<compile_context>
chip_gen: v7x
topology: tpu7x:2x2x1
jax: 0.10.0
libtpu: 0.0.40
codegen_flags: <defaults>
</compile_context>

<pallas_src>
import jax
import jax.numpy as jnp
from jax import lax
from jax.experimental import pallas as pl
from jax.experimental.pallas import tpu as pltpu

D_MODEL = 64
HEADS = 8
D_K = D_MODEL // HEADS
D_FF = 4 * D_MODEL
SCALE = float(D_K) ** -0.5
LN_EPS = 1e-5

# rows of the packed bias / LayerNorm stack (each is (1, D_MODEL))
_B_ROWS = ("bo_b", "b2_b", "g11", "be11", "g12", "be12")


def _layer_norm(x, gamma, beta):
    mu = jnp.mean(x, axis=-1, keepdims=True)
    var = jnp.mean((x - mu) ** 2, axis=-1, keepdims=True)
    return (x - mu) * lax.rsqrt(var + LN_EPS) * gamma + beta


def _softmax_lastdim(dots):
    dots = dots - jnp.max(dots, axis=-1, keepdims=True)
    e = jnp.exp(dots)
    return e * pl.reciprocal(jnp.sum(e, axis=-1, keepdims=True), approx=True)


def _bcab_kernel(basis_ref, series_ref, wbas_ref, wser_ref, wo_ref, w1_ref,
                 w2_ref, bbas_ref, bser_ref, bstack_ref, b1_ref,
                 basis_out_ref, basis_attn_ref, series_attn_ref):
    f32 = jnp.float32
    Bt, Lb, d = basis_ref.shape
    Ls = series_ref.shape[1]

    basis = basis_ref[...]                       # (Bt, Lb, d)
    series = series_ref[...]                     # (Bt, Ls, d)
    bas2 = basis.reshape(Bt * Lb, d)             # rows folded for the MXU
    ser2 = series.reshape(Bt * Ls, d)

    bst = bstack_ref[...]                        # (6, d): bo_b,b2_b,g11,be11,g12,be12

    def mm(x, w):
        return jnp.dot(x, w, preferred_element_type=f32)

    # --------- fused input projections (softmax scale pre-folded on host) ---
    # W_bas = [Wq_b | Wk_t]  -> one wide matmul per input stream
    # W_ser = [Wk_b | Wv_b | Wq_t]
    proj_b = mm(bas2, wbas_ref[...]) + bbas_ref[...]      # (Bt*Lb, 2d)
    proj_s = mm(ser2, wser_ref[...]) + bser_ref[...]      # (Bt*Ls, 3d)

    q = proj_b[:, 0:d].reshape(Bt, Lb, d)
    kt = proj_b[:, d:2 * d].reshape(Bt, Lb, d)
    k = proj_s[:, 0:d].reshape(Bt, Ls, d)
    v = proj_s[:, d:2 * d].reshape(Bt, Ls, d)
    qt = proj_s[:, 2 * d:3 * d].reshape(Bt, Ls, d)

    # ---------------- cross_attention_basis(basis, series, series) ---------
    attn_heads, ctx_heads = [], []
    for h in range(HEADS):                       # static unroll; batched over Bt
        sl = slice(h * D_K, (h + 1) * D_K)
        dots = jnp.einsum('bld,bsd->bls', q[:, :, sl], k[:, :, sl],
                          preferred_element_type=f32)
        attn = _softmax_lastdim(dots)            # (Bt, Lb, Ls)
        attn_heads.append(attn)
        ctx_heads.append(jnp.einsum('bls,bsd->bld', attn, v[:, :, sl],
                                    preferred_element_type=f32))
    # one lane-dense store of all heads' attention (last dim H*Ls = 128)
    basis_attn_ref[...] = jnp.concatenate(attn_heads, axis=-1)
    ctx = jnp.concatenate(ctx_heads, axis=-1).reshape(Bt * Lb, d)
    basis_add = mm(ctx, wo_ref[...]) + bst[0:1]            # concat(heads) @ Wo + bo

    x = _layer_norm(bas2 + basis_add, bst[2:3], bst[3:4])          # layer_norm11
    y = jnp.maximum(mm(x, w1_ref[...]) + b1_ref[...], 0.0)         # conv1 + relu
    y = mm(y, w2_ref[...]) + bst[1:2]                              # conv2
    basis_out_ref[...] = _layer_norm(x + y, bst[4:5],              # layer_norm12
                                     bst[5:6]).reshape(Bt, Lb, d)

    # ---------------- cross_attention_ts(series, basis, basis) -------------
    # Only the attention map reaches the returned outputs (see header note).
    attn_t = []
    for h in range(HEADS):
        sl = slice(h * D_K, (h + 1) * D_K)
        dots = jnp.einsum('bsd,bld->bsl', qt[:, :, sl], kt[:, :, sl],
                          preferred_element_type=f32)
        attn_t.append(_softmax_lastdim(dots))    # (Bt, Ls, Lb)
    series_attn_ref[...] = jnp.concatenate(attn_t, axis=-1)        # (Bt, Ls, H*Lb)


def bcab_forward(basis, series, params, *, block_b=None):
    B, Lb, d = basis.shape
    Ls = series.shape[1]
    assert d == D_MODEL
    Bt = block_b if block_b is not None else min(B, 8)
    assert B % Bt == 0, (B, Bt)

    # ---- pack parameters (fused projection weights, scale folded into q) ----
    wbas = jnp.concatenate([params["wq_b"] * SCALE, params["wk_t"]], axis=1)   # (d, 2d)
    bbas = jnp.concatenate([params["bq_b"] * SCALE, params["bk_t"]], axis=1)   # (1, 2d)
    wser = jnp.concatenate([params["wk_b"], params["wv_b"],
                            params["wq_t"] * SCALE], axis=1)                   # (d, 3d)
    bser = jnp.concatenate([params["bk_b"], params["bv_b"],
                            params["bq_t"] * SCALE], axis=1)                   # (1, 3d)
    bstack = jnp.concatenate([params[n] for n in _B_ROWS], axis=0)             # (6, d)
    wo, w1, w2, b1 = params["wo_b"], params["w1_b"], params["w2_b"], params["b1_b"]

    def blocked(shape):
        blk = (Bt,) + tuple(shape[1:])
        nd = len(shape)
        return pl.BlockSpec(blk, lambda i, _n=nd: (i,) + (0,) * (_n - 1))

    def full(arr):
        nd = arr.ndim
        return pl.BlockSpec(arr.shape, lambda i, _n=nd: (0,) * _n)

    in_specs = [blocked(basis.shape), blocked(series.shape),
                full(wbas), full(wser), full(wo), full(w1), full(w2),
                full(bbas), full(bser), full(bstack), full(b1)]

    out_shape = (
        jax.ShapeDtypeStruct((B, Lb, d), jnp.float32),
        jax.ShapeDtypeStruct((B, Lb, HEADS * Ls), jnp.float32),   # lane-dense
        jax.ShapeDtypeStruct((B, Ls, HEADS * Lb), jnp.float32),
    )
    out_specs = (blocked((B, Lb, d)),
                 blocked((B, Lb, HEADS * Ls)),
                 blocked((B, Ls, HEADS * Lb)))

    # advisory cost estimate (helps XLA overlap/schedule the custom call)
    flops = B * (2 * Lb * d * (2 * d)            # fused basis projection
                 + 2 * Ls * d * (3 * d)          # fused series projection
                 + 2 * Lb * d * d                # out projection
                 + 2 * Lb * (d * D_FF + D_FF * d)  # FFN
                 + HEADS * 6 * Lb * Ls * D_K)    # attention dots + context
    transcendentals = 2 * B * HEADS * Lb * Ls
    bytes_accessed = 4 * (basis.size + series.size + wbas.size + wser.size
                          + wo.size + w1.size + w2.size + bbas.size + bser.size
                          + bstack.size + b1.size
                          + B * Lb * d + B * Lb * HEADS * Ls + B * Ls * HEADS * Lb)

    fn = pl.pallas_call(
        _bcab_kernel,
        grid=(B // Bt,),
        in_specs=in_specs,
        out_specs=out_specs,
        out_shape=out_shape,
        compiler_params=pltpu.CompilerParams(
            dimension_semantics=("parallel",)),       # batch axis -> v7x megacore
        cost_estimate=pl.CostEstimate(flops=flops,
                                      transcendentals=transcendentals,
                                      bytes_accessed=bytes_accessed),
    )
    basis_out, basis_attn_flat, series_attn_flat = fn(
        basis, series, wbas, wser, wo, w1, w2, bbas, bser, bstack, b1)

    # un-flatten lane-dense attention maps back to (B, H, Lq, Lk)
    basis_attn = basis_attn_flat.reshape(B, Lb, HEADS, Ls).transpose(0, 2, 1, 3)
    series_attn = series_attn_flat.reshape(B, Ls, HEADS, Lb).transpose(0, 2, 1, 3)

    # series_out = layer_norm22(series_raw): depends only on the raw input, so
    # it is hoisted out of the kernel into plain JAX.
    series_out = _layer_norm(series, params["g22"][0], params["be22"][0])
    return basis_out, series_out, basis_attn, series_attn


def init_params(key):
    keys = jax.random.split(key, 8)

    def lin(k, din, dout, scale=0.05):
        kw, kb = jax.random.split(k)
        w = jax.random.normal(kw, (din, dout), jnp.float32) * scale
        b = jax.random.normal(kb, (1, dout), jnp.float32) * scale
        return w, b

    p = {}
    p["wq_b"], p["bq_b"] = lin(keys[0], D_MODEL, D_MODEL)
    p["wk_b"], p["bk_b"] = lin(keys[1], D_MODEL, D_MODEL)
    p["wv_b"], p["bv_b"] = lin(keys[2], D_MODEL, D_MODEL)
    p["wo_b"], p["bo_b"] = lin(keys[3], D_MODEL, D_MODEL)
    p["w1_b"], p["b1_b"] = lin(keys[4], D_MODEL, D_FF)
    p["w2_b"], p["b2_b"] = lin(keys[5], D_FF, D_MODEL)
    p["g11"] = jnp.ones((1, D_MODEL), jnp.float32)
    p["be11"] = jnp.zeros((1, D_MODEL), jnp.float32)
    p["g12"] = jnp.ones((1, D_MODEL), jnp.float32)
    p["be12"] = jnp.zeros((1, D_MODEL), jnp.float32)
    p["wq_t"], p["bq_t"] = lin(keys[6], D_MODEL, D_MODEL)
    p["wk_t"], p["bk_t"] = lin(keys[7], D_MODEL, D_MODEL)
    p["g22"] = jnp.ones((1, D_MODEL), jnp.float32)
    p["be22"] = jnp.zeros((1, D_MODEL), jnp.float32)
    return p


def reference(basis, series, p):
    """Pure-JAX mirror of the PyTorch forward (eval mode)."""
    def ln(x, g, b):
        mu = jnp.mean(x, -1, keepdims=True)
        var = jnp.mean((x - mu) ** 2, -1, keepdims=True)
        return (x - mu) / jnp.sqrt(var + LN_EPS) * g[0] + b[0]

    B, Lb, _ = basis.shape
    Ls = series.shape[1]

    # basis attends to series
    q = (basis @ p["wq_b"] + p["bq_b"][0]).reshape(B, Lb, HEADS, D_K).transpose(0, 2, 1, 3)
    k = (series @ p["wk_b"] + p["bk_b"][0]).reshape(B, Ls, HEADS, D_K).transpose(0, 2, 1, 3)
    v = (series @ p["wv_b"] + p["bv_b"][0]).reshape(B, Ls, HEADS, D_K).transpose(0, 2, 1, 3)
    basis_attn = jax.nn.softmax(jnp.einsum("bhld,bhsd->bhls", q, k) * SCALE, axis=-1)
    out = jnp.einsum("bhls,bhsd->bhld", basis_attn, v).transpose(0, 2, 1, 3).reshape(B, Lb, D_MODEL)
    basis_add = out @ p["wo_b"] + p["bo_b"][0]
    basis_out = ln(basis + basis_add, p["g11"], p["be11"])
    y = jnp.maximum(basis_out @ p["w1_b"] + p["b1_b"][0], 0.0)
    y = y @ p["w2_b"] + p["b2_b"][0]
    basis_out = ln(basis_out + y, p["g12"], p["be12"])

    # series attends to basis (only attn + layer_norm22(series_raw) survive)
    qt = (series @ p["wq_t"] + p["bq_t"][0]).reshape(B, Ls, HEADS, D_K).transpose(0, 2, 1, 3)
    kt = (basis @ p["wk_t"] + p["bk_t"][0]).reshape(B, Lb, HEADS, D_K).transpose(0, 2, 1, 3)
    series_attn = jax.nn.softmax(jnp.einsum("bhsd,bhld->bhsl", qt, kt) * SCALE, axis=-1)
    series_out = ln(series, p["g22"], p["be22"])
    return basis_out, series_out, basis_attn, series_attn


if __name__ == "__main__":
    key = jax.random.PRNGKey(0)
    kb, ks, kp = jax.random.split(key, 3)
    B, Lb, Ls = 8, 8, 16
    basis = jax.random.normal(kb, (B, Lb, D_MODEL), jnp.float32)
    series = jax.random.normal(ks, (B, Ls, D_MODEL), jnp.float32)
    params = init_params(kp)

    outs = jax.block_until_ready(bcab_forward(basis, series, params, block_b=4))
    refs = jax.block_until_ready(reference(basis, series, params))
    names = ["basis_out", "series_out", "basis_attn", "series_attn"]
    for name, o, r in zip(names, outs, refs):
        assert o.shape == r.shape, (name, o.shape, r.shape)
        err = float(jnp.abs(o - r).max())
        # tolerance covers the approx-reciprocal softmax denominator
        assert jnp.allclose(o, r, atol=2e-3, rtol=2e-3), (name, err)
    print("KERNEL_OK")
</pallas_src>

<mosaic_0001>
module attributes {stable_mosaic.version = 11 : i64} {
  func.func @_bcab_kernel(%arg0: i32, %arg1: memref<4x8x64xf32, #tpu.memory_space<vmem>>, %arg2: memref<4x16x64xf32, #tpu.memory_space<vmem>>, %arg3: memref<64x128xf32, #tpu.memory_space<vmem>>, %arg4: memref<64x192xf32, #tpu.memory_space<vmem>>, %arg5: memref<64x64xf32, #tpu.memory_space<vmem>>, %arg6: memref<64x256xf32, #tpu.memory_space<vmem>>, %arg7: memref<256x64xf32, #tpu.memory_space<vmem>>, %arg8: memref<1x128xf32, #tpu.memory_space<vmem>>, %arg9: memref<1x192xf32, #tpu.memory_space<vmem>>, %arg10: memref<6x64xf32, #tpu.memory_space<vmem>>, %arg11: memref<1x256xf32, #tpu.memory_space<vmem>>, %arg12: memref<4x8x64xf32, #tpu.memory_space<vmem>>, %arg13: memref<4x8x128xf32, #tpu.memory_space<vmem>>, %arg14: memref<4x16x64xf32, #tpu.memory_space<vmem>>) attributes {dimension_semantics = [#tpu.dimension_semantics<parallel>], iteration_bounds = array<i64: 2>, scalar_prefetch = 0 : i64, scratch_operands = 0 : i64, tpu.core_type = #tpu.core_type<tc>, window_params = [{transform_indices = @transform_0, window_bounds = array<i64: 4, 8, 64>}, {transform_indices = @transform_1, window_bounds = array<i64: 4, 16, 64>}, {pipeline_mode = #tpu.pipeline_mode<synchronous>, transform_indices = @transform_2, window_bounds = array<i64: 64, 128>}, {pipeline_mode = #tpu.pipeline_mode<synchronous>, transform_indices = @transform_3, window_bounds = array<i64: 64, 192>}, {pipeline_mode = #tpu.pipeline_mode<synchronous>, transform_indices = @transform_4, window_bounds = array<i64: 64, 64>}, {pipeline_mode = #tpu.pipeline_mode<synchronous>, transform_indices = @transform_5, window_bounds = array<i64: 64, 256>}, {pipeline_mode = #tpu.pipeline_mode<synchronous>, transform_indices = @transform_6, window_bounds = array<i64: 256, 64>}, {pipeline_mode = #tpu.pipeline_mode<synchronous>, transform_indices = @transform_7, window_bounds = array<i64: 1, 128>}, {pipeline_mode = #tpu.pipeline_mode<synchronous>, transform_indices = @transform_8, window_bounds = array<i64: 1, 192>}, {pipeline_mode = #tpu.pipeline_mode<synchronous>, transform_indices = @transform_9, window_bounds = array<i64: 6, 64>}, {pipeline_mode = #tpu.pipeline_mode<synchronous>, transform_indices = @transform_10, window_bounds = array<i64: 1, 256>}, {transform_indices = @transform_11, window_bounds = array<i64: 4, 8, 64>}, {transform_indices = @transform_12, window_bounds = array<i64: 4, 8, 128>}, {transform_indices = @transform_13, window_bounds = array<i64: 4, 16, 64>}]} {
    %c0 = arith.constant 0 : index
    %c0_0 = arith.constant 0 : index
    %c0_1 = arith.constant 0 : index
    %0 = vector.load %arg1[%c0, %c0_0, %c0_1] : memref<4x8x64xf32, #tpu.memory_space<vmem>>, vector<4x8x64xf32>
    %c0_2 = arith.constant 0 : index
    %c0_3 = arith.constant 0 : index
    %c0_4 = arith.constant 0 : index
    %1 = vector.load %arg2[%c0_2, %c0_3, %c0_4] : memref<4x16x64xf32, #tpu.memory_space<vmem>>, vector<4x16x64xf32>
    %2 = vector.shape_cast %0 : vector<4x8x64xf32> to vector<32x64xf32>
    %3 = vector.shape_cast %1 : vector<4x16x64xf32> to vector<64x64xf32>
    %c0_5 = arith.constant 0 : index
    %c0_6 = arith.constant 0 : index
    %4 = vector.load %arg10[%c0_5, %c0_6] : memref<6x64xf32, #tpu.memory_space<vmem>>, vector<6x64xf32>
    %c0_7 = arith.constant 0 : index
    %c0_8 = arith.constant 0 : index
    %5 = vector.load %arg3[%c0_7, %c0_8] : memref<64x128xf32, #tpu.memory_space<vmem>>, vector<64x128xf32>
    %cst = arith.constant dense<0.000000e+00> : vector<32x128xf32>
    %6 = tpu.matmul %2, %5, %cst {dimension_numbers = #tpu.dot_dimension_numbers<[1], [0], [0], [1], [0, 0, 1, 1], [], []>} : vector<32x64xf32>, vector<64x128xf32>, vector<32x128xf32> -> vector<32x128xf32>
    %c0_9 = arith.constant 0 : index
    %c0_10 = arith.constant 0 : index
    %7 = vector.load %arg8[%c0_9, %c0_10] : memref<1x128xf32, #tpu.memory_space<vmem>>, vector<1x128xf32>
    %8 = vector.broadcast %7 : vector<1x128xf32> to vector<32x128xf32>
    %9 = arith.addf %6, %8 : vector<32x128xf32>
    %c0_11 = arith.constant 0 : index
    %c0_12 = arith.constant 0 : index
    %10 = vector.load %arg4[%c0_11, %c0_12] : memref<64x192xf32, #tpu.memory_space<vmem>>, vector<64x192xf32>
    %cst_13 = arith.constant dense<0.000000e+00> : vector<64x192xf32>
    %11 = tpu.matmul %3, %10, %cst_13 {dimension_numbers = #tpu.dot_dimension_numbers<[1], [0], [0], [1], [0, 0, 1, 1], [], []>} : vector<64x64xf32>, vector<64x192xf32>, vector<64x192xf32> -> vector<64x192xf32>
    %c0_14 = arith.constant 0 : index
    %c0_15 = arith.constant 0 : index
    %12 = vector.load %arg9[%c0_14, %c0_15] : memref<1x192xf32, #tpu.memory_space<vmem>>, vector<1x192xf32>
    %13 = vector.broadcast %12 : vector<1x192xf32> to vector<64x192xf32>
    %14 = arith.addf %11, %13 : vector<64x192xf32>
    %15 = vector.extract_strided_slice %9 {offsets = [0, 0], sizes = [32, 64], strides = [1, 1]} : vector<32x128xf32> to vector<32x64xf32>
    %16 = vector.shape_cast %15 : vector<32x64xf32> to vector<4x8x64xf32>
    %17 = vector.extract_strided_slice %9 {offsets = [0, 64], sizes = [32, 64], strides = [1, 1]} : vector<32x128xf32> to vector<32x64xf32>
    %18 = vector.shape_cast %17 : vector<32x64xf32> to vector<4x8x64xf32>
    %19 = vector.extract_strided_slice %14 {offsets = [0, 0], sizes = [64, 64], strides = [1, 1]} : vector<64x192xf32> to vector<64x64xf32>
    %20 = vector.shape_cast %19 : vector<64x64xf32> to vector<4x16x64xf32>
    %21 = vector.extract_strided_slice %14 {offsets = [0, 64], sizes = [64, 64], strides = [1, 1]} : vector<64x192xf32> to vector<64x64xf32>
    %22 = vector.shape_cast %21 : vector<64x64xf32> to vector<4x16x64xf32>
    %23 = vector.extract_strided_slice %14 {offsets = [0, 128], sizes = [64, 64], strides = [1, 1]} : vector<64x192xf32> to vector<64x64xf32>
    %24 = vector.shape_cast %23 : vector<64x64xf32> to vector<4x16x64xf32>
    %25 = vector.extract_strided_slice %16 {offsets = [0, 0, 0], sizes = [4, 8, 8], strides = [1, 1, 1]} : vector<4x8x64xf32> to vector<4x8x8xf32>
    %26 = vector.extract_strided_slice %20 {offsets = [0, 0, 0], sizes = [4, 16, 8], strides = [1, 1, 1]} : vector<4x16x64xf32> to vector<4x16x8xf32>
    "tpu.trace_start"() <{level = 10 : i32, message = "bld,bsd->bls"}> : () -> ()
    %cst_16 = arith.constant dense<0.000000e+00> : vector<4x8x16xf32>
    %27 = tpu.matmul %25, %26, %cst_16 {dimension_numbers = #tpu.dot_dimension_numbers<[2], [2], [1], [1], [0, 0, 0, 1, 1, 1], [0], [0]>} : vector<4x8x8xf32>, vector<4x16x8xf32>, vector<4x8x16xf32> -> vector<4x8x16xf32>
    "tpu.trace_stop"() : () -> ()
    %cst_17 = arith.constant dense<0xFF800000> : vector<4x8xf32>
    %28 = vector.multi_reduction <maximumf>, %27, %cst_17 [2] : vector<4x8x16xf32> to vector<4x8xf32>
    %29 = vector.shape_cast %28 : vector<4x8xf32> to vector<4x8x1xf32>
    %30 = vector.broadcast %29 : vector<4x8x1xf32> to vector<4x8x16xf32>
    %31 = arith.subf %27, %30 : vector<4x8x16xf32>
    %32 = math.exp %31 : vector<4x8x16xf32>
    %cst_18 = arith.constant dense<0.000000e+00> : vector<4x8xf32>
    %33 = vector.multi_reduction <add>, %32, %cst_18 [2] : vector<4x8x16xf32> to vector<4x8xf32>
    %34 = vector.shape_cast %33 : vector<4x8xf32> to vector<4x8x1xf32>
    %35 = tpu.reciprocal %34 {approx = true} : vector<4x8x1xf32> -> vector<4x8x1xf32>
    %36 = vector.broadcast %35 : vector<4x8x1xf32> to vector<4x8x16xf32>
    %37 = arith.mulf %32, %36 : vector<4x8x16xf32>
    %38 = vector.extract_strided_slice %22 {offsets = [0, 0, 0], sizes = [4, 16, 8], strides = [1, 1, 1]} : vector<4x16x64xf32> to vector<4x16x8xf32>
    "tpu.trace_start"() <{level = 10 : i32, message = "bls,bsd->bld"}> : () -> ()
    %cst_19 = arith.constant dense<0.000000e+00> : vector<4x8x8xf32>
    %39 = tpu.matmul %37, %38, %cst_19 {dimension_numbers = #tpu.dot_dimension_numbers<[2], [1], [1], [2], [0, 0, 0, 1, 1, 2], [0], [0]>} : vector<4x8x16xf32>, vector<4x16x8xf32>, vector<4x8x8xf32> -> vector<4x8x8xf32>
    "tpu.trace_stop"() : () -> ()
    %40 = vector.extract_strided_slice %16 {offsets = [0, 0, 8], sizes = [4, 8, 8], strides = [1, 1, 1]} : vector<4x8x64xf32> to vector<4x8x8xf32>
    %41 = vector.extract_strided_slice %20 {offsets = [0, 0, 8], sizes = [4, 16, 8], strides = [1, 1, 1]} : vector<4x16x64xf32> to vector<4x16x8xf32>
    "tpu.trace_start"() <{level = 10 : i32, message = "bld,bsd->bls"}> : () -> ()
    %cst_20 = arith.constant dense<0.000000e+00> : vector<4x8x16xf32>
    %42 = tpu.matmul %40, %41, %cst_20 {dimension_numbers = #tpu.dot_dimension_numbers<[2], [2], [1], [1], [0, 0, 0, 1, 1, 1], [0], [0]>} : vector<4x8x8xf32>, vector<4x16x8xf32>, vector<4x8x16xf32> -> vector<4x8x16xf32>
    "tpu.trace_stop"() : () -> ()
    %cst_21 = arith.constant dense<0xFF800000> : vector<4x8xf32>
    %43 = vector.multi_reduction <maximumf>, %42, %cst_21 [2] : vector<4x8x16xf32> to vector<4x8xf32>
    %44 = vector.shape_cast %43 : vector<4x8xf32> to vector<4x8x1xf32>
    %45 = vector.broadcast %44 : vector<4x8x1xf32> to vector<4x8x16xf32>
    %46 = arith.subf %42, %45 : vector<4x8x16xf32>
    %47 = math.exp %46 : vector<4x8x16xf32>
    %cst_22 = arith.constant dense<0.000000e+00> : vector<4x8xf32>
    %48 = vector.multi_reduction <add>, %47, %cst_22 [2] : vector<4x8x16xf32> to vector<4x8xf32>
    %49 = vector.shape_cast %48 : vector<4x8xf32> to vector<4x8x1xf32>
    %50 = tpu.reciprocal %49 {approx = true} : vector<4x8x1xf32> -> vector<4x8x1xf32>
    %51 = vector.broadcast %50 : vector<4x8x1xf32> to vector<4x8x16xf32>
    %52 = arith.mulf %47, %51 : vector<4x8x16xf32>
    %53 = vector.extract_strided_slice %22 {offsets = [0, 0, 8], sizes = [4, 16, 8], strides = [1, 1, 1]} : vector<4x16x64xf32> to vector<4x16x8xf32>
    "tpu.trace_start"() <{level = 10 : i32, message = "bls,bsd->bld"}> : () -> ()
    %cst_23 = arith.constant dense<0.000000e+00> : vector<4x8x8xf32>
    %54 = tpu.matmul %52, %53, %cst_23 {dimension_numbers = #tpu.dot_dimension_numbers<[2], [1], [1], [2], [0, 0, 0, 1, 1, 2], [0], [0]>} : vector<4x8x16xf32>, vector<4x16x8xf32>, vector<4x8x8xf32> -> vector<4x8x8xf32>
    "tpu.trace_stop"() : () -> ()
    %55 = vector.extract_strided_slice %16 {offsets = [0, 0, 16], sizes = [4, 8, 8], strides = [1, 1, 1]} : vector<4x8x64xf32> to vector<4x8x8xf32>
    %56 = vector.extract_strided_slice %20 {offsets = [0, 0, 16], sizes = [4, 16, 8], strides = [1, 1, 1]} : vector<4x16x64xf32> to vector<4x16x8xf32>
    "tpu.trace_start"() <{level = 10 : i32, message = "bld,bsd->bls"}> : () -> ()
    %cst_24 = arith.constant dense<0.000000e+00> : vector<4x8x16xf32>
    %57 = tpu.matmul %55, %56, %cst_24 {dimension_numbers = #tpu.dot_dimension_numbers<[2], [2], [1], [1], [0, 0, 0, 1, 1, 1], [0], [0]>} : vector<4x8x8xf32>, vector<4x16x8xf32>, vector<4x8x16xf32> -> vector<4x8x16xf32>
    "tpu.trace_stop"() : () -> ()
    %cst_25 = arith.constant dense<0xFF800000> : vector<4x8xf32>
    %58 = vector.multi_reduction <maximumf>, %57, %cst_25 [2] : vector<4x8x16xf32> to vector<4x8xf32>
    %59 = vector.shape_cast %58 : vector<4x8xf32> to vector<4x8x1xf32>
    %60 = vector.broadcast %59 : vector<4x8x1xf32> to vector<4x8x16xf32>
    %61 = arith.subf %57, %60 : vector<4x8x16xf32>
    %62 = math.exp %61 : vector<4x8x16xf32>
    %cst_26 = arith.constant dense<0.000000e+00> : vector<4x8xf32>
    %63 = vector.multi_reduction <add>, %62, %cst_26 [2] : vector<4x8x16xf32> to vector<4x8xf32>
    %64 = vector.shape_cast %63 : vector<4x8xf32> to vector<4x8x1xf32>
    %65 = tpu.reciprocal %64 {approx = true} : vector<4x8x1xf32> -> vector<4x8x1xf32>
    %66 = vector.broadcast %65 : vector<4x8x1xf32> to vector<4x8x16xf32>
    %67 = arith.mulf %62, %66 : vector<4x8x16xf32>
    %68 = vector.extract_strided_slice %22 {offsets = [0, 0, 16], sizes = [4, 16, 8], strides = [1, 1, 1]} : vector<4x16x64xf32> to vector<4x16x8xf32>
    "tpu.trace_start"() <{level = 10 : i32, message = "bls,bsd->bld"}> : () -> ()
    %cst_27 = arith.constant dense<0.000000e+00> : vector<4x8x8xf32>
    %69 = tpu.matmul %67, %68, %cst_27 {dimension_numbers = #tpu.dot_dimension_numbers<[2], [1], [1], [2], [0, 0, 0, 1, 1, 2], [0], [0]>} : vector<4x8x16xf32>, vector<4x16x8xf32>, vector<4x8x8xf32> -> vector<4x8x8xf32>
    "tpu.trace_stop"() : () -> ()
    %70 = vector.extract_strided_slice %16 {offsets = [0, 0, 24], sizes = [4, 8, 8], strides = [1, 1, 1]} : vector<4x8x64xf32> to vector<4x8x8xf32>
    %71 = vector.extract_strided_slice %20 {offsets = [0, 0, 24], sizes = [4, 16, 8], strides = [1, 1, 1]} : vector<4x16x64xf32> to vector<4x16x8xf32>
    "tpu.trace_start"() <{level = 10 : i32, message = "bld,bsd->bls"}> : () -> ()
    %cst_28 = arith.constant dense<0.000000e+00> : vector<4x8x16xf32>
    %72 = tpu.matmul %70, %71, %cst_28 {dimension_numbers = #tpu.dot_dimension_numbers<[2], [2], [1], [1], [0, 0, 0, 1, 1, 1], [0], [0]>} : vector<4x8x8xf32>, vector<4x16x8xf32>, vector<4x8x16xf32> -> vector<4x8x16xf32>
    "tpu.trace_stop"() : () -> ()
    %cst_29 = arith.constant dense<0xFF800000> : vector<4x8xf32>
    %73 = vector.multi_reduction <maximumf>, %72, %cst_29 [2] : vector<4x8x16xf32> to vector<4x8xf32>
    %74 = vector.shape_cast %73 : vector<4x8xf32> to vector<4x8x1xf32>
    %75 = vector.broadcast %74 : vector<4x8x1xf32> to vector<4x8x16xf32>
    %76 = arith.subf %72, %75 : vector<4x8x16xf32>
    %77 = math.exp %76 : vector<4x8x16xf32>
    %cst_30 = arith.constant dense<0.000000e+00> : vector<4x8xf32>
    %78 = vector.multi_reduction <add>, %77, %cst_30 [2] : vector<4x8x16xf32> to vector<4x8xf32>
    %79 = vector.shape_cast %78 : vector<4x8xf32> to vector<4x8x1xf32>
    %80 = tpu.reciprocal %79 {approx = true} : vector<4x8x1xf32> -> vector<4x8x1xf32>
    %81 = vector.broadcast %80 : vector<4x8x1xf32> to vector<4x8x16xf32>
    %82 = arith.mulf %77, %81 : vector<4x8x16xf32>
    %83 = vector.extract_strided_slice %22 {offsets = [0, 0, 24], sizes = [4, 16, 8], strides = [1, 1, 1]} : vector<4x16x64xf32> to vector<4x16x8xf32>
    "tpu.trace_start"() <{level = 10 : i32, message = "bls,bsd->bld"}> : () -> ()
    %cst_31 = arith.constant dense<0.000000e+00> : vector<4x8x8xf32>
    %84 = tpu.matmul %82, %83, %cst_31 {dimension_numbers = #tpu.dot_dimension_numbers<[2], [1], [1], [2], [0, 0, 0, 1, 1, 2], [0], [0]>} : vector<4x8x16xf32>, vector<4x16x8xf32>, vector<4x8x8xf32> -> vector<4x8x8xf32>
    "tpu.trace_stop"() : () -> ()
    %85 = vector.extract_strided_slice %16 {offsets = [0, 0, 32], sizes = [4, 8, 8], strides = [1, 1, 1]} : vector<4x8x64xf32> to vector<4x8x8xf32>
    %86 = vector.extract_strided_slice %20 {offsets = [0, 0, 32], sizes = [4, 16, 8], strides = [1, 1, 1]} : vector<4x16x64xf32> to vector<4x16x8xf32>
    "tpu.trace_start"() <{level = 10 : i32, message = "bld,bsd->bls"}> : () -> ()
    %cst_32 = arith.constant dense<0.000000e+00> : vector<4x8x16xf32>
    %87 = tpu.matmul %85, %86, %cst_32 {dimension_numbers = #tpu.dot_dimension_numbers<[2], [2], [1], [1], [0, 0, 0, 1, 1, 1], [0], [0]>} : vector<4x8x8xf32>, vector<4x16x8xf32>, vector<4x8x16xf32> -> vector<4x8x16xf32>
    "tpu.trace_stop"() : () -> ()
    %cst_33 = arith.constant dense<0xFF800000> : vector<4x8xf32>
    %88 = vector.multi_reduction <maximumf>, %87, %cst_33 [2] : vector<4x8x16xf32> to vector<4x8xf32>
    %89 = vector.shape_cast %88 : vector<4x8xf32> to vector<4x8x1xf32>
    %90 = vector.broadcast %89 : vector<4x8x1xf32> to vector<4x8x16xf32>
    %91 = arith.subf %87, %90 : vector<4x8x16xf32>
    %92 = math.exp %91 : vector<4x8x16xf32>
    %cst_34 = arith.constant dense<0.000000e+00> : vector<4x8xf32>
    %93 = vector.multi_reduction <add>, %92, %cst_34 [2] : vector<4x8x16xf32> to vector<4x8xf32>
    %94 = vector.shape_cast %93 : vector<4x8xf32> to vector<4x8x1xf32>
    %95 = tpu.reciprocal %94 {approx = true} : vector<4x8x1xf32> -> vector<4x8x1xf32>
    %96 = vector.broadcast %95 : vector<4x8x1xf32> to vector<4x8x16xf32>
    %97 = arith.mulf %92, %96 : vector<4x8x16xf32>
    %98 = vector.extract_strided_slice %22 {offsets = [0, 0, 32], sizes = [4, 16, 8], strides = [1, 1, 1]} : vector<4x16x64xf32> to vector<4x16x8xf32>
    "tpu.trace_start"() <{level = 10 : i32, message = "bls,bsd->bld"}> : () -> ()
    %cst_35 = arith.constant dense<0.000000e+00> : vector<4x8x8xf32>
    %99 = tpu.matmul %97, %98, %cst_35 {dimension_numbers = #tpu.dot_dimension_numbers<[2], [1], [1], [2], [0, 0, 0, 1, 1, 2], [0], [0]>} : vector<4x8x16xf32>, vector<4x16x8xf32>, vector<4x8x8xf32> -> vector<4x8x8xf32>
    "tpu.trace_stop"() : () -> ()
    %100 = vector.extract_strided_slice %16 {offsets = [0, 0, 40], sizes = [4, 8, 8], strides = [1, 1, 1]} : vector<4x8x64xf32> to vector<4x8x8xf32>
    %101 = vector.extract_strided_slice %20 {offsets = [0, 0, 40], sizes = [4, 16, 8], strides = [1, 1, 1]} : vector<4x16x64xf32> to vector<4x16x8xf32>
    "tpu.trace_start"() <{level = 10 : i32, message = "bld,bsd->bls"}> : () -> ()
    %cst_36 = arith.constant dense<0.000000e+00> : vector<4x8x16xf32>
    %102 = tpu.matmul %100, %101, %cst_36 {dimension_numbers = #tpu.dot_dimension_numbers<[2], [2], [1], [1], [0, 0, 0, 1, 1, 1], [0], [0]>} : vector<4x8x8xf32>, vector<4x16x8xf32>, vector<4x8x16xf32> -> vector<4x8x16xf32>
    "tpu.trace_stop"() : () -> ()
    %cst_37 = arith.constant dense<0xFF800000> : vector<4x8xf32>
    %103 = vector.multi_reduction <maximumf>, %102, %cst_37 [2] : vector<4x8x16xf32> to vector<4x8xf32>
    %104 = vector.shape_cast %103 : vector<4x8xf32> to vector<4x8x1xf32>
    %105 = vector.broadcast %104 : vector<4x8x1xf32> to vector<4x8x16xf32>
    %106 = arith.subf %102, %105 : vector<4x8x16xf32>
    %107 = math.exp %106 : vector<4x8x16xf32>
    %cst_38 = arith.constant dense<0.000000e+00> : vector<4x8xf32>
    %108 = vector.multi_reduction <add>, %107, %cst_38 [2] : vector<4x8x16xf32> to vector<4x8xf32>
    %109 = vector.shape_cast %108 : vector<4x8xf32> to vector<4x8x1xf32>
    %110 = tpu.reciprocal %109 {approx = true} : vector<4x8x1xf32> -> vector<4x8x1xf32>
    %111 = vector.broadcast %110 : vector<4x8x1xf32> to vector<4x8x16xf32>
    %112 = arith.mulf %107, %111 : vector<4x8x16xf32>
    %113 = vector.extract_strided_slice %22 {offsets = [0, 0, 40], sizes = [4, 16, 8], strides = [1, 1, 1]} : vector<4x16x64xf32> to vector<4x16x8xf32>
    "tpu.trace_start"() <{level = 10 : i32, message = "bls,bsd->bld"}> : () -> ()
    %cst_39 = arith.constant dense<0.000000e+00> : vector<4x8x8xf32>
    %114 = tpu.matmul %112, %113, %cst_39 {dimension_numbers = #tpu.dot_dimension_numbers<[2], [1], [1], [2], [0, 0, 0, 1, 1, 2], [0], [0]>} : vector<4x8x16xf32>, vector<4x16x8xf32>, vector<4x8x8xf32> -> vector<4x8x8xf32>
    "tpu.trace_stop"() : () -> ()
    %115 = vector.extract_strided_slice %16 {offsets = [0, 0, 48], sizes = [4, 8, 8], strides = [1, 1, 1]} : vector<4x8x64xf32> to vector<4x8x8xf32>
    %116 = vector.extract_strided_slice %20 {offsets = [0, 0, 48], sizes = [4, 16, 8], strides = [1, 1, 1]} : vector<4x16x64xf32> to vector<4x16x8xf32>
    "tpu.trace_start"() <{level = 10 : i32, message = "bld,bsd->bls"}> : () -> ()
    %cst_40 = arith.constant dense<0.000000e+00> : vector<4x8x16xf32>
    %117 = tpu.matmul %115, %116, %cst_40 {dimension_numbers = #tpu.dot_dimension_numbers<[2], [2], [1], [1], [0, 0, 0, 1, 1, 1], [0], [0]>} : vector<4x8x8xf32>, vector<4x16x8xf32>, vector<4x8x16xf32> -> vector<4x8x16xf32>
    "tpu.trace_stop"() : () -> ()
    %cst_41 = arith.constant dense<0xFF800000> : vector<4x8xf32>
    %118 = vector.multi_reduction <maximumf>, %117, %cst_41 [2] : vector<4x8x16xf32> to vector<4x8xf32>
    %119 = vector.shape_cast %118 : vector<4x8xf32> to vector<4x8x1xf32>
    %120 = vector.broadcast %119 : vector<4x8x1xf32> to vector<4x8x16xf32>
    %121 = arith.subf %117, %120 : vector<4x8x16xf32>
    %122 = math.exp %121 : vector<4x8x16xf32>
    %cst_42 = arith.constant dense<0.000000e+00> : vector<4x8xf32>
    %123 = vector.multi_reduction <add>, %122, %cst_42 [2] : vector<4x8x16xf32> to vector<4x8xf32>
    %124 = vector.shape_cast %123 : vector<4x8xf32> to vector<4x8x1xf32>
    %125 = tpu.reciprocal %124 {approx = true} : vector<4x8x1xf32> -> vector<4x8x1xf32>
    %126 = vector.broadcast %125 : vector<4x8x1xf32> to vector<4x8x16xf32>
    %127 = arith.mulf %122, %126 : vector<4x8x16xf32>
    %128 = vector.extract_strided_slice %22 {offsets = [0, 0, 48], sizes = [4, 16, 8], strides = [1, 1, 1]} : vector<4x16x64xf32> to vector<4x16x8xf32>
    "tpu.trace_start"() <{level = 10 : i32, message = "bls,bsd->bld"}> : () -> ()
    %cst_43 = arith.constant dense<0.000000e+00> : vector<4x8x8xf32>
    %129 = tpu.matmul %127, %128, %cst_43 {dimension_numbers = #tpu.dot_dimension_numbers<[2], [1], [1], [2], [0, 0, 0, 1, 1, 2], [0], [0]>} : vector<4x8x16xf32>, vector<4x16x8xf32>, vector<4x8x8xf32> -> vector<4x8x8xf32>
    "tpu.trace_stop"() : () -> ()
    %130 = vector.extract_strided_slice %16 {offsets = [0, 0, 56], sizes = [4, 8, 8], strides = [1, 1, 1]} : vector<4x8x64xf32> to vector<4x8x8xf32>
    %131 = vector.extract_strided_slice %20 {offsets = [0, 0, 56], sizes = [4, 16, 8], strides = [1, 1, 1]} : vector<4x16x64xf32> to vector<4x16x8xf32>
    "tpu.trace_start"() <{level = 10 : i32, message = "bld,bsd->bls"}> : () -> ()
    %cst_44 = arith.constant dense<0.000000e+00> : vector<4x8x16xf32>
    %132 = tpu.matmul %130, %131, %cst_44 {dimension_numbers = #tpu.dot_dimension_numbers<[2], [2], [1], [1], [0, 0, 0, 1, 1, 1], [0], [0]>} : vector<4x8x8xf32>, vector<4x16x8xf32>, vector<4x8x16xf32> -> vector<4x8x16xf32>
    "tpu.trace_stop"() : () -> ()
    %cst_45 = arith.constant dense<0xFF800000> : vector<4x8xf32>
    %133 = vector.multi_reduction <maximumf>, %132, %cst_45 [2] : vector<4x8x16xf32> to vector<4x8xf32>
    %134 = vector.shape_cast %133 : vector<4x8xf32> to vector<4x8x1xf32>
    %135 = vector.broadcast %134 : vector<4x8x1xf32> to vector<4x8x16xf32>
    %136 = arith.subf %132, %135 : vector<4x8x16xf32>
    %137 = math.exp %136 : vector<4x8x16xf32>
    %cst_46 = arith.constant dense<0.000000e+00> : vector<4x8xf32>
    %138 = vector.multi_reduction <add>, %137, %cst_46 [2] : vector<4x8x16xf32> to vector<4x8xf32>
    %139 = vector.shape_cast %138 : vector<4x8xf32> to vector<4x8x1xf32>
    %140 = tpu.reciprocal %139 {approx = true} : vector<4x8x1xf32> -> vector<4x8x1xf32>
    %141 = vector.broadcast %140 : vector<4x8x1xf32> to vector<4x8x16xf32>
    %142 = arith.mulf %137, %141 : vector<4x8x16xf32>
    %143 = vector.extract_strided_slice %22 {offsets = [0, 0, 56], sizes = [4, 16, 8], strides = [1, 1, 1]} : vector<4x16x64xf32> to vector<4x16x8xf32>
    "tpu.trace_start"() <{level = 10 : i32, message = "bls,bsd->bld"}> : () -> ()
    %cst_47 = arith.constant dense<0.000000e+00> : vector<4x8x8xf32>
    %144 = tpu.matmul %142, %143, %cst_47 {dimension_numbers = #tpu.dot_dimension_numbers<[2], [1], [1], [2], [0, 0, 0, 1, 1, 2], [0], [0]>} : vector<4x8x16xf32>, vector<4x16x8xf32>, vector<4x8x8xf32> -> vector<4x8x8xf32>
    "tpu.trace_stop"() : () -> ()
    %145 = tpu.concatenate %37, %52, %67, %82, %97, %112, %127, %142 in 2 : vector<4x8x16xf32>, vector<4x8x16xf32>, vector<4x8x16xf32>, vector<4x8x16xf32>, vector<4x8x16xf32>, vector<4x8x16xf32>, vector<4x8x16xf32>, vector<4x8x16xf32> -> vector<4x8x128xf32>
    %c0_48 = arith.constant 0 : index
    %c0_49 = arith.constant 0 : index
    %c0_50 = arith.constant 0 : index
    %146 = vector.load %arg13[%c0_48, %c0_49, %c0_50] : memref<4x8x128xf32, #tpu.memory_space<vmem>>, vector<4x8x128xf32>
    tpu.vector_store %arg13[%c0_48, %c0_49, %c0_50], %145 {strides = array<i32>} : memref<4x8x128xf32, #tpu.memory_space<vmem>>, vector<4x8x128xf32>,
    %147 = tpu.concatenate %39, %54, %69, %84, %99, %114, %129, %144 in 2 : vector<4x8x8xf32>, vector<4x8x8xf32>, vector<4x8x8xf32>, vector<4x8x8xf32>, vector<4x8x8xf32>, vector<4x8x8xf32>, vector<4x8x8xf32>, vector<4x8x8xf32> -> vector<4x8x64xf32>
    %148 = vector.shape_cast %147 : vector<4x8x64xf32> to vector<32x64xf32>
    %c0_51 = arith.constant 0 : index
    %c0_52 = arith.constant 0 : index
    %149 = vector.load %arg5[%c0_51, %c0_52] : memref<64x64xf32, #tpu.memory_space<vmem>>, vector<64x64xf32>
    %cst_53 = arith.constant dense<0.000000e+00> : vector<32x64xf32>
    %150 = tpu.matmul %148, %149, %cst_53 {dimension_numbers = #tpu.dot_dimension_numbers<[1], [0], [0], [1], [0, 0, 1, 1], [], []>} : vector<32x64xf32>, vector<64x64xf32>, vector<32x64xf32> -> vector<32x64xf32>
    %151 = vector.extract_strided_slice %4 {offsets = [0, 0], sizes = [1, 64], strides = [1, 1]} : vector<6x64xf32> to vector<1x64xf32>
    %152 = vector.broadcast %151 : vector<1x64xf32> to vector<32x64xf32>
    %153 = arith.addf %150, %152 : vector<32x64xf32>
    %154 = arith.addf %2, %153 : vector<32x64xf32>
    %155 = vector.extract_strided_slice %4 {offsets = [2, 0], sizes = [1, 64], strides = [1, 1]} : vector<6x64xf32> to vector<1x64xf32>
    %156 = vector.extract_strided_slice %4 {offsets = [3, 0], sizes = [1, 64], strides = [1, 1]} : vector<6x64xf32> to vector<1x64xf32>
    %cst_54 = arith.constant dense<0.000000e+00> : vector<32xf32>
    %157 = vector.multi_reduction <add>, %154, %cst_54 [1] : vector<32x64xf32> to vector<32xf32>
    %158 = vector.shape_cast %157 : vector<32xf32> to vector<32x1xf32>
    %cst_55 = arith.constant 6.400000e+01 : f32
    %159 = vector.broadcast %cst_55 : f32 to vector<32x1xf32>
    %160 = arith.divf %158, %159 : vector<32x1xf32>
    %161 = vector.broadcast %160 : vector<32x1xf32> to vector<32x64xf32>
    %162 = arith.subf %154, %161 : vector<32x64xf32>
    %163 = arith.mulf %162, %162 : vector<32x64xf32>
    %cst_56 = arith.constant dense<0.000000e+00> : vector<32xf32>
    %164 = vector.multi_reduction <add>, %163, %cst_56 [1] : vector<32x64xf32> to vector<32xf32>
    %165 = vector.shape_cast %164 : vector<32xf32> to vector<32x1xf32>
    %cst_57 = arith.constant 6.400000e+01 : f32
    %166 = vector.broadcast %cst_57 : f32 to vector<32x1xf32>
    %167 = arith.divf %165, %166 : vector<32x1xf32>
    %168 = vector.broadcast %160 : vector<32x1xf32> to vector<32x64xf32>
    %169 = arith.subf %154, %168 : vector<32x64xf32>
    %cst_58 = arith.constant 9.99999974E-6 : f32
    %170 = vector.broadcast %cst_58 : f32 to vector<32x1xf32>
    %171 = arith.addf %167, %170 : vector<32x1xf32>
    %172 = math.rsqrt %171 : vector<32x1xf32>
    %173 = vector.broadcast %172 : vector<32x1xf32> to vector<32x64xf32>
    %174 = arith.mulf %169, %173 : vector<32x64xf32>
    %175 = vector.broadcast %155 : vector<1x64xf32> to vector<32x64xf32>
    %176 = arith.mulf %174, %175 : vector<32x64xf32>
    %177 = vector.broadcast %156 : vector<1x64xf32> to vector<32x64xf32>
    %178 = arith.addf %176, %177 : vector<32x64xf32>
    %c0_59 = arith.constant 0 : index
    %c0_60 = arith.constant 0 : index
    %179 = vector.load %arg6[%c0_59, %c0_60] : memref<64x256xf32, #tpu.memory_space<vmem>>, vector<64x256xf32>
    %cst_61 = arith.constant dense<0.000000e+00> : vector<32x256xf32>
    %180 = tpu.matmul %178, %179, %cst_61 {dimension_numbers = #tpu.dot_dimension_numbers<[1], [0], [0], [1], [0, 0, 1, 1], [], []>} : vector<32x64xf32>, vector<64x256xf32>, vector<32x256xf32> -> vector<32x256xf32>
    %c0_62 = arith.constant 0 : index
    %c0_63 = arith.constant 0 : index
    %181 = vector.load %arg11[%c0_62, %c0_63] : memref<1x256xf32, #tpu.memory_space<vmem>>, vector<1x256xf32>
    %182 = vector.broadcast %181 : vector<1x256xf32> to vector<32x256xf32>
    %183 = arith.addf %180, %182 : vector<32x256xf32>
    %cst_64 = arith.constant 0.000000e+00 : f32
    %184 = vector.broadcast %cst_64 : f32 to vector<32x256xf32>
    %185 = arith.maximumf %183, %184 : vector<32x256xf32>
    %c0_65 = arith.constant 0 : index
    %c0_66 = arith.constant 0 : index
    %186 = vector.load %arg7[%c0_65, %c0_66] : memref<256x64xf32, #tpu.memory_space<vmem>>, vector<256x64xf32>
    %cst_67 = arith.constant dense<0.000000e+00> : vector<32x64xf32>
    %187 = tpu.matmul %185, %186, %cst_67 {dimension_numbers = #tpu.dot_dimension_numbers<[1], [0], [0], [1], [0, 0, 1, 1], [], []>} : vector<32x256xf32>, vector<256x64xf32>, vector<32x64xf32> -> vector<32x64xf32>
    %188 = vector.extract_strided_slice %4 {offsets = [1, 0], sizes = [1, 64], strides = [1, 1]} : vector<6x64xf32> to vector<1x64xf32>
    %189 = vector.broadcast %188 : vector<1x64xf32> to vector<32x64xf32>
    %190 = arith.addf %187, %189 : vector<32x64xf32>
    %191 = arith.addf %178, %190 : vector<32x64xf32>
    %192 = vector.extract_strided_slice %4 {offsets = [4, 0], sizes = [1, 64], strides = [1, 1]} : vector<6x64xf32> to vector<1x64xf32>
    %193 = vector.extract_strided_slice %4 {offsets = [5, 0], sizes = [1, 64], strides = [1, 1]} : vector<6x64xf32> to vector<1x64xf32>
    %cst_68 = arith.constant dense<0.000000e+00> : vector<32xf32>
    %194 = vector.multi_reduction <add>, %191, %cst_68 [1] : vector<32x64xf32> to vector<32xf32>
    %195 = vector.shape_cast %194 : vector<32xf32> to vector<32x1xf32>
    %cst_69 = arith.constant 6.400000e+01 : f32
    %196 = vector.broadcast %cst_69 : f32 to vector<32x1xf32>
    %197 = arith.divf %195, %196 : vector<32x1xf32>
    %198 = vector.broadcast %197 : vector<32x1xf32> to vector<32x64xf32>
    %199 = arith.subf %191, %198 : vector<32x64xf32>
    %200 = arith.mulf %199, %199 : vector<32x64xf32>
    %cst_70 = arith.constant dense<0.000000e+00> : vector<32xf32>
    %201 = vector.multi_reduction <add>, %200, %cst_70 [1] : vector<32x64xf32> to vector<32xf32>
    %202 = vector.shape_cast %201 : vector<32xf32> to vector<32x1xf32>
    %cst_71 = arith.constant 6.400000e+01 : f32
    %203 = vector.broadcast %cst_71 : f32 to vector<32x1xf32>
    %204 = arith.divf %202, %203 : vector<32x1xf32>
    %205 = vector.broadcast %197 : vector<32x1xf32> to vector<32x64xf32>
    %206 = arith.subf %191, %205 : vector<32x64xf32>
    %cst_72 = arith.constant 9.99999974E-6 : f32
    %207 = vector.broadcast %cst_72 : f32 to vector<32x1xf32>
    %208 = arith.addf %204, %207 : vector<32x1xf32>
    %209 = math.rsqrt %208 : vector<32x1xf32>
    %210 = vector.broadcast %209 : vector<32x1xf32> to vector<32x64xf32>
    %211 = arith.mulf %206, %210 : vector<32x64xf32>
    %212 = vector.broadcast %192 : vector<1x64xf32> to vector<32x64xf32>
    %213 = arith.mulf %211, %212 : vector<32x64xf32>
    %214 = vector.broadcast %193 : vector<1x64xf32> to vector<32x64xf32>
    %215 = arith.addf %213, %214 : vector<32x64xf32>
    %216 = vector.shape_cast %215 : vector<32x64xf32> to vector<4x8x64xf32>
    %c0_73 = arith.constant 0 : index
    %c0_74 = arith.constant 0 : index
    %c0_75 = arith.constant 0 : index
    %217 = vector.load %arg12[%c0_73, %c0_74, %c0_75] : memref<4x8x64xf32, #tpu.memory_space<vmem>>, vector<4x8x64xf32>
    tpu.vector_store %arg12[%c0_73, %c0_74, %c0_75], %216 {strides = array<i32>} : memref<4x8x64xf32, #tpu.memory_space<vmem>>, vector<4x8x64xf32>,
    %218 = vector.extract_strided_slice %24 {offsets = [0, 0, 0], sizes = [4, 16, 8], strides = [1, 1, 1]} : vector<4x16x64xf32> to vector<4x16x8xf32>
    %219 = vector.extract_strided_slice %18 {offsets = [0, 0, 0], sizes = [4, 8, 8], strides = [1, 1, 1]} : vector<4x8x64xf32> to vector<4x8x8xf32>
    "tpu.trace_start"() <{level = 10 : i32, message = "bsd,bld->bsl"}> : () -> ()
    %cst_76 = arith.constant dense<0.000000e+00> : vector<4x16x8xf32>
    %220 = tpu.matmul %218, %219, %cst_76 {dimension_numbers = #tpu.dot_dimension_numbers<[2], [2], [1], [1], [0, 0, 0, 1, 1, 1], [0], [0]>} : vector<4x16x8xf32>, vector<4x8x8xf32>, vector<4x16x8xf32> -> vector<4x16x8xf32>
    "tpu.trace_stop"() : () -> ()
    %cst_77 = arith.constant dense<0xFF800000> : vector<4x16xf32>
    %221 = vector.multi_reduction <maximumf>, %220, %cst_77 [2] : vector<4x16x8xf32> to vector<4x16xf32>
    %222 = vector.shape_cast %221 : vector<4x16xf32> to vector<4x16x1xf32>
    %223 = vector.broadcast %222 : vector<4x16x1xf32> to vector<4x16x8xf32>
    %224 = arith.subf %220, %223 : vector<4x16x8xf32>
    %225 = math.exp %224 : vector<4x16x8xf32>
    %cst_78 = arith.constant dense<0.000000e+00> : vector<4x16xf32>
    %226 = vector.multi_reduction <add>, %225, %cst_78 [2] : vector<4x16x8xf32> to vector<4x16xf32>
    %227 = vector.shape_cast %226 : vector<4x16xf32> to vector<4x16x1xf32>
    %228 = tpu.reciprocal %227 {approx = true} : vector<4x16x1xf32> -> vector<4x16x1xf32>
    %229 = vector.broadcast %228 : vector<4x16x1xf32> to vector<4x16x8xf32>
    %230 = arith.mulf %225, %229 : vector<4x16x8xf32>
    %231 = vector.extract_strided_slice %24 {offsets = [0, 0, 8], sizes = [4, 16, 8], strides = [1, 1, 1]} : vector<4x16x64xf32> to vector<4x16x8xf32>
    %232 = vector.extract_strided_slice %18 {offsets = [0, 0, 8], sizes = [4, 8, 8], strides = [1, 1, 1]} : vector<4x8x64xf32> to vector<4x8x8xf32>
    "tpu.trace_start"() <{level = 10 : i32, message = "bsd,bld->bsl"}> : () -> ()
    %cst_79 = arith.constant dense<0.000000e+00> : vector<4x16x8xf32>
    %233 = tpu.matmul %231, %232, %cst_79 {dimension_numbers = #tpu.dot_dimension_numbers<[2], [2], [1], [1], [0, 0, 0, 1, 1, 1], [0], [0]>} : vector<4x16x8xf32>, vector<4x8x8xf32>, vector<4x16x8xf32> -> vector<4x16x8xf32>
    "tpu.trace_stop"() : () -> ()
    %cst_80 = arith.constant dense<0xFF800000> : vector<4x16xf32>
    %234 = vector.multi_reduction <maximumf>, %233, %cst_80 [2] : vector<4x16x8xf32> to vector<4x16xf32>
    %235 = vector.shape_cast %234 : vector<4x16xf32> to vector<4x16x1xf32>
    %236 = vector.broadcast %235 : vector<4x16x1xf32> to vector<4x16x8xf32>
    %237 = arith.subf %233, %236 : vector<4x16x8xf32>
    %238 = math.exp %237 : vector<4x16x8xf32>
    %cst_81 = arith.constant dense<0.000000e+00> : vector<4x16xf32>
    %239 = vector.multi_reduction <add>, %238, %cst_81 [2] : vector<4x16x8xf32> to vector<4x16xf32>
    %240 = vector.shape_cast %239 : vector<4x16xf32> to vector<4x16x1xf32>
    %241 = tpu.reciprocal %240 {approx = true} : vector<4x16x1xf32> -> vector<4x16x1xf32>
    %242 = vector.broadcast %241 : vector<4x16x1xf32> to vector<4x16x8xf32>
    %243 = arith.mulf %238, %242 : vector<4x16x8xf32>
    %244 = vector.extract_strided_slice %24 {offsets = [0, 0, 16], sizes = [4, 16, 8], strides = [1, 1, 1]} : vector<4x16x64xf32> to vector<4x16x8xf32>
    %245 = vector.extract_strided_slice %18 {offsets = [0, 0, 16], sizes = [4, 8, 8], strides = [1, 1, 1]} : vector<4x8x64xf32> to vector<4x8x8xf32>
    "tpu.trace_start"() <{level = 10 : i32, message = "bsd,bld->bsl"}> : () -> ()
    %cst_82 = arith.constant dense<0.000000e+00> : vector<4x16x8xf32>
    %246 = tpu.matmul %244, %245, %cst_82 {dimension_numbers = #tpu.dot_dimension_numbers<[2], [2], [1], [1], [0, 0, 0, 1, 1, 1], [0], [0]>} : vector<4x16x8xf32>, vector<4x8x8xf32>, vector<4x16x8xf32> -> vector<4x16x8xf32>
    "tpu.trace_stop"() : () -> ()
    %cst_83 = arith.constant dense<0xFF800000> : vector<4x16xf32>
    %247 = vector.multi_reduction <maximumf>, %246, %cst_83 [2] : vector<4x16x8xf32> to vector<4x16xf32>
    %248 = vector.shape_cast %247 : vector<4x16xf32> to vector<4x16x1xf32>
    %249 = vector.broadcast %248 : vector<4x16x1xf32> to vector<4x16x8xf32>
    %250 = arith.subf %246, %249 : vector<4x16x8xf32>
    %251 = math.exp %250 : vector<4x16x8xf32>
    %cst_84 = arith.constant dense<0.000000e+00> : vector<4x16xf32>
    %252 = vector.multi_reduction <add>, %251, %cst_84 [2] : vector<4x16x8xf32> to vector<4x16xf32>
    %253 = vector.shape_cast %252 : vector<4x16xf32> to vector<4x16x1xf32>
    %254 = tpu.reciprocal %253 {approx = true} : vector<4x16x1xf32> -> vector<4x16x1xf32>
    %255 = vector.broadcast %254 : vector<4x16x1xf32> to vector<4x16x8xf32>
    %256 = arith.mulf %251, %255 : vector<4x16x8xf32>
    %257 = vector.extract_strided_slice %24 {offsets = [0, 0, 24], sizes = [4, 16, 8], strides = [1, 1, 1]} : vector<4x16x64xf32> to vector<4x16x8xf32>
    %258 = vector.extract_strided_slice %18 {offsets = [0, 0, 24], sizes = [4, 8, 8], strides = [1, 1, 1]} : vector<4x8x64xf32> to vector<4x8x8xf32>
    "tpu.trace_start"() <{level = 10 : i32, message = "bsd,bld->bsl"}> : () -> ()
    %cst_85 = arith.constant dense<0.000000e+00> : vector<4x16x8xf32>
    %259 = tpu.matmul %257, %258, %cst_85 {dimension_numbers = #tpu.dot_dimension_numbers<[2], [2], [1], [1], [0, 0, 0, 1, 1, 1], [0], [0]>} : vector<4x16x8xf32>, vector<4x8x8xf32>, vector<4x16x8xf32> -> vector<4x16x8xf32>
    "tpu.trace_stop"() : () -> ()
    %cst_86 = arith.constant dense<0xFF800000> : vector<4x16xf32>
    %260 = vector.multi_reduction <maximumf>, %259, %cst_86 [2] : vector<4x16x8xf32> to vector<4x16xf32>
    %261 = vector.shape_cast %260 : vector<4x16xf32> to vector<4x16x1xf32>
    %262 = vector.broadcast %261 : vector<4x16x1xf32> to vector<4x16x8xf32>
    %263 = arith.subf %259, %262 : vector<4x16x8xf32>
    %264 = math.exp %263 : vector<4x16x8xf32>
    %cst_87 = arith.constant dense<0.000000e+00> : vector<4x16xf32>
    %265 = vector.multi_reduction <add>, %264, %cst_87 [2] : vector<4x16x8xf32> to vector<4x16xf32>
    %266 = vector.shape_cast %265 : vector<4x16xf32> to vector<4x16x1xf32>
    %267 = tpu.reciprocal %266 {approx = true} : vector<4x16x1xf32> -> vector<4x16x1xf32>
    %268 = vector.broadcast %267 : vector<4x16x1xf32> to vector<4x16x8xf32>
    %269 = arith.mulf %264, %268 : vector<4x16x8xf32>
    %270 = vector.extract_strided_slice %24 {offsets = [0, 0, 32], sizes = [4, 16, 8], strides = [1, 1, 1]} : vector<4x16x64xf32> to vector<4x16x8xf32>
    %271 = vector.extract_strided_slice %18 {offsets = [0, 0, 32], sizes = [4, 8, 8], strides = [1, 1, 1]} : vector<4x8x64xf32> to vector<4x8x8xf32>
    "tpu.trace_start"() <{level = 10 : i32, message = "bsd,bld->bsl"}> : () -> ()
    %cst_88 = arith.constant dense<0.000000e+00> : vector<4x16x8xf32>
    %272 = tpu.matmul %270, %271, %cst_88 {dimension_numbers = #tpu.dot_dimension_numbers<[2], [2], [1], [1], [0, 0, 0, 1, 1, 1], [0], [0]>} : vector<4x16x8xf32>, vector<4x8x8xf32>, vector<4x16x8xf32> -> vector<4x16x8xf32>
    "tpu.trace_stop"() : () -> ()
    %cst_89 = arith.constant dense<0xFF800000> : vector<4x16xf32>
    %273 = vector.multi_reduction <maximumf>, %272, %cst_89 [2] : vector<4x16x8xf32> to vector<4x16xf32>
    %274 = vector.shape_cast %273 : vector<4x16xf32> to vector<4x16x1xf32>
    %275 = vector.broadcast %274 : vector<4x16x1xf32> to vector<4x16x8xf32>
    %276 = arith.subf %272, %275 : vector<4x16x8xf32>
    %277 = math.exp %276 : vector<4x16x8xf32>
    %cst_90 = arith.constant dense<0.000000e+00> : vector<4x16xf32>
    %278 = vector.multi_reduction <add>, %277, %cst_90 [2] : vector<4x16x8xf32> to vector<4x16xf32>
    %279 = vector.shape_cast %278 : vector<4x16xf32> to vector<4x16x1xf32>
    %280 = tpu.reciprocal %279 {approx = true} : vector<4x16x1xf32> -> vector<4x16x1xf32>
    %281 = vector.broadcast %280 : vector<4x16x1xf32> to vector<4x16x8xf32>
    %282 = arith.mulf %277, %281 : vector<4x16x8xf32>
    %283 = vector.extract_strided_slice %24 {offsets = [0, 0, 40], sizes = [4, 16, 8], strides = [1, 1, 1]} : vector<4x16x64xf32> to vector<4x16x8xf32>
    %284 = vector.extract_strided_slice %18 {offsets = [0, 0, 40], sizes = [4, 8, 8], strides = [1, 1, 1]} : vector<4x8x64xf32> to vector<4x8x8xf32>
    "tpu.trace_start"() <{level = 10 : i32, message = "bsd,bld->bsl"}> : () -> ()
    %cst_91 = arith.constant dense<0.000000e+00> : vector<4x16x8xf32>
    %285 = tpu.matmul %283, %284, %cst_91 {dimension_numbers = #tpu.dot_dimension_numbers<[2], [2], [1], [1], [0, 0, 0, 1, 1, 1], [0], [0]>} : vector<4x16x8xf32>, vector<4x8x8xf32>, vector<4x16x8xf32> -> vector<4x16x8xf32>
    "tpu.trace_stop"() : () -> ()
    %cst_92 = arith.constant dense<0xFF800000> : vector<4x16xf32>
    %286 = vector.multi_reduction <maximumf>, %285, %cst_92 [2] : vector<4x16x8xf32> to vector<4x16xf32>
    %287 = vector.shape_cast %286 : vector<4x16xf32> to vector<4x16x1xf32>
    %288 = vector.broadcast %287 : vector<4x16x1xf32> to vector<4x16x8xf32>
    %289 = arith.subf %285, %288 : vector<4x16x8xf32>
    %290 = math.exp %289 : vector<4x16x8xf32>
    %cst_93 = arith.constant dense<0.000000e+00> : vector<4x16xf32>
    %291 = vector.multi_reduction <add>, %290, %cst_93 [2] : vector<4x16x8xf32> to vector<4x16xf32>
    %292 = vector.shape_cast %291 : vector<4x16xf32> to vector<4x16x1xf32>
    %293 = tpu.reciprocal %292 {approx = true} : vector<4x16x1xf32> -> vector<4x16x1xf32>
    %294 = vector.broadcast %293 : vector<4x16x1xf32> to vector<4x16x8xf32>
    %295 = arith.mulf %290, %294 : vector<4x16x8xf32>
    %296 = vector.extract_strided_slice %24 {offsets = [0, 0, 48], sizes = [4, 16, 8], strides = [1, 1, 1]} : vector<4x16x64xf32> to vector<4x16x8xf32>
    %297 = vector.extract_strided_slice %18 {offsets = [0, 0, 48], sizes = [4, 8, 8], strides = [1, 1, 1]} : vector<4x8x64xf32> to vector<4x8x8xf32>
    "tpu.trace_start"() <{level = 10 : i32, message = "bsd,bld->bsl"}> : () -> ()
    %cst_94 = arith.constant dense<0.000000e+00> : vector<4x16x8xf32>
    %298 = tpu.matmul %296, %297, %cst_94 {dimension_numbers = #tpu.dot_dimension_numbers<[2], [2], [1], [1], [0, 0, 0, 1, 1, 1], [0], [0]>} : vector<4x16x8xf32>, vector<4x8x8xf32>, vector<4x16x8xf32> -> vector<4x16x8xf32>
    "tpu.trace_stop"() : () -> ()
    %cst_95 = arith.constant dense<0xFF800000> : vector<4x16xf32>
    %299 = vector.multi_reduction <maximumf>, %298, %cst_95 [2] : vector<4x16x8xf32> to vector<4x16xf32>
    %300 = vector.shape_cast %299 : vector<4x16xf32> to vector<4x16x1xf32>
    %301 = vector.broadcast %300 : vector<4x16x1xf32> to vector<4x16x8xf32>
    %302 = arith.subf %298, %301 : vector<4x16x8xf32>
    %303 = math.exp %302 : vector<4x16x8xf32>
    %cst_96 = arith.constant dense<0.000000e+00> : vector<4x16xf32>
    %304 = vector.multi_reduction <add>, %303, %cst_96 [2] : vector<4x16x8xf32> to vector<4x16xf32>
    %305 = vector.shape_cast %304 : vector<4x16xf32> to vector<4x16x1xf32>
    %306 = tpu.reciprocal %305 {approx = true} : vector<4x16x1xf32> -> vector<4x16x1xf32>
    %307 = vector.broadcast %306 : vector<4x16x1xf32> to vector<4x16x8xf32>
    %308 = arith.mulf %303, %307 : vector<4x16x8xf32>
    %309 = vector.extract_strided_slice %24 {offsets = [0, 0, 56], sizes = [4, 16, 8], strides = [1, 1, 1]} : vector<4x16x64xf32> to vector<4x16x8xf32>
    %310 = vector.extract_strided_slice %18 {offsets = [0, 0, 56], sizes = [4, 8, 8], strides = [1, 1, 1]} : vector<4x8x64xf32> to vector<4x8x8xf32>
    "tpu.trace_start"() <{level = 10 : i32, message = "bsd,bld->bsl"}> : () -> ()
    %cst_97 = arith.constant dense<0.000000e+00> : vector<4x16x8xf32>
    %311 = tpu.matmul %309, %310, %cst_97 {dimension_numbers = #tpu.dot_dimension_numbers<[2], [2], [1], [1], [0, 0, 0, 1, 1, 1], [0], [0]>} : vector<4x16x8xf32>, vector<4x8x8xf32>, vector<4x16x8xf32> -> vector<4x16x8xf32>
    "tpu.trace_stop"() : () -> ()
    %cst_98 = arith.constant dense<0xFF800000> : vector<4x16xf32>
    %312 = vector.multi_reduction <maximumf>, %311, %cst_98 [2] : vector<4x16x8xf32> to vector<4x16xf32>
    %313 = vector.shape_cast %312 : vector<4x16xf32> to vector<4x16x1xf32>
    %314 = vector.broadcast %313 : vector<4x16x1xf32> to vector<4x16x8xf32>
    %315 = arith.subf %311, %314 : vector<4x16x8xf32>
    %316 = math.exp %315 : vector<4x16x8xf32>
    %cst_99 = arith.constant dense<0.000000e+00> : vector<4x16xf32>
    %317 = vector.multi_reduction <add>, %316, %cst_99 [2] : vector<4x16x8xf32> to vector<4x16xf32>
    %318 = vector.shape_cast %317 : vector<4x16xf32> to vector<4x16x1xf32>
    %319 = tpu.reciprocal %318 {approx = true} : vector<4x16x1xf32> -> vector<4x16x1xf32>
    %320 = vector.broadcast %319 : vector<4x16x1xf32> to vector<4x16x8xf32>
    %321 = arith.mulf %316, %320 : vector<4x16x8xf32>
    %322 = tpu.concatenate %230, %243, %256, %269, %282, %295, %308, %321 in 2 : vector<4x16x8xf32>, vector<4x16x8xf32>, vector<4x16x8xf32>, vector<4x16x8xf32>, vector<4x16x8xf32>, vector<4x16x8xf32>, vector<4x16x8xf32>, vector<4x16x8xf32> -> vector<4x16x64xf32>
    %c0_100 = arith.constant 0 : index
    %c0_101 = arith.constant 0 : index
    %c0_102 = arith.constant 0 : index
    %323 = vector.load %arg14[%c0_100, %c0_101, %c0_102] : memref<4x16x64xf32, #tpu.memory_space<vmem>>, vector<4x16x64xf32>
    tpu.vector_store %arg14[%c0_100, %c0_101, %c0_102], %322 {strides = array<i32>} : memref<4x16x64xf32, #tpu.memory_space<vmem>>, vector<4x16x64xf32>,
    return
  }
  func.func @transform_0(%arg0: i32) -> (i32, i32, i32) {
    %c0_i32 = arith.constant 0 : i32
    %c0_i32_0 = arith.constant 0 : i32
    %c0_i32_1 = arith.constant 0 : i32
    return %arg0, %c0_i32, %c0_i32_0 : i32, i32, i32
  }
  func.func @transform_1(%arg0: i32) -> (i32, i32, i32) {
    %c0_i32 = arith.constant 0 : i32
    %c0_i32_0 = arith.constant 0 : i32
    %c0_i32_1 = arith.constant 0 : i32
    return %arg0, %c0_i32, %c0_i32_0 : i32, i32, i32
  }
  func.func @transform_2(%arg0: i32) -> (i32, i32) {
    %c0_i32 = arith.constant 0 : i32
    %c0_i32_0 = arith.constant 0 : i32
    %c0_i32_1 = arith.constant 0 : i32
    return %c0_i32, %c0_i32_0 : i32, i32
  }
  func.func @transform_3(%arg0: i32) -> (i32, i32) {
    %c0_i32 = arith.constant 0 : i32
    %c0_i32_0 = arith.constant 0 : i32
    %c0_i32_1 = arith.constant 0 : i32
    return %c0_i32, %c0_i32_0 : i32, i32
  }
  func.func @transform_4(%arg0: i32) -> (i32, i32) {
    %c0_i32 = arith.constant 0 : i32
    %c0_i32_0 = arith.constant 0 : i32
    %c0_i32_1 = arith.constant 0 : i32
    return %c0_i32, %c0_i32_0 : i32, i32
  }
  func.func @transform_5(%arg0: i32) -> (i32, i32) {
    %c0_i32 = arith.constant 0 : i32
    %c0_i32_0 = arith.constant 0 : i32
    %c0_i32_1 = arith.constant 0 : i32
    return %c0_i32, %c0_i32_0 : i32, i32
  }
  func.func @transform_6(%arg0: i32) -> (i32, i32) {
    %c0_i32 = arith.constant 0 : i32
    %c0_i32_0 = arith.constant 0 : i32
    %c0_i32_1 = arith.constant 0 : i32
    return %c0_i32, %c0_i32_0 : i32, i32
  }
  func.func @transform_7(%arg0: i32) -> (i32, i32) {
    %c0_i32 = arith.constant 0 : i32
    %c0_i32_0 = arith.constant 0 : i32
    %c0_i32_1 = arith.constant 0 : i32
    return %c0_i32, %c0_i32_0 : i32, i32
  }
  func.func @transform_8(%arg0: i32) -> (i32, i32) {
    %c0_i32 = arith.constant 0 : i32
    %c0_i32_0 = arith.constant 0 : i32
    %c0_i32_1 = arith.constant 0 : i32
    return %c0_i32, %c0_i32_0 : i32, i32
  }
  func.func @transform_9(%arg0: i32) -> (i32, i32) {
    %c0_i32 = arith.constant 0 : i32
    %c0_i32_0 = arith.constant 0 : i32
    %c0_i32_1 = arith.constant 0 : i32
    return %c0_i32, %c0_i32_0 : i32, i32
  }
  func.func @transform_10(%arg0: i32) -> (i32, i32) {
    %c0_i32 = arith.constant 0 : i32
    %c0_i32_0 = arith.constant 0 : i32
    %c0_i32_1 = arith.constant 0 : i32
    return %c0_i32, %c0_i32_0 : i32, i32
  }
  func.func @transform_11(%arg0: i32) -> (i32, i32, i32) {
    %c0_i32 = arith.constant 0 : i32
    %c0_i32_0 = arith.constant 0 : i32
    %c0_i32_1 = arith.constant 0 : i32
    return %arg0, %c0_i32, %c0_i32_0 : i32, i32, i32
  }
  func.func @transform_12(%arg0: i32) -> (i32, i32, i32) {
    %c0_i32 = arith.constant 0 : i32
    %c0_i32_0 = arith.constant 0 : i32
    %c0_i32_1 = arith.constant 0 : i32
    return %arg0, %c0_i32, %c0_i32_0 : i32, i32, i32
  }
  func.func @transform_13(%arg0: i32) -> (i32, i32, i32) {
    %c0_i32 = arith.constant 0 : i32
    %c0_i32_0 = arith.constant 0 : i32
    %c0_i32_1 = arith.constant 0 : i32
    return %arg0, %c0_i32, %c0_i32_0 : i32, i32, i32
  }
}

</mosaic_0001>

<bundles_post_ra>
// kernel: tpu_custom_call.1
= control target key start
LH: loop header
LB: loop body
LE: loop exit
PB: predicated region body
PF: predicated region fallthrough
CT: control target
= control target key end

     0   :  { %s17128_s0 = inlined_call_operand.hbm [shape: f32[8,8,64], index: 0, kind: input, shape index: {}]   ;;  %s17129_s1 = inlined_call_operand.vmem [shape: f32[8,16,64], index: 1, kind: input, shape index: {}]   ;;  %s17130_s2 = inlined_call_operand.hbm [shape: f32[64,128], index: 2, kind: input, shape index: {}]   ;;  %s17131_s3 = inlined_call_operand.vmem [shape: f32[64,192], index: 3, kind: input, shape index: {}]   ;;  %s17132_s4 = inlined_call_operand.hbm [shape: f32[64,64], index: 4, kind: input, shape index: {}]   ;;  %s17133_s5 = inlined_call_operand.vmem [shape: f32[64,256], index: 5, kind: input, shape index: {}]   ;;  %s17134_s6 = inlined_call_operand.vmem [shape: f32[256,64], index: 6, kind: input, shape index: {}]   ;;  %s17135_s7 = inlined_call_operand.vmem [shape: f32[1,128], index: 7, kind: input, shape index: {}]   ;;  %s17136_s8 = inlined_call_operand.vmem [shape: f32[1,192], index: 8, kind: input, shape index: {}]   ;;  %s17137_s9 = inlined_call_operand.vmem [shape: f32[6,64], index: 9, kind: input, shape index: {}]   ;;  %s17138_s10 = inlined_call_operand.vmem [shape: f32[1,256], index: 10, kind: input, shape index: {}]   ;;  %s17139_s11 = inlined_call_operand.hbm [shape: f32[8,8,64], index: 11, kind: output, shape index: {0}]   ;;  %s17140_s12 = inlined_call_operand.hbm [shape: f32[8,8,128], index: 12, kind: output, shape index: {1}]   ;;  %s17141_s13 = inlined_call_operand.hbm [shape: f32[8,16,64], index: 13, kind: output, shape index: {2}]  }
   0x1   :  { %17255 = sst [smem:[#allocation64_spill]] %s17128_s0 }
   0x2   :  { %17256 = sst [smem:[#allocation65_spill]] %s17129_s1 }
   0x3   :  { %17257 = sst [smem:[#allocation66_spill]] %s17130_s2 }
   0x4   :  { %17258 = sst [smem:[#allocation67_spill]] %s17131_s3 }
   0x5   :  { %17259 = sst [smem:[#allocation68_spill]] %s17132_s4 }
   0x6   :  { %17260 = sst [smem:[#allocation69_spill]] %s17133_s5 }
   0x7   :  { %17261 = sst [smem:[#allocation70_spill]] %s17135_s7 }
   0x8   :  { %17262 = sst [smem:[#allocation71_spill]] %s17139_s11 }
   0x9   :  { %17263 = sst [smem:[#allocation72_spill]] %s17140_s12 }
   0xa   :  { %17264 = sst [smem:[#allocation73_spill]] %s17141_s13 }
   0xb   :  { %19 = vsyncpa [#allocation3], 0 }
   0xc   :  { %21 = vsyncpa [#allocation3 + $0x1], 0 }
   0xd   :  { %22 = vsyncpa [#allocation6], 0 }
   0xe   :  { %23 = vsyncpa [#allocation4], 0 }
   0xf   :  { %25 = vsyncpa [#allocation4 + $0x1], 0 }
  0x10   :  { %26 = vsyncpa [#allocation10], 0 }
  0x11   :  { %28 = vsyncpa [#allocation10 + $0x1], 0  ;;  %s13817_s25 = smov 0   ;;  %s13819_s26 = smov 0  }
  0x12   :  { %s13821_s27 = smov 0   ;;  %s13823_s28 = smov 0  }
  0x13 LB: > { %17265 = sst [smem:[#allocation16_spill]] %s13706_s25  ;;  %s13838_s29 = sadd.s32 4294967295, %s13718_s28   ;;  %s13718_s28 = sphi %s13823_s28, %s17504_s28   ;;  %s13714_s27 = sphi %s13821_s27, %s17503_s27   ;;  %s13710_s26 = sphi %s13819_s26, %s17502_s26   ;;  %s13706_s25 = sphi %s13817_s25, %s17501_s25  }
  0x14   : > { %s17142_s30 = sadd.s32 4294967294, %s13718_s28   ;;  %p54_p0 = scmp.ne.s32.totalorder %s13710_s26, %s13706_s25 }
  0x15   : > { %p17145_p1 = scmp.eq.s32.totalorder %s13838_s29, 0  ;;  %p299_p3 = scmp.eq.s32.totalorder %s17142_s30, 1 }
  0x16   : > { %p11091_p5 = scmp.ge.s32.totalorder %s13718_s28, 1  ;;  %p358_p7 = scmp.lt.s32.totalorder %s13718_s28, 3 }
  0x17   : > { %p13849_p4 = por %p17145_p1, %p54_p0  ;;  %p13854_p6 = por %p299_p3, %p54_p0 }
  0x18   : > { %p13859_p8 = pnand %p11091_p5, %p358_p7  ;;  %s13720_s17 = smov [#allocation5]  }
  0x19   : > { %s17266_s14 = scalar_select %p13849_p4, 1, 0 }
  0x1a   : > { %s17267_s15 = scalar_select %p13854_p6, 1, 0 }
  0x1b   : > { %s370_s18 = sshll.u32 %s13720_s17, 4  ;;  %p12715_p9 = pneg %p13859_p8  ;;  %s13863_s18 = int_to_ptr.vmem [resolvable:$true] %s370_s18 }
  0x1c   : > { %17268 = sst [smem:[#allocation17_spill]] %s17267_s15  ;;  %s13721_s20 = smov [#allocation7]  }
  0x1d   : > { %p13870_p11 = pnand %p12715_p9, %p17145_p1  ;;  %s386_s21 = sshll.u32 %s13721_s20, 4  ;;  %s13874_s21 = int_to_ptr.vmem [resolvable:$true] %s386_s21 }
  0x1e   : > { %s17271_s2 = sld [smem:[#allocation66_spill]] }
  0x1f   : > { %p13504_p13 = pneg %p13870_p11 }
  0x24   : > { %s13502_s24 = scalar_lea.hbm %s17271_s2, 1024 }
  0x25   : > { %p13503_p12 = scmp.ne.s32.totalorder %s17271_s2, %s13502_s24  ;;  %p13509_p5 = scmp.lt.u32.totalorder %s13502_s24, %s17271_s2 }
  0x27   : > { %p13505_p0 = pnand %p13504_p13, %p13503_p12 }
  0x29   : > { %p13506_p3 = pneg %p13505_p0 }
  0x2b   : > { %p13511_p7 = pnand %p13509_p5, %p13506_p3 }
  0x2d   : > { %13514 = shalt.err (!%p13511_p7)
}
  0x2e   : > { %s13515_s20 = scalar_lea.vmem %s13863_s18, 1024  ;;  %p13523_p2 = scmp.lt.s32.totalorder %s13863_s18, %s13863_s18 }
  0x2f   : > { %p13516_p9 = scmp.ne.s32.totalorder %s13863_s18, %s13515_s20  ;;  %p13524_p12 = scmp.lt.s32.totalorder %s13515_s20, %s13515_s20 }
  0x31   : > { %p13518_p10 = pnand %p13516_p9, %p13504_p13  ;;  %p13525_p0 = por %p13524_p12, %p13523_p2 }
  0x33   : > { %p13519_p1 = pneg %p13518_p10 }
  0x35   : > { %p13526_p6 = pnand %p13525_p0, %p13519_p1 }
  0x37   : > { %13529 = shalt.err (!%p13526_p6)
}
  0x38   : > { %s17149_s25 = smov 128   ;;  %s17150_s30 = smov 8  }
  0x39   : > { %12718 = dma.hbm_to_vmem [thread:$0]  (!%p13870_p11), %s17271_s2, 1024, %s13863_s18, [#allocation6], %s17149_s25, %s17149_s25, %s17150_s30  }
  0x3a   : > { %s17272_s4 = sld [smem:[#allocation68_spill]] }
  0x40   : > { %s13530_s17 = scalar_lea.hbm %s17272_s4, 1024 }
  0x41   : > { %p13531_p1 = scmp.ne.s32.totalorder %s17272_s4, %s13530_s17  ;;  %p13537_p10 = scmp.lt.u32.totalorder %s13530_s17, %s17272_s4 }
  0x43   : > { %p13533_p2 = pnand %p13531_p1, %p13504_p13 }
  0x45   : > { %p13534_p6 = pneg %p13533_p2 }
  0x47   : > { %p13539_p3 = pnand %p13537_p10, %p13534_p6 }
  0x49   : > { %13542 = shalt.err (!%p13539_p3)
}
  0x4a   : > { %s13543_s18 = scalar_lea.vmem %s13874_s21, 1024  ;;  %p13551_p12 = scmp.lt.s32.totalorder %s13874_s21, %s13874_s21 }
  0x4b   : > { %p13544_p5 = scmp.ne.s32.totalorder %s13874_s21, %s13543_s18  ;;  %p13552_p0 = scmp.lt.s32.totalorder %s13543_s18, %s13543_s18 }
  0x4d   : > { %p13546_p7 = pnand %p13544_p5, %p13504_p13  ;;  %p13553_p1 = por %p13552_p0, %p13551_p12 }
  0x4f   : > { %p13547_p9 = pneg %p13546_p7 }
  0x51   : > { %p13554_p2 = pnand %p13553_p1, %p13547_p9 }
  0x53   : > { %13557 = shalt.err (!%p13554_p2)
}
  0x54   : > { %12721 = dma.hbm_to_vmem [thread:$0]  (!%p13870_p11), %s17272_s4, 1024, %s13874_s21, [#allocation6], %s17149_s25, %s17149_s25, %s17150_s30  }
  0x55   : > { %s13935_s13 = sadd.s32 1, %s13718_s28   ;;  %s41_s19 = sadd.s32 1, %s13714_s27 }
  0x56   : > { %s38_s15 = ssub.s32 %s13718_s28, %s13935_s13  ;;  %p48_p13 = scmp.ne.s32.totalorder %s13714_s27, %s13710_s26 }
  0x57   : > { %p39_p6 = scmp.eq.s32.totalorder %s38_s15, 0  ;;  %p49_p10 = scmp.eq.s32.totalorder %s13718_s28, 0 }
  0x58   : > { %p17273_p3 = scmp.eq.s32.totalorder %s13838_s29, 1  ;;  %p12738_p7 = scmp.lt.s32.totalorder %s13718_s28, 2 }
  0x59   : > { %s13951_s23 = scalar_select %p39_p6, %s13714_s27, %s41_s19  }
  0x5a   : > { %p13945_p5 = por %p17273_p3, %p48_p13  ;;  %p50_p9 = por %p49_p10, %p48_p13 }
  0x5b   : > { %s418_s24 = sand.u32 1, %s13714_s27   ;;  %s11365_s21 = sshll.u32 %s13718_s28, 9 }
  0x5c   : > { %s17274_s22 = scalar_select %p13945_p5, 1, 0 }
  0x5d   : > { %s11095_s17 = sshll.u32 %s418_s24, 5  ;;  %s17275_s0 = sld [smem:[#allocation64_spill]] }
  0x5e   : > { %s422_s12 = scalar_lea.vmem [#allocation2], %s11095_s17  ;;  %p13962_p11 = pnand %p12738_p7, %p50_p9 }
  0x5f   : > { %s429_s15 = sshll.u32 %s422_s12, 4  ;;  %s13966_s25 = scalar_lea.sflag [#allocation3], %s418_s24  ;;  %s13960_s15 = int_to_ptr.vmem [resolvable:$true] %s429_s15 }
  0x60   : > { %p13560_p0 = pneg %p13962_p11 }
  0x63   : > { %s13958_s11 = scalar_lea.hbm %s17275_s0, %s11365_s21  ;;  %s13563_s20 = scalar_lea.hbm %s17275_s0, 1024 }
  0x64   : > { %s13558_s30 = scalar_lea.hbm %s13958_s11, 512  ;;  %p13564_p13 = scmp.lt.u32.totalorder %s13958_s11, %s17275_s0 }
  0x65   : > { %p13559_p12 = scmp.ne.s32.totalorder %s13958_s11, %s13558_s30  ;;  %p13565_p6 = scmp.lt.u32.totalorder %s13563_s20, %s13558_s30 }
  0x66   : > { %p13567_p3 = scmp.lt.u32.totalorder %s13558_s30, %s13958_s11 }
  0x67   : > { %p13561_p1 = pnand %p13560_p0, %p13559_p12  ;;  %p13566_p10 = por %p13565_p6, %p13564_p13 }
  0x69   : > { %p13562_p2 = pneg %p13561_p1  ;;  %p13568_p7 = por %p13567_p3, %p13566_p10 }
  0x6b   : > { %p13569_p9 = pnand %p13568_p7, %p13562_p2 }
  0x6d   : > { %13572 = shalt.err (!%p13569_p9)
}
  0x6e   : > { %s13573_s24 = scalar_lea.vmem %s13960_s15, 512  ;;  %s13724_s17 = smov [#allocation2]  }
  0x6f   : > { %p13574_p12 = scmp.ne.s32.totalorder %s13960_s15, %s13573_s24  ;;  %s13578_s21 = sshll.u32 %s13724_s17, 4  ;;  %s13579_s21 = int_to_ptr.vmem [resolvable:$false] %s13578_s21 }
  0x70   : > { %s13580_s18 = scalar_lea.vmem %s13579_s21, 1024  ;;  %p13581_p4 = scmp.lt.s32.totalorder %s13960_s15, %s13579_s21 }
  0x71   : > { %p13576_p1 = pnand %p13574_p12, %p13560_p0  ;;  %p13582_p13 = scmp.lt.s32.totalorder %s13580_s18, %s13573_s24 }
  0x73   : > { %p13577_p5 = pneg %p13576_p1  ;;  %p13583_p6 = por %p13582_p13, %p13581_p4 }
  0x75   : > { %p13584_p10 = pnand %p13583_p6, %p13577_p5 }
  0x77   : > { %13587 = shalt.err (!%p13584_p10)
}
  0x78   : > { %s17277_s30 = smov 8   ;;  %s17278_s20 = smov 128  }
  0x79   : > { %12725 = dma.hbm_to_vmem [thread:$0]  (!%p13962_p11), %s13958_s11, 512, %s13960_s15, %s13966_s25, %s17278_s20, %s17278_s20, %s17277_s30  }
  0x7a   : > { %451 = sbr.rel (%p13859_p8) target bundleno = 7105 (0x1bc1), region = 64 }
  0x81   : > { %s14000_s12 = sand.u32 1, %s13710_s26   ;;  %p17279_p4 = scmp.ne.s32.totalorder %s17266_s14, 0 }
  0x82   : > { %s14003_s24 = sshll.u32 %s14000_s12, 5  ;;  %s454_s19 = scalar_lea.sflag [#allocation3], %s14000_s12 }
  0x83   : > { %s14007_s17 = scalar_lea.vmem [#allocation2], %s14003_s24 }
  0x84   : > { %13689 = dma.done.wait (%p17279_p4), %s454_s19, 512  }
  0x85   : > { %13691 = vsyncadd (%p17279_p4), %s454_s19, 4294966784  ;;  %p17280_p5 = scmp.eq.s32.totalorder %s13838_s29, 0 }
  0x87   : > { %13693 = dma.done.wait (%p17280_p5), [#allocation6], 2048   ;;  %p17281_p8 = pmov %p17280_p5 }
  0x88   : > { %v17153_v0 = vmov 0.0   ;;  %s11105_s16 = sshll.u32 %s13838_s29, 2  ;;  %s17282_s3 = sld [smem:[#allocation67_spill]]  ;;  %v548_v15 = vld [vmem:[#allocation5] sm:$0xff]  ;;  %v549_v16 = vld [vmem:[#allocation5 + $0x8] sm:$0xff]  ;;  %v550_v23 = vld [vmem:[#allocation5 + $0x10] sm:$0xff]  ;;  %v679_v50 = vlaneseq }
  0x89   : > { %13695 = vsyncadd (%p17281_p8), [#allocation6], 4294965248  ;;  %777 = vmatprep.mubr.f32.mxu1 %v17153_v0  ;;  %p14046_p11 = scmp.lt.s32.totalorder %s11105_s16, 7  ;;  %v12379_v20 = vpack.c.bf16 %v549_v16, %v548_v15  ;;  %v551_v24 = vld [vmem:[#allocation5 + $0x18] sm:$0xff]  ;;  %v552_v26 = vld [vmem:[#allocation5 + $0x20] sm:$0xff]  ;;  %vm563_vm0 = vcmask 523264  }
  0x8a   : > { %v12383_v25 = vpack.c.bf16 %v551_v24, %v550_v23  ;;  %v553_v27 = vld [vmem:[#allocation5 + $0x28] sm:$0xff]  ;;  %v535_v33 = vld [vmem:[%s14007_s17] sm:$0xff]  ;;  %v554_v34 = vld [vmem:[#allocation5 + $0x30] sm:$0xff]  ;;  %s17284_s1 = sld [smem:[#allocation65_spill]]  ;;  %v17157_v49 = vmov 0.0|0.0   ;;  %vm13727_vm1 = vmmov 0  }
  0x8b   : > { %s17506_s16 = smov (!%p14046_p11, %s11105_s16), 7  ;;  %12380 = vmatprep.subr.bf16.mxu0 %v12379_v20  ;;  %v12387_v32 = vpack.c.bf16 %v553_v27, %v552_v26  ;;  %v555_v35 = vld [vmem:[#allocation5 + $0x38] sm:$0xff]  ;;  %11743 = vmatprep.mubr.msk.f32.mxu0 %vm563_vm0, %v535_v33  ;;  %v536_v40 = vld [vmem:[%s14007_s17 + $0x8] sm:$0xff]  ;;  %v537_v41 = vld [vmem:[%s14007_s17 + $0x10] sm:$0xff]  ;;  %v14115_v51 = vshrl.u32 %v679_v50, 7  ;;  %vm826_vm2 = vcmask 64512  }
  0x8c   : > { %12382 = vmatpush3.bf16.msra.mxu0 %v12379_v20  ;;  %s11366_s0 = sshll.u32 %s17506_s16, 4  ;;  %v12391_v37 = vpack.c.bf16 %v555_v35, %v554_v34  ;;  %v538_v43 = vld [vmem:[%s14007_s17 + $0x18] sm:$0xff]  ;;  %v677_v53 = vld [vmem:[%s17136_s8] sm:$0x3]  ;;  %vm14136_vm3 = vmpackc.low %vm826_vm2, %vm826_vm2  ;;  %s17291_s7 = sld [smem:[#allocation70_spill]]  ;;  %vm1143_vm4 = vcmask 130048  }
  0x8d   : > { %12384 = vmatprep.subr.bf16.mxu0 %v12383_v25  ;;  %17285 = vst [vmem:[#allocation18_spill] sm:$0xff] %v14115_v51  ;;  %v14118_v52 = vsub.s32 0, %v14115_v51  ;;  %v14127_v57 = vsub.s32 1, %v14115_v51  ;;  %s17212_s2 = smov 64   ;;  %s17202_s20 = smov 120   ;;  %vm6561_vm5 = vcmask 195584  }
  0x8e   : > { %v662_v1 = vld [vmem:[%s17282_s3 + $0x8] sm:$0xff]  ;;  %v664_v2 = vld [vmem:[%s17282_s3 + $0x18] sm:$0xff]  ;;  %v661_v3 = vld [vmem:[%s17282_s3] sm:$0xff]  ;;  %s17204_s19 = smov 56   ;;  %s17208_s25 = smov 112   ;;  %vm6408_vm6 = vcmask 261120  }
  0x8f   : > { %v12395_v4 = vpack.c.bf16 %v664_v2, %v662_v1  ;;  %v663_v5 = vld [vmem:[%s17282_s3 + $0x10] sm:$0xff]  ;;  %v666_v6 = vld [vmem:[%s17282_s3 + $0x28] sm:$0xff]  ;;  %v668_v7 = vld [vmem:[%s17282_s3 + $0x38] sm:$0xff]  ;;  %17286 = vst [vmem:[#allocation19_spill] sm:$0xff] %v14118_v52  ;;  %v682_v55 = vrot.slane %v677_v53, %v14118_v52  ;;  %v14132_v1 = vrot.slane %v677_v53, %v14127_v57  ;;  %s17177_s11 = smov 104   ;;  %s17198_s15 = smov 40  }
  0x90   : > { %v12397_v8 = vpack.c.bf16 %v663_v5, %v661_v3  ;;  %v12399_v9 = vpack.c.bf16 %v668_v7, %v666_v6  ;;  %v665_v10 = vld [vmem:[%s17282_s3 + $0x20] sm:$0xff]  ;;  %v667_v11 = vld [vmem:[%s17282_s3 + $0x30] sm:$0xff]  ;;  %v670_v12 = vld [vmem:[%s17282_s3 + $0x48] sm:$0xff]  ;;  %12386 = vmatpush3.bf16.msra.mxu0 %v12383_v25  ;;  %s14078_s21 = scalar_lea.vmem %s17284_s1, %s11366_s0  ;;  %17287 = vst [vmem:[#allocation20_spill] sm:$0xff] %v14127_v57  ;;  %s17210_s0 = smov 48   ;;  %vm6570_vm7 = vcmask 326656  }
  0x91   : > { %12396 = vmatprep.subr.bf16.mxu1 %v12395_v4  ;;  %v672_v13 = vld [vmem:[%s17282_s3 + $0x58] sm:$0xff]  ;;  %v12401_v14 = vpack.c.bf16 %v667_v11, %v665_v10  ;;  %v669_v18 = vld [vmem:[%s17282_s3 + $0x40] sm:$0xff]  ;;  %v671_v19 = vld [vmem:[%s17282_s3 + $0x50] sm:$0xff]  ;;  %12388 = vmatprep.subr.bf16.mxu0 %v12387_v32  ;;  %s17200_s16 = smov 32   ;;  %s17175_s14 = smov 88   ;;  %vm6413_vm8 = vcmask 392192  }
  0x92   : > { %12398 = vmatpush1.bf16.msra.mxu1 %v12397_v8  ;;  %v12403_v17 = vpack.c.bf16 %v672_v13, %v670_v12  ;;  %v674_v21 = vld [vmem:[%s17282_s3 + $0x68] sm:$0xff]  ;;  %v676_v22 = vld [vmem:[%s17282_s3 + $0x78] sm:$0xff]  ;;  %v12405_v28 = vpack.c.bf16 %v671_v19, %v669_v18  ;;  %v673_v30 = vld [vmem:[%s17282_s3 + $0x60] sm:$0xff]  ;;  %s17196_s18 = smov 24   ;;  %s17216_s30 = smov 80   ;;  %vm6579_vm9 = vcmask 457728  }
  0x93   : > { %12400 = vmatprep.subr.bf16.mxu1 %v12399_v9  ;;  %v12407_v29 = vpack.c.bf16 %v676_v22, %v674_v21  ;;  %v675_v31 = vld [vmem:[%s17282_s3 + $0x70] sm:$0xff]  ;;  %v539_v38 = vld [vmem:[%s14078_s21] sm:$0xff]  ;;  %v540_v39 = vld [vmem:[%s14078_s21 + $0x8] sm:$0xff]  ;;  %s17322_s5 = sld [smem:[#allocation69_spill]]  ;;  %vm6422_vm10 = vcmask 654336   ;;  %vm6427_vm11 = vcmask 785408  }
  0x94   : > { %v12409_v36 = vpack.c.bf16 %v675_v31, %v673_v30  ;;  %12390 = vmatpush3.bf16.msra.mxu0 %v12387_v32  ;;  %v541_v42 = vld [vmem:[%s14078_s21 + $0x10] sm:$0xff]  ;;  %v542_v44 = vld [vmem:[%s14078_s21 + $0x18] sm:$0xff]  ;;  %v543_v45 = vld [vmem:[%s14078_s21 + $0x20] sm:$0xff]  ;;  %vm6432_vm12 = vcmask 916480   ;;  %p17481_p2 = scmp.ne.s32.totalorder %s17274_s22, 0 }
  0x95   : > { %12392 = vmatprep.subr.bf16.mxu0 %v12391_v37  ;;  %v544_v46 = vld [vmem:[%s14078_s21 + $0x28] sm:$0xff]  ;;  %v545_v47 = vld [vmem:[%s14078_s21 + $0x30] sm:$0xff]  ;;  %v546_v48 = vld [vmem:[%s14078_s21 + $0x38] sm:$0xff]  ;;  %s17214_s21 = smov 96  }
  0x96   : > { %12402 = vmatpush1.bf16.msra.mxu1 %v12401_v14  ;;  %v11108_v8 = vld [vmem:[%s17291_s7] ss:$0 sm:$0xff]  ;;  %s15272_s7 = scalar_lea.vmem [#allocation9], %s14003_s24 }
  0x97   : > { %12404 = vmatprep.subr.bf16.mxu1 %v12403_v17 }
  0x98   : > { %12394 = vmatpush3.bf16.msra.mxu0 %v12391_v37 }
  0x99   : > { %12411 = vmatprep.subr.bf16.mxu0 %v17157_v49 }
  0x9a   : > { %12406 = vmatpush1.bf16.msra.mxu1 %v12405_v28 }
  0x9b   : > { %12408 = vmatprep.subr.bf16.mxu1 %v12407_v29  ;;  %11744 = vmatmul.mubr.msk.f32.vlgmr.msra.gmra.mrb[0].mxu0 %vm563_vm0, %v536_v40 }
  0x9c   : > { %11746 = vmatprep.mubr.msk.f32.mxu0 %vm563_vm0, %v537_v41 }
  0x9e   : > { %12410 = vmatpush1.bf16.msra.mxu1 %v12409_v36 }
  0x9f   : > { %11747 = vmatmul.mubr.msk.f32.gmra.mrb[2].mxu0 %vm563_vm0, %v538_v43  ;;  %12427 = vmatprep.subr.bf16.mxu1 %v17157_v49 }
  0xa0   : > { %11753 = vmatprep.mubr.msk.f32.mxu0 %vm13727_vm1, %v17153_v0 }
  0xa1   : > { %11113 = vmatmul.mubr.msk.f32.vlgmr.msra.gmra.mrb[0].mxu1 %vm563_vm0, %v539_v38 }
  0xa2   : > { %783 = vmatprep.mubr.f32.mxu1 %v17153_v0 }
  0xa5   : > { %11114 = vmatmul.mubr.msk.f32.gmra.mrb[2].mxu1 %vm563_vm0, %v540_v39 }
  0xa6   : > { %789 = vmatprep.mubr.f32.mxu1 %v17153_v0 }
  0xa9   : > { %11115 = vmatmul.mubr.msk.f32.gmra.mrb[4].mxu1 %vm563_vm0, %v541_v42 }
  0xaa   : > { %795 = vmatprep.mubr.f32.mxu1 %v17153_v0 }
  0xad   : > { %11116 = vmatmul.mubr.msk.f32.gmra.mrb[6].mxu1 %vm563_vm0, %v542_v44 }
  0xae   : > { %801 = vmatprep.mubr.f32.mxu1 %v17153_v0 }
  0xb1   : > { %11117 = vmatmul.mubr.msk.f32.gmra.mrb[8].mxu1 %vm563_vm0, %v543_v45 }
  0xb2   : > { %807 = vmatprep.mubr.f32.mxu1 %v17153_v0 }
  0xb5   : > { %11118 = vmatmul.mubr.msk.f32.gmra.mrb[10].mxu1 %vm563_vm0, %v544_v46 }
  0xb6   : > { %813 = vmatprep.mubr.f32.mxu1 %v17153_v0 }
  0xb9   : > { %11119 = vmatmul.mubr.msk.f32.gmra.mrb[12].mxu1 %vm563_vm0, %v545_v47 }
  0xba   : > { %819 = vmatprep.mubr.f32.mxu1 %v17153_v0 }
  0xbd   : > { %11120 = vmatmul.mubr.msk.f32.gmra.mrb[14].mxu1 %vm563_vm0, %v546_v48 }
  0xbe   : > { %11781 = vmatprep.mubr.msk.f32.mxu1 %vm13727_vm1, %v17153_v0 }
 0x16e   : > { %v11745_v59 = vpop.f32.mrb[0].mxu0 }
 0x16f   : > { %v642_v63 = vpop.f32.mrb[1].mxu0  ;;  %v14170_v24 = vadd.f32 %v11745_v59, %v11108_v8 }
 0x170   : > { %v14151_v12 = vadd.f32 %v11108_v8, %v642_v63 }
 0x171   : > { %17294 = vst [vmem:[#allocation24_spill] sm:$0xff] %v14170_v24 }
 0x172   : > { %v11748_v6 = vpop.f32.mrb[2].mxu0 }
 0x173   : > { %v652_v9 = vpop.f32.mrb[3].mxu0  ;;  %v14201_v37 = vadd.f32 %v11748_v6, %v11108_v8 }
 0x174   : > { %v779_v54 = vpop.f32.mrb[0].mxu1  ;;  %v14186_v32 = vadd.f32 %v11108_v8, %v652_v9 }
 0x175   : > { %v14124_v56 = vpop.f32.mrb[1].mxu1  ;;  %v780_v60 = vadd.f32 %v779_v54, %v682_v55  ;;  %17298 = vst [vmem:[#allocation28_spill] sm:$0xff] %v14201_v37 }
 0x176   : > { %17296 = vst [vmem:[#allocation26_spill] sm:$0xff] %v14186_v32 }
 0x178   : > { %v785_v58 = vpop.f32.mrb[2].mxu1 }
 0x179   : > { %v786_v61 = vadd.f32 %v785_v58, %v682_v55  ;;  %v14129_v62 = vpop.f32.mrb[3].mxu1 }
 0x17a   : > { %17288 = vst [vmem:[#allocation21_spill] sm:$0xff] %v14129_v62 }
 0x17b   : > { %v12412_v3 = vpack.c.bf16 %v786_v61, %v780_v60  ;;  %v14140_v4 = vpack.i.bf16 %v786_v61, %v780_v60 }
 0x17c   : > { %v791_v5 = vpop.f32.mrb[4].mxu1 }
 0x17d   : > { %v793_v7 = vpop.f32.mrb[5].mxu1  ;;  %12414 = vmatpush3.bf16.xpose.msk.msra.mxu0 %vm14136_vm3, %v12412_v3  ;;  %v792_v13 = vadd.f32 %v791_v5, %v682_v55 }
 0x17e   : > { %v14148_v10 = vadd.f32 %v793_v7, %v14132_v1  ;;  %12415 = vmatprep.subr.bf16.mxu0 %v17157_v49 }
 0x180   : > { %17292 = vst [vmem:[#allocation22_spill] sm:$0xff] %v14148_v10  ;;  %v797_v11 = vpop.f32.mrb[6].mxu1 }
 0x181   : > { %v798_v14 = vadd.f32 %v797_v11, %v682_v55  ;;  %v14153_v15 = vpop.f32.mrb[7].mxu1 }
 0x183   : > { %v14155_v16 = vpack.i.bf16 %v798_v14, %v792_v13  ;;  %v12416_v17 = vpack.c.bf16 %v798_v14, %v792_v13 }
 0x184   : > { %11754 = vmatmul.mubr.msk.f32.vlgmr.msra.gmra.mrb[4].mxu0 %vm826_vm2, %v14151_v12  ;;  %v803_v18 = vpop.f32.mrb[8].mxu1 }
 0x185   : > { %12803 = vrot.lane.b32.xlu1 %v14155_v16, %s17212_s2  ;;  %12418 = vmatpush3.bf16.xpose.msk.msra.mxu0 %vm14136_vm3, %v12416_v17  ;;  %v14163_v19 = vpop.f32.mrb[9].mxu1  ;;  %v804_v20 = vadd.f32 %v803_v18, %v682_v55 }
 0x186   : > { %11760 = vmatprep.mubr.msk.f32.mxu0 %vm13727_vm1, %v17153_v0  ;;  %12419 = vmatprep.subr.bf16.mxu0 %v17157_v49 }
 0x188   : > { %v809_v21 = vpop.f32.mrb[10].mxu1 }
 0x189   : > { %v810_v22 = vadd.f32 %v809_v21, %v682_v55  ;;  %v14168_v23 = vpop.f32.mrb[11].mxu1 }
 0x18a   : > { %17293 = vst [vmem:[#allocation23_spill] sm:$0xff] %v14168_v23 }
 0x18b   : > { %v12420_v25 = vpack.c.bf16 %v810_v22, %v804_v20  ;;  %v14172_v26 = vpack.i.bf16 %v810_v22, %v804_v20 }
 0x18c   : > { %11761 = vmatmul.mubr.msk.f32.vlgmr.msra.gmra.mrb[6].mxu0 %vm826_vm2, %v14170_v24  ;;  %v815_v27 = vpop.f32.mrb[12].mxu1 }
 0x18d   : > { %12422 = vmatpush3.bf16.xpose.msk.msra.mxu0 %vm14136_vm3, %v12420_v25  ;;  %v816_v28 = vadd.f32 %v815_v27, %v682_v55  ;;  %v817_v29 = vpop.f32.mrb[13].mxu1  ;;  %11767 = vmatprep.mubr.msk.f32.mxu0 %vm13727_vm1, %v17153_v0 }
 0x18e   : > { %v14181_v30 = vadd.f32 %v817_v29, %v14132_v1  ;;  %12423 = vmatprep.subr.bf16.mxu0 %v17157_v49  ;;  %12808 = vrot.lane.b32.xlu1 %v14172_v26, %s17212_s2 }
 0x190   : > { %17295 = vst [vmem:[#allocation25_spill] sm:$0xff] %v14181_v30  ;;  %v821_v31 = vpop.f32.mrb[14].mxu1 }
 0x191   : > { %v822_v33 = vadd.f32 %v821_v31, %v682_v55  ;;  %v14188_v34 = vpop.f32.mrb[15].mxu1 }
 0x192   : > { %17297 = vst [vmem:[#allocation27_spill] sm:$0xff] %v14188_v34 }
 0x193   : > { %v12424_v35 = vpack.c.bf16 %v822_v33, %v816_v28  ;;  %v14190_v36 = vpack.i.bf16 %v822_v33, %v816_v28 }
 0x194   : > { %11768 = vmatmul.mubr.msk.f32.vlgmr.msra.gmra.mrb[8].mxu0 %vm826_vm2, %v14186_v32 }
 0x195   : > { %12426 = vmatpush3.bf16.xpose.msk.msra.mxu0 %vm14136_vm3, %v12424_v35  ;;  %11774 = vmatprep.mubr.msk.f32.mxu0 %vm13727_vm1, %v17153_v0 }
 0x196   : > { %12813 = vrot.lane.b32.xlu1 %v14190_v36, %s17212_s2  ;;  %12430 = vmatprep.subr.bf16.mxu0 %v17157_v49 }
 0x19c   : > { %11775 = vmatmul.mubr.msk.f32.vlgmr.msra.gmra.mrb[10].mxu0 %vm826_vm2, %v14201_v37 }
 0x19d   : > { %11788 = vmatprep.mubr.msk.f32.mxu0 %vm13727_vm1, %v17153_v0 }
 0x1f7   : > { %v12804_v38 = vpop.permute.xlu1 %12803 }
 0x1f8   : > { %v12806_v39 = vunpack.i.h.bf16 %v12804_v38  ;;  %v12805_v40 = vunpack.i.l.bf16 %v12804_v38 }
 0x1fa   : > { %v12431_v41 = vpack.c.bf16 %v12806_v39, %v12805_v40 }
 0x1fc   : > { %12432 = vmatpush3.bf16.msra.mxu0 %v12431_v41 }
 0x1fd   : > { %12436 = vmatprep.subr.bf16.mxu0 %v17157_v49 }
 0x200   : > { %v12809_v18 = vpop.permute.xlu1 %12808 }
 0x208   : > { %v12814_v20 = vpop.permute.xlu1 %12813 }
 0x257   : > { %v902_v42 = vpop.f32.mrb[4].mxu0 }
 0x258   : > { %v11755_v43 = vpop.f32.mrb[5].mxu0  ;;  %v1144_v44 = vsel %vm1143_vm4, %v902_v42, -inf }
 0x259   : > { %1145 = vmax.xlane.f32.xlu0 %v1144_v44  ;;  %v12810_v43 = vunpack.i.l.bf16 %v12809_v18 }
 0x25f   : > { %v981_v45 = vpop.f32.mrb[6].mxu0 }
 0x260   : > { %v11762_v46 = vpop.f32.mrb[7].mxu0  ;;  %v1147_v47 = vsel %vm1143_vm4, %v981_v45, -inf }
 0x261   : > { %1148 = vmax.xlane.f32.xlu0 %v1147_v47  ;;  %v12816_v47 = vunpack.i.h.bf16 %v12814_v20 }
 0x267   : > { %v1060_v48 = vpop.f32.mrb[8].mxu0 }
 0x268   : > { %v1150_v50 = vsel %vm1143_vm4, %v1060_v48, -inf  ;;  %v11769_v53 = vpop.f32.mrb[9].mxu0 }
 0x269   : > { %1151 = vmax.xlane.f32.xlu1 %v1150_v50 }
 0x26f   : > { %v1139_v54 = vpop.f32.mrb[10].mxu0 }
 0x270   : > { %v1153_v55 = vsel %vm1143_vm4, %v1139_v54, -inf  ;;  %v11776_v58 = vpop.f32.mrb[11].mxu0 }
 0x271   : > { %1154 = vmax.xlane.f32.xlu1 %v1153_v55 }
 0x277   : > { %12798 = vrot.lane.b32.xlu0 %v14140_v4, %s17212_s2 }
 0x282   : > { %12823 = vrot.lane.b32.xlu1 %v14155_v16, %s17202_s20 }
 0x2e6   : > { %v1146_v59 = vpop.xlane.xlu0 %1145 }
 0x2e7   : > { %v1156_v60 = vsub.f32 %v902_v42, %v1146_v59  ;;  %v12811_v42 = vunpack.i.h.bf16 %v12809_v18 }
 0x2e9   : > { %v1160_v61 = vmul.f32 1.442695, %v1156_v60  ;;  %v12434_v46 = vpack.c.bf16 %v12811_v42, %v12810_v43 }
 0x2eb   : > { %13097 = vpow2.f32 %v1160_v61 }
 0x2ee   : > { %v1149_v63 = vpop.xlane.xlu0 %1148 }
 0x2ef   : > { %v1157_v3 = vsub.f32 %v981_v45, %v1149_v63 }
 0x2f1   : > { %v1162_v5 = vmul.f32 1.442695, %v1157_v3 }
 0x2f2   : > { %v12799_v6 = vpop.permute.xlu0 %12798 }
 0x2f3   : > { %13099 = vpow2.f32 %v1162_v5  ;;  %v12801_v7 = vunpack.i.h.bf16 %v12799_v6  ;;  %v12800_v8 = vunpack.i.l.bf16 %v12799_v6 }
 0x2f5   : > { %v13098_v9 = vpop.eup %13097  ;;  %v12428_v11 = vpack.c.bf16 %v12801_v7, %v12800_v8 }
 0x2f6   : > { %v1168_v13 = vsel %vm1143_vm4, %v13098_v9, 0.0  ;;  %v1152_v21 = vpop.xlane.xlu1 %1151 }
 0x2f7   : > { %1169 = vadd.xlane.f32.xlu0 %v1168_v13  ;;  %12429 = vmatpush3.bf16.msra.mxu1 %v12428_v11  ;;  %v1158_v22 = vsub.f32 %v1060_v48, %v1152_v21  ;;  %v12815_v48 = vunpack.i.l.bf16 %v12814_v20 }
 0x2f8   : > { %12433 = vmatprep.subr.bf16.mxu1 %v17157_v49 }
 0x2f9   : > { %v1164_v25 = vmul.f32 1.442695, %v1158_v22 }
 0x2fb   : > { %13101 = vpow2.f32 %v1164_v25 }
 0x2fd   : > { %v13100_v14 = vpop.eup %13099 }
 0x2fe   : > { %v1171_v17 = vsel %vm1143_vm4, %v13100_v14, 0.0  ;;  %v1155_v27 = vpop.xlane.xlu1 %1154 }
 0x2ff   : > { %1172 = vadd.xlane.f32.xlu1 %v1171_v17  ;;  %v1159_v28 = vsub.f32 %v1139_v54, %v1155_v27  ;;  %v12437_v54 = vpack.c.bf16 %v12816_v47, %v12815_v48 }
 0x301   : > { %v1166_v29 = vmul.f32 1.442695, %v1159_v28 }
 0x302   : > { %v12824_v40 = vpop.permute.xlu1 %12823 }
 0x303   : > { %13103 = vpow2.f32 %v1166_v29  ;;  %v12826_v7 = vunpack.i.h.bf16 %v12824_v40  ;;  %v12825_v8 = vunpack.i.l.bf16 %v12824_v40 }
 0x305   : > { %v13102_v31 = vpop.eup %13101  ;;  %v12444_v18 = vpack.c.bf16 %v12826_v7, %v12825_v8 }
 0x306   : > { %v1174_v33 = vsel %vm1143_vm4, %v13102_v31, 0.0 }
 0x30d   : > { %12818 = vrot.lane.b32.xlu0 %v14140_v4, %s17202_s20  ;;  %v13104_v35 = vpop.eup %13103 }
 0x30e   : > { %v1177_v38 = vsel %vm1143_vm4, %v13104_v35, 0.0 }
 0x310   : > { %12828 = vrot.lane.b32.xlu1 %v14172_v26, %s17202_s20 }
 0x32c   : > { %1175 = vadd.xlane.f32.xlu0 %v1174_v33 }
 0x334   : > { %1178 = vadd.xlane.f32.xlu1 %v1177_v38 }
 0x342   : > { %1504 = vrot.lane.b32.xlu0 %v14151_v12, %s17202_s20 }
 0x345   : > { %12833 = vrot.lane.b32.xlu1 %v14190_v36, %s17202_s20 }
 0x346   : > { %1586 = vrot.lane.b32.xlu0 %v14170_v24, %s17202_s20 }
 0x349   : > { %1750 = vrot.lane.b32.xlu1 %v14201_v37, %s17202_s20 }
 0x34a   : > { %1668 = vrot.lane.b32.xlu0 %v14186_v32, %s17202_s20  ;;  %s17332_s20 = smov 32  }
 0x384   : > { %v1170_v39 = vpop.xlane.xlu0 %1169 }
 0x385   : > { %13105 = vrcp.f32 %v1170_v39 }
 0x388   : > { %v12819_v55 = vpop.permute.xlu0 %12818 }
 0x389   : > { %v12821_v61 = vunpack.i.h.bf16 %v12819_v55  ;;  %v12820_v63 = vunpack.i.l.bf16 %v12819_v55 }
 0x38b   : > { %v12440_v6 = vpack.c.bf16 %v12821_v61, %v12820_v63 }
 0x38c   : > { %v1173_v41 = vpop.xlane.xlu1 %1172 }
 0x38d   : > { %13107 = vrcp.f32 %v1173_v41 }
 0x38f   : > { %v13106_v44 = vpop.eup %13105 }
 0x390   : > { %v14235_v45 = vmul.f32 %v13106_v44, %v13098_v9  ;;  %v12829_v59 = vpop.permute.xlu1 %12828 }
 0x391   : > { %v12831_v9 = vunpack.i.h.bf16 %v12829_v59  ;;  %v12830_v11 = vunpack.i.l.bf16 %v12829_v59 }
 0x392   : > { %17299 = vst [vmem:[#allocation29_spill] sm:$0xff] %v14235_v45  ;;  %11782 = vmatmul.mubr.msk.f32.vlgmr.msra.gmra.mrb[16].mxu1 %vm1143_vm4, %v14235_v45  ;;  %v17315_v45 = vmov 0.0|0.0  }
 0x393   : > { %12435 = vmatpush3.bf16.msra.mxu1 %v12434_v46  ;;  %11795 = vmatprep.mubr.msk.f32.mxu1 %vm13727_vm1, %v17153_v0  ;;  %v12448_v20 = vpack.c.bf16 %v12831_v9, %v12830_v11 }
 0x394   : > { %12439 = vmatprep.subr.bf16.mxu1 %v17157_v49 }
 0x397   : > { %v13108_v50 = vpop.eup %13107 }
 0x398   : > { %v14242_v53 = vmul.f32 %v13108_v50, %v13100_v14 }
 0x39a   : > { %17300 = vst [vmem:[#allocation30_spill] sm:$0xff] %v14242_v53  ;;  %11789 = vmatmul.mubr.msk.f32.vlgmr.msra.gmra.mrb[12].mxu0 %vm1143_vm4, %v14242_v53 }
 0x39b   : > { %12438 = vmatpush3.bf16.msra.mxu0 %v12437_v54  ;;  %11802 = vmatprep.mubr.msk.f32.mxu0 %vm13727_vm1, %v17153_v0 }
 0x39c   : > { %12443 = vmatprep.subr.bf16.mxu0 %v17157_v49 }
 0x3b9   : > { %v1176_v58 = vpop.xlane.xlu0 %1175 }
 0x3ba   : > { %13109 = vrcp.f32 %v1176_v58 }
 0x3bd   : > { %v1505_v13 = vpop.permute.xlu0 %1504 }
 0x3c1   : > { %v1179_v60 = vpop.xlane.xlu1 %1178  ;;  %v1587_v22 = vpop.permute.xlu0 %1586 }
 0x3c2   : > { %13111 = vrcp.f32 %v1179_v60 }
 0x3c4   : > { %v13110_v3 = vpop.eup %13109 }
 0x3c5   : > { %v14249_v5 = vmul.f32 %v13110_v3, %v13102_v31  ;;  %v12834_v21 = vpop.permute.xlu1 %12833  ;;  %v1669_v28 = vpop.permute.xlu0 %1668 }
 0x3c6   : > { %v12836_v25 = vunpack.i.h.bf16 %v12834_v21  ;;  %v12835_v27 = vunpack.i.l.bf16 %v12834_v21 }
 0x3c7   : > { %17301 = vst [vmem:[#allocation31_spill] sm:$0xff] %v14249_v5  ;;  %11796 = vmatmul.mubr.msk.f32.vlgmr.msra.gmra.mrb[18].mxu1 %vm1143_vm4, %v14249_v5 }
 0x3c8   : > { %12442 = vmatpush3.bf16.xpose.msk.msra.mxu1 %vm14136_vm3, %v12440_v6  ;;  %11809 = vmatprep.mubr.msk.f32.mxu1 %vm13727_vm1, %v17153_v0  ;;  %v12452_v29 = vpack.c.bf16 %v12836_v25, %v12835_v27 }
 0x3c9   : > { %12447 = vmatprep.subr.bf16.mxu1 %v17157_v49  ;;  %v1751_v31 = vpop.permute.xlu1 %1750 }
 0x3cc   : > { %v13112_v14 = vpop.eup %13111 }
 0x3cd   : > { %v14258_v17 = vmul.f32 %v13112_v14, %v13104_v35 }
 0x3cf   : > { %17302 = vst [vmem:[#allocation32_spill] sm:$0xff] %v14258_v17  ;;  %11810 = vmatmul.mubr.msk.f32.vlgmr.msra.gmra.mrb[20].mxu1 %vm826_vm2, %v1505_v13  ;;  %11803 = vmatmul.mubr.msk.f32.vlgmr.msra.gmra.mrb[14].mxu0 %vm1143_vm4, %v14258_v17 }
 0x3d0   : > { %12446 = vmatpush3.bf16.xpose.msk.msra.mxu0 %vm14136_vm3, %v12444_v18  ;;  %12450 = vmatpush3.bf16.xpose.msk.msra.mxu1 %vm14136_vm3, %v12448_v20 }
 0x3d1   : > { %11816 = vmatprep.mubr.msk.f32.mxu0 %vm13727_vm1, %v17153_v0  ;;  %11823 = vmatprep.mubr.msk.f32.mxu1 %vm13727_vm1, %v17153_v0 }
 0x3d2   : > { %12451 = vmatprep.subr.bf16.mxu0 %v17157_v49  ;;  %12455 = vmatprep.subr.bf16.mxu1 %v17157_v49 }
 0x3d7   : > { %11817 = vmatmul.mubr.msk.f32.vlgmr.msra.gmra.mrb[16].mxu0 %vm826_vm2, %v1587_v22  ;;  %11824 = vmatmul.mubr.msk.f32.vlgmr.msra.gmra.mrb[22].mxu1 %vm826_vm2, %v1669_v28 }
 0x3d8   : > { %12454 = vmatpush3.bf16.xpose.msk.msra.mxu0 %vm14136_vm3, %v12452_v29  ;;  %11830 = vmatprep.mubr.msk.f32.mxu0 %vm13727_vm1, %v17153_v0 }
 0x3d9   : > { %12458 = vmatprep.subr.bf16.mxu0 %v17157_v49  ;;  %11837 = vmatprep.mubr.msk.f32.mxu1 %vm13727_vm1, %v17153_v0 }
 0x3df   : > { %11831 = vmatmul.mubr.msk.f32.vlgmr.msra.gmra.mrb[18].mxu0 %vm826_vm2, %v1751_v31 }
 0x3e0   : > { %11844 = vmatprep.mubr.msk.f32.mxu0 %vm13727_vm1, %v17153_v0 }
 0x465   : > { %v14285_v33 = vpop.f32.mrb[16].mxu1 }
 0x466   : > { %17303 = vst [vmem:[#allocation33_spill] sm:$0xff] %v14285_v33  ;;  %v11783_v35 = vpop.f32.mrb[17].mxu1 }
 0x46d   : > { %v14287_v38 = vpop.f32.mrb[12].mxu0 }
 0x46e   : > { %17304 = vst [vmem:[#allocation34_spill] sm:$0xff] %v14287_v38  ;;  %v11790_v39 = vpop.f32.mrb[13].mxu0 }
 0x49a   : > { %v14289_v40 = vpop.f32.mrb[18].mxu1 }
 0x49b   : > { %17305 = vst [vmem:[#allocation35_spill] sm:$0xff] %v14289_v40  ;;  %v11797_v41 = vpop.f32.mrb[19].mxu1 }
 0x4a2   : > { %v1582_v42 = vpop.f32.mrb[20].mxu1  ;;  %v14291_v43 = vpop.f32.mrb[14].mxu0 }
 0x4a3   : > { %17306 = vst [vmem:[#allocation36_spill] sm:$0xff] %v14291_v43  ;;  %v11811_v44 = vpop.f32.mrb[21].mxu1  ;;  %v1832_v46 = vsel %vm1143_vm4, %v1582_v42, -inf  ;;  %v11804_v47 = vpop.f32.mrb[15].mxu0 }
 0x4a4   : > { %1833 = vmax.xlane.f32.xlu0 %v1832_v46 }
 0x4aa   : > { %v1664_v48 = vpop.f32.mrb[16].mxu0  ;;  %v1746_v50 = vpop.f32.mrb[22].mxu1 }
 0x4ab   : > { %v11818_v54 = vpop.f32.mrb[17].mxu0  ;;  %v11825_v55 = vpop.f32.mrb[23].mxu1  ;;  %v1838_v58 = vsel %vm1143_vm4, %v1746_v50, -inf  ;;  %v1835_v59 = vsel %vm1143_vm4, %v1664_v48, -inf }
 0x4ac   : > { %1839 = vmax.xlane.f32.xlu0 %v1838_v58  ;;  %1836 = vmax.xlane.f32.xlu1 %v1835_v59 }
 0x4b2   : > { %v1828_v60 = vpop.f32.mrb[18].mxu0 }
 0x4b3   : > { %v11832_v61 = vpop.f32.mrb[19].mxu0  ;;  %v1841_v63 = vsel %vm1143_vm4, %v1828_v60, -inf }
 0x4b4   : > { %1842 = vmax.xlane.f32.xlu0 %v1841_v63 }
 0x4bd   : > { %12843 = vrot.lane.b32.xlu1 %v14155_v16, %s17204_s19 }
 0x4c1   : > { %12848 = vrot.lane.b32.xlu1 %v14172_v26, %s17204_s19 }
 0x4c5   : > { %12853 = vrot.lane.b32.xlu1 %v14190_v36, %s17204_s19 }
 0x4c9   : > { %12863 = vrot.lane.b32.xlu1 %v14155_v16, %s17208_s25 }
 0x4ca   : > { %12838 = vrot.lane.b32.xlu0 %v14140_v4, %s17204_s19 }
 0x531   : > { %v1834_v3 = vpop.xlane.xlu0 %1833 }
 0x532   : > { %v1844_v6 = vsub.f32 %v1582_v42, %v1834_v3 }
 0x534   : > { %v1848_v7 = vmul.f32 1.442695, %v1844_v6 }
 0x536   : > { %13113 = vpow2.f32 %v1848_v7 }
 0x539   : > { %v1837_v8 = vpop.xlane.xlu1 %1836  ;;  %v1840_v13 = vpop.xlane.xlu0 %1839 }
 0x53a   : > { %v1845_v9 = vsub.f32 %v1664_v48, %v1837_v8  ;;  %v1846_v42 = vsub.f32 %v1746_v50, %v1840_v13 }
 0x53c   : > { %v1850_v11 = vmul.f32 1.442695, %v1845_v9  ;;  %v1852_v44 = vmul.f32 1.442695, %v1846_v42 }
 0x53d   : > { %v12844_v14 = vpop.permute.xlu1 %12843 }
 0x53e   : > { %v12846_v18 = vunpack.i.h.bf16 %v12844_v14  ;;  %v12845_v20 = vunpack.i.l.bf16 %v12844_v14  ;;  %13115 = vpow2.f32 %v1850_v11 }
 0x53f   : > { %13117 = vpow2.f32 %v1852_v44 }
 0x540   : > { %v13114_v21 = vpop.eup %13113  ;;  %v12459_v22 = vpack.c.bf16 %v12846_v18, %v12845_v20 }
 0x541   : > { %v1843_v25 = vpop.xlane.xlu0 %1842  ;;  %v1856_v27 = vsel %vm1143_vm4, %v13114_v21, 0.0  ;;  %v12849_v50 = vpop.permute.xlu1 %12848 }
 0x542   : > { %12460 = vmatpush3.bf16.msra.mxu0 %v12459_v22  ;;  %1857 = vadd.xlane.f32.xlu0 %v1856_v27  ;;  %v1847_v46 = vsub.f32 %v1828_v60, %v1843_v25  ;;  %v12851_v63 = vunpack.i.h.bf16 %v12849_v50  ;;  %v12850_v3 = vunpack.i.l.bf16 %v12849_v50 }
 0x543   : > { %12464 = vmatprep.subr.bf16.mxu0 %v17157_v49 }
 0x544   : > { %v1854_v47 = vmul.f32 1.442695, %v1847_v46  ;;  %v12462_v9 = vpack.c.bf16 %v12851_v63, %v12850_v3 }
 0x545   : > { %v12839_v28 = vpop.permute.xlu0 %12838  ;;  %v12854_v59 = vpop.permute.xlu1 %12853 }
 0x546   : > { %v12841_v29 = vunpack.i.h.bf16 %v12839_v28  ;;  %v12840_v31 = vunpack.i.l.bf16 %v12839_v28  ;;  %13119 = vpow2.f32 %v1854_v47  ;;  %v12856_v11 = vunpack.i.h.bf16 %v12854_v59 }
 0x547   : > { %v12855_v13 = vunpack.i.l.bf16 %v12854_v59 }
 0x548   : > { %v13116_v35 = vpop.eup %13115  ;;  %v12456_v39 = vpack.c.bf16 %v12841_v29, %v12840_v31 }
 0x549   : > { %v1859_v41 = vsel %vm1143_vm4, %v13116_v35, 0.0  ;;  %v13118_v48 = vpop.eup %13117  ;;  %v12864_v61 = vpop.permute.xlu1 %12863  ;;  %v12465_v20 = vpack.c.bf16 %v12856_v11, %v12855_v13 }
 0x54a   : > { %1860 = vadd.xlane.f32.xlu1 %v1859_v41  ;;  %12457 = vmatpush3.bf16.msra.mxu1 %v12456_v39  ;;  %v1862_v54 = vsel %vm1143_vm4, %v13118_v48, 0.0  ;;  %v12866_v46 = vunpack.i.h.bf16 %v12864_v61  ;;  %v12865_v47 = vunpack.i.l.bf16 %v12864_v61 }
 0x54b   : > { %12461 = vmatprep.subr.bf16.mxu1 %v17157_v49 }
 0x54c   : > { %v12472_v50 = vpack.c.bf16 %v12866_v46, %v12865_v47 }
 0x550   : > { %v13120_v55 = vpop.eup %13119 }
 0x551   : > { %v1865_v58 = vsel %vm1143_vm4, %v13120_v55, 0.0 }
 0x558   : > { %12858 = vrot.lane.b32.xlu0 %v14140_v4, %s17208_s25 }
 0x55b   : > { %12868 = vrot.lane.b32.xlu1 %v14172_v26, %s17208_s25 }
 0x577   : > { %1863 = vadd.xlane.f32.xlu0 %v1862_v54 }
 0x57f   : > { %1866 = vadd.xlane.f32.xlu1 %v1865_v58 }
 0x58d   : > { %2192 = vrot.lane.b32.xlu0 %v14151_v12, %s17208_s25 }
 0x590   : > { %12873 = vrot.lane.b32.xlu1 %v14190_v36, %s17208_s25 }
 0x591   : > { %2274 = vrot.lane.b32.xlu0 %v14170_v24, %s17208_s25 }
 0x594   : > { %2438 = vrot.lane.b32.xlu1 %v14201_v37, %s17208_s25 }
 0x595   : > { %2356 = vrot.lane.b32.xlu0 %v14186_v32, %s17208_s25  ;;  %s17323_s25 = smov 96  }
 0x5cf   : > { %v1858_v60 = vpop.xlane.xlu0 %1857 }
 0x5d0   : > { %13121 = vrcp.f32 %v1858_v60 }
 0x5d7   : > { %v1861_v6 = vpop.xlane.xlu1 %1860 }
 0x5d8   : > { %13123 = vrcp.f32 %v1861_v6 }
 0x5da   : > { %v13122_v7 = vpop.eup %13121 }
 0x5db   : > { %v14327_v8 = vmul.f32 %v13122_v7, %v13114_v21  ;;  %v12859_v21 = vpop.permute.xlu0 %12858  ;;  %v12869_v25 = vpop.permute.xlu1 %12868 }
 0x5dc   : > { %v12861_v27 = vunpack.i.h.bf16 %v12859_v21  ;;  %v12860_v28 = vunpack.i.l.bf16 %v12859_v21  ;;  %v12871_v41 = vunpack.i.h.bf16 %v12869_v25  ;;  %v12870_v42 = vunpack.i.l.bf16 %v12869_v25 }
 0x5dd   : > { %11838 = vmatmul.mubr.msk.f32.vlgmr.msra.gmra.mrb[24].mxu1 %vm1143_vm4, %v14327_v8 }
 0x5de   : > { %12463 = vmatpush3.bf16.msra.mxu1 %v12462_v9  ;;  %11851 = vmatprep.mubr.msk.f32.mxu1 %vm13727_vm1, %v17153_v0  ;;  %v12468_v39 = vpack.c.bf16 %v12861_v27, %v12860_v28 }
 0x5df   : > { %12467 = vmatprep.subr.bf16.mxu1 %v17157_v49 }
 0x5e2   : > { %v13124_v14 = vpop.eup %13123 }
 0x5e3   : > { %v14334_v18 = vmul.f32 %v13124_v14, %v13116_v35 }
 0x5e5   : > { %11845 = vmatmul.mubr.msk.f32.vlgmr.msra.gmra.mrb[20].mxu0 %vm1143_vm4, %v14334_v18 }
 0x5e6   : > { %12466 = vmatpush3.bf16.msra.mxu0 %v12465_v20  ;;  %11858 = vmatprep.mubr.msk.f32.mxu0 %vm13727_vm1, %v17153_v0 }
 0x5e7   : > { %12471 = vmatprep.subr.bf16.mxu0 %v17157_v49 }
 0x604   : > { %v1864_v22 = vpop.xlane.xlu0 %1863 }
 0x605   : > { %13125 = vrcp.f32 %v1864_v22 }
 0x608   : > { %v2193_v44 = vpop.permute.xlu0 %2192 }
 0x60c   : > { %v1867_v29 = vpop.xlane.xlu1 %1866  ;;  %v2275_v59 = vpop.permute.xlu0 %2274 }
 0x60d   : > { %13127 = vrcp.f32 %v1867_v29 }
 0x60f   : > { %v13126_v31 = vpop.eup %13125 }
 0x610   : > { %v14341_v35 = vmul.f32 %v13126_v31, %v13118_v48  ;;  %v12476_v48 = vpack.c.bf16 %v12871_v41, %v12870_v42  ;;  %v12874_v60 = vpop.permute.xlu1 %12873  ;;  %v2357_v63 = vpop.permute.xlu0 %2356 }
 0x611   : > { %v12875_v61 = vunpack.i.l.bf16 %v12874_v60 }
 0x612   : > { %11852 = vmatmul.mubr.msk.f32.vlgmr.msra.gmra.mrb[26].mxu1 %vm1143_vm4, %v14341_v35 }
 0x613   : > { %12470 = vmatpush3.bf16.xpose.msk.msra.mxu1 %vm14136_vm3, %v12468_v39  ;;  %11865 = vmatprep.mubr.msk.f32.mxu1 %vm13727_vm1, %v17153_v0 }
 0x614   : > { %12475 = vmatprep.subr.bf16.mxu1 %v17157_v49  ;;  %v2439_v6 = vpop.permute.xlu1 %2438 }
 0x617   : > { %v13128_v54 = vpop.eup %13127 }
 0x618   : > { %v14350_v58 = vmul.f32 %v13128_v54, %v13120_v55  ;;  %v12876_v55 = vunpack.i.h.bf16 %v12874_v60 }
 0x61a   : > { %17307 = vst [vmem:[#allocation37_spill] sm:$0xff] %v14350_v58  ;;  %11866 = vmatmul.mubr.msk.f32.vlgmr.msra.gmra.mrb[28].mxu1 %vm826_vm2, %v2193_v44  ;;  %11859 = vmatmul.mubr.msk.f32.vlgmr.msra.gmra.mrb[22].mxu0 %vm1143_vm4, %v14350_v58  ;;  %v12480_v3 = vpack.c.bf16 %v12876_v55, %v12875_v61 }
 0x61b   : > { %12478 = vmatpush3.bf16.xpose.msk.msra.mxu1 %vm14136_vm3, %v12476_v48  ;;  %12474 = vmatpush3.bf16.xpose.msk.msra.mxu0 %vm14136_vm3, %v12472_v50 }
 0x61c   : > { %11872 = vmatprep.mubr.msk.f32.mxu0 %vm13727_vm1, %v17153_v0  ;;  %11879 = vmatprep.mubr.msk.f32.mxu1 %vm13727_vm1, %v17153_v0 }
 0x61d   : > { %12479 = vmatprep.subr.bf16.mxu0 %v17157_v49  ;;  %12483 = vmatprep.subr.bf16.mxu1 %v17157_v49 }
 0x622   : > { %11880 = vmatmul.mubr.msk.f32.vlgmr.msra.gmra.mrb[30].mxu1 %vm826_vm2, %v2357_v63  ;;  %11873 = vmatmul.mubr.msk.f32.vlgmr.msra.gmra.mrb[24].mxu0 %vm826_vm2, %v2275_v59 }
 0x623   : > { %11893 = vmatprep.mubr.msk.f32.mxu1 %vm13727_vm1, %v17153_v0  ;;  %12482 = vmatpush3.bf16.xpose.msk.msra.mxu0 %vm14136_vm3, %v12480_v3 }
 0x624   : > { %11886 = vmatprep.mubr.msk.f32.mxu0 %vm13727_vm1, %v17153_v0  ;;  %12486 = vmatprep.subr.bf16.mxu0 %v17157_v49 }
 0x62a   : > { %11887 = vmatmul.mubr.msk.f32.vlgmr.msra.gmra.mrb[26].mxu0 %vm826_vm2, %v2439_v6 }
 0x62b   : > { %11900 = vmatprep.mubr.msk.f32.mxu0 %vm13727_vm1, %v17153_v0 }
 0x6b0   : > { %v14377_v7 = vpop.f32.mrb[24].mxu1 }
 0x6b1   : > { %v11839_v9 = vpop.f32.mrb[25].mxu1 }
 0x6b8   : > { %v14379_v11 = vpop.f32.mrb[20].mxu0 }
 0x6b9   : > { %v11846_v13 = vpop.f32.mrb[21].mxu0 }
 0x6e5   : > { %v14381_v14 = vpop.f32.mrb[26].mxu1 }
 0x6e6   : > { %v11853_v20 = vpop.f32.mrb[27].mxu1 }
 0x6ed   : > { %v2270_v21 = vpop.f32.mrb[28].mxu1  ;;  %v14383_v22 = vpop.f32.mrb[22].mxu0 }
 0x6ee   : > { %v11867_v25 = vpop.f32.mrb[29].mxu1  ;;  %v2520_v27 = vsel %vm1143_vm4, %v2270_v21, -inf  ;;  %v11860_v28 = vpop.f32.mrb[23].mxu0 }
 0x6ef   : > { %2521 = vmax.xlane.f32.xlu0 %v2520_v27 }
 0x6f5   : > { %v2434_v29 = vpop.f32.mrb[30].mxu1  ;;  %v2352_v31 = vpop.f32.mrb[24].mxu0 }
 0x6f6   : > { %v11881_v39 = vpop.f32.mrb[31].mxu1  ;;  %v2526_v41 = vsel %vm1143_vm4, %v2434_v29, -inf  ;;  %v11874_v42 = vpop.f32.mrb[25].mxu0  ;;  %v2523_v44 = vsel %vm1143_vm4, %v2352_v31, -inf }
 0x6f7   : > { %2527 = vmax.xlane.f32.xlu0 %v2526_v41  ;;  %2524 = vmax.xlane.f32.xlu1 %v2523_v44 }
 0x6fd   : > { %v2516_v46 = vpop.f32.mrb[26].mxu0 }
 0x6fe   : > { %v11888_v47 = vpop.f32.mrb[27].mxu0  ;;  %v2529_v54 = vsel %vm1143_vm4, %v2516_v46, -inf }
 0x6ff   : > { %2530 = vmax.xlane.f32.xlu0 %v2529_v54 }
 0x708   : > { %12883 = vrot.lane.b32.xlu1 %v14155_v16, %s17210_s0 }
 0x70c   : > { %12888 = vrot.lane.b32.xlu1 %v14172_v26, %s17210_s0 }
 0x710   : > { %12893 = vrot.lane.b32.xlu1 %v14190_v36, %s17210_s0 }
 0x714   : > { %12903 = vrot.lane.b32.xlu1 %v14155_v16, %s17177_s11 }
 0x715   : > { %12878 = vrot.lane.b32.xlu0 %v14140_v4, %s17210_s0 }
 0x77c   : > { %v2522_v48 = vpop.xlane.xlu0 %2521 }
 0x77d   : > { %v2532_v50 = vsub.f32 %v2270_v21, %v2522_v48 }
 0x77f   : > { %v2536_v59 = vmul.f32 1.442695, %v2532_v50 }
 0x781   : > { %13129 = vpow2.f32 %v2536_v59 }
 0x784   : > { %v2525_v60 = vpop.xlane.xlu1 %2524  ;;  %v2528_v63 = vpop.xlane.xlu0 %2527 }
 0x785   : > { %v2533_v55 = vsub.f32 %v2352_v31, %v2525_v60  ;;  %v2534_v44 = vsub.f32 %v2434_v29, %v2528_v63 }
 0x787   : > { %v2538_v61 = vmul.f32 1.442695, %v2533_v55  ;;  %v2540_v47 = vmul.f32 1.442695, %v2534_v44 }
 0x788   : > { %v12884_v3 = vpop.permute.xlu1 %12883 }
 0x789   : > { %13131 = vpow2.f32 %v2538_v61  ;;  %v12886_v6 = vunpack.i.h.bf16 %v12884_v3  ;;  %v12885_v9 = vunpack.i.l.bf16 %v12884_v3 }
 0x78a   : > { %13133 = vpow2.f32 %v2540_v47 }
 0x78b   : > { %v13130_v13 = vpop.eup %13129  ;;  %v12487_v20 = vpack.c.bf16 %v12886_v6, %v12885_v9 }
 0x78c   : > { %v2544_v25 = vsel %vm1143_vm4, %v13130_v13, 0.0  ;;  %v2531_v27 = vpop.xlane.xlu0 %2530  ;;  %v12889_v29 = vpop.permute.xlu1 %12888 }
 0x78d   : > { %2545 = vadd.xlane.f32.xlu0 %v2544_v25  ;;  %12488 = vmatpush3.bf16.msra.mxu0 %v12487_v20  ;;  %v2535_v54 = vsub.f32 %v2516_v46, %v2531_v27  ;;  %v12891_v3 = vunpack.i.h.bf16 %v12889_v29  ;;  %v12890_v6 = vunpack.i.l.bf16 %v12889_v29 }
 0x78e   : > { %12492 = vmatprep.subr.bf16.mxu0 %v17157_v49 }
 0x78f   : > { %v2542_v48 = vmul.f32 1.442695, %v2535_v54  ;;  %v12490_v27 = vpack.c.bf16 %v12891_v3, %v12890_v6 }
 0x790   : > { %v12879_v21 = vpop.permute.xlu0 %12878  ;;  %v12894_v46 = vpop.permute.xlu1 %12893 }
 0x791   : > { %v12881_v28 = vunpack.i.h.bf16 %v12879_v21  ;;  %v12880_v39 = vunpack.i.l.bf16 %v12879_v21  ;;  %13135 = vpow2.f32 %v2542_v48  ;;  %v12896_v21 = vunpack.i.h.bf16 %v12894_v46 }
 0x793   : > { %v13132_v41 = vpop.eup %13131  ;;  %v12484_v31 = vpack.c.bf16 %v12881_v28, %v12880_v39  ;;  %v12895_v28 = vunpack.i.l.bf16 %v12894_v46 }
 0x794   : > { %v2547_v42 = vsel %vm1143_vm4, %v13132_v41, 0.0  ;;  %v13134_v50 = vpop.eup %13133  ;;  %v12904_v63 = vpop.permute.xlu1 %12903 }
 0x795   : > { %2548 = vadd.xlane.f32.xlu1 %v2547_v42  ;;  %12485 = vmatpush3.bf16.msra.mxu1 %v12484_v31  ;;  %v2550_v59 = vsel %vm1143_vm4, %v13134_v50, 0.0  ;;  %v12493_v42 = vpack.c.bf16 %v12896_v21, %v12895_v28  ;;  %v12906_v6 = vunpack.i.h.bf16 %v12904_v63 }
 0x796   : > { %12489 = vmatprep.subr.bf16.mxu1 %v17157_v49 }
 0x79b   : > { %v13136_v60 = vpop.eup %13135 }
 0x79c   : > { %v2553_v55 = vsel %vm1143_vm4, %v13136_v60, 0.0 }
 0x7a3   : > { %12898 = vrot.lane.b32.xlu0 %v14140_v4, %s17177_s11 }
 0x7a6   : > { %12908 = vrot.lane.b32.xlu1 %v14172_v26, %s17177_s11 }
 0x7c2   : > { %2551 = vadd.xlane.f32.xlu0 %v2550_v59 }
 0x7ca   : > { %2554 = vadd.xlane.f32.xlu1 %v2553_v55 }
 0x7d8   : > { %2880 = vrot.lane.b32.xlu0 %v14151_v12, %s17177_s11 }
 0x7db   : > { %12913 = vrot.lane.b32.xlu1 %v14190_v36, %s17177_s11 }
 0x7dc   : > { %2962 = vrot.lane.b32.xlu0 %v14170_v24, %s17177_s11 }
 0x7df   : > { %3126 = vrot.lane.b32.xlu1 %v14201_v37, %s17177_s11 }
 0x7e0   : > { %3044 = vrot.lane.b32.xlu0 %v14186_v32, %s17177_s11  ;;  %s17192_s11 = smov 72  }
 0x81a   : > { %v2546_v61 = vpop.xlane.xlu0 %2545 }
 0x81b   : > { %13137 = vrcp.f32 %v2546_v61 }
 0x822   : > { %v2549_v9 = vpop.xlane.xlu1 %2548 }
 0x823   : > { %13139 = vrcp.f32 %v2549_v9  ;;  %v12905_v9 = vunpack.i.l.bf16 %v12904_v63 }
 0x825   : > { %v13138_v20 = vpop.eup %13137  ;;  %v12500_v21 = vpack.c.bf16 %v12906_v6, %v12905_v9 }
 0x826   : > { %v14419_v25 = vmul.f32 %v13138_v20, %v13130_v13  ;;  %v12899_v13 = vpop.permute.xlu0 %12898  ;;  %v12909_v47 = vpop.permute.xlu1 %12908 }
 0x827   : > { %v12901_v54 = vunpack.i.h.bf16 %v12899_v13  ;;  %v12900_v48 = vunpack.i.l.bf16 %v12899_v13  ;;  %v12911_v46 = vunpack.i.h.bf16 %v12909_v47  ;;  %v12910_v61 = vunpack.i.l.bf16 %v12909_v47 }
 0x828   : > { %17308 = vst [vmem:[#allocation38_spill] sm:$0xff] %v14419_v25  ;;  %11894 = vmatmul.mubr.msk.f32.vlgmr.msra.gmra.mrb[32].mxu1 %vm1143_vm4, %v14419_v25 }
 0x829   : > { %12491 = vmatpush3.bf16.msra.mxu1 %v12490_v27  ;;  %11907 = vmatprep.mubr.msk.f32.mxu1 %vm13727_vm1, %v17153_v0  ;;  %v12496_v29 = vpack.c.bf16 %v12901_v54, %v12900_v48 }
 0x82a   : > { %12495 = vmatprep.subr.bf16.mxu1 %v17157_v49 }
 0x82d   : > { %v13140_v39 = vpop.eup %13139 }
 0x82e   : > { %v14426_v31 = vmul.f32 %v13140_v39, %v13132_v41 }
 0x830   : > { %17309 = vst [vmem:[#allocation39_spill] sm:$0xff] %v14426_v31  ;;  %11901 = vmatmul.mubr.msk.f32.vlgmr.msra.gmra.mrb[28].mxu0 %vm1143_vm4, %v14426_v31 }
 0x831   : > { %12494 = vmatpush3.bf16.msra.mxu0 %v12493_v42  ;;  %11914 = vmatprep.mubr.msk.f32.mxu0 %vm13727_vm1, %v17153_v0 }
 0x832   : > { %12499 = vmatprep.subr.bf16.mxu0 %v17157_v49 }
 0x84f   : > { %v2552_v44 = vpop.xlane.xlu0 %2551 }
 0x850   : > { %13141 = vrcp.f32 %v2552_v44 }
 0x853   : > { %v2881_v3 = vpop.permute.xlu0 %2880 }
 0x857   : > { %v2555_v59 = vpop.xlane.xlu1 %2554  ;;  %v2963_v28 = vpop.permute.xlu0 %2962 }
 0x858   : > { %13143 = vrcp.f32 %v2555_v59 }
 0x85a   : > { %v13142_v41 = vpop.eup %13141 }
 0x85b   : > { %v14433_v55 = vmul.f32 %v13142_v41, %v13134_v50  ;;  %v12504_v50 = vpack.c.bf16 %v12911_v46, %v12910_v61  ;;  %v12914_v39 = vpop.permute.xlu1 %12913  ;;  %v3045_v42 = vpop.permute.xlu0 %3044 }
 0x85c   : > { %v12915_v63 = vunpack.i.l.bf16 %v12914_v39 }
 0x85d   : > { %17310 = vst [vmem:[#allocation40_spill] sm:$0xff] %v14433_v55  ;;  %11908 = vmatmul.mubr.msk.f32.vlgmr.msra.gmra.mrb[34].mxu1 %vm1143_vm4, %v14433_v55 }
 0x85e   : > { %12498 = vmatpush3.bf16.xpose.msk.msra.mxu1 %vm14136_vm3, %v12496_v29  ;;  %11921 = vmatprep.mubr.msk.f32.mxu1 %vm13727_vm1, %v17153_v0 }
 0x85f   : > { %12503 = vmatprep.subr.bf16.mxu1 %v17157_v49  ;;  %v3127_v44 = vpop.permute.xlu1 %3126 }
 0x862   : > { %v13144_v20 = vpop.eup %13143 }
 0x863   : > { %v14442_v27 = vmul.f32 %v13144_v20, %v13136_v60  ;;  %v12916_v60 = vunpack.i.h.bf16 %v12914_v39 }
 0x865   : > { %17311 = vst [vmem:[#allocation41_spill] sm:$0xff] %v14442_v27  ;;  %11922 = vmatmul.mubr.msk.f32.vlgmr.msra.gmra.mrb[36].mxu1 %vm826_vm2, %v2881_v3  ;;  %11915 = vmatmul.mubr.msk.f32.vlgmr.msra.gmra.mrb[30].mxu0 %vm1143_vm4, %v14442_v27  ;;  %v12508_v13 = vpack.c.bf16 %v12916_v60, %v12915_v63 }
 0x866   : > { %12506 = vmatpush3.bf16.xpose.msk.msra.mxu1 %vm14136_vm3, %v12504_v50  ;;  %12502 = vmatpush3.bf16.xpose.msk.msra.mxu0 %vm14136_vm3, %v12500_v21 }
 0x867   : > { %11928 = vmatprep.mubr.msk.f32.mxu0 %vm13727_vm1, %v17153_v0  ;;  %11935 = vmatprep.mubr.msk.f32.mxu1 %vm13727_vm1, %v17153_v0 }
 0x868   : > { %12507 = vmatprep.subr.bf16.mxu0 %v17157_v49  ;;  %12511 = vmatprep.subr.bf16.mxu1 %v17157_v49 }
 0x86d   : > { %11936 = vmatmul.mubr.msk.f32.vlgmr.msra.gmra.mrb[38].mxu1 %vm826_vm2, %v3045_v42  ;;  %11929 = vmatmul.mubr.msk.f32.vlgmr.msra.gmra.mrb[32].mxu0 %vm826_vm2, %v2963_v28 }
 0x86e   : > { %11949 = vmatprep.mubr.msk.f32.mxu1 %vm13727_vm1, %v17153_v0  ;;  %12510 = vmatpush3.bf16.xpose.msk.msra.mxu0 %vm14136_vm3, %v12508_v13 }
 0x86f   : > { %11942 = vmatprep.mubr.msk.f32.mxu0 %vm13727_vm1, %v17153_v0  ;;  %12514 = vmatprep.subr.bf16.mxu0 %v17157_v49 }
 0x875   : > { %11943 = vmatmul.mubr.msk.f32.vlgmr.msra.gmra.mrb[34].mxu0 %vm826_vm2, %v3127_v44 }
 0x876   : > { %11956 = vmatprep.mubr.msk.f32.mxu0 %vm13727_vm1, %v17153_v0 }
 0x8fb   : > { %v14469_v47 = vpop.f32.mrb[32].mxu1 }
 0x8fc   : > { %v11895_v54 = vpop.f32.mrb[33].mxu1 }
 0x903   : > { %v14471_v48 = vpop.f32.mrb[28].mxu0 }
 0x904   : > { %v11902_v59 = vpop.f32.mrb[29].mxu0 }
 0x930   : > { %v14473_v41 = vpop.f32.mrb[34].mxu1 }
 0x931   : > { %v11909_v29 = vpop.f32.mrb[35].mxu1 }
 0x938   : > { %v2958_v46 = vpop.f32.mrb[36].mxu1  ;;  %v14475_v61 = vpop.f32.mrb[30].mxu0 }
 0x939   : > { %v11923_v3 = vpop.f32.mrb[37].mxu1  ;;  %v3208_v6 = vsel %vm1143_vm4, %v2958_v46, -inf  ;;  %v11916_v9 = vpop.f32.mrb[31].mxu0 }
 0x93a   : > { %3209 = vmax.xlane.f32.xlu0 %v3208_v6 }
 0x940   : > { %v3122_v20 = vpop.f32.mrb[38].mxu1  ;;  %v3040_v50 = vpop.f32.mrb[32].mxu0 }
 0x941   : > { %v11937_v21 = vpop.f32.mrb[39].mxu1  ;;  %v3214_v28 = vsel %vm1143_vm4, %v3122_v20, -inf  ;;  %v11930_v39 = vpop.f32.mrb[33].mxu0  ;;  %v3211_v60 = vsel %vm1143_vm4, %v3040_v50, -inf }
 0x942   : > { %3215 = vmax.xlane.f32.xlu0 %v3214_v28  ;;  %3212 = vmax.xlane.f32.xlu1 %v3211_v60 }
 0x948   : > { %v3204_v63 = vpop.f32.mrb[34].mxu0 }
 0x949   : > { %v11944_v42 = vpop.f32.mrb[35].mxu0  ;;  %v3217_v13 = vsel %vm1143_vm4, %v3204_v63, -inf }
 0x94a   : > { %3218 = vmax.xlane.f32.xlu0 %v3217_v13 }
 0x953   : > { %12923 = vrot.lane.b32.xlu1 %v14155_v16, %s17198_s15 }
 0x957   : > { %12928 = vrot.lane.b32.xlu1 %v14172_v26, %s17198_s15 }
 0x95b   : > { %12933 = vrot.lane.b32.xlu1 %v14190_v36, %s17198_s15 }
 0x95f   : > { %12943 = vrot.lane.b32.xlu1 %v14155_v16, %s17214_s21 }
 0x960   : > { %12918 = vrot.lane.b32.xlu0 %v14140_v4, %s17198_s15 }
 0x9c7   : > { %v3210_v44 = vpop.xlane.xlu0 %3209 }
 0x9c8   : > { %v3220_v54 = vsub.f32 %v2958_v46, %v3210_v44 }
 0x9ca   : > { %v3224_v59 = vmul.f32 1.442695, %v3220_v54 }
 0x9cc   : > { %13145 = vpow2.f32 %v3224_v59 }
 0x9cf   : > { %v3213_v29 = vpop.xlane.xlu1 %3212  ;;  %v3216_v9 = vpop.xlane.xlu0 %3215 }
 0x9d0   : > { %v3221_v3 = vsub.f32 %v3040_v50, %v3213_v29 }
 0x9d2   : > { %v3226_v6 = vmul.f32 1.442695, %v3221_v3  ;;  %v3222_v3 = vsub.f32 %v3122_v20, %v3216_v9 }
 0x9d3   : > { %v12924_v21 = vpop.permute.xlu1 %12923 }
 0x9d4   : > { %13147 = vpow2.f32 %v3226_v6  ;;  %v12926_v28 = vunpack.i.h.bf16 %v12924_v21  ;;  %v12925_v39 = vunpack.i.l.bf16 %v12924_v21  ;;  %v3228_v6 = vmul.f32 1.442695, %v3222_v3 }
 0x9d6   : > { %v13146_v60 = vpop.eup %13145  ;;  %v12515_v42 = vpack.c.bf16 %v12926_v28, %v12925_v39  ;;  %13149 = vpow2.f32 %v3228_v6 }
 0x9d7   : > { %v3232_v13 = vsel %vm1143_vm4, %v13146_v60, 0.0  ;;  %v3219_v0 = vpop.xlane.xlu0 %3218 }
 0x9d8   : > { %3233 = vadd.xlane.f32.xlu0 %v3232_v13  ;;  %12516 = vmatpush3.bf16.msra.mxu0 %v12515_v42  ;;  %v3223_v21 = vsub.f32 %v3204_v63, %v3219_v0  ;;  %v12929_v0 = vpop.permute.xlu1 %12928 }
 0x9d9   : > { %12520 = vmatprep.subr.bf16.mxu0 %v17157_v49 }
 0x9da   : > { %v3230_v28 = vmul.f32 1.442695, %v3223_v21  ;;  %v17312_v21 = vmov 0.0  }
 0x9db   : > { %v12919_v46 = vpop.permute.xlu0 %12918 }
 0x9dc   : > { %v12921_v44 = vunpack.i.h.bf16 %v12919_v46  ;;  %v12920_v54 = vunpack.i.l.bf16 %v12919_v46  ;;  %13151 = vpow2.f32 %v3230_v28  ;;  %v12934_v20 = vpop.permute.xlu1 %12933 }
 0x9dd   : > { %v12936_v28 = vunpack.i.h.bf16 %v12934_v20 }
 0x9de   : > { %v13148_v59 = vpop.eup %13147  ;;  %v12512_v50 = vpack.c.bf16 %v12921_v44, %v12920_v54  ;;  %v12931_v44 = vunpack.i.h.bf16 %v12929_v0  ;;  %v12930_v54 = vunpack.i.l.bf16 %v12929_v0 }
 0x9df   : > { %v3235_v29 = vsel %vm1143_vm4, %v13148_v59, 0.0 }
 0x9e0   : > { %3236 = vadd.xlane.f32.xlu1 %v3235_v29  ;;  %12513 = vmatpush3.bf16.msra.mxu1 %v12512_v50  ;;  %v13150_v39 = vpop.eup %13149  ;;  %v12944_v9 = vpop.permute.xlu1 %12943  ;;  %v12518_v6 = vpack.c.bf16 %v12931_v44, %v12930_v54 }
 0x9e1   : > { %12517 = vmatprep.subr.bf16.mxu1 %v17157_v49  ;;  %v3238_v42 = vsel %vm1143_vm4, %v13150_v39, 0.0 }
 0x9e6   : > { %v13152_v13 = vpop.eup %13151 }
 0x9e7   : > { %v3241_v46 = vsel %vm1143_vm4, %v13152_v13, 0.0 }
 0x9ee   : > { %12938 = vrot.lane.b32.xlu0 %v14140_v4, %s17214_s21 }
 0x9f1   : > { %12948 = vrot.lane.b32.xlu1 %v14172_v26, %s17214_s21 }
 0xa0d   : > { %3239 = vadd.xlane.f32.xlu0 %v3238_v42  ;;  %v12935_v42 = vunpack.i.l.bf16 %v12934_v20 }
 0xa0f   : > { %v12521_v0 = vpack.c.bf16 %v12936_v28, %v12935_v42 }
 0xa15   : > { %3242 = vadd.xlane.f32.xlu1 %v3241_v46 }
 0xa23   : > { %3568 = vrot.lane.b32.xlu0 %v14151_v12, %s17214_s21 }
 0xa26   : > { %12953 = vrot.lane.b32.xlu1 %v14190_v36, %s17214_s21 }
 0xa27   : > { %3650 = vrot.lane.b32.xlu0 %v14170_v24, %s17214_s21 }
 0xa2a   : > { %3814 = vrot.lane.b32.xlu1 %v14201_v37, %s17214_s21 }
 0xa2b   : > { %3732 = vrot.lane.b32.xlu0 %v14186_v32, %s17214_s21  ;;  %s17369_s21 = smov 8  }
 0xa65   : > { %v3234_v63 = vpop.xlane.xlu0 %3233 }
 0xa66   : > { %13153 = vrcp.f32 %v3234_v63 }
 0xa6d   : > { %v3237_v50 = vpop.xlane.xlu1 %3236 }
 0xa6e   : > { %13155 = vrcp.f32 %v3237_v50 }
 0xa70   : > { %v13154_v29 = vpop.eup %13153 }
 0xa71   : > { %v14511_v3 = vmul.f32 %v13154_v29, %v13146_v60  ;;  %v12939_v60 = vpop.permute.xlu0 %12938  ;;  %v12949_v54 = vpop.permute.xlu1 %12948 }
 0xa72   : > { %v12941_v50 = vunpack.i.h.bf16 %v12939_v60  ;;  %v12940_v29 = vunpack.i.l.bf16 %v12939_v60  ;;  %v12951_v42 = vunpack.i.h.bf16 %v12949_v54  ;;  %v12946_v60 = vunpack.i.h.bf16 %v12944_v9 }
 0xa73   : > { %11950 = vmatmul.mubr.msk.f32.vlgmr.msra.gmra.mrb[40].mxu1 %vm1143_vm4, %v14511_v3 }
 0xa74   : > { %12519 = vmatpush3.bf16.msra.mxu1 %v12518_v6  ;;  %11963 = vmatprep.mubr.msk.f32.mxu1 %vm13727_vm1, %v17312_v21  ;;  %v12524_v28 = vpack.c.bf16 %v12941_v50, %v12940_v29 }
 0xa75   : > { %12523 = vmatprep.subr.bf16.mxu1 %v17157_v49 }
 0xa78   : > { %v13156_v46 = vpop.eup %13155 }
 0xa79   : > { %v14518_v63 = vmul.f32 %v13156_v46, %v13148_v59  ;;  %v12950_v46 = vunpack.i.l.bf16 %v12949_v54 }
 0xa7b   : > { %17313 = vst [vmem:[#allocation42_spill] sm:$0xff] %v14518_v63  ;;  %11957 = vmatmul.mubr.msk.f32.vlgmr.msra.gmra.mrb[36].mxu0 %vm1143_vm4, %v14518_v63 }
 0xa7c   : > { %12522 = vmatpush3.bf16.msra.mxu0 %v12521_v0  ;;  %11970 = vmatprep.mubr.msk.f32.mxu0 %vm13727_vm1, %v17312_v21 }
 0xa7d   : > { %12527 = vmatprep.subr.bf16.mxu0 %v17157_v49 }
 0xa9a   : > { %v3240_v44 = vpop.xlane.xlu0 %3239 }
 0xa9b   : > { %13157 = vrcp.f32 %v3240_v44  ;;  %v12945_v44 = vunpack.i.l.bf16 %v12944_v9 }
 0xa9d   : > { %v12528_v50 = vpack.c.bf16 %v12946_v60, %v12945_v44 }
 0xa9e   : > { %v3569_v0 = vpop.permute.xlu0 %3568 }
 0xaa2   : > { %v3243_v20 = vpop.xlane.xlu1 %3242  ;;  %v3651_v29 = vpop.permute.xlu0 %3650 }
 0xaa3   : > { %13159 = vrcp.f32 %v3243_v20 }
 0xaa5   : > { %v13158_v59 = vpop.eup %13157 }
 0xaa6   : > { %v14525_v6 = vmul.f32 %v13158_v59, %v13150_v39  ;;  %v12532_v39 = vpack.c.bf16 %v12951_v42, %v12950_v46  ;;  %v12954_v57 = vpop.permute.xlu1 %12953  ;;  %v3733_v54 = vpop.permute.xlu0 %3732 }
 0xaa7   : > { %v12955_v9 = vunpack.i.l.bf16 %v12954_v57 }
 0xaa8   : > { %11964 = vmatmul.mubr.msk.f32.vlgmr.msra.gmra.mrb[42].mxu1 %vm1143_vm4, %v14525_v6 }
 0xaa9   : > { %12526 = vmatpush3.bf16.xpose.msk.msra.mxu1 %vm14136_vm3, %v12524_v28  ;;  %11977 = vmatprep.mubr.msk.f32.mxu1 %vm13727_vm1, %v17312_v21 }
 0xaaa   : > { %12531 = vmatprep.subr.bf16.mxu1 %v17157_v49 }
 0xaad   : > { %v13160_v20 = vpop.eup %13159 }
 0xaae   : > { %v14534_v59 = vmul.f32 %v13160_v20, %v13152_v13  ;;  %v12956_v13 = vunpack.i.h.bf16 %v12954_v57  ;;  %v3815_v57 = vpop.permute.xlu1 %3814 }
 0xab0   : > { %17314 = vst [vmem:[#allocation43_spill] sm:$0xff] %v14534_v59  ;;  %11978 = vmatmul.mubr.msk.f32.vlgmr.msra.gmra.mrb[44].mxu1 %vm826_vm2, %v3569_v0  ;;  %11971 = vmatmul.mubr.msk.f32.vlgmr.msra.gmra.mrb[38].mxu0 %vm1143_vm4, %v14534_v59  ;;  %v12536_v28 = vpack.c.bf16 %v12956_v13, %v12955_v9 }
 0xab1   : > { %12534 = vmatpush3.bf16.xpose.msk.msra.mxu1 %vm14136_vm3, %v12532_v39  ;;  %12530 = vmatpush3.bf16.xpose.msk.msra.mxu0 %vm14136_vm3, %v12528_v50 }
 0xab2   : > { %11984 = vmatprep.mubr.msk.f32.mxu0 %vm13727_vm1, %v17312_v21  ;;  %11991 = vmatprep.mubr.msk.f32.mxu1 %vm13727_vm1, %v17312_v21 }
 0xab3   : > { %12535 = vmatprep.subr.bf16.mxu0 %v17157_v49  ;;  %12539 = vmatprep.subr.bf16.mxu1 %v17157_v49 }
 0xab8   : > { %11992 = vmatmul.mubr.msk.f32.vlgmr.msra.gmra.mrb[46].mxu1 %vm826_vm2, %v3733_v54  ;;  %11985 = vmatmul.mubr.msk.f32.vlgmr.msra.gmra.mrb[40].mxu0 %vm826_vm2, %v3651_v29 }
 0xab9   : > { %12005 = vmatprep.mubr.msk.f32.mxu1 %vm13727_vm1, %v17312_v21  ;;  %12538 = vmatpush3.bf16.xpose.msk.msra.mxu0 %vm14136_vm3, %v12536_v28 }
 0xaba   : > { %11998 = vmatprep.mubr.msk.f32.mxu0 %vm13727_vm1, %v17312_v21  ;;  %12542 = vmatprep.subr.bf16.mxu0 %v17157_v49 }
 0xac0   : > { %11999 = vmatmul.mubr.msk.f32.vlgmr.msra.gmra.mrb[42].mxu0 %vm826_vm2, %v3815_v57 }
 0xac1   : > { %12012 = vmatprep.mubr.msk.f32.mxu0 %vm13727_vm1, %v17312_v21 }
 0xb46   : > { %v14561_v42 = vpop.f32.mrb[40].mxu1 }
 0xb47   : > { %v11951_v46 = vpop.f32.mrb[41].mxu1 }
 0xb4e   : > { %v14563_v0 = vpop.f32.mrb[36].mxu0 }
 0xb4f   : > { %v11958_v60 = vpop.f32.mrb[37].mxu0 }
 0xb7b   : > { %v14565_v44 = vpop.f32.mrb[42].mxu1 }
 0xb7c   : > { %v11965_v20 = vpop.f32.mrb[43].mxu1 }
 0xb83   : > { %v3646_v39 = vpop.f32.mrb[44].mxu1  ;;  %v14567_v50 = vpop.f32.mrb[38].mxu0 }
 0xb84   : > { %v11979_v29 = vpop.f32.mrb[45].mxu1  ;;  %v3896_v13 = vsel %vm1143_vm4, %v3646_v39, -inf  ;;  %v11972_v9 = vpop.f32.mrb[39].mxu0 }
 0xb85   : > { %3897 = vmax.xlane.f32.xlu0 %v3896_v13 }
 0xb8b   : > { %v3810_v54 = vpop.f32.mrb[46].mxu1  ;;  %v3728_v28 = vpop.f32.mrb[40].mxu0 }
 0xb8c   : > { %v11993_v57 = vpop.f32.mrb[47].mxu1  ;;  %v3902_v49 = vsel %vm1143_vm4, %v3810_v54, -inf  ;;  %v11986_v46 = vpop.f32.mrb[41].mxu0  ;;  %v3899_v60 = vsel %vm1143_vm4, %v3728_v28, -inf }
 0xb8d   : > { %3903 = vmax.xlane.f32.xlu0 %v3902_v49  ;;  %3900 = vmax.xlane.f32.xlu1 %v3899_v60 }
 0xb93   : > { %v3892_v51 = vpop.f32.mrb[42].mxu0 }
 0xb94   : > { %v12000_v20 = vpop.f32.mrb[43].mxu0  ;;  %v3905_v17 = vsel %vm1143_vm4, %v3892_v51, -inf }
 0xb95   : > { %3906 = vmax.xlane.f32.xlu0 %v3905_v17 }
 0xb9e   : > { %12963 = vrot.lane.b32.xlu1 %v14155_v16, %s17200_s16 }
 0xba2   : > { %12968 = vrot.lane.b32.xlu1 %v14172_v26, %s17200_s16 }
 0xba6   : > { %12973 = vrot.lane.b32.xlu1 %v14190_v36, %s17200_s16 }
 0xbaa   : > { %12983 = vrot.lane.b32.xlu1 %v14155_v16, %s17175_s14 }
 0xbab   : > { %12958 = vrot.lane.b32.xlu0 %v14140_v4, %s17200_s16 }
 0xc12   : > { %v3898_v49 = vpop.xlane.xlu0 %3897 }
 0xc13   : > { %v3908_v29 = vsub.f32 %v3646_v39, %v3898_v49 }
 0xc15   : > { %v3912_v17 = vmul.f32 1.442695, %v3908_v29 }
 0xc17   : > { %13161 = vpow2.f32 %v3912_v17 }
 0xc1a   : > { %v3901_v13 = vpop.xlane.xlu1 %3900  ;;  %v3904_v46 = vpop.xlane.xlu0 %3903 }
 0xc1b   : > { %v3909_v9 = vsub.f32 %v3728_v28, %v3901_v13 }
 0xc1d   : > { %v3914_v57 = vmul.f32 1.442695, %v3909_v9 }
 0xc1e   : > { %v12964_v60 = vpop.permute.xlu1 %12963 }
 0xc1f   : > { %13163 = vpow2.f32 %v3914_v57  ;;  %v12966_v20 = vunpack.i.h.bf16 %v12964_v60  ;;  %v12965_v53 = vunpack.i.l.bf16 %v12964_v60 }
 0xc21   : > { %v13162_v30 = vpop.eup %13161  ;;  %v12543_v10 = vpack.c.bf16 %v12966_v20, %v12965_v53 }
 0xc22   : > { %v3920_v52 = vsel %vm1143_vm4, %v13162_v30, 0.0  ;;  %v3907_v5 = vpop.xlane.xlu0 %3906 }
 0xc23   : > { %3921 = vadd.xlane.f32.xlu0 %v3920_v52  ;;  %12544 = vmatpush3.bf16.msra.mxu0 %v12543_v10  ;;  %v3910_v52 = vsub.f32 %v3810_v54, %v3904_v46  ;;  %v3911_v53 = vsub.f32 %v3892_v51, %v3907_v5  ;;  %v12969_v51 = vpop.permute.xlu1 %12968 }
 0xc24   : > { %12548 = vmatprep.subr.bf16.mxu0 %v17315_v45 }
 0xc25   : > { %v3916_v10 = vmul.f32 1.442695, %v3910_v52  ;;  %v3918_v9 = vmul.f32 1.442695, %v3911_v53 }
 0xc26   : > { %v12959_v39 = vpop.permute.xlu0 %12958 }
 0xc27   : > { %v12961_v49 = vunpack.i.h.bf16 %v12959_v39  ;;  %v12960_v29 = vunpack.i.l.bf16 %v12959_v39  ;;  %13165 = vpow2.f32 %v3916_v10  ;;  %v12974_v5 = vpop.permute.xlu1 %12973 }
 0xc28   : > { %13167 = vpow2.f32 %v3918_v9  ;;  %v12976_v53 = vunpack.i.h.bf16 %v12974_v5  ;;  %v12975_v9 = vunpack.i.l.bf16 %v12974_v5 }
 0xc29   : > { %v13164_v17 = vpop.eup %13163  ;;  %v12540_v28 = vpack.c.bf16 %v12961_v49, %v12960_v29  ;;  %v12971_v49 = vunpack.i.h.bf16 %v12969_v51  ;;  %v12970_v29 = vunpack.i.l.bf16 %v12969_v51 }
 0xc2a   : > { %v3923_v13 = vsel %vm1143_vm4, %v13164_v17, 0.0  ;;  %v12549_v51 = vpack.c.bf16 %v12976_v53, %v12975_v9 }
 0xc2b   : > { %3924 = vadd.xlane.f32.xlu1 %v3923_v13  ;;  %12541 = vmatpush3.bf16.msra.mxu1 %v12540_v28  ;;  %v12984_v46 = vpop.permute.xlu1 %12983  ;;  %v12546_v10 = vpack.c.bf16 %v12971_v49, %v12970_v29 }
 0xc2c   : > { %12545 = vmatprep.subr.bf16.mxu1 %v17315_v45 }
 0xc31   : > { %v13166_v57 = vpop.eup %13165 }
 0xc32   : > { %v3926_v60 = vsel %vm1143_vm4, %v13166_v57, 0.0  ;;  %v13168_v20 = vpop.eup %13167 }
 0xc33   : > { %v3929_v39 = vsel %vm1143_vm4, %v13168_v20, 0.0 }
 0xc39   : > { %12978 = vrot.lane.b32.xlu0 %v14140_v4, %s17175_s14 }
 0xc3c   : > { %12988 = vrot.lane.b32.xlu1 %v14172_v26, %s17175_s14 }
 0xc58   : > { %3927 = vadd.xlane.f32.xlu0 %v3926_v60 }
 0xc60   : > { %3930 = vadd.xlane.f32.xlu1 %v3929_v39 }
 0xc6e   : > { %4256 = vrot.lane.b32.xlu0 %v14151_v12, %s17175_s14 }
 0xc71   : > { %12993 = vrot.lane.b32.xlu1 %v14190_v36, %s17175_s14 }
 0xc72   : > { %4338 = vrot.lane.b32.xlu0 %v14170_v24, %s17175_s14 }
 0xc75   : > { %4502 = vrot.lane.b32.xlu1 %v14201_v37, %s17175_s14 }
 0xc76   : > { %4420 = vrot.lane.b32.xlu0 %v14186_v32, %s17175_s14  ;;  %s17206_s14 = smov 16  }
 0xcb0   : > { %v3922_v54 = vpop.xlane.xlu0 %3921 }
 0xcb1   : > { %13169 = vrcp.f32 %v3922_v54 }
 0xcb8   : > { %v3925_v28 = vpop.xlane.xlu1 %3924 }
 0xcb9   : > { %13171 = vrcp.f32 %v3925_v28 }
 0xcbb   : > { %v13170_v13 = vpop.eup %13169 }
 0xcbc   : > { %v14603_v52 = vmul.f32 %v13170_v13, %v13162_v30  ;;  %v12979_v30 = vpop.permute.xlu0 %12978  ;;  %v12989_v49 = vpop.permute.xlu1 %12988 }
 0xcbd   : > { %v12981_v29 = vunpack.i.h.bf16 %v12979_v30  ;;  %v12980_v28 = vunpack.i.l.bf16 %v12979_v30  ;;  %v12991_v53 = vunpack.i.h.bf16 %v12989_v49  ;;  %v12990_v9 = vunpack.i.l.bf16 %v12989_v49 }
 0xcbe   : > { %12006 = vmatmul.mubr.msk.f32.vlgmr.msra.gmra.mrb[48].mxu1 %vm1143_vm4, %v14603_v52  ;;  %v12985_v30 = vunpack.i.l.bf16 %v12984_v46 }
 0xcbf   : > { %12547 = vmatpush3.bf16.msra.mxu1 %v12546_v10  ;;  %12019 = vmatprep.mubr.msk.f32.mxu1 %vm13727_vm1, %v17312_v21  ;;  %v12552_v10 = vpack.c.bf16 %v12981_v29, %v12980_v28 }
 0xcc0   : > { %12551 = vmatprep.subr.bf16.mxu1 %v17315_v45 }
 0xcc3   : > { %v13172_v60 = vpop.eup %13171 }
 0xcc4   : > { %v14610_v39 = vmul.f32 %v13172_v60, %v13164_v17 }
 0xcc6   : > { %17316 = vst [vmem:[#allocation44_spill] sm:$0xff] %v14610_v39  ;;  %12013 = vmatmul.mubr.msk.f32.vlgmr.msra.gmra.mrb[44].mxu0 %vm1143_vm4, %v14610_v39 }
 0xcc7   : > { %12550 = vmatpush3.bf16.msra.mxu0 %v12549_v51  ;;  %12026 = vmatprep.mubr.msk.f32.mxu0 %vm13727_vm1, %v17312_v21  ;;  %v12986_v51 = vunpack.i.h.bf16 %v12984_v46 }
 0xcc8   : > { %12555 = vmatprep.subr.bf16.mxu0 %v17315_v45 }
 0xcc9   : > { %v12556_v29 = vpack.c.bf16 %v12986_v51, %v12985_v30 }
 0xce5   : > { %v3928_v54 = vpop.xlane.xlu0 %3927 }
 0xce6   : > { %13173 = vrcp.f32 %v3928_v54 }
 0xce9   : > { %v4257_v60 = vpop.permute.xlu0 %4256 }
 0xced   : > { %v3931_v5 = vpop.xlane.xlu1 %3930  ;;  %v4339_v28 = vpop.permute.xlu0 %4338 }
 0xcee   : > { %13175 = vrcp.f32 %v3931_v5 }
 0xcf0   : > { %v13174_v17 = vpop.eup %13173 }
 0xcf1   : > { %v14617_v13 = vmul.f32 %v13174_v17, %v13166_v57  ;;  %v12560_v57 = vpack.c.bf16 %v12991_v53, %v12990_v9  ;;  %v12994_v17 = vpop.permute.xlu1 %12993  ;;  %v4421_v49 = vpop.permute.xlu0 %4420 }
 0xcf2   : > { %v12995_v46 = vunpack.i.l.bf16 %v12994_v17 }
 0xcf3   : > { %12020 = vmatmul.mubr.msk.f32.vlgmr.msra.gmra.mrb[50].mxu1 %vm1143_vm4, %v14617_v13 }
 0xcf4   : > { %12554 = vmatpush3.bf16.xpose.msk.msra.mxu1 %vm14136_vm3, %v12552_v10  ;;  %12033 = vmatprep.mubr.msk.f32.mxu1 %vm13727_vm1, %v17312_v21 }
 0xcf5   : > { %12559 = vmatprep.subr.bf16.mxu1 %v17315_v45  ;;  %v4503_v53 = vpop.permute.xlu1 %4502 }
 0xcf8   : > { %v13176_v54 = vpop.eup %13175 }
 0xcf9   : > { %v14626_v5 = vmul.f32 %v13176_v54, %v13168_v20  ;;  %v12996_v20 = vunpack.i.h.bf16 %v12994_v17 }
 0xcfb   : > { %17317 = vst [vmem:[#allocation45_spill] sm:$0xff] %v14626_v5  ;;  %12034 = vmatmul.mubr.msk.f32.vlgmr.msra.gmra.mrb[52].mxu1 %vm826_vm2, %v4257_v60  ;;  %12027 = vmatmul.mubr.msk.f32.vlgmr.msra.gmra.mrb[46].mxu0 %vm1143_vm4, %v14626_v5  ;;  %v12564_v10 = vpack.c.bf16 %v12996_v20, %v12995_v46 }
 0xcfc   : > { %12562 = vmatpush3.bf16.xpose.msk.msra.mxu1 %vm14136_vm3, %v12560_v57  ;;  %12558 = vmatpush3.bf16.xpose.msk.msra.mxu0 %vm14136_vm3, %v12556_v29 }
 0xcfd   : > { %12040 = vmatprep.mubr.msk.f32.mxu0 %vm13727_vm1, %v17312_v21  ;;  %12047 = vmatprep.mubr.msk.f32.mxu1 %vm13727_vm1, %v17312_v21 }
 0xcfe   : > { %12563 = vmatprep.subr.bf16.mxu0 %v17315_v45  ;;  %12567 = vmatprep.subr.bf16.mxu1 %v17315_v45 }
 0xd03   : > { %12048 = vmatmul.mubr.msk.f32.vlgmr.msra.gmra.mrb[54].mxu1 %vm826_vm2, %v4421_v49  ;;  %12041 = vmatmul.mubr.msk.f32.vlgmr.msra.gmra.mrb[48].mxu0 %vm826_vm2, %v4339_v28 }
 0xd04   : > { %12061 = vmatprep.mubr.msk.f32.mxu1 %vm13727_vm1, %v17312_v21  ;;  %12566 = vmatpush3.bf16.xpose.msk.msra.mxu0 %vm14136_vm3, %v12564_v10 }
 0xd05   : > { %12054 = vmatprep.mubr.msk.f32.mxu0 %vm13727_vm1, %v17312_v21  ;;  %12570 = vmatprep.subr.bf16.mxu0 %v17315_v45 }
 0xd0b   : > { %12055 = vmatmul.mubr.msk.f32.vlgmr.msra.gmra.mrb[50].mxu0 %vm826_vm2, %v4503_v53 }
 0xd0c   : > { %12068 = vmatprep.mubr.msk.f32.mxu0 %vm13727_vm1, %v17312_v21 }
 0xd91   : > { %v14653_v9 = vpop.f32.mrb[48].mxu1 }
 0xd92   : > { %v12007_v60 = vpop.f32.mrb[49].mxu1 }
 0xd99   : > { %v14655_v51 = vpop.f32.mrb[44].mxu0 }
 0xd9a   : > { %v12014_v30 = vpop.f32.mrb[45].mxu0 }
 0xdc6   : > { %v14657_v54 = vpop.f32.mrb[50].mxu1 }
 0xdc7   : > { %v12021_v57 = vpop.f32.mrb[51].mxu1 }
 0xdce   : > { %v4334_v29 = vpop.f32.mrb[52].mxu1  ;;  %v14659_v28 = vpop.f32.mrb[46].mxu0 }
 0xdcf   : > { %v12035_v17 = vpop.f32.mrb[53].mxu1  ;;  %v4584_v20 = vsel %vm1143_vm4, %v4334_v29, -inf  ;;  %v12028_v46 = vpop.f32.mrb[47].mxu0 }
 0xdd0   : > { %4585 = vmax.xlane.f32.xlu0 %v4584_v20 }
 0xdd6   : > { %v4498_v49 = vpop.f32.mrb[54].mxu1  ;;  %v4416_v10 = vpop.f32.mrb[48].mxu0 }
 0xdd7   : > { %v12049_v53 = vpop.f32.mrb[55].mxu1  ;;  %v4590_v43 = vsel %vm1143_vm4, %v4498_v49, -inf  ;;  %v12042_v60 = vpop.f32.mrb[49].mxu0  ;;  %v4587_v30 = vsel %vm1143_vm4, %v4416_v10, -inf }
 0xdd8   : > { %4591 = vmax.xlane.f32.xlu0 %v4590_v43  ;;  %4588 = vmax.xlane.f32.xlu1 %v4587_v30 }
 0xdde   : > { %v4580_v40 = vpop.f32.mrb[50].mxu0 }
 0xddf   : > { %v12056_v57 = vpop.f32.mrb[51].mxu0  ;;  %v4593_v38 = vsel %vm1143_vm4, %v4580_v40, -inf }
 0xde0   : > { %4594 = vmax.xlane.f32.xlu0 %v4593_v38 }
 0xde9   : > { %13003 = vrot.lane.b32.xlu1 %v14155_v16, %s17196_s18 }
 0xded   : > { %13008 = vrot.lane.b32.xlu1 %v14172_v26, %s17196_s18 }
 0xdf1   : > { %13013 = vrot.lane.b32.xlu1 %v14190_v36, %s17196_s18 }
 0xdf5   : > { %13023 = vrot.lane.b32.xlu1 %v14155_v16, %s17216_s30 }
 0xdf6   : > { %12998 = vrot.lane.b32.xlu0 %v14140_v4, %s17196_s18 }
 0xe5d   : > { %v4586_v43 = vpop.xlane.xlu0 %4585 }
 0xe5e   : > { %v4596_v17 = vsub.f32 %v4334_v29, %v4586_v43 }
 0xe60   : > { %v4600_v38 = vmul.f32 1.442695, %v4596_v17 }
 0xe62   : > { %13177 = vpow2.f32 %v4600_v38 }
 0xe65   : > { %v4589_v20 = vpop.xlane.xlu1 %4588  ;;  %v4592_v60 = vpop.xlane.xlu0 %4591 }
 0xe66   : > { %v4597_v46 = vsub.f32 %v4416_v10, %v4589_v20 }
 0xe68   : > { %v4602_v53 = vmul.f32 1.442695, %v4597_v46 }
 0xe69   : > { %v13004_v30 = vpop.permute.xlu1 %13003 }
 0xe6a   : > { %13179 = vpow2.f32 %v4602_v53  ;;  %v13006_v57 = vunpack.i.h.bf16 %v13004_v30  ;;  %v13005_v33 = vunpack.i.l.bf16 %v13004_v30 }
 0xe6c   : > { %v13178_v5 = vpop.eup %13177  ;;  %v12571_v39 = vpack.c.bf16 %v13006_v57, %v13005_v33  ;;  %v4598_v33 = vsub.f32 %v4498_v49, %v4592_v60 }
 0xe6d   : > { %v4608_v59 = vsel %vm1143_vm4, %v13178_v5, 0.0  ;;  %v4595_v23 = vpop.xlane.xlu0 %4594 }
 0xe6e   : > { %4609 = vadd.xlane.f32.xlu0 %v4608_v59  ;;  %12572 = vmatpush3.bf16.msra.mxu0 %v12571_v39  ;;  %v4604_v59 = vmul.f32 1.442695, %v4598_v33  ;;  %v4599_v39 = vsub.f32 %v4580_v40, %v4595_v23  ;;  %v13009_v23 = vpop.permute.xlu1 %13008 }
 0xe6f   : > { %12576 = vmatprep.subr.bf16.mxu0 %v17315_v45 }
 0xe70   : > { %13181 = vpow2.f32 %v4604_v59  ;;  %v4606_v46 = vmul.f32 1.442695, %v4599_v39 }
 0xe71   : > { %v12999_v29 = vpop.permute.xlu0 %12998 }
 0xe72   : > { %v13001_v43 = vunpack.i.h.bf16 %v12999_v29  ;;  %v13000_v17 = vunpack.i.l.bf16 %v12999_v29  ;;  %13183 = vpow2.f32 %v4606_v46  ;;  %v13014_v40 = vpop.permute.xlu1 %13013 }
 0xe73   : > { %v13016_v39 = vunpack.i.h.bf16 %v13014_v40  ;;  %v13015_v46 = vunpack.i.l.bf16 %v13014_v40 }
 0xe74   : > { %v13180_v38 = vpop.eup %13179  ;;  %v12568_v10 = vpack.c.bf16 %v13001_v43, %v13000_v17  ;;  %v13011_v43 = vunpack.i.h.bf16 %v13009_v23  ;;  %v13010_v17 = vunpack.i.l.bf16 %v13009_v23 }
 0xe75   : > { %v4611_v20 = vsel %vm1143_vm4, %v13180_v38, 0.0  ;;  %v12577_v23 = vpack.c.bf16 %v13016_v39, %v13015_v46 }
 0xe76   : > { %4612 = vadd.xlane.f32.xlu1 %v4611_v20  ;;  %12569 = vmatpush3.bf16.msra.mxu1 %v12568_v10  ;;  %v13024_v60 = vpop.permute.xlu1 %13023  ;;  %v12574_v59 = vpack.c.bf16 %v13011_v43, %v13010_v17 }
 0xe77   : > { %12573 = vmatprep.subr.bf16.mxu1 %v17315_v45 }
 0xe7a   : > { %v13182_v53 = vpop.eup %13181 }
 0xe7b   : > { %v4614_v30 = vsel %vm1143_vm4, %v13182_v53, 0.0 }
 0xe7c   : > { %v13184_v57 = vpop.eup %13183 }
 0xe7d   : > { %v4617_v29 = vsel %vm1143_vm4, %v13184_v57, 0.0 }
 0xe84   : > { %13018 = vrot.lane.b32.xlu0 %v14140_v4, %s17216_s30 }
 0xe87   : > { %13028 = vrot.lane.b32.xlu1 %v14172_v26, %s17216_s30 }
 0xea3   : > { %4615 = vadd.xlane.f32.xlu0 %v4614_v30 }
 0xeab   : > { %4618 = vadd.xlane.f32.xlu1 %v4617_v29 }
 0xeb9   : > { %4944 = vrot.lane.b32.xlu0 %v14151_v12, %s17216_s30 }
 0xebc   : > { %13033 = vrot.lane.b32.xlu1 %v14190_v36, %s17216_s30 }
 0xebd   : > { %5026 = vrot.lane.b32.xlu0 %v14170_v24, %s17216_s30 }
 0xec0   : > { %5190 = vrot.lane.b32.xlu1 %v14201_v37, %s17216_s30 }
 0xec1   : > { %5108 = vrot.lane.b32.xlu0 %v14186_v32, %s17216_s30 }
 0xefb   : > { %v4610_v49 = vpop.xlane.xlu0 %4609 }
 0xefc   : > { %13185 = vrcp.f32 %v4610_v49 }
 0xf03   : > { %v4613_v10 = vpop.xlane.xlu1 %4612 }
 0xf04   : > { %13187 = vrcp.f32 %v4613_v10 }
 0xf06   : > { %v13186_v20 = vpop.eup %13185 }
 0xf07   : > { %v14695_v33 = vmul.f32 %v13186_v20, %v13178_v5  ;;  %v13019_v5 = vpop.permute.xlu0 %13018  ;;  %v13029_v43 = vpop.permute.xlu1 %13028 }
 0xf08   : > { %v13021_v17 = vunpack.i.h.bf16 %v13019_v5  ;;  %v13020_v10 = vunpack.i.l.bf16 %v13019_v5  ;;  %v13031_v39 = vunpack.i.h.bf16 %v13029_v43  ;;  %v13030_v46 = vunpack.i.l.bf16 %v13029_v43 }
 0xf09   : > { %12062 = vmatmul.mubr.msk.f32.vlgmr.msra.gmra.mrb[56].mxu1 %vm1143_vm4, %v14695_v33  ;;  %v13025_v5 = vunpack.i.l.bf16 %v13024_v60 }
 0xf0a   : > { %12575 = vmatpush3.bf16.msra.mxu1 %v12574_v59  ;;  %12075 = vmatprep.mubr.msk.f32.mxu1 %vm13727_vm1, %v17312_v21  ;;  %v12580_v59 = vpack.c.bf16 %v13021_v17, %v13020_v10 }
 0xf0b   : > { %12579 = vmatprep.subr.bf16.mxu1 %v17315_v45 }
 0xf0e   : > { %v13188_v30 = vpop.eup %13187 }
 0xf0f   : > { %v14702_v29 = vmul.f32 %v13188_v30, %v13180_v38 }
 0xf11   : > { %17318 = vst [vmem:[#allocation46_spill] sm:$0xff] %v14702_v29  ;;  %12069 = vmatmul.mubr.msk.f32.vlgmr.msra.gmra.mrb[52].mxu0 %vm1143_vm4, %v14702_v29 }
 0xf12   : > { %12578 = vmatpush3.bf16.msra.mxu0 %v12577_v23  ;;  %12082 = vmatprep.mubr.msk.f32.mxu0 %vm13727_vm1, %v17312_v21  ;;  %v13026_v23 = vunpack.i.h.bf16 %v13024_v60 }
 0xf13   : > { %12583 = vmatprep.subr.bf16.mxu0 %v17315_v45 }
 0xf14   : > { %v12584_v17 = vpack.c.bf16 %v13026_v23, %v13025_v5 }
 0xf30   : > { %v4616_v49 = vpop.xlane.xlu0 %4615 }
 0xf31   : > { %13189 = vrcp.f32 %v4616_v49 }
 0xf34   : > { %v4945_v30 = vpop.permute.xlu0 %4944 }
 0xf38   : > { %v4619_v40 = vpop.xlane.xlu1 %4618  ;;  %v5027_v10 = vpop.permute.xlu0 %5026 }
 0xf39   : > { %13191 = vrcp.f32 %v4619_v40 }
 0xf3b   : > { %v13190_v38 = vpop.eup %13189 }
 0xf3c   : > { %v14709_v20 = vmul.f32 %v13190_v38, %v13182_v53  ;;  %v12588_v53 = vpack.c.bf16 %v13031_v39, %v13030_v46  ;;  %v13034_v38 = vpop.permute.xlu1 %13033  ;;  %v5109_v43 = vpop.permute.xlu0 %5108 }
 0xf3d   : > { %v13035_v60 = vunpack.i.l.bf16 %v13034_v38 }
 0xf3e   : > { %12076 = vmatmul.mubr.msk.f32.vlgmr.msra.gmra.mrb[58].mxu1 %vm1143_vm4, %v14709_v20 }
 0xf3f   : > { %12582 = vmatpush3.bf16.xpose.msk.msra.mxu1 %vm14136_vm3, %v12580_v59  ;;  %12089 = vmatprep.mubr.msk.f32.mxu1 %vm13727_vm1, %v17312_v21 }
 0xf40   : > { %12587 = vmatprep.subr.bf16.mxu1 %v17315_v45  ;;  %v5191_v39 = vpop.permute.xlu1 %5190 }
 0xf43   : > { %v13192_v49 = vpop.eup %13191 }
 0xf44   : > { %v14718_v40 = vmul.f32 %v13192_v49, %v13184_v57  ;;  %v13036_v57 = vunpack.i.h.bf16 %v13034_v38 }
 0xf46   : > { %17319 = vst [vmem:[#allocation47_spill] sm:$0xff] %v14718_v40  ;;  %12090 = vmatmul.mubr.msk.f32.vlgmr.msra.gmra.mrb[60].mxu1 %vm826_vm2, %v4945_v30  ;;  %12083 = vmatmul.mubr.msk.f32.vlgmr.msra.gmra.mrb[54].mxu0 %vm1143_vm4, %v14718_v40  ;;  %v12592_v59 = vpack.c.bf16 %v13036_v57, %v13035_v60 }
 0xf47   : > { %12590 = vmatpush3.bf16.xpose.msk.msra.mxu1 %vm14136_vm3, %v12588_v53  ;;  %12586 = vmatpush3.bf16.xpose.msk.msra.mxu0 %vm14136_vm3, %v12584_v17 }
 0xf48   : > { %12096 = vmatprep.mubr.msk.f32.mxu0 %vm13727_vm1, %v17312_v21  ;;  %12103 = vmatprep.mubr.msk.f32.mxu1 %vm13727_vm1, %v17312_v21 }
 0xf49   : > { %12591 = vmatprep.subr.bf16.mxu0 %v17315_v45  ;;  %12595 = vmatprep.subr.bf16.mxu1 %v17315_v45 }
 0xf4e   : > { %12104 = vmatmul.mubr.msk.f32.vlgmr.msra.gmra.mrb[62].mxu1 %vm826_vm2, %v5109_v43  ;;  %12097 = vmatmul.mubr.msk.f32.vlgmr.msra.gmra.mrb[56].mxu0 %vm826_vm2, %v5027_v10 }
 0xf4f   : > { %12117 = vmatprep.mubr.msk.f32.mxu1 %vm13727_vm1, %v17312_v21  ;;  %12594 = vmatpush3.bf16.xpose.msk.msra.mxu0 %vm14136_vm3, %v12592_v59 }
 0xf50   : > { %12110 = vmatprep.mubr.msk.f32.mxu0 %vm13727_vm1, %v17312_v21  ;;  %12598 = vmatprep.subr.bf16.mxu0 %v17315_v45 }
 0xf56   : > { %12111 = vmatmul.mubr.msk.f32.vlgmr.msra.gmra.mrb[58].mxu0 %vm826_vm2, %v5191_v39 }
 0xf57   : > { %12124 = vmatprep.mubr.msk.f32.mxu0 %vm13727_vm1, %v17312_v21 }
 0xfdc   : > { %v14745_v46 = vpop.f32.mrb[56].mxu1 }
 0xfdd   : > { %v12063_v30 = vpop.f32.mrb[57].mxu1 }
 0xfe4   : > { %v14747_v23 = vpop.f32.mrb[52].mxu0 }
 0xfe5   : > { %v12070_v5 = vpop.f32.mrb[53].mxu0 }
0x1011   : > { %v14749_v49 = vpop.f32.mrb[58].mxu1 }
0x1012   : > { %v12077_v53 = vpop.f32.mrb[59].mxu1 }
0x1019   : > { %v5022_v17 = vpop.f32.mrb[60].mxu1  ;;  %v14751_v10 = vpop.f32.mrb[54].mxu0 }
0x101a   : > { %v12091_v38 = vpop.f32.mrb[61].mxu1  ;;  %v5272_v57 = vsel %vm1143_vm4, %v5022_v17, -inf  ;;  %v12084_v60 = vpop.f32.mrb[55].mxu0 }
0x101b   : > { %5273 = vmax.xlane.f32.xlu0 %v5272_v57 }
0x1021   : > { %v5186_v43 = vpop.f32.mrb[62].mxu1  ;;  %v5104_v59 = vpop.f32.mrb[56].mxu0 }
0x1022   : > { %v12105_v39 = vpop.f32.mrb[63].mxu1  ;;  %v5278_v40 = vsel %vm1143_vm4, %v5186_v43, -inf  ;;  %v12098_v30 = vpop.f32.mrb[57].mxu0  ;;  %v5275_v5 = vsel %vm1143_vm4, %v5104_v59, -inf }
0x1023   : > { %5279 = vmax.xlane.f32.xlu0 %v5278_v40  ;;  %5276 = vmax.xlane.f32.xlu1 %v5275_v5 }
0x1029   : > { %v5268_v29 = vpop.f32.mrb[58].mxu0 }
0x102a   : > { %v12112_v53 = vpop.f32.mrb[59].mxu0  ;;  %v5281_v63 = vsel %vm1143_vm4, %v5268_v29, -inf }
0x102b   : > { %5282 = vmax.xlane.f32.xlu0 %v5281_v63 }
0x1034   : > { %13043 = vrot.lane.b32.xlu1 %v14155_v16, %s17206_s14 }
0x1038   : > { %13048 = vrot.lane.b32.xlu1 %v14172_v26, %s17206_s14 }
0x103c   : > { %13053 = vrot.lane.b32.xlu1 %v14190_v36, %s17206_s14 }
0x1040   : > { %13063 = vrot.lane.b32.xlu1 %v14155_v16, %s17192_s11 }
0x1041   : > { %13038 = vrot.lane.b32.xlu0 %v14140_v4, %s17206_s14 }
0x10a8   : > { %v5274_v40 = vpop.xlane.xlu0 %5273 }
0x10a9   : > { %v5284_v38 = vsub.f32 %v5022_v17, %v5274_v40 }
0x10ab   : > { %v5288_v63 = vmul.f32 1.442695, %v5284_v38 }
0x10ad   : > { %13193 = vpow2.f32 %v5288_v63 }
0x10b0   : > { %v5277_v57 = vpop.xlane.xlu1 %5276  ;;  %v5280_v30 = vpop.xlane.xlu0 %5279 }
0x10b1   : > { %v5285_v60 = vsub.f32 %v5104_v59, %v5277_v57 }
0x10b3   : > { %v5290_v39 = vmul.f32 1.442695, %v5285_v60 }
0x10b4   : > { %v13044_v5 = vpop.permute.xlu1 %13043 }
0x10b5   : > { %13195 = vpow2.f32 %v5290_v39  ;;  %v13046_v53 = vunpack.i.h.bf16 %v13044_v5  ;;  %v13045_v27 = vunpack.i.l.bf16 %v13044_v5 }
0x10b7   : > { %v13194_v55 = vpop.eup %13193  ;;  %v12599_v62 = vpack.c.bf16 %v13046_v53, %v13045_v27 }
0x10b8   : > { %v5296_v31 = vsel %vm1143_vm4, %v13194_v55, 0.0  ;;  %v5283_v25 = vpop.xlane.xlu0 %5282 }
0x10b9   : > { %5297 = vadd.xlane.f32.xlu0 %v5296_v31  ;;  %12600 = vmatpush3.bf16.msra.mxu0 %v12599_v62  ;;  %v5286_v62 = vsub.f32 %v5186_v43, %v5280_v30  ;;  %v5287_v27 = vsub.f32 %v5268_v29, %v5283_v25  ;;  %v13049_v25 = vpop.permute.xlu1 %13048 }
0x10ba   : > { %12604 = vmatprep.subr.bf16.mxu0 %v17315_v45 }
0x10bb   : > { %v5292_v31 = vmul.f32 1.442695, %v5286_v62  ;;  %v5294_v60 = vmul.f32 1.442695, %v5287_v27 }
0x10bc   : > { %v13039_v17 = vpop.permute.xlu0 %13038 }
0x10bd   : > { %v13041_v40 = vunpack.i.h.bf16 %v13039_v17  ;;  %v13040_v38 = vunpack.i.l.bf16 %v13039_v17  ;;  %13197 = vpow2.f32 %v5292_v31  ;;  %v13054_v29 = vpop.permute.xlu1 %13053 }
0x10be   : > { %13199 = vpow2.f32 %v5294_v60  ;;  %v13056_v27 = vunpack.i.h.bf16 %v13054_v29  ;;  %v13055_v60 = vunpack.i.l.bf16 %v13054_v29 }
0x10bf   : > { %v13196_v63 = vpop.eup %13195  ;;  %v12596_v59 = vpack.c.bf16 %v13041_v40, %v13040_v38  ;;  %v13051_v40 = vunpack.i.h.bf16 %v13049_v25  ;;  %v13050_v38 = vunpack.i.l.bf16 %v13049_v25 }
0x10c0   : > { %v5299_v57 = vsel %vm1143_vm4, %v13196_v63, 0.0  ;;  %v12605_v25 = vpack.c.bf16 %v13056_v27, %v13055_v60 }
0x10c1   : > { %5300 = vadd.xlane.f32.xlu1 %v5299_v57  ;;  %12597 = vmatpush3.bf16.msra.mxu1 %v12596_v59  ;;  %v13064_v30 = vpop.permute.xlu1 %13063  ;;  %v12602_v31 = vpack.c.bf16 %v13051_v40, %v13050_v38 }
0x10c2   : > { %12601 = vmatprep.subr.bf16.mxu1 %v17315_v45 }
0x10c7   : > { %v13198_v39 = vpop.eup %13197 }
0x10c8   : > { %v5302_v5 = vsel %vm1143_vm4, %v13198_v39, 0.0  ;;  %v13200_v53 = vpop.eup %13199 }
0x10c9   : > { %v5305_v17 = vsel %vm1143_vm4, %v13200_v53, 0.0 }
0x10cf   : > { %13058 = vrot.lane.b32.xlu0 %v14140_v4, %s17192_s11 }
0x10d2   : > { %5632 = vrot.lane.b32.xlu1 %v14151_v12, %s17192_s11 }
0x10ee   : > { %5303 = vadd.xlane.f32.xlu0 %v5302_v5 }
0x10f6   : > { %5306 = vadd.xlane.f32.xlu1 %v5305_v17 }
0x1104   : > { %13068 = vrot.lane.b32.xlu0 %v14172_v26, %s17192_s11 }
0x1107   : > { %5714 = vrot.lane.b32.xlu1 %v14170_v24, %s17192_s11 }
0x1108   : > { %13073 = vrot.lane.b32.xlu0 %v14190_v36, %s17192_s11 }
0x110b   : > { %5878 = vrot.lane.b32.xlu1 %v14201_v37, %s17192_s11 }
0x110c   : > { %5796 = vrot.lane.b32.xlu0 %v14186_v32, %s17192_s11  ;;  %s17194_s11 = smov 8  }
0x1146   : > { %v5298_v43 = vpop.xlane.xlu0 %5297 }
0x1147   : > { %13201 = vrcp.f32 %v5298_v43 }
0x114e   : > { %v5301_v59 = vpop.xlane.xlu1 %5300 }
0x114f   : > { %13203 = vrcp.f32 %v5301_v59 }
0x1151   : > { %v13202_v57 = vpop.eup %13201 }
0x1152   : > { %v14787_v62 = vmul.f32 %v13202_v57, %v13194_v55  ;;  %v13059_v55 = vpop.permute.xlu0 %13058  ;;  %v5633_v40 = vpop.permute.xlu1 %5632 }
0x1153   : > { %v13061_v38 = vunpack.i.h.bf16 %v13059_v55  ;;  %v13060_v59 = vunpack.i.l.bf16 %v13059_v55  ;;  %v13065_v55 = vunpack.i.l.bf16 %v13064_v30 }
0x1154   : > { %12118 = vmatmul.mubr.msk.f32.vlgmr.msra.gmra.mrb[64].mxu1 %vm1143_vm4, %v14787_v62 }
0x1155   : > { %12603 = vmatpush3.bf16.msra.mxu1 %v12602_v31  ;;  %12131 = vmatprep.mubr.msk.f32.mxu1 %vm13727_vm1, %v17312_v21  ;;  %v12608_v31 = vpack.c.bf16 %v13061_v38, %v13060_v59 }
0x1156   : > { %12607 = vmatprep.subr.bf16.mxu1 %v17315_v45 }
0x1159   : > { %v13204_v5 = vpop.eup %13203 }
0x115a   : > { %v14794_v17 = vmul.f32 %v13204_v5, %v13196_v63 }
0x115c   : > { %17320 = vst [vmem:[#allocation48_spill] sm:$0xff] %v14794_v17  ;;  %12125 = vmatmul.mubr.msk.f32.vlgmr.msra.gmra.mrb[60].mxu0 %vm1143_vm4, %v14794_v17 }
0x115d   : > { %12606 = vmatpush3.bf16.msra.mxu0 %v12605_v25  ;;  %12138 = vmatprep.mubr.msk.f32.mxu0 %vm13727_vm1, %v17312_v21  ;;  %v13066_v25 = vunpack.i.h.bf16 %v13064_v30 }
0x115e   : > { %12611 = vmatprep.subr.bf16.mxu0 %v17315_v45 }
0x115f   : > { %v12612_v38 = vpack.c.bf16 %v13066_v25, %v13065_v55 }
0x117b   : > { %v5304_v43 = vpop.xlane.xlu0 %5303 }
0x117c   : > { %13205 = vrcp.f32 %v5304_v43 }
0x117f   : > { %v13069_v27 = vpop.permute.xlu0 %13068 }
0x1180   : > { %v13071_v60 = vunpack.i.h.bf16 %v13069_v27  ;;  %v13070_v5 = vunpack.i.l.bf16 %v13069_v27 }
0x1183   : > { %v5307_v29 = vpop.xlane.xlu1 %5306  ;;  %v13074_v59 = vpop.permute.xlu0 %13073 }
0x1184   : > { %13207 = vrcp.f32 %v5307_v29  ;;  %v13075_v30 = vunpack.i.l.bf16 %v13074_v59 }
0x1186   : > { %v13206_v63 = vpop.eup %13205 }
0x1187   : > { %v14801_v57 = vmul.f32 %v13206_v63, %v13198_v39  ;;  %v12616_v39 = vpack.c.bf16 %v13071_v60, %v13070_v5 }
0x1189   : > { %12132 = vmatmul.mubr.msk.f32.vlgmr.msra.gmra.mrb[66].mxu1 %vm1143_vm4, %v14801_v57 }
0x118a   : > { %12610 = vmatpush3.bf16.xpose.msk.msra.mxu1 %vm14136_vm3, %v12608_v31  ;;  %12145 = vmatprep.mubr.msk.f32.mxu1 %vm13727_vm1, %v17312_v21  ;;  %v5715_v31 = vpop.permute.xlu1 %5714 }
0x118b   : > { %12615 = vmatprep.subr.bf16.mxu1 %v17315_v45 }
0x118e   : > { %v13208_v43 = vpop.eup %13207  ;;  %v5879_v27 = vpop.permute.xlu1 %5878 }
0x118f   : > { %v14810_v29 = vmul.f32 %v13208_v43, %v13200_v53  ;;  %v13076_v53 = vunpack.i.h.bf16 %v13074_v59 }
0x1191   : > { %17321 = vst [vmem:[#allocation49_spill] sm:$0xff] %v14810_v29  ;;  %12146 = vmatmul.mubr.msk.f32.vlgmr.msra.gmra.mrb[68].mxu1 %vm826_vm2, %v5633_v40  ;;  %12139 = vmatmul.mubr.msk.f32.vlgmr.msra.gmra.mrb[62].mxu0 %vm1143_vm4, %v14810_v29  ;;  %v5797_v40 = vpop.permute.xlu0 %5796  ;;  %v12620_v63 = vpack.c.bf16 %v13076_v53, %v13075_v30 }
0x1192   : > { %12618 = vmatpush3.bf16.xpose.msk.msra.mxu1 %vm14136_vm3, %v12616_v39  ;;  %12614 = vmatpush3.bf16.xpose.msk.msra.mxu0 %vm14136_vm3, %v12612_v38 }
0x1193   : > { %12152 = vmatprep.mubr.msk.f32.mxu0 %vm13727_vm1, %v17312_v21  ;;  %12159 = vmatprep.mubr.msk.f32.mxu1 %vm13727_vm1, %v17312_v21 }
0x1194   : > { %12619 = vmatprep.subr.bf16.mxu0 %v17315_v45  ;;  %12623 = vmatprep.subr.bf16.mxu1 %v17315_v45 }
0x1199   : > { %12160 = vmatmul.mubr.msk.f32.vlgmr.msra.gmra.mrb[70].mxu1 %vm826_vm2, %v5797_v40  ;;  %12153 = vmatmul.mubr.msk.f32.vlgmr.msra.gmra.mrb[64].mxu0 %vm826_vm2, %v5715_v31 }
0x119a   : > { %12173 = vmatprep.mubr.msk.f32.mxu1 %vm13727_vm1, %v17312_v21  ;;  %12622 = vmatpush3.bf16.xpose.msk.msra.mxu0 %vm14136_vm3, %v12620_v63 }
0x119b   : > { %12166 = vmatprep.mubr.msk.f32.mxu0 %vm13727_vm1, %v17312_v21  ;;  %12626 = vmatprep.subr.bf16.mxu0 %v17315_v45 }
0x11a1   : > { %12167 = vmatmul.mubr.msk.f32.vlgmr.msra.gmra.mrb[66].mxu0 %vm826_vm2, %v5879_v27 }
0x11a2   : > { %12180 = vmatprep.mubr.msk.f32.mxu0 %vm13727_vm1, %v17312_v21 }
0x1227   : > { %v5391_v60 = vpop.f32.mrb[64].mxu1 }
0x1228   : > { %v12119_v5 = vpop.f32.mrb[65].mxu1 }
0x122f   : > { %v14837_v25 = vpop.f32.mrb[60].mxu0 }
0x1230   : > { %v12126_v55 = vpop.f32.mrb[61].mxu0 }
0x125c   : > { %v14839_v43 = vpop.f32.mrb[66].mxu1 }
0x125d   : > { %v12133_v2 = vpop.f32.mrb[67].mxu1 }
0x1264   : > { %v5710_v39 = vpop.f32.mrb[68].mxu1  ;;  %v14841_v38 = vpop.f32.mrb[62].mxu0 }
0x1265   : > { %v12147_v59 = vpop.f32.mrb[69].mxu1  ;;  %v5960_v53 = vsel %vm1143_vm4, %v5710_v39, -inf  ;;  %v12140_v30 = vpop.f32.mrb[63].mxu0 }
0x1266   : > { %5961 = vmax.xlane.f32.xlu0 %v5960_v53 }
0x126c   : > { %v5874_v40 = vpop.f32.mrb[70].mxu1  ;;  %v5792_v63 = vpop.f32.mrb[64].mxu0 }
0x126d   : > { %v12161_v31 = vpop.f32.mrb[71].mxu1  ;;  %v5966_v27 = vsel %vm1143_vm4, %v5874_v40, -inf  ;;  %v12154_v5 = vpop.f32.mrb[65].mxu0  ;;  %v5963_v55 = vsel %vm1143_vm4, %v5792_v63, -inf }
0x126e   : > { %5967 = vmax.xlane.f32.xlu0 %v5966_v27  ;;  %5964 = vmax.xlane.f32.xlu1 %v5963_v55 }
0x1274   : > { %v5956_v37 = vpop.f32.mrb[66].mxu0 }
0x1275   : > { %v12168_v2 = vpop.f32.mrb[67].mxu0  ;;  %v5969_v24 = vsel %vm1143_vm4, %v5956_v37, -inf }
0x1276   : > { %5970 = vmax.xlane.f32.xlu0 %v5969_v24  ;;  %v6585_v2 = vld [vmem:[#allocation7 + $0x8] sm:$0xff] }
0x12f3   : > { %v5962_v59 = vpop.xlane.xlu0 %5961 }
0x12f4   : > { %v5972_v29 = vsub.f32 %v5710_v39, %v5962_v59 }
0x12f6   : > { %v5976_v17 = vmul.f32 1.442695, %v5972_v29 }
0x12f8   : > { %13209 = vpow2.f32 %v5976_v17 }
0x12fb   : > { %v5968_v53 = vpop.xlane.xlu0 %5967  ;;  %v5965_v34 = vpop.xlane.xlu1 %5964 }
0x12fc   : > { %v5974_v30 = vsub.f32 %v5874_v40, %v5968_v53  ;;  %v5973_v31 = vsub.f32 %v5792_v63, %v5965_v34  ;;  %v6584_v63 = vld [vmem:[#allocation7] sm:$0xff]  ;;  %v6586_v53 = vld [vmem:[#allocation7 + $0x10] sm:$0xff] }
0x12fd   : > { %v12635_v59 = vpack.c.bf16 %v6585_v2, %v6584_v63  ;;  %v15039_v63 = vadd.f32 %v14163_v19, %v14132_v1 }
0x12fe   : > { %v5980_v32 = vmul.f32 1.442695, %v5974_v30  ;;  %v5978_v58 = vmul.f32 1.442695, %v5973_v31  ;;  %v6587_v30 = vld [vmem:[#allocation7 + $0x18] sm:$0xff] }
0x12ff   : > { %v12639_v31 = vpack.c.bf16 %v6587_v30, %v6586_v53  ;;  %v17331_v53 = vld [vmem:[#allocation27_spill] sm:$0xff] }
0x1300   : > { %13211 = vpow2.f32 %v5980_v32  ;;  %v15051_v30 = vadd.f32 %v17331_v53, %v14132_v1  ;;  %v6905_v53 = vld [vmem:[%s17134_s6 + $0x10] sm:$0xff] }
0x1301   : > { %13213 = vpow2.f32 %v5978_v58 }
0x1302   : > { %v14847_v27 = vpop.eup %13209 }
0x1303   : > { %v5984_v5 = vsel %vm1143_vm4, %v14847_v27, 0.0  ;;  %v5971_v32 = vpop.xlane.xlu0 %5970 }
0x1304   : > { %5985 = vadd.xlane.f32.xlu0 %v5984_v5  ;;  %v5975_v58 = vsub.f32 %v5956_v37, %v5971_v32  ;;  %v6589_v5 = vld [vmem:[#allocation7 + $0x28] sm:$0xff] }
0x130a   : > { %v14851_v55 = vpop.eup %13211 }
0x130b   : > { %v14853_v24 = vpop.eup %13213  ;;  %v5990_v17 = vsel %vm1143_vm4, %v14851_v55, 0.0 }
0x130c   : > { %v5987_v34 = vsel %vm1143_vm4, %v14853_v24, 0.0  ;;  %5991 = vadd.xlane.f32.xlu0 %v5990_v17  ;;  %v6591_v17 = vld [vmem:[#allocation7 + $0x38] sm:$0xff] }
0x130d   : > { %5988 = vadd.xlane.f32.xlu1 %v5987_v34 }
0x131e   : > { %13083 = vrot.lane.b32.xlu1 %v14155_v16, %s17194_s11  ;;  %v5982_v16 = vmul.f32 1.442695, %v5975_v58 }
0x1320   : > { %13215 = vpow2.f32 %v5982_v16 }
0x1322   : > { %13088 = vrot.lane.b32.xlu1 %v14172_v26, %s17194_s11  ;;  %13078 = vrot.lane.b32.xlu0 %v14140_v4, %s17194_s11 }
0x1326   : > { %6445 = vrot.lane.b32.xlu0 %v14377_v7, %s17194_s11 }
0x132a   : > { %6461 = vrot.lane.b32.xlu0 %v14469_v47, %s17206_s14  ;;  %v13216_v4 = vpop.eup %13215 }
0x132b   : > { %v5993_v26 = vsel %vm1143_vm4, %v13216_v4, 0.0 }
0x132e   : > { %6477 = vrot.lane.b32.xlu0 %v14561_v42, %s17196_s18 }
0x1332   : > { %6493 = vrot.lane.b32.xlu0 %v14653_v9, %s17200_s16 }
0x1336   : > { %6509 = vrot.lane.b32.xlu0 %v14745_v46, %s17198_s15 }
0x133a   : > { %6525 = vrot.lane.b32.xlu0 %v5391_v60, %s17210_s0 }
0x133e   : > { %6449 = vrot.lane.b32.xlu0 %v14381_v14, %s17194_s11 }
0x1342   : > { %6465 = vrot.lane.b32.xlu0 %v14473_v41, %s17206_s14 }
0x1346   : > { %5994 = vadd.xlane.f32.xlu1 %v5993_v26  ;;  %6481 = vrot.lane.b32.xlu0 %v14565_v44, %s17196_s18 }
0x134a   : > { %6497 = vrot.lane.b32.xlu0 %v14657_v54, %s17200_s16 }
0x134e   : > { %6513 = vrot.lane.b32.xlu0 %v14749_v49, %s17198_s15 }
0x1357   : > { %13093 = vrot.lane.b32.xlu1 %v14190_v36, %s17194_s11 }
0x135b   : > { %6447 = vrot.lane.b32.xlu1 %v14379_v11, %s17194_s11 }
0x135f   : > { %6463 = vrot.lane.b32.xlu1 %v14471_v48, %s17206_s14 }
0x1363   : > { %6479 = vrot.lane.b32.xlu1 %v14563_v0, %s17196_s18 }
0x1367   : > { %6495 = vrot.lane.b32.xlu1 %v14655_v51, %s17200_s16 }
0x136b   : > { %6511 = vrot.lane.b32.xlu1 %v14747_v23, %s17198_s15 }
0x136f   : > { %6527 = vrot.lane.b32.xlu1 %v14837_v25, %s17210_s0 }
0x1373   : > { %6451 = vrot.lane.b32.xlu1 %v14383_v22, %s17194_s11  ;;  %s17325_s11 = smov 64  }
0x1377   : > { %6467 = vrot.lane.b32.xlu1 %v14475_v61, %s17206_s14 }
0x137b   : > { %6483 = vrot.lane.b32.xlu1 %v14567_v50, %s17196_s18  ;;  %s17326_s18 = smov 56  }
0x137f   : > { %6499 = vrot.lane.b32.xlu1 %v14659_v28, %s17200_s16  ;;  %s17328_s16 = smov 16  }
0x1383   : > { %6515 = vrot.lane.b32.xlu1 %v14751_v10, %s17198_s15  ;;  %s17327_s15 = smov 120  }
0x1391   : > { %v5986_v36 = vpop.xlane.xlu0 %5985 }
0x1392   : > { %13217 = vrcp.f32 %v5986_v36 }
0x1399   : > { %v5992_v37 = vpop.xlane.xlu0 %5991 }
0x139a   : > { %v5989_v7 = vpop.xlane.xlu1 %5988  ;;  %13219 = vrcp.f32 %v5992_v37 }
0x139b   : > { %13221 = vrcp.f32 %v5989_v7  ;;  %v6773_v7 = vld [vmem:[%s17322_s5 + $0x38] sm:$0xff] }
0x139c   : > { %v13218_v61 = vpop.eup %13217 }
0x139d   : > { %v13079_v11 = vpop.permute.xlu0 %13078  ;;  %v14912_v51 = vmul.f32 %v13218_v61, %v14847_v27  ;;  %v6588_v27 = vld [vmem:[#allocation7 + $0x20] sm:$0xff] }
0x139e   : > { %v13084_v14 = vpop.permute.xlu1 %13083  ;;  %v13081_v22 = vunpack.i.h.bf16 %v13079_v11  ;;  %v13080_v47 = vunpack.i.l.bf16 %v13079_v11  ;;  %v6770_v11 = vld [vmem:[%s17322_s5 + $0x20] sm:$0xff] }
0x139f   : > { %v13086_v48 = vunpack.i.h.bf16 %v13084_v14  ;;  %v13085_v41 = vunpack.i.l.bf16 %v13084_v14 }
0x13a0   : > { %v12624_v42 = vpack.c.bf16 %v13081_v22, %v13080_v47  ;;  %v6775_v47 = vld [vmem:[%s17322_s5 + $0x48] sm:$0xff] }
0x13a1   : > { %v12627_v0 = vpack.c.bf16 %v13086_v48, %v13085_v41  ;;  %v6777_v48 = vld [vmem:[%s17322_s5 + $0x58] sm:$0xff]  ;;  %v6919_v41 = vld [vmem:[%s17134_s6 + $0x80] sm:$0xff] }
0x13a2   : > { %v13089_v44 = vpop.permute.xlu1 %13088  ;;  %12625 = vmatpush3.bf16.msra.mxu1 %v12624_v42  ;;  %v12659_v61 = vpack.c.bf16 %v6777_v48, %v6775_v47  ;;  %v6774_v42 = vld [vmem:[%s17322_s5 + $0x40] sm:$0xff] }
0x13a3   : > { %v13091_v50 = vunpack.i.h.bf16 %v13089_v44  ;;  %v13090_v9 = vunpack.i.l.bf16 %v13089_v44  ;;  %12628 = vmatpush3.bf16.msra.mxu0 %v12627_v0  ;;  %12629 = vmatprep.subr.bf16.mxu1 %v17315_v45  ;;  %v6776_v0 = vld [vmem:[%s17322_s5 + $0x50] sm:$0xff] }
0x13a4   : > { %v13220_v54 = vpop.eup %13219  ;;  %12632 = vmatprep.subr.bf16.mxu0 %v17315_v45 }
0x13a5   : > { %v13222_v28 = vpop.eup %13221  ;;  %v12630_v46 = vpack.c.bf16 %v13091_v50, %v13090_v9  ;;  %12174 = vmatmul.mubr.msk.f32.vlgmr.msra.gmra.mrb[72].mxu1 %vm1143_vm4, %v14912_v51  ;;  %v14926_v49 = vmul.f32 %v13220_v54, %v14851_v55  ;;  %v12643_v55 = vpack.c.bf16 %v6589_v5, %v6588_v27  ;;  %v12661_v50 = vpack.c.bf16 %v6776_v0, %v6774_v42  ;;  %v6779_v9 = vld [vmem:[%s17322_s5 + $0x68] sm:$0xff]  ;;  %v6781_v54 = vld [vmem:[%s17322_s5 + $0x78] sm:$0xff] }
0x13a6   : > { %v14919_v23 = vmul.f32 %v13222_v28, %v14853_v24  ;;  %12187 = vmatprep.mubr.msk.f32.mxu1 %vm13727_vm1, %v17312_v21  ;;  %v6590_v24 = vld [vmem:[#allocation7 + $0x30] sm:$0xff]  ;;  %v12663_v28 = vpack.c.bf16 %v6781_v54, %v6779_v9  ;;  %v17334_v5 = vld [vmem:[#allocation39_spill] sm:$0xff]  ;;  %v6903_v9 = vld [vmem:[%s17134_s6] sm:$0xff] }
0x13a7   : > { %12631 = vmatpush3.bf16.msra.mxu1 %v12630_v46  ;;  %v12647_v34 = vpack.c.bf16 %v6591_v17, %v6590_v24  ;;  %v6778_v46 = vld [vmem:[%s17322_s5 + $0x60] sm:$0xff]  ;;  %v17347_v42 = vld [vmem:[#allocation47_spill] sm:$0xff] }
0x13a8   : > { %12181 = vmatmul.mubr.msk.f32.vlgmr.msra.gmra.mrb[68].mxu0 %vm1143_vm4, %v14919_v23  ;;  %12636 = vmatprep.subr.bf16.mxu1 %v12635_v59  ;;  %v6904_v54 = vld [vmem:[%s17134_s6 + $0x8] sm:$0xff] }
0x13a9   : > { %12194 = vmatprep.mubr.msk.f32.mxu0 %vm13727_vm1, %v17312_v21 }
0x13aa   : > { %12188 = vmatmul.mubr.msk.f32.vlgmr.msra.gmra.mrb[74].mxu1 %vm1143_vm4, %v14926_v49 }
0x13ab   : > { %12638 = vmatpush3.bf16.msra.mxu1 %v12635_v59  ;;  %v17329_v59 = vld [vmem:[#allocation37_spill] sm:$0xff] }
0x13ac   : > { %12640 = vmatprep.subr.bf16.mxu1 %v12639_v31 }
0x13af   : > { %12642 = vmatpush3.bf16.msra.mxu1 %v12639_v31  ;;  %v17333_v31 = vld [vmem:[#allocation38_spill] sm:$0xff] }
0x13b0   : > { %12644 = vmatprep.subr.bf16.mxu1 %v12643_v55 }
0x13b3   : > { %12646 = vmatpush3.bf16.msra.mxu1 %v12643_v55  ;;  %v17336_v55 = vld [vmem:[#allocation21_spill] sm:$0xff] }
0x13b4   : > { %12648 = vmatprep.subr.bf16.mxu1 %v12647_v34  ;;  %v15063_v24 = vadd.f32 %v17336_v55, %v14132_v1 }
0x13b7   : > { %12650 = vmatpush3.bf16.msra.mxu1 %v12647_v34  ;;  %v17337_v34 = vld [vmem:[#allocation40_spill] sm:$0xff] }
0x13d3   : > { %v5995_v45 = vpop.xlane.xlu1 %5994 }
0x13d4   : > { %13223 = vrcp.f32 %v5995_v45 }
0x13d7   : > { %v13094_v10 = vpop.permute.xlu1 %13093 }
0x13d8   : > { %v13096_v29 = vunpack.i.h.bf16 %v13094_v10  ;;  %v13095_v60 = vunpack.i.l.bf16 %v13094_v10  ;;  %v6446_v10 = vpop.permute.xlu0 %6445 }
0x13da   : > { %v12633_v25 = vpack.c.bf16 %v13096_v29, %v13095_v60 }
0x13db   : > { %v6448_v29 = vpop.permute.xlu1 %6447 }
0x13dc   : > { %12634 = vmatpush3.bf16.msra.mxu0 %v12633_v25  ;;  %v6462_v60 = vpop.permute.xlu0 %6461 }
0x13de   : > { %v13224_v39 = vpop.eup %13223 }
0x13df   : > { %v14932_v40 = vmul.f32 %v13224_v39, %v13216_v4  ;;  %v6464_v25 = vpop.permute.xlu1 %6463 }
0x13e1   : > { %12195 = vmatmul.mubr.msk.f32.vlgmr.msra.gmra.mrb[70].mxu0 %vm1143_vm4, %v14932_v40 }
0x13e2   : > { %6870 = vmatprep.mubr.f32.mxu0 %v17312_v21 }
0x1478   : > { %v6079_v32 = vpop.f32.mrb[72].mxu1 }
0x1479   : > { %6541 = vrot.lane.b32.xlu0 %v6079_v32, %s17204_s19  ;;  %v12175_v58 = vpop.f32.mrb[73].mxu1 }
0x147a   : > { %v17338_v58 = vld [vmem:[#allocation41_spill] sm:$0xff] }
0x147b   : > { %v6158_v16 = vpop.f32.mrb[68].mxu0 }
0x147c   : > { %6543 = vrot.lane.b32.xlu1 %v6158_v16, %s17204_s19  ;;  %v12182_v4 = vpop.f32.mrb[69].mxu0 }
0x147d   : > { %v6237_v26 = vpop.f32.mrb[74].mxu1  ;;  %6529 = vrot.lane.b32.xlu0 %v14839_v43, %s17210_s0  ;;  %v6767_v43 = vld [vmem:[%s17322_s5 + $0x8] sm:$0xff] }
0x147e   : > { %v12189_v36 = vpop.f32.mrb[75].mxu1 }
0x147f   : > { %v17340_v36 = vld [vmem:[#allocation23_spill] sm:$0xff] }
0x1480   : > { %6531 = vrot.lane.b32.xlu1 %v14841_v38, %s17210_s0  ;;  %v6769_v38 = vld [vmem:[%s17322_s5 + $0x18] sm:$0xff] }
0x1481   : > { %6545 = vrot.lane.b32.xlu0 %v6237_v26, %s17204_s19  ;;  %v12651_v37 = vpack.c.bf16 %v6769_v38, %v6767_v43  ;;  %v17339_v26 = vld [vmem:[#allocation42_spill] sm:$0xff]  ;;  %v15081_v43 = vadd.f32 %v17340_v36, %v14132_v1  ;;  %s17370_s19 = smov 72  }
0x1483   : > { %12652 = vmatprep.subr.bf16.mxu0 %v12651_v37 }
0x1485   : > { %6322 = vrot.lane.b32.xlu0 %v14334_v18, %s17206_s14  ;;  %v6766_v18 = vld [vmem:[%s17322_s5] sm:$0xff]  ;;  %s17324_s14 = smov 112  }
0x1489   : > { %6344 = vrot.lane.b32.xlu0 %v14511_v3, %s17210_s0  ;;  %v6768_v3 = vld [vmem:[%s17322_s5 + $0x10] sm:$0xff] }
0x148d   : > { %6348 = vrot.lane.b32.xlu0 %v14525_v6, %s17210_s0  ;;  %v12653_v6 = vpack.c.bf16 %v6768_v3, %v6766_v18  ;;  %v17341_v18 = vld [vmem:[#allocation43_spill] sm:$0xff]  ;;  %v17342_v3 = vld [vmem:[#allocation44_spill] sm:$0xff]  ;;  %s17368_s0 = smov 80  }
0x148f   : > { %12654 = vmatpush1.bf16.msra.mxu0 %v12653_v6 }
0x1491   : > { %6356 = vrot.lane.b32.xlu0 %v14603_v52, %s17212_s2  ;;  %v6771_v52 = vld [vmem:[%s17322_s5 + $0x28] sm:$0xff] }
0x1492   : > { %v12655_v14 = vpack.c.bf16 %v6773_v7, %v6771_v52  ;;  %v17343_v7 = vld [vmem:[#allocation45_spill] sm:$0xff] }
0x1494   : > { %12656 = vmatprep.subr.bf16.mxu0 %v12655_v14  ;;  %v17345_v14 = vld [vmem:[#allocation33_spill] sm:$0xff] }
0x1495   : > { %6360 = vrot.lane.b32.xlu0 %v14617_v13, %s17212_s2  ;;  %v6772_v13 = vld [vmem:[%s17322_s5 + $0x30] sm:$0xff]  ;;  %s17335_s2 = smov 48  }
0x1496   : > { %v12657_v22 = vpack.c.bf16 %v6772_v13, %v6770_v11  ;;  %v17344_v11 = vld [vmem:[#allocation46_spill] sm:$0xff]  ;;  %v6553_v13 = vsel %vm826_vm2, %v17345_v14, %v6446_v10  ;;  %v6922_v10 = vld [vmem:[%s17134_s6 + $0x98] sm:$0xff]  ;;  %v6909_v14 = vld [vmem:[%s17134_s6 + $0x30] sm:$0xff] }
0x1498   : > { %12658 = vmatpush1.bf16.msra.mxu0 %v12657_v22  ;;  %v6557_v22 = vsel %vm1143_vm4, %v6553_v13, %v6462_v60  ;;  %v6910_v13 = vld [vmem:[%s17134_s6 + $0x38] sm:$0xff] }
0x1499   : > { %6368 = vrot.lane.b32.xlu0 %v14695_v33, %s17216_s30  ;;  %v6920_v33 = vld [vmem:[%s17134_s6 + $0x88] sm:$0xff]  ;;  %12660 = vmatprep.subr.bf16.mxu0 %v12659_v61  ;;  %v17346_v61 = vld [vmem:[#allocation34_spill] sm:$0xff] }
0x149a   : > { %v12667_v44 = vpack.c.bf16 %v6920_v33, %v6919_v41  ;;  %v6554_v33 = vsel %vm826_vm2, %v17346_v61, %v6448_v29 }
0x149c   : > { %12668 = vmatprep.subr.bf16.mxu1 %v12667_v44  ;;  %12662 = vmatpush1.bf16.msra.mxu0 %v12661_v50  ;;  %v6558_v44 = vsel %vm1143_vm4, %v6554_v33, %v6464_v25  ;;  %v6911_v33 = vld [vmem:[%s17134_s6 + $0x40] sm:$0xff] }
0x149d   : > { %6372 = vrot.lane.b32.xlu0 %v14709_v20, %s17216_s30  ;;  %v6780_v20 = vld [vmem:[%s17322_s5 + $0x70] sm:$0xff]  ;;  %12664 = vmatprep.subr.bf16.mxu0 %v12663_v28  ;;  %s16690_s5 = scalar_lea.vmem [#allocation8], %s14003_s24  ;;  %s11104_s24 = sshll.u32 %s14000_s12, 6 }
0x149e   : > { %v12665_v45 = vpack.c.bf16 %v6780_v20, %v6778_v46  ;;  %s10892_s1 = sshll.u32 %s16690_s5, 4  ;;  %s16956_s1 = int_to_ptr.vmem [resolvable:$true] %s10892_s1 }
0x14a0   : > { %12666 = vmatpush1.bf16.msra.mxu0 %v12665_v45  ;;  %v6921_v45 = vld [vmem:[%s17134_s6 + $0x90] sm:$0xff] }
0x14a1   : > { %6380 = vrot.lane.b32.xlu0 %v14787_v62, %s17323_s25  ;;  %v15024_v62 = vadd.f32 %v14124_v56, %v14132_v1  ;;  %v6480_v56 = vpop.permute.xlu1 %6479 }
0x14a2   : > { %v6563_v46 = vsel %vm6561_vm5, %v6558_v44, %v6480_v56  ;;  %v6929_v44 = vld [vmem:[%s17134_s6 + $0xd0] sm:$0xff] }
0x14a5   : > { %6384 = vrot.lane.b32.xlu0 %v14801_v57, %s17323_s25 }
0x14a9   : > { %6392 = vrot.lane.b32.xlu0 %v14912_v51, %s17324_s14  ;;  %v15031_v51 = vadd.f32 %v14153_v15, %v14132_v1  ;;  %v6496_v15 = vpop.permute.xlu1 %6495 }
0x14aa   : > { %v6567_v29 = vsel %vm6408_vm6, %v6563_v46, %v6496_v15  ;;  %v6906_v15 = vld [vmem:[%s17134_s6 + $0x18] sm:$0xff]  ;;  %v6913_v46 = vld [vmem:[%s17134_s6 + $0x50] sm:$0xff] }
0x14ad   : > { %6396 = vrot.lane.b32.xlu0 %v14926_v49, %s17324_s14  ;;  %v6478_v49 = vpop.permute.xlu0 %6477 }
0x14ae   : > { %v6562_v48 = vsel %vm6561_vm5, %v6557_v22, %v6478_v49 }
0x14b1   : > { %7100 = vrot.lane.b32.xlu0 %v14151_v12, %s17325_s11  ;;  %v6494_v2 = vpop.permute.xlu0 %6493 }
0x14b2   : > { %v6566_v41 = vsel %vm6408_vm6, %v6562_v48, %v6494_v2  ;;  %v6928_v48 = vld [vmem:[%s17134_s6 + $0xc8] sm:$0xff] }
0x14b4   : > { %v6316_v39 = vpop.f32.mrb[70].mxu0 }
0x14b5   : > { %6547 = vrot.lane.b32.xlu1 %v6316_v39, %s17326_s18  ;;  %v12196_v57 = vpop.f32.mrb[71].mxu0  ;;  %7528 = vrot.lane.b32.xlu0 %v15024_v62, %s17327_s15  ;;  %v6510_v19 = vpop.permute.xlu0 %6509  ;;  %v12669_v39 = vpack.c.bf16 %v6904_v54, %v6903_v9  ;;  %v6930_v9 = vld [vmem:[%s17134_s6 + $0xd8] sm:$0xff] }
0x14b6   : > { %v6571_v0 = vsel %vm6570_vm7, %v6566_v41, %v6510_v19  ;;  %v17348_v57 = vld [vmem:[#allocation35_spill] sm:$0xff]  ;;  %v12681_v41 = vpack.c.bf16 %v6910_v13, %v6909_v14 }
0x14b9   : > { %6320 = vrot.lane.b32.xlu1 %v14327_v8, %s17328_s16  ;;  %7617 = vrot.lane.b32.xlu0 %v15031_v51, %s17327_s15  ;;  %v17330_v8 = vld [vmem:[#allocation26_spill] sm:$0xff]  ;;  %v6526_v27 = vpop.permute.xlu0 %6525 }
0x14ba   : > { %v6575_v28 = vsel %vm6413_vm8, %v6571_v0, %v6526_v27  ;;  %v6923_v27 = vld [vmem:[%s17134_s6 + $0xa0] sm:$0xff] }
0x14bd   : > { %6324 = vrot.lane.b32.xlu1 %v14341_v35, %s17328_s16  ;;  %7702 = vrot.lane.b32.xlu0 %v15039_v63, %s17327_s15  ;;  %v6512_v35 = vpop.permute.xlu1 %6511  ;;  %v6450_v32 = vpop.permute.xlu0 %6449 }
0x14be   : > { %v6572_v25 = vsel %vm6570_vm7, %v6567_v29, %v6512_v35  ;;  %v6555_v49 = vsel %vm826_vm2, %v17348_v57, %v6450_v32  ;;  %v6932_v29 = vld [vmem:[%s17134_s6 + $0xe8] sm:$0xff] }
0x14bf   : > { %v6916_v57 = vld [vmem:[%s17134_s6 + $0x68] sm:$0xff] }
0x14c1   : > { %6326 = vrot.lane.b32.xlu1 %v17329_v59, %s17328_s16  ;;  %7706 = vrot.lane.b32.xlu0 %v17330_v8, %s17326_s18  ;;  %v6528_v17 = vpop.permute.xlu1 %6527  ;;  %v6466_v4 = vpop.permute.xlu0 %6465  ;;  %v12671_v59 = vpack.c.bf16 %v6922_v10, %v6921_v45  ;;  %v6931_v10 = vld [vmem:[%s17134_s6 + $0xe0] sm:$0xff] }
0x14c2   : > { %v6576_v56 = vsel %vm6413_vm8, %v6572_v25, %v6528_v17  ;;  %v6559_v19 = vsel %vm1143_vm4, %v6555_v49, %v6466_v4  ;;  %v6907_v4 = vld [vmem:[%s17134_s6 + $0x20] sm:$0xff]  ;;  %v12691_v25 = vpack.c.bf16 %v6932_v29, %v6931_v10 }
0x14c5   : > { %6332 = vrot.lane.b32.xlu1 %v17333_v31, %s17332_s20  ;;  %7791 = vrot.lane.b32.xlu0 %v15051_v30, %s17327_s15  ;;  %v15073_v16 = vpop.permute.xlu1 %6451  ;;  %v6482_v37 = vpop.permute.xlu0 %6481 }
0x14c6   : > { %v6564_v55 = vsel %vm6561_vm5, %v6559_v19, %v6482_v37  ;;  %v6925_v37 = vld [vmem:[%s17134_s6 + $0xb0] sm:$0xff]  ;;  %v6918_v19 = vld [vmem:[%s17134_s6 + $0x78] sm:$0xff] }
0x14c9   : > { %6334 = vrot.lane.b32.xlu1 %v17334_v5, %s17332_s20  ;;  %7968 = vrot.lane.b32.xlu0 %v14151_v12, %s17335_s2  ;;  %v15083_v38 = vpop.permute.xlu1 %6467  ;;  %v6498_v52 = vpop.permute.xlu0 %6497  ;;  %v6924_v5 = vld [vmem:[%s17134_s6 + $0xa8] sm:$0xff] }
0x14ca   : > { %v6568_v17 = vsel %vm6408_vm6, %v6564_v55, %v6498_v52 }
0x14cd   : > { %6336 = vrot.lane.b32.xlu1 %v17337_v34, %s17332_s20  ;;  %7966 = vrot.lane.b32.xlu0 %v15063_v24, %s17324_s14  ;;  %v15091_v6 = vpop.permute.xlu1 %6483  ;;  %v6514_v47 = vpop.permute.xlu0 %6513  ;;  %v12673_v34 = vpack.c.bf16 %v6906_v15, %v6905_v53  ;;  %v6917_v15 = vld [vmem:[%s17134_s6 + $0x70] sm:$0xff] }
0x14ce   : > { %v6573_v32 = vsel %vm6570_vm7, %v6568_v17, %v6514_v47  ;;  %v6927_v47 = vld [vmem:[%s17134_s6 + $0xc0] sm:$0xff] }
0x14cf   : > { %v12683_v61 = vpack.c.bf16 %v6928_v48, %v6927_v47 }
0x14d1   : > { %6338 = vrot.lane.b32.xlu1 %v17338_v58, %s17332_s20  ;;  %8142 = vrot.lane.b32.xlu0 %v17330_v8, %s17335_s2  ;;  %v15095_v1 = vpop.permute.xlu1 %6499  ;;  %v12675_v58 = vpack.c.bf16 %v6924_v5, %v6923_v27 }
0x14d5   : > { %6346 = vrot.lane.b32.xlu1 %v17339_v26, %s17335_s2  ;;  %8138 = vrot.lane.b32.xlu0 %v15039_v63, %s17324_s14  ;;  %v15110_v50 = vpop.permute.xlu1 %6515  ;;  %v6908_v26 = vld [vmem:[%s17134_s6 + $0x28] sm:$0xff] }
0x14d9   : > { %6350 = vrot.lane.b32.xlu1 %v17341_v18, %s17335_s2  ;;  %8140 = vrot.lane.b32.xlu0 %v15081_v43, %s17324_s14 }
0x14dd   : > { %6358 = vrot.lane.b32.xlu1 %v17342_v3, %s17325_s11  ;;  %v6926_v3 = vld [vmem:[%s17134_s6 + $0xb8] sm:$0xff] }
0x14e1   : > { %6362 = vrot.lane.b32.xlu1 %v17343_v7, %s17325_s11  ;;  %v12677_v7 = vpack.c.bf16 %v6908_v26, %v6907_v4 }
0x14e5   : > { %6370 = vrot.lane.b32.xlu1 %v17344_v11, %s17216_s30  ;;  %v12679_v11 = vpack.c.bf16 %v6926_v3, %v6925_v37 }
0x14e9   : > { %6374 = vrot.lane.b32.xlu1 %v17347_v42, %s17216_s30  ;;  %v6912_v42 = vld [vmem:[%s17134_s6 + $0x48] sm:$0xff]  ;;  %s11367_s30 = sshll.u32 %s13838_s29, 9 }
0x14ea   : > { %v12685_v54 = vpack.c.bf16 %v6912_v42, %v6911_v33 }
0x14eb   : > { %v6542_v20 = vpop.permute.xlu0 %6541 }
0x14ec   : > { %v6580_v60 = vsel %vm6579_vm9, %v6575_v28, %v6542_v20  ;;  %v12687_v28 = vpack.c.bf16 %v6930_v9, %v6929_v44  ;;  %v6914_v20 = vld [vmem:[%s17134_s6 + $0x58] sm:$0xff] }
0x14ed   : > { %12213 = vmatprep.mubr.msk.f32.mxu1 %vm563_vm0, %v6580_v60  ;;  %v12689_v60 = vpack.c.bf16 %v6914_v20, %v6913_v46 }
0x14ee   : > { %v6544_v2 = vpop.permute.xlu1 %6543 }
0x14ef   : > { %v6581_v31 = vsel %vm6579_vm9, %v6576_v56, %v6544_v2  ;;  %v6530_v35 = vpop.permute.xlu0 %6529  ;;  %v6933_v56 = vld [vmem:[%s17134_s6 + $0xf0] sm:$0xff]  ;;  %v6934_v2 = vld [vmem:[%s17134_s6 + $0xf8] sm:$0xff] }
0x14f0   : > { %12214 = vmatmul.mubr.msk.f32.vlgmr.msra.gmra.mrb[76].mxu1 %vm563_vm0, %v6581_v31  ;;  %v6577_v36 = vsel %vm6413_vm8, %v6573_v32, %v6530_v35  ;;  %v12695_v53 = vpack.c.bf16 %v6934_v2, %v6933_v56  ;;  %v12697_v35 = vpack.c.bf16 %v6918_v19, %v6917_v15 }
0x14f1   : > { %12670 = vmatpush3.bf16.msra.mxu1 %v12669_v39  ;;  %v6915_v39 = vld [vmem:[%s17134_s6 + $0x60] sm:$0xff] }
0x14f2   : > { %12672 = vmatprep.subr.bf16.mxu1 %v12671_v59  ;;  %v12693_v59 = vpack.c.bf16 %v6916_v57, %v6915_v39 }
0x14f3   : > { %v6546_v18 = vpop.permute.xlu0 %6545 }
0x14f4   : > { %v6582_v52 = vsel %vm6579_vm9, %v6577_v36, %v6546_v18  ;;  %v6532_v36 = vpop.permute.xlu1 %6531 }
0x14f5   : > { %12216 = vmatprep.mubr.msk.f32.mxu1 %vm563_vm0, %v6582_v52  ;;  %12674 = vmatpush3.bf16.msra.mxu1 %v12673_v34 }
0x14f6   : > { %12676 = vmatprep.subr.bf16.mxu1 %v12675_v58  ;;  %v17349_v58 = vld [vmem:[#allocation36_spill] sm:$0xff] }
0x14f7   : > { %v15172_v22 = vpop.permute.xlu0 %6322  ;;  %v6556_v4 = vsel %vm826_vm2, %v17349_v58, %v15073_v16  ;;  %v17353_v58 = vld [vmem:[#allocation48_spill] sm:$0xff] }
0x14f8   : > { %v6560_v26 = vsel %vm1143_vm4, %v6556_v4, %v15083_v38  ;;  %v17354_v4 = vld [vmem:[#allocation49_spill] sm:$0xff] }
0x14f9   : > { %12678 = vmatpush3.bf16.msra.mxu1 %v12677_v7  ;;  %v6565_v37 = vsel %vm6561_vm5, %v6560_v26, %v15091_v6  ;;  %v17355_v26 = vld [vmem:[#allocation24_spill] sm:$0xff] }
0x14fa   : > { %12680 = vmatprep.subr.bf16.mxu1 %v12679_v11  ;;  %v6569_v3 = vsel %vm6408_vm6, %v6565_v37, %v15095_v1 }
0x14fb   : > { %v15186_v0 = vpop.permute.xlu0 %6344  ;;  %v6574_v52 = vsel %vm6570_vm7, %v6569_v3, %v15110_v50  ;;  %v17350_v50 = vld [vmem:[#allocation29_spill] sm:$0xff] }
0x14fc   : > { %v6578_v16 = vsel %vm6413_vm8, %v6574_v52, %v6532_v36  ;;  %v17356_v36 = vld [vmem:[#allocation28_spill] sm:$0xff] }
0x14fd   : > { %12682 = vmatpush3.bf16.msra.mxu1 %v12681_v41 }
0x14fe   : > { %12684 = vmatprep.subr.bf16.mxu1 %v12683_v61 }
0x14ff   : > { %v15200_v45 = vpop.permute.xlu0 %6348 }
0x1501   : > { %12686 = vmatpush3.bf16.msra.mxu1 %v12685_v54 }
0x1502   : > { %12688 = vmatprep.subr.bf16.mxu1 %v12687_v28 }
0x1503   : > { %v6357_v49 = vpop.permute.xlu0 %6356 }
0x1505   : > { %12690 = vmatpush3.bf16.msra.mxu1 %v12689_v60 }
0x1506   : > { %12692 = vmatprep.subr.bf16.mxu1 %v12691_v25 }
0x1507   : > { %v6361_v31 = vpop.permute.xlu0 %6360 }
0x1509   : > { %12694 = vmatpush3.bf16.msra.mxu1 %v12693_v59  ;;  %v15288_v59 = vld [vmem:[%s17137_s9] sm:$0x3f] }
0x150a   : > { %12696 = vmatprep.subr.bf16.mxu1 %v12695_v53  ;;  %v17352_v53 = vld [vmem:[#allocation19_spill] sm:$0xff] }
0x150b   : > { %v6369_v27 = vpop.permute.xlu0 %6368  ;;  %v6595_v15 = vrot.slane %v15288_v59, %v17352_v53 }
0x150d   : > { %12698 = vmatpush3.bf16.msra.mxu1 %v12697_v35 }
0x150f   : > { %v6373_v5 = vpop.permute.xlu0 %6372 }
0x1513   : > { %v6381_v55 = vpop.permute.xlu0 %6380 }
0x1517   : > { %v6385_v17 = vpop.permute.xlu0 %6384 }
0x151b   : > { %v6393_v34 = vpop.permute.xlu0 %6392 }
0x151f   : > { %v6397_v32 = vpop.permute.xlu0 %6396 }
0x1523   : > { %v15231_v18 = vpop.permute.xlu0 %7100 }
0x1524   : > { %12219 = vmatprep.subr.msk.mxu0 %vm826_vm2, %v15231_v18 }
0x1527   : > { %v6548_v7 = vpop.permute.xlu1 %6547  ;;  %v15242_v11 = vpop.permute.xlu0 %7528 }
0x1528   : > { %v6583_v38 = vsel %vm6579_vm9, %v6578_v16, %v6548_v7  ;;  %v13499_v16 = vld [vmem:[%s14007_s17 + $0x18] sm:$0xff] }
0x1529   : > { %12217 = vmatmul.mubr.msk.f32.gmra.mrb[78].mxu1 %vm563_vm0, %v6583_v38  ;;  %v13500_v38 = vld [vmem:[%s14007_s17 + $0x10] sm:$0xff] }
0x152b   : > { %v6321_v14 = vpop.permute.xlu1 %6320  ;;  %v15246_v6 = vpop.permute.xlu0 %7617 }
0x152c   : > { %v6404_v41 = vsel %vm1143_vm4, %v17350_v50, %v6321_v14 }
0x152f   : > { %v6325_v13 = vpop.permute.xlu1 %6324  ;;  %v15248_v47 = vpop.permute.xlu0 %7702 }
0x1533   : > { %v15250_v48 = vpop.permute.xlu1 %6326  ;;  %v15252_v1 = vpop.permute.xlu0 %7706 }
0x1537   : > { %v6333_v61 = vpop.permute.xlu1 %6332  ;;  %v15256_v33 = vpop.permute.xlu0 %7791 }
0x1538   : > { %v6409_v42 = vsel %vm6408_vm6, %v6404_v41, %v6333_v61  ;;  %v17358_v41 = vld [vmem:[#allocation25_spill] sm:$0xff] }
0x1539   : > { %v6414_v44 = vsel %vm6413_vm8, %v6409_v42, %v15186_v0  ;;  %v17351_v0 = vld [vmem:[#allocation31_spill] sm:$0xff] }
0x153a   : > { %v6418_v9 = vsel %vm563_vm0, %v6414_v44, %v6357_v49  ;;  %v6406_v29 = vsel %vm1143_vm4, %v17351_v0, %v6325_v13 }
0x153b   : > { %v15262_v54 = vpop.permute.xlu1 %6334  ;;  %v15264_v28 = vpop.permute.xlu0 %7968  ;;  %v6423_v46 = vsel %vm6422_vm10, %v6418_v9, %v6369_v27 }
0x153c   : > { %12259 = vmatprep.subr.msk.mxu1 %vm826_vm2, %v15264_v28  ;;  %v6428_v20 = vsel %vm6427_vm11, %v6423_v46, %v6381_v55 }
0x153d   : > { %v6433_v10 = vsel %vm6432_vm12, %v6428_v20, %v6393_v34 }
0x153e   : > { %6437 = vst [vmem:[%s15272_s7] sm:$0xff] %v6433_v10 }
0x153f   : > { %v6337_v60 = vpop.permute.xlu1 %6336  ;;  %v15372_v46 = vpop.permute.xlu0 %7966 }
0x1540   : > { %v6411_v25 = vsel %vm6408_vm6, %v6406_v29, %v6337_v60  ;;  %17361 = vst [vmem:[#allocation37_spill] sm:$0xff] %v15372_v46 }
0x1541   : > { %v6416_v39 = vsel %vm6413_vm8, %v6411_v25, %v15200_v45 }
0x1542   : > { %v6420_v57 = vsel %vm563_vm0, %v6416_v39, %v6361_v31  ;;  %v13497_v31 = vld [vmem:[%s14007_s17 + $0x8] sm:$0xff] }
0x1543   : > { %v6425_v49 = vsel %vm6422_vm10, %v6420_v57, %v6373_v5  ;;  %v13498_v5 = vld [vmem:[%s14007_s17] sm:$0xff]  ;;  %s17359_s17 = smov 40   ;;  %v6339_v61 = vpop.permute.xlu1 %6338  ;;  %v15378_v10 = vpop.permute.xlu0 %8142 }
0x1544   : > { %v6430_v56 = vsel %vm6427_vm11, %v6425_v49, %v6385_v17 }
0x1545   : > { %v6435_v2 = vsel %vm6432_vm12, %v6430_v56, %v6397_v32 }
0x1546   : > { %6439 = vst [vmem:[%s15272_s7 + $0x10] sm:$0xff] %v6435_v2 }
0x1547   : > { %v6347_v42 = vpop.permute.xlu1 %6346  ;;  %v15382_v29 = vpop.permute.xlu0 %8138 }
0x1548   : > { %17362 = vst [vmem:[#allocation26_spill] sm:$0xff] %v15382_v29 }
0x154b   : > { %v6351_v44 = vpop.permute.xlu1 %6350  ;;  %v15388_v25 = vpop.permute.xlu0 %8140 }
0x154c   : > { %17363 = vst [vmem:[#allocation27_spill] sm:$0xff] %v15388_v25 }
0x154f   : > { %v6359_v9 = vpop.permute.xlu1 %6358 }
0x1553   : > { %v6363_v20 = vpop.permute.xlu1 %6362 }
0x1557   : > { %v6371_v0 = vpop.permute.xlu1 %6370 }
0x155b   : > { %v6375_v60 = vpop.permute.xlu1 %6374 }
0x15c3   : > { %v12215_v19 = vpop.f32.mrb[76].mxu1 }
0x15c4   : > { %v6680_v35 = vadd.f32 %v12215_v19, %v6595_v15  ;;  %v6674_v45 = vpop.f32.mrb[77].mxu1 }
0x15c5   : > { %v6675_v27 = vadd.f32 %v6674_v45, %v6595_v15  ;;  %v17364_v45 = vld [vmem:[#allocation30_spill] sm:$0xff] }
0x15c6   : > { %v15293_v55 = vadd.f32 %v13497_v31, %v6680_v35 }
0x15c7   : > { %v15296_v17 = vadd.f32 %v13498_v5, %v6675_v27  ;;  %v6405_v27 = vsel %vm1143_vm4, %v17364_v45, %v15172_v22  ;;  %v17366_v22 = vld [vmem:[#allocation32_spill] sm:$0xff] }
0x15c8   : > { %v6700_v34 = vsel %vm563_vm0, %v15293_v55, 0.0  ;;  %v6410_v5 = vsel %vm6408_vm6, %v6405_v27, %v15262_v54 }
0x15c9   : > { %6701 = vadd.xlane.f32.xlu1 %v6700_v34  ;;  %v6697_v32 = vsel %vm563_vm0, %v15296_v17, 0.0  ;;  %v6415_v34 = vsel %vm6413_vm8, %v6410_v5, %v6347_v42 }
0x15ca   : > { %6698 = vadd.xlane.f32.xlu0 %v6697_v32  ;;  %v6419_v32 = vsel %vm563_vm0, %v6415_v34, %v6359_v9 }
0x15da   : > { %6382 = vrot.lane.b32.xlu1 %v17353_v58, %s17323_s25  ;;  %v6407_v58 = vsel %vm1143_vm4, %v17366_v22, %v15250_v48 }
0x15db   : > { %v6412_v54 = vsel %vm6408_vm6, %v6407_v58, %v6339_v61 }
0x15de   : > { %6386 = vrot.lane.b32.xlu1 %v17354_v4, %s17323_s25  ;;  %v6424_v4 = vsel %vm6422_vm10, %v6419_v32, %v6371_v0 }
0x15e2   : > { %6394 = vrot.lane.b32.xlu1 %v14919_v23, %s17324_s14 }
0x15e6   : > { %6398 = vrot.lane.b32.xlu1 %v14932_v40, %s17324_s14  ;;  %v17357_v40 = vld [vmem:[#allocation22_spill] sm:$0xff] }
0x15ea   : > { %7185 = vrot.lane.b32.xlu1 %v17355_v26, %s17325_s11 }
0x15ee   : > { %7270 = vrot.lane.b32.xlu1 %v17330_v8, %s17325_s11 }
0x15f2   : > { %7355 = vrot.lane.b32.xlu1 %v17356_v36, %s17325_s11  ;;  %s17360_s11 = smov 104  }
0x15f6   : > { %7530 = vrot.lane.b32.xlu1 %v15063_v24, %s17327_s15 }
0x15fa   : > { %7532 = vrot.lane.b32.xlu1 %v14151_v12, %s17326_s18 }
0x15fc   : > { %v12218_v37 = vpop.f32.mrb[78].mxu1 }
0x15fd   : > { %v6690_v23 = vadd.f32 %v12218_v37, %v6595_v15  ;;  %v6684_v3 = vpop.f32.mrb[79].mxu1 }
0x15fe   : > { %v6685_v52 = vadd.f32 %v6684_v3, %v6595_v15  ;;  %7615 = vrot.lane.b32.xlu1 %v17357_v40, %s17327_s15 }
0x15ff   : > { %v15323_v7 = vadd.f32 %v13499_v16, %v6690_v23 }
0x1600   : > { %v15326_v14 = vadd.f32 %v13500_v38, %v6685_v52  ;;  %v6417_v52 = vsel %vm6413_vm8, %v6412_v54, %v6351_v44 }
0x1601   : > { %v6706_v13 = vsel %vm563_vm0, %v15323_v7, 0.0  ;;  %v6421_v48 = vsel %vm563_vm0, %v6417_v52, %v6363_v20 }
0x1602   : > { %7619 = vrot.lane.b32.xlu1 %v17355_v26, %s17326_s18  ;;  %6707 = vadd.xlane.f32.xlu0 %v6706_v13  ;;  %v6703_v50 = vsel %vm563_vm0, %v15326_v14, 0.0  ;;  %v6426_v38 = vsel %vm6422_vm10, %v6421_v48, %v6375_v60 }
0x1606   : > { %7704 = vrot.lane.b32.xlu1 %v15081_v43, %s17327_s15  ;;  %6704 = vadd.xlane.f32.xlu0 %v6703_v50 }
0x160a   : > { %7789 = vrot.lane.b32.xlu1 %v17358_v41, %s17327_s15  ;;  %s17367_s15 = smov 88  }
0x160e   : > { %7793 = vrot.lane.b32.xlu1 %v17356_v36, %s17326_s18 }
0x1612   : > { %8055 = vrot.lane.b32.xlu1 %v17355_v26, %s17335_s2 }
0x1616   : > { %7964 = vrot.lane.b32.xlu1 %v15024_v62, %s17324_s14 }
0x161a   : > { %8051 = vrot.lane.b32.xlu1 %v17357_v40, %s17324_s14 }
0x161c   : > { %8404 = vrot.lane.b32.xlu0 %v14151_v12, %s17359_s17 }
0x161e   : > { %8053 = vrot.lane.b32.xlu1 %v15031_v51, %s17324_s14 }
0x1620   : > { %8400 = vrot.lane.b32.xlu0 %v15024_v62, %s17360_s11 }
0x1622   : > { %8229 = vrot.lane.b32.xlu1 %v17356_v36, %s17335_s2 }
0x1624   : > { %8402 = vrot.lane.b32.xlu0 %v15063_v24, %s17360_s11 }
0x1626   : > { %8225 = vrot.lane.b32.xlu1 %v17358_v41, %s17324_s14 }
0x1628   : > { %8578 = vrot.lane.b32.xlu0 %v17330_v8, %s17359_s17 }
0x162a   : > { %8227 = vrot.lane.b32.xlu1 %v15051_v30, %s17324_s14  ;;  %s17365_s14 = smov 24  }
0x162e   : > { %8491 = vrot.lane.b32.xlu1 %v17355_v26, %s17359_s17 }
0x1632   : > { %8487 = vrot.lane.b32.xlu1 %v17357_v40, %s17360_s11 }
0x1636   : > { %8489 = vrot.lane.b32.xlu1 %v15031_v51, %s17360_s11 }
0x163a   : > { %8665 = vrot.lane.b32.xlu1 %v17356_v36, %s17359_s17 }
0x163e   : > { %8661 = vrot.lane.b32.xlu1 %v17358_v41, %s17360_s11 }
0x1642   : > { %8663 = vrot.lane.b32.xlu1 %v15051_v30, %s17360_s11 }
0x1646   : > { %8927 = vrot.lane.b32.xlu1 %v17355_v26, %s17332_s20 }
0x164a   : > { %8923 = vrot.lane.b32.xlu1 %v17357_v40, %s17323_s25 }
0x164e   : > { %8925 = vrot.lane.b32.xlu1 %v15031_v51, %s17323_s25 }
0x1652   : > { %9101 = vrot.lane.b32.xlu1 %v17356_v36, %s17332_s20 }
0x1656   : > { %9097 = vrot.lane.b32.xlu1 %v17358_v41, %s17323_s25  ;;  %v6702_v39 = vpop.xlane.xlu1 %6701 }
0x1657   : > { %v6711_v57 = vmul.f32 0.015625, %v6702_v39  ;;  %v6699_v49 = vpop.xlane.xlu0 %6698 }
0x1658   : > { %v6710_v56 = vmul.f32 0.015625, %v6699_v49 }
0x1659   : > { %v15393_v2 = vsub.f32 %v15293_v55, %v6711_v57 }
0x165a   : > { %v15396_v15 = vsub.f32 %v15296_v17, %v6710_v56  ;;  %9099 = vrot.lane.b32.xlu1 %v15051_v30, %s17323_s25  ;;  %v6383_v19 = vpop.permute.xlu1 %6382 }
0x165b   : > { %v6719_v35 = vmul.f32 %v15393_v2, %v15393_v2  ;;  %v6429_v23 = vsel %vm6427_vm11, %v6424_v4, %v6383_v19 }
0x165c   : > { %v6718_v55 = vmul.f32 %v15396_v15, %v15396_v15 }
0x165d   : > { %v6725_v31 = vsel %vm563_vm0, %v6719_v35, 0.0 }
0x165e   : > { %9363 = vrot.lane.b32.xlu1 %v17355_v26, %s17365_s14  ;;  %6726 = vadd.xlane.f32.xlu0 %v6725_v31  ;;  %v6387_v17 = vpop.permute.xlu1 %6386  ;;  %v6722_v37 = vsel %vm563_vm0, %v6718_v55, 0.0 }
0x165f   : > { %v6431_v13 = vsel %vm6427_vm11, %v6426_v38, %v6387_v17 }
0x1662   : > { %9359 = vrot.lane.b32.xlu1 %v17357_v40, %s17367_s15  ;;  %6723 = vadd.xlane.f32.xlu0 %v6722_v37  ;;  %v6395_v3 = vpop.permute.xlu1 %6394 }
0x1663   : > { %v6434_v16 = vsel %vm6432_vm12, %v6429_v23, %v6395_v3 }
0x1664   : > { %6438 = vst [vmem:[%s15272_s7 + $0x8] sm:$0xff] %v6434_v16 }
0x1666   : > { %9361 = vrot.lane.b32.xlu1 %v15031_v51, %s17367_s15  ;;  %v6399_v50 = vpop.permute.xlu1 %6398 }
0x1667   : > { %v6436_v61 = vsel %vm6432_vm12, %v6431_v13, %v6399_v50 }
0x1668   : > { %6440 = vst [vmem:[%s15272_s7 + $0x18] sm:$0xff] %v6436_v61 }
0x166a   : > { %9537 = vrot.lane.b32.xlu1 %v17356_v36, %s17365_s14  ;;  %v15443_v42 = vpop.permute.xlu1 %7185 }
0x166e   : > { %9533 = vrot.lane.b32.xlu1 %v17358_v41, %s17367_s15  ;;  %v15449_v44 = vpop.permute.xlu1 %7270 }
0x1672   : > { %9535 = vrot.lane.b32.xlu1 %v15051_v30, %s17367_s15  ;;  %v15453_v9 = vpop.permute.xlu1 %7355 }
0x1676   : > { %9799 = vrot.lane.b32.xlu1 %v17355_v26, %s17328_s16  ;;  %v15459_v20 = vpop.permute.xlu1 %7530 }
0x167a   : > { %9795 = vrot.lane.b32.xlu1 %v17357_v40, %s17368_s0  ;;  %v15468_v19 = vpop.permute.xlu1 %7532 }
0x167e   : > { %9797 = vrot.lane.b32.xlu1 %v15031_v51, %s17368_s0  ;;  %v15481_v27 = vpop.permute.xlu1 %7615 }
0x1682   : > { %9973 = vrot.lane.b32.xlu1 %v17356_v36, %s17328_s16 }
0x1686   : > { %9969 = vrot.lane.b32.xlu1 %v17358_v41, %s17368_s0 }
0x168a   : > { %9971 = vrot.lane.b32.xlu1 %v15051_v30, %s17368_s0 }
0x168e   : > { %10235 = vrot.lane.b32.xlu1 %v17355_v26, %s17369_s21 }
0x168f   : > { %v6708_v0 = vpop.xlane.xlu0 %6707 }
0x1690   : > { %v6713_v60 = vmul.f32 0.015625, %v6708_v0 }
0x1692   : > { %v15462_v39 = vsub.f32 %v15323_v7, %v6713_v60  ;;  %10231 = vrot.lane.b32.xlu1 %v17357_v40, %s17370_s19 }
0x1693   : > { %v6705_v57 = vpop.xlane.xlu0 %6704 }
0x1694   : > { %v6712_v49 = vmul.f32 0.015625, %v6705_v57  ;;  %v6721_v56 = vmul.f32 %v15462_v39, %v15462_v39 }
0x1696   : > { %v15471_v35 = vsub.f32 %v15326_v14, %v6712_v49  ;;  %10233 = vrot.lane.b32.xlu1 %v15031_v51, %s17370_s19  ;;  %v6731_v26 = vsel %vm563_vm0, %v6721_v56, 0.0  ;;  %v15485_v14 = vpop.permute.xlu1 %7619  ;;  %v17375_v56 = vld [vmem:[#allocation18_spill] sm:$0xff] }
0x1697   : > { %6732 = vadd.xlane.f32.xlu0 %v6731_v26  ;;  %v15523_v58 = vpop.permute.xlu0 %8404  ;;  %v6752_v26 = vsub.s32 2, %v17375_v56 }
0x1698   : > { %v6720_v7 = vmul.f32 %v15471_v35, %v15471_v35  ;;  %17371 = vst [vmem:[#allocation38_spill] sm:$0xff] %v15523_v58 }
0x169a   : > { %10409 = vrot.lane.b32.xlu1 %v17356_v36, %s17369_s21  ;;  %v6728_v45 = vsel %vm563_vm0, %v6720_v7, 0.0  ;;  %v15489_v31 = vpop.permute.xlu1 %7704 }
0x169b   : > { %6729 = vadd.xlane.f32.xlu0 %v6728_v45  ;;  %v15531_v37 = vpop.permute.xlu0 %8400  ;;  %v6760_v45 = vsub.s32 3, %v17375_v56 }
0x169c   : > { %17372 = vst [vmem:[#allocation39_spill] sm:$0xff] %v15531_v37 }
0x169e   : > { %10405 = vrot.lane.b32.xlu1 %v17358_v41, %s17370_s19  ;;  %v15491_v55 = vpop.permute.xlu1 %7789 }
0x169f   : > { %v15537_v23 = vpop.permute.xlu0 %8402 }
0x16a0   : > { %17373 = vst [vmem:[#allocation21_spill] sm:$0xff] %v15537_v23  ;;  %v6761_v23 = vrot.slane %v15288_v59, %v6760_v45 }
0x16a2   : > { %10407 = vrot.lane.b32.xlu1 %v15051_v30, %s17370_s19  ;;  %v15495_v36 = vpop.permute.xlu1 %7793 }
0x16a3   : > { %v15545_v52 = vpop.permute.xlu0 %8578 }
0x16a4   : > { %17374 = vst [vmem:[#allocation40_spill] sm:$0xff] %v15545_v52 }
0x16a6   : > { %v15499_v5 = vpop.permute.xlu1 %8055 }
0x16aa   : > { %v15505_v17 = vpop.permute.xlu1 %7964 }
0x16ae   : > { %v15509_v34 = vpop.permute.xlu1 %8051 }
0x16b1   : > { %8574 = vrot.lane.b32.xlu0 %v15039_v63, %s17360_s11 }
0x16b2   : > { %v15515_v32 = vpop.permute.xlu1 %8053 }
0x16b5   : > { %8576 = vrot.lane.b32.xlu0 %v15081_v43, %s17360_s11 }
0x16b6   : > { %v15519_v22 = vpop.permute.xlu1 %8229 }
0x16b9   : > { %8840 = vrot.lane.b32.xlu0 %v14151_v12, %s17332_s20 }
0x16ba   : > { %v15527_v4 = vpop.permute.xlu1 %8225 }
0x16bd   : > { %8836 = vrot.lane.b32.xlu0 %v15024_v62, %s17323_s25 }
0x16be   : > { %v15533_v54 = vpop.permute.xlu1 %8227 }
0x16c1   : > { %8838 = vrot.lane.b32.xlu0 %v15063_v24, %s17323_s25 }
0x16c2   : > { %v15541_v3 = vpop.permute.xlu1 %8491 }
0x16c5   : > { %9014 = vrot.lane.b32.xlu0 %v17330_v8, %s17332_s20 }
0x16c6   : > { %v15547_v16 = vpop.permute.xlu1 %8487 }
0x16c9   : > { %9010 = vrot.lane.b32.xlu0 %v15039_v63, %s17323_s25 }
0x16ca   : > { %v15553_v50 = vpop.permute.xlu1 %8489 }
0x16cd   : > { %9012 = vrot.lane.b32.xlu0 %v15081_v43, %s17323_s25 }
0x16ce   : > { %v15557_v57 = vpop.permute.xlu1 %8665 }
0x16d1   : > { %9276 = vrot.lane.b32.xlu0 %v14151_v12, %s17365_s14 }
0x16d2   : > { %v15563_v49 = vpop.permute.xlu1 %8661 }
0x16d5   : > { %9272 = vrot.lane.b32.xlu0 %v15024_v62, %s17367_s15 }
0x16d9   : > { %9274 = vrot.lane.b32.xlu0 %v15063_v24, %s17367_s15 }
0x16dd   : > { %9450 = vrot.lane.b32.xlu0 %v17330_v8, %s17365_s14 }
0x16e1   : > { %9446 = vrot.lane.b32.xlu0 %v15039_v63, %s17367_s15 }
0x16e5   : > { %9448 = vrot.lane.b32.xlu0 %v15081_v43, %s17367_s15 }
0x16e9   : > { %9712 = vrot.lane.b32.xlu0 %v14151_v12, %s17328_s16 }
0x16eb   : > { %v6727_v48 = vpop.xlane.xlu0 %6726 }
0x16ec   : > { %v6735_v38 = vmul.f32 0.015625, %v6727_v48 }
0x16ed   : > { %9708 = vrot.lane.b32.xlu0 %v15024_v62, %s17368_s0 }
0x16ee   : > { %v6739_v13 = vadd.f32 1e-05, %v6735_v38 }
0x16ef   : > { %v6724_v61 = vpop.xlane.xlu0 %6723 }
0x16f0   : > { %v6734_v0 = vmul.f32 0.015625, %v6724_v61  ;;  %13225 = vrsqrt.f32 %v6739_v13  ;;  %v6753_v13 = vrot.slane %v15288_v59, %v6752_v26 }
0x16f1   : > { %9710 = vrot.lane.b32.xlu0 %v15063_v24, %s17368_s0 }
0x16f2   : > { %v6738_v60 = vadd.f32 1e-05, %v6734_v0  ;;  %v15572_v0 = vpop.permute.xlu1 %8663 }
0x16f4   : > { %13227 = vrsqrt.f32 %v6738_v60 }
0x16f5   : > { %9886 = vrot.lane.b32.xlu0 %v17330_v8, %s17328_s16 }
0x16f9   : > { %9882 = vrot.lane.b32.xlu0 %v15039_v63, %s17368_s0 }
0x16fa   : > { %v13226_v7 = vpop.eup %13225 }
0x16fb   : > { %v6747_v61 = vmul.f32 %v13226_v7, %v15393_v2  ;;  %v15586_v2 = vpop.permute.xlu1 %8927 }
0x16fd   : > { %9884 = vrot.lane.b32.xlu0 %v15081_v43, %s17368_s0  ;;  %v6755_v37 = vmul.f32 %v6753_v13, %v6747_v61 }
0x16fe   : > { %v13228_v48 = vpop.eup %13227 }
0x16ff   : > { %v6746_v38 = vmul.f32 %v13228_v48, %v15396_v15  ;;  %v15597_v59 = vpop.permute.xlu1 %8923 }
0x1701   : > { %10148 = vrot.lane.b32.xlu0 %v14151_v12, %s17369_s21  ;;  %v6754_v60 = vmul.f32 %v6753_v13, %v6746_v38  ;;  %v15590_v12 = vadd.f32 %v6761_v23, %v6755_v37 }
0x1703   : > { %v15577_v52 = vadd.f32 %v6761_v23, %v6754_v60  ;;  %17377 = vst [vmem:[#allocation42_spill] sm:$0xff] %v15590_v12 }
0x1705   : > { %17376 = vst [vmem:[#allocation41_spill] sm:$0xff] %v15577_v52  ;;  %10144 = vrot.lane.b32.xlu0 %v15024_v62, %s17370_s19  ;;  %11253 = vmatmul.mubr.msk.f32.vlgmr.msra.gmra.mrb[72].mxu0 %vm563_vm0, %v15577_v52 }
0x1706   : > { %12220 = vmatpush3.xpose.msk.msra.mxu0 %vm826_vm2, %v15231_v18  ;;  %6876 = vmatprep.mubr.f32.mxu0 %v17312_v21  ;;  %v15603_v18 = vpop.permute.xlu1 %8925 }
0x1707   : > { %12224 = vmatprep.subr.msk.mxu0 %vm826_vm2, %v15443_v42 }
0x1709   : > { %10146 = vrot.lane.b32.xlu0 %v15063_v24, %s17370_s19  ;;  %11254 = vmatmul.mubr.msk.f32.gmra.mrb[74].mxu0 %vm563_vm0, %v15590_v12 }
0x170a   : > { %6882 = vmatprep.mubr.f32.mxu0 %v17312_v21  ;;  %v15607_v15 = vpop.permute.xlu1 %9101 }
0x170d   : > { %10322 = vrot.lane.b32.xlu0 %v17330_v8, %s17369_s21 }
0x170e   : > { %v15609_v37 = vpop.permute.xlu1 %9097 }
0x1711   : > { %10318 = vrot.lane.b32.xlu0 %v15039_v63, %s17370_s19 }
0x1712   : > { %v15611_v7 = vpop.permute.xlu1 %9099 }
0x1715   : > { %10320 = vrot.lane.b32.xlu0 %v15081_v43, %s17370_s19  ;;  %s17479_s19 = sld [smem:[#allocation71_spill]] }
0x1716   : > { %v15613_v8 = vpop.permute.xlu1 %9363 }
0x171a   : > { %v15615_v56 = vpop.permute.xlu1 %9359 }
0x171b   : > { %s16950_s25 = scalar_lea.hbm %s17479_s19, %s11367_s30 }
0x171e   : > { %v15617_v25 = vpop.permute.xlu1 %9361 }
0x1724   : > { %v6733_v26 = vpop.xlane.xlu0 %6732 }
0x1725   : > { %v6737_v45 = vmul.f32 0.015625, %v6733_v26 }
0x1727   : > { %v6741_v48 = vadd.f32 1e-05, %v6737_v45 }
0x1728   : > { %v6730_v38 = vpop.xlane.xlu0 %6729 }
0x1729   : > { %v6736_v61 = vmul.f32 0.015625, %v6730_v38  ;;  %13229 = vrsqrt.f32 %v6741_v48  ;;  %v15623_v38 = vpop.permute.xlu1 %9537 }
0x172b   : > { %v6740_v60 = vadd.f32 1e-05, %v6736_v61 }
0x172d   : > { %13231 = vrsqrt.f32 %v6740_v60  ;;  %v15632_v61 = vpop.permute.xlu1 %9533 }
0x1733   : > { %v13230_v12 = vpop.eup %13229 }
0x1734   : > { %v6749_v29 = vmul.f32 %v13230_v12, %v15462_v39  ;;  %v17378_v39 = vld [vmem:[#allocation20_spill] sm:$0xff] }
0x1736   : > { %v6757_v45 = vmul.f32 %v6753_v13, %v6749_v29 }
0x1737   : > { %v13232_v52 = vpop.eup %13231 }
0x1738   : > { %v6748_v58 = vmul.f32 %v13232_v52, %v15471_v35  ;;  %v15628_v48 = vadd.f32 %v6761_v23, %v6757_v45 }
0x173a   : > { %v6756_v46 = vmul.f32 %v6753_v13, %v6748_v58 }
0x173c   : > { %v15621_v26 = vadd.f32 %v6761_v23, %v6756_v46 }
0x173e   : > { %11255 = vmatmul.mubr.msk.f32.gmra.mrb[76].mxu0 %vm563_vm0, %v15621_v26 }
0x173f   : > { %6888 = vmatprep.mubr.f32.mxu0 %v17312_v21  ;;  %v15644_v21 = vpop.permute.xlu1 %9535 }
0x1742   : > { %11256 = vmatmul.mubr.msk.f32.gmra.mrb[78].mxu0 %vm563_vm0, %v15628_v48 }
0x1743   : > { %12221 = vmatprep.mubr.msk.f32.mxu0 %vm826_vm2, %v15024_v62  ;;  %v9800_v62 = vpop.permute.xlu1 %9799 }
0x1746   : > { %12222 = vmatmul.mubr.msk.f32.vlgmr.msra.gmra.mrb[80].mxu0 %vm826_vm2, %v15063_v24 }
0x1747   : > { %12225 = vmatpush3.xpose.msk.msra.mxu0 %vm826_vm2, %v15443_v42  ;;  %12226 = vmatprep.mubr.msk.f32.mxu0 %vm826_vm2, %v17357_v40 }
0x1748   : > { %12229 = vmatprep.subr.msk.mxu0 %vm826_vm2, %v15449_v44 }
0x174a   : > { %12227 = vmatmul.mubr.msk.f32.vlgmr.msra.gmra.mrb[82].mxu0 %vm826_vm2, %v15031_v51  ;;  %v9796_v51 = vpop.permute.xlu1 %9795 }
0x174b   : > { %12230 = vmatpush3.xpose.msk.msra.mxu0 %vm826_vm2, %v15449_v44  ;;  %12231 = vmatprep.mubr.msk.f32.mxu0 %vm826_vm2, %v15039_v63  ;;  %v6782_v44 = vld [vmem:[%s17138_s10] sm:$0x3] }
0x174c   : > { %12234 = vmatprep.subr.msk.mxu0 %vm826_vm2, %v15453_v9 }
0x174e   : > { %12232 = vmatmul.mubr.msk.f32.vlgmr.msra.gmra.mrb[84].mxu0 %vm826_vm2, %v15081_v43  ;;  %v9798_v63 = vpop.permute.xlu1 %9797 }
0x174f   : > { %12235 = vmatpush3.xpose.msk.msra.mxu0 %vm826_vm2, %v15453_v9  ;;  %12236 = vmatprep.mubr.msk.f32.mxu0 %vm826_vm2, %v17358_v41  ;;  %v15774_v41 = vpop.permute.xlu0 %8574 }
0x1750   : > { %12239 = vmatprep.subr.msk.mxu0 %vm826_vm2, %v15468_v19 }
0x1752   : > { %12237 = vmatmul.mubr.msk.f32.vlgmr.msra.gmra.mrb[86].mxu0 %vm826_vm2, %v15051_v30  ;;  %v9974_v30 = vpop.permute.xlu1 %9973 }
0x1753   : > { %12240 = vmatpush3.xpose.msk.msra.mxu0 %vm826_vm2, %v15468_v19  ;;  %12241 = vmatprep.mubr.msk.f32.mxu0 %vm826_vm2, %v15242_v11  ;;  %v15776_v46 = vpop.permute.xlu0 %8576  ;;  %v6791_v19 = vrot.slane %v6782_v44, %v17378_v39 }
0x1754   : > { %12244 = vmatprep.subr.msk.mxu0 %vm826_vm2, %v15485_v14 }
0x1756   : > { %12242 = vmatmul.mubr.msk.f32.vlgmr.msra.gmra.mrb[88].mxu0 %vm826_vm2, %v15459_v20  ;;  %v9970_v24 = vpop.permute.xlu1 %9969  ;;  %v6787_v20 = vrot.slane %v6782_v44, %v17352_v53  ;;  %v17382_v44 = vld [vmem:[#allocation27_spill] sm:$0xff] }
0x1757   : > { %12245 = vmatpush3.xpose.msk.msra.mxu0 %vm826_vm2, %v15485_v14  ;;  %12246 = vmatprep.mubr.msk.f32.mxu0 %vm826_vm2, %v15481_v27  ;;  %v15778_v29 = vpop.permute.xlu0 %8840 }
0x1758   : > { %12249 = vmatprep.subr.msk.mxu0 %vm826_vm2, %v15252_v1 }
0x175a   : > { %12247 = vmatmul.mubr.msk.f32.vlgmr.msra.gmra.mrb[90].mxu0 %vm826_vm2, %v15246_v6  ;;  %v9972_v43 = vpop.permute.xlu1 %9971 }
0x175b   : > { %12250 = vmatpush3.xpose.msk.msra.mxu0 %vm826_vm2, %v15252_v1  ;;  %12251 = vmatprep.mubr.msk.f32.mxu0 %vm826_vm2, %v15248_v47 }
0x175c   : > { %12254 = vmatprep.subr.msk.mxu0 %vm826_vm2, %v15495_v36 }
0x175e   : > { %12252 = vmatmul.mubr.msk.f32.vlgmr.msra.gmra.mrb[92].mxu0 %vm826_vm2, %v15489_v31  ;;  %v10236_v11 = vpop.permute.xlu1 %10235 }
0x175f   : > { %12255 = vmatpush3.xpose.msk.msra.mxu0 %vm826_vm2, %v15495_v36  ;;  %12256 = vmatprep.mubr.msk.f32.mxu0 %vm826_vm2, %v15491_v55 }
0x1760   : > { %12264 = vmatprep.subr.msk.mxu0 %vm826_vm2, %v15499_v5 }
0x1762   : > { %12257 = vmatmul.mubr.msk.f32.vlgmr.msra.gmra.mrb[94].mxu0 %vm826_vm2, %v15256_v33  ;;  %v10232_v6 = vpop.permute.xlu1 %10231 }
0x1763   : > { %12265 = vmatpush3.xpose.msk.msra.mxu0 %vm826_vm2, %v15499_v5  ;;  %12266 = vmatprep.mubr.msk.f32.mxu0 %vm826_vm2, %v15509_v34 }
0x1764   : > { %12274 = vmatprep.subr.msk.mxu0 %vm826_vm2, %v15519_v22 }
0x1766   : > { %12267 = vmatmul.mubr.msk.f32.vlgmr.msra.gmra.mrb[96].mxu0 %vm826_vm2, %v15515_v32  ;;  %v10234_v47 = vpop.permute.xlu1 %10233 }
0x1767   : > { %12275 = vmatpush3.xpose.msk.msra.mxu0 %vm826_vm2, %v15519_v22  ;;  %12276 = vmatprep.mubr.msk.f32.mxu0 %vm826_vm2, %v15527_v4 }
0x1768   : > { %12284 = vmatprep.subr.msk.mxu0 %vm826_vm2, %v15541_v3 }
0x176a   : > { %12277 = vmatmul.mubr.msk.f32.vlgmr.msra.gmra.mrb[98].mxu0 %vm826_vm2, %v15533_v54  ;;  %v10410_v1 = vpop.permute.xlu1 %10409 }
0x176b   : > { %12285 = vmatpush3.xpose.msk.msra.mxu0 %vm826_vm2, %v15541_v3  ;;  %12286 = vmatprep.mubr.msk.f32.mxu0 %vm826_vm2, %v15547_v16 }
0x176c   : > { %12294 = vmatprep.subr.msk.mxu0 %vm826_vm2, %v15557_v57 }
0x176e   : > { %12287 = vmatmul.mubr.msk.f32.vlgmr.msra.gmra.mrb[100].mxu0 %vm826_vm2, %v15553_v50  ;;  %v10406_v33 = vpop.permute.xlu1 %10405 }
0x176f   : > { %12295 = vmatpush3.xpose.msk.msra.mxu0 %vm826_vm2, %v15557_v57  ;;  %12296 = vmatprep.mubr.msk.f32.mxu0 %vm826_vm2, %v15563_v49 }
0x1770   : > { %12304 = vmatprep.subr.msk.mxu0 %vm826_vm2, %v15586_v2 }
0x1772   : > { %12297 = vmatmul.mubr.msk.f32.vlgmr.msra.gmra.mrb[102].mxu0 %vm826_vm2, %v15572_v0  ;;  %v10408_v40 = vpop.permute.xlu1 %10407 }
0x1773   : > { %12305 = vmatpush3.xpose.msk.msra.mxu0 %vm826_vm2, %v15586_v2  ;;  %12306 = vmatprep.mubr.msk.f32.mxu0 %vm826_vm2, %v15597_v59 }
0x1774   : > { %12314 = vmatprep.subr.msk.mxu0 %vm826_vm2, %v15607_v15 }
0x1776   : > { %12307 = vmatmul.mubr.msk.f32.vlgmr.msra.gmra.mrb[104].mxu0 %vm826_vm2, %v15603_v18 }
0x1777   : > { %12315 = vmatpush3.xpose.msk.msra.mxu0 %vm826_vm2, %v15607_v15  ;;  %12316 = vmatprep.mubr.msk.f32.mxu0 %vm826_vm2, %v15609_v37 }
0x1778   : > { %12324 = vmatprep.subr.msk.mxu0 %vm826_vm2, %v15613_v8 }
0x177a   : > { %12317 = vmatmul.mubr.msk.f32.vlgmr.msra.gmra.mrb[106].mxu0 %vm826_vm2, %v15611_v7 }
0x177b   : > { %12325 = vmatpush3.xpose.msk.msra.mxu0 %vm826_vm2, %v15613_v8  ;;  %12326 = vmatprep.mubr.msk.f32.mxu0 %vm826_vm2, %v15615_v56 }
0x177c   : > { %12334 = vmatprep.subr.msk.mxu0 %vm826_vm2, %v15623_v38 }
0x177e   : > { %12327 = vmatmul.mubr.msk.f32.vlgmr.msra.gmra.mrb[108].mxu0 %vm826_vm2, %v15617_v25  ;;  %v15780_v25 = vpop.permute.xlu0 %8836 }
0x177f   : > { %12335 = vmatpush3.xpose.msk.msra.mxu0 %vm826_vm2, %v15623_v38  ;;  %12336 = vmatprep.mubr.msk.f32.mxu0 %vm826_vm2, %v15632_v61 }
0x1780   : > { %12344 = vmatprep.subr.msk.mxu0 %vm826_vm2, %v9800_v62 }
0x1782   : > { %12337 = vmatmul.mubr.msk.f32.vlgmr.msra.gmra.mrb[110].mxu0 %vm826_vm2, %v15644_v21  ;;  %v15782_v42 = vpop.permute.xlu0 %8838 }
0x1783   : > { %12345 = vmatpush3.xpose.msk.msra.mxu0 %vm826_vm2, %v9800_v62  ;;  %12346 = vmatprep.mubr.msk.f32.mxu0 %vm826_vm2, %v9796_v51 }
0x1784   : > { %12354 = vmatprep.subr.msk.mxu0 %vm826_vm2, %v9974_v30 }
0x1786   : > { %12347 = vmatmul.mubr.msk.f32.vlgmr.msra.gmra.mrb[112].mxu0 %vm826_vm2, %v9798_v63  ;;  %v15787_v9 = vpop.permute.xlu0 %9014 }
0x1787   : > { %12355 = vmatpush3.xpose.msk.msra.mxu0 %vm826_vm2, %v9974_v30  ;;  %12356 = vmatprep.mubr.msk.f32.mxu0 %vm826_vm2, %v9970_v24 }
0x1788   : > { %12364 = vmatprep.subr.msk.mxu0 %vm826_vm2, %v10236_v11 }
0x178a   : > { %12357 = vmatmul.mubr.msk.f32.vlgmr.msra.gmra.mrb[114].mxu0 %vm826_vm2, %v9972_v43  ;;  %v15791_v27 = vpop.permute.xlu0 %9010  ;;  %v17379_v43 = vld [vmem:[#allocation37_spill] sm:$0xff] }
0x178b   : > { %12365 = vmatpush3.xpose.msk.msra.mxu0 %vm826_vm2, %v10236_v11  ;;  %12366 = vmatprep.mubr.msk.f32.mxu0 %vm826_vm2, %v10232_v6 }
0x178c   : > { %12374 = vmatprep.subr.msk.mxu0 %vm826_vm2, %v10410_v1 }
0x178e   : > { %12367 = vmatmul.mubr.msk.f32.vlgmr.msra.gmra.mrb[116].mxu0 %vm826_vm2, %v10234_v47  ;;  %v15793_v4 = vpop.permute.xlu0 %9012  ;;  %v17380_v47 = vld [vmem:[#allocation26_spill] sm:$0xff] }
0x178f   : > { %12375 = vmatpush3.xpose.msk.msra.mxu0 %vm826_vm2, %v10410_v1  ;;  %12376 = vmatprep.mubr.msk.f32.mxu0 %vm826_vm2, %v10406_v33 }
0x1792   : > { %12377 = vmatmul.mubr.msk.f32.vlgmr.msra.gmra.mrb[118].mxu0 %vm826_vm2, %v10408_v40  ;;  %v15799_v23 = vpop.permute.xlu0 %9276 }
0x1796   : > { %v15801_v3 = vpop.permute.xlu0 %9272 }
0x179a   : > { %v15803_v52 = vpop.permute.xlu0 %9274 }
0x179e   : > { %v15805_v16 = vpop.permute.xlu0 %9450 }
0x17a2   : > { %v15807_v50 = vpop.permute.xlu0 %9446 }
0x17a6   : > { %v15809_v57 = vpop.permute.xlu0 %9448 }
0x17aa   : > { %v15811_v49 = vpop.permute.xlu0 %9712 }
0x17d8   : > { %v6872_v35 = vpop.f32.mrb[72].mxu0 }
0x17d9   : > { %v6873_v14 = vadd.f32 %v6872_v35, %v6787_v20  ;;  %v6874_v31 = vpop.f32.mrb[73].mxu0 }
0x17da   : > { %v6875_v55 = vadd.f32 %v6874_v31, %v6791_v19 }
0x17db   : > { %v6895_v34 = vmax.f32 %v6873_v14, 0.0 }
0x17dc   : > { %v6896_v36 = vmax.f32 %v6875_v55, 0.0  ;;  %v6878_v5 = vpop.f32.mrb[74].mxu0 }
0x17dd   : > { %v6879_v32 = vadd.f32 %v6878_v5, %v6787_v20  ;;  %v6880_v22 = vpop.f32.mrb[75].mxu0 }
0x17de   : > { %v6881_v58 = vadd.f32 %v6880_v22, %v6791_v19  ;;  %7003 = vmatprep.mubr.f32.mxu1 %v6896_v36  ;;  %v17385_v36 = vld [vmem:[#allocation21_spill] sm:$0xff] }
0x17df   : > { %7004 = vmatmul.mubr.f32.vlgmr.msra.gmra.mrb[80].mxu1 %v6895_v34  ;;  %v6897_v53 = vmax.f32 %v6879_v32, 0.0 }
0x17e0   : > { %v6898_v54 = vmax.f32 %v6881_v58, 0.0  ;;  %12260 = vmatpush3.xpose.msk.msra.mxu1 %vm826_vm2, %v15264_v28  ;;  %v15813_v28 = vpop.permute.xlu0 %9708 }
0x17e1   : > { %12269 = vmatprep.subr.msk.mxu1 %vm826_vm2, %v15378_v10 }
0x17e2   : > { %7008 = vmatprep.mubr.f32.mxu1 %v6898_v54 }
0x17e3   : > { %7009 = vmatmul.mubr.f32.gmra.mrb[82].mxu1 %v6897_v53 }
0x17e4   : > { %v15815_v12 = vpop.permute.xlu0 %9710 }
0x17e8   : > { %v15823_v62 = vpop.permute.xlu0 %9886 }
0x17ec   : > { %v15837_v11 = vpop.permute.xlu0 %9882 }
0x17f0   : > { %v15867_v31 = vpop.permute.xlu0 %9884 }
0x17f4   : > { %v15889_v58 = vpop.permute.xlu0 %10148 }
0x1811   : > { %v6884_v56 = vpop.f32.mrb[76].mxu0 }
0x1812   : > { %v6885_v13 = vadd.f32 %v6884_v56, %v6787_v20  ;;  %v6886_v0 = vpop.f32.mrb[77].mxu0  ;;  %v10145_v56 = vpop.permute.xlu0 %10144 }
0x1813   : > { %v6887_v2 = vadd.f32 %v6886_v0, %v6791_v19 }
0x1814   : > { %v6899_v15 = vmax.f32 %v6885_v13, 0.0 }
0x1815   : > { %v6900_v59 = vmax.f32 %v6887_v2, 0.0  ;;  %v6890_v18 = vpop.f32.mrb[78].mxu0 }
0x1816   : > { %v6891_v37 = vadd.f32 %v6890_v18, %v6787_v20  ;;  %v6892_v7 = vpop.f32.mrb[79].mxu0  ;;  %v17383_v20 = vld [vmem:[#allocation39_spill] sm:$0xff] }
0x1817   : > { %v6893_v8 = vadd.f32 %v6892_v7, %v6791_v19  ;;  %7013 = vmatprep.mubr.f32.mxu1 %v6900_v59  ;;  %v17384_v19 = vld [vmem:[#allocation40_spill] sm:$0xff] }
0x1818   : > { %7014 = vmatmul.mubr.f32.gmra.mrb[84].mxu1 %v6899_v15  ;;  %v6901_v38 = vmax.f32 %v6891_v37, 0.0 }
0x1819   : > { %v6902_v60 = vmax.f32 %v6893_v8, 0.0  ;;  %v15817_v45 = vpop.f32.mrb[80].mxu0 }
0x181a   : > { %v15819_v61 = vpop.f32.mrb[81].mxu0  ;;  %v7443_v21 = vsel %vm826_vm2, %v15817_v45, -inf }
0x181b   : > { %7444 = vmax.xlane.f32.xlu1 %v7443_v21  ;;  %7018 = vmatprep.mubr.f32.mxu1 %v6902_v60  ;;  %v7440_v51 = vsel %vm826_vm2, %v15819_v61, -inf }
0x181c   : > { %7441 = vmax.xlane.f32.xlu0 %v7440_v51  ;;  %7019 = vmatmul.mubr.f32.gmra.mrb[86].mxu1 %v6901_v38 }
0x181d   : > { %v15827_v63 = vpop.f32.mrb[82].mxu0  ;;  %12261 = vmatprep.mubr.msk.f32.mxu1 %vm826_vm2, %v15505_v17  ;;  %v17381_v17 = vld [vmem:[#allocation38_spill] sm:$0xff] }
0x181e   : > { %v15831_v30 = vpop.f32.mrb[83].mxu0  ;;  %v7449_v24 = vsel %vm826_vm2, %v15827_v63, -inf }
0x181f   : > { %v7446_v40 = vsel %vm826_vm2, %v15831_v30, -inf }
0x1820   : > { %7450 = vmax.xlane.f32.xlu0 %v7449_v24  ;;  %12262 = vmatmul.mubr.msk.f32.vlgmr.msra.gmra.mrb[88].mxu1 %vm826_vm2, %v17379_v43 }
0x1821   : > { %12270 = vmatpush3.xpose.msk.msra.mxu1 %vm826_vm2, %v15378_v10  ;;  %v15841_v6 = vpop.f32.mrb[84].mxu0  ;;  %12271 = vmatprep.mubr.msk.f32.mxu1 %vm826_vm2, %v17380_v47 }
0x1822   : > { %12279 = vmatprep.subr.msk.mxu1 %vm826_vm2, %v17381_v17  ;;  %v15847_v1 = vpop.f32.mrb[85].mxu0  ;;  %v7455_v33 = vsel %vm826_vm2, %v15841_v6, -inf }
0x1823   : > { %7456 = vmax.xlane.f32.xlu1 %v7455_v33  ;;  %v7452_v55 = vsel %vm826_vm2, %v15847_v1, -inf }
0x1824   : > { %7447 = vmax.xlane.f32.xlu0 %v7446_v40  ;;  %12272 = vmatmul.mubr.msk.f32.vlgmr.msra.gmra.mrb[90].mxu1 %vm826_vm2, %v17382_v44 }
0x1825   : > { %12280 = vmatpush3.xpose.msk.msra.mxu1 %vm826_vm2, %v17381_v17  ;;  %v15857_v10 = vpop.f32.mrb[86].mxu0  ;;  %12281 = vmatprep.mubr.msk.f32.mxu1 %vm826_vm2, %v17383_v20 }
0x1826   : > { %12289 = vmatprep.subr.msk.mxu1 %vm826_vm2, %v17384_v19  ;;  %v15863_v35 = vpop.f32.mrb[87].mxu0  ;;  %v7461_v14 = vsel %vm826_vm2, %v15857_v10, -inf }
0x1827   : > { %7462 = vmax.xlane.f32.xlu1 %v7461_v14  ;;  %v7458_v22 = vsel %vm826_vm2, %v15863_v35, -inf }
0x1828   : > { %7453 = vmax.xlane.f32.xlu0 %v7452_v55  ;;  %12282 = vmatmul.mubr.msk.f32.vlgmr.msra.gmra.mrb[92].mxu1 %vm826_vm2, %v17385_v36 }
0x1829   : > { %12290 = vmatpush3.xpose.msk.msra.mxu1 %vm826_vm2, %v17384_v19  ;;  %v15875_v5 = vpop.f32.mrb[88].mxu0  ;;  %12291 = vmatprep.mubr.msk.f32.mxu1 %vm826_vm2, %v15774_v41 }
0x182a   : > { %12299 = vmatprep.subr.msk.mxu1 %vm826_vm2, %v15778_v29  ;;  %v15881_v34 = vpop.f32.mrb[89].mxu0  ;;  %v7879_v32 = vsel %vm826_vm2, %v15875_v5, -inf }
0x182b   : > { %7880 = vmax.xlane.f32.xlu1 %v7879_v32  ;;  %v7876_v53 = vsel %vm826_vm2, %v15881_v34, -inf }
0x182c   : > { %7459 = vmax.xlane.f32.xlu0 %v7458_v22  ;;  %12292 = vmatmul.mubr.msk.f32.vlgmr.msra.gmra.mrb[94].mxu1 %vm826_vm2, %v15776_v46 }
0x182d   : > { %12300 = vmatpush3.xpose.msk.msra.mxu1 %vm826_vm2, %v15778_v29  ;;  %v15893_v41 = vpop.f32.mrb[90].mxu0  ;;  %12301 = vmatprep.mubr.msk.f32.mxu1 %vm826_vm2, %v15780_v25 }
0x182e   : > { %12309 = vmatprep.subr.msk.mxu1 %vm826_vm2, %v15787_v9  ;;  %v15899_v54 = vpop.f32.mrb[91].mxu0 }
0x1830   : > { %7877 = vmax.xlane.f32.xlu0 %v7876_v53  ;;  %12302 = vmatmul.mubr.msk.f32.vlgmr.msra.gmra.mrb[96].mxu1 %vm826_vm2, %v15782_v42  ;;  %v7885_v42 = vsel %vm826_vm2, %v15893_v41, -inf }
0x1831   : > { %12310 = vmatpush3.xpose.msk.msra.mxu1 %vm826_vm2, %v15787_v9  ;;  %v15907_v46 = vpop.f32.mrb[92].mxu0  ;;  %12311 = vmatprep.mubr.msk.f32.mxu1 %vm826_vm2, %v15791_v27 }
0x1832   : > { %12319 = vmatprep.subr.msk.mxu1 %vm826_vm2, %v15799_v23  ;;  %v15913_v29 = vpop.f32.mrb[93].mxu0  ;;  %v7891_v25 = vsel %vm826_vm2, %v15907_v46, -inf }
0x1833   : > { %7892 = vmax.xlane.f32.xlu1 %v7891_v25 }
0x1834   : > { %7886 = vmax.xlane.f32.xlu0 %v7885_v42  ;;  %12312 = vmatmul.mubr.msk.f32.vlgmr.msra.gmra.mrb[98].mxu1 %vm826_vm2, %v15793_v4  ;;  %v7882_v4 = vsel %vm826_vm2, %v15899_v54, -inf }
0x1835   : > { %12320 = vmatpush3.xpose.msk.msra.mxu1 %vm826_vm2, %v15799_v23  ;;  %v15923_v9 = vpop.f32.mrb[94].mxu0  ;;  %12321 = vmatprep.mubr.msk.f32.mxu1 %vm826_vm2, %v15801_v3  ;;  %v10147_v23 = vpop.permute.xlu0 %10146 }
0x1836   : > { %12329 = vmatprep.subr.msk.mxu1 %vm826_vm2, %v15805_v16  ;;  %v15929_v27 = vpop.f32.mrb[95].mxu0  ;;  %v7897_v13 = vsel %vm826_vm2, %v15923_v9, -inf }
0x1837   : > { %7898 = vmax.xlane.f32.xlu1 %v7897_v13 }
0x1838   : > { %7883 = vmax.xlane.f32.xlu0 %v7882_v4  ;;  %12322 = vmatmul.mubr.msk.f32.vlgmr.msra.gmra.mrb[100].mxu1 %vm826_vm2, %v15803_v52  ;;  %v7888_v52 = vsel %vm826_vm2, %v15913_v29, -inf }
0x1839   : > { %12330 = vmatpush3.xpose.msk.msra.mxu1 %vm826_vm2, %v15805_v16  ;;  %v15939_v3 = vpop.f32.mrb[96].mxu0  ;;  %12331 = vmatprep.mubr.msk.f32.mxu1 %vm826_vm2, %v15807_v50  ;;  %v10323_v18 = vpop.permute.xlu0 %10322 }
0x183a   : > { %12339 = vmatprep.subr.msk.mxu1 %vm826_vm2, %v15811_v49  ;;  %v15945_v0 = vpop.f32.mrb[97].mxu0  ;;  %v8321_v2 = vsel %vm826_vm2, %v15939_v3, -inf }
0x183b   : > { %8322 = vmax.xlane.f32.xlu1 %v8321_v2 }
0x183c   : > { %7889 = vmax.xlane.f32.xlu0 %v7888_v52  ;;  %12332 = vmatmul.mubr.msk.f32.vlgmr.msra.gmra.mrb[102].mxu1 %vm826_vm2, %v15809_v57  ;;  %v7894_v57 = vsel %vm826_vm2, %v15929_v27, -inf }
0x183d   : > { %12340 = vmatpush3.xpose.msk.msra.mxu1 %vm826_vm2, %v15811_v49  ;;  %v15955_v16 = vpop.f32.mrb[98].mxu0  ;;  %12341 = vmatprep.mubr.msk.f32.mxu1 %vm826_vm2, %v15813_v28  ;;  %v10319_v37 = vpop.permute.xlu0 %10318 }
0x183e   : > { %12349 = vmatprep.subr.msk.mxu1 %vm826_vm2, %v15823_v62  ;;  %v15961_v50 = vpop.f32.mrb[99].mxu0  ;;  %v8333_v59 = vsel %vm826_vm2, %v15955_v16, -inf }
0x183f   : > { %8334 = vmax.xlane.f32.xlu1 %v8333_v59  ;;  %v8330_v38 = vsel %vm826_vm2, %v15961_v50, -inf }
0x1840   : > { %7895 = vmax.xlane.f32.xlu0 %v7894_v57  ;;  %12342 = vmatmul.mubr.msk.f32.vlgmr.msra.gmra.mrb[104].mxu1 %vm826_vm2, %v15815_v12  ;;  %v8318_v12 = vsel %vm826_vm2, %v15945_v0, -inf }
0x1841   : > { %12350 = vmatpush3.xpose.msk.msra.mxu1 %vm826_vm2, %v15823_v62  ;;  %v15971_v49 = vpop.f32.mrb[100].mxu0  ;;  %12351 = vmatprep.mubr.msk.f32.mxu1 %vm826_vm2, %v15837_v11  ;;  %v10321_v24 = vpop.permute.xlu0 %10320 }
0x1842   : > { %12359 = vmatprep.subr.msk.mxu1 %vm826_vm2, %v15889_v58  ;;  %v15977_v28 = vpop.f32.mrb[101].mxu0  ;;  %v8757_v15 = vsel %vm826_vm2, %v15971_v49, -inf }
0x1843   : > { %8758 = vmax.xlane.f32.xlu1 %v8757_v15  ;;  %v8754_v43 = vsel %vm826_vm2, %v15977_v28, -inf }
0x1844   : > { %8319 = vmax.xlane.f32.xlu0 %v8318_v12  ;;  %12352 = vmatmul.mubr.msk.f32.vlgmr.msra.gmra.mrb[106].mxu1 %vm826_vm2, %v15867_v31 }
0x1845   : > { %12360 = vmatpush3.xpose.msk.msra.mxu1 %vm826_vm2, %v15889_v58  ;;  %v15987_v7 = vpop.f32.mrb[102].mxu0  ;;  %12361 = vmatprep.mubr.msk.f32.mxu1 %vm826_vm2, %v10145_v56 }
0x1846   : > { %12369 = vmatprep.subr.msk.mxu1 %vm826_vm2, %v10323_v18  ;;  %v15991_v8 = vpop.f32.mrb[103].mxu0  ;;  %v8769_v60 = vsel %vm826_vm2, %v15987_v7, -inf }
0x1847   : > { %8770 = vmax.xlane.f32.xlu1 %v8769_v60  ;;  %v8766_v33 = vsel %vm826_vm2, %v15991_v8, -inf }
0x1848   : > { %8331 = vmax.xlane.f32.xlu0 %v8330_v38  ;;  %12362 = vmatmul.mubr.msk.f32.vlgmr.msra.gmra.mrb[108].mxu1 %vm826_vm2, %v10147_v23 }
0x1849   : > { %12370 = vmatpush3.xpose.msk.msra.mxu1 %vm826_vm2, %v10323_v18  ;;  %v15999_v21 = vpop.f32.mrb[104].mxu0  ;;  %12371 = vmatprep.mubr.msk.f32.mxu1 %vm826_vm2, %v10319_v37 }
0x184a   : > { %v16002_v62 = vpop.f32.mrb[105].mxu0  ;;  %v9193_v51 = vsel %vm826_vm2, %v15999_v21, -inf }
0x184b   : > { %9194 = vmax.xlane.f32.xlu1 %v9193_v51  ;;  %v9190_v19 = vsel %vm826_vm2, %v16002_v62, -inf }
0x184c   : > { %8755 = vmax.xlane.f32.xlu0 %v8754_v43  ;;  %12372 = vmatmul.mubr.msk.f32.vlgmr.msra.gmra.mrb[110].mxu1 %vm826_vm2, %v10321_v24 }
0x184d   : > { %v16009_v11 = vpop.f32.mrb[106].mxu0 }
0x184e   : > { %v16011_v47 = vpop.f32.mrb[107].mxu0  ;;  %v9205_v17 = vsel %vm826_vm2, %v16009_v11, -inf }
0x184f   : > { %9206 = vmax.xlane.f32.xlu1 %v9205_v17  ;;  %v9202_v36 = vsel %vm826_vm2, %v16011_v47, -inf }
0x1850   : > { %8767 = vmax.xlane.f32.xlu0 %v8766_v33 }
0x1851   : > { %v16017_v40 = vpop.f32.mrb[108].mxu0 }
0x1852   : > { %v16019_v44 = vpop.f32.mrb[109].mxu0  ;;  %v9629_v20 = vsel %vm826_vm2, %v16017_v40, -inf }
0x1853   : > { %9630 = vmax.xlane.f32.xlu1 %v9629_v20  ;;  %v9626_v53 = vsel %vm826_vm2, %v16019_v44, -inf }
0x1854   : > { %9191 = vmax.xlane.f32.xlu0 %v9190_v19 }
0x1855   : > { %v16025_v14 = vpop.f32.mrb[110].mxu0 }
0x1856   : > { %v16027_v31 = vpop.f32.mrb[111].mxu0  ;;  %v9641_v55 = vsel %vm826_vm2, %v16025_v14, -inf }
0x1857   : > { %9642 = vmax.xlane.f32.xlu1 %v9641_v55  ;;  %v9638_v13 = vsel %vm826_vm2, %v16027_v31, -inf }
0x1858   : > { %9203 = vmax.xlane.f32.xlu0 %v9202_v36 }
0x1859   : > { %v16033_v32 = vpop.f32.mrb[112].mxu0 }
0x185a   : > { %v16035_v22 = vpop.f32.mrb[113].mxu0  ;;  %v10065_v58 = vsel %vm826_vm2, %v16033_v32, -inf }
0x185b   : > { %10066 = vmax.xlane.f32.xlu1 %v10065_v58  ;;  %v10062_v52 = vsel %vm826_vm2, %v16035_v22, -inf }
0x185c   : > { %9627 = vmax.xlane.f32.xlu0 %v9626_v53 }
0x185d   : > { %v16041_v25 = vpop.f32.mrb[114].mxu0 }
0x185e   : > { %v16043_v56 = vpop.f32.mrb[115].mxu0  ;;  %v10077_v42 = vsel %vm826_vm2, %v16041_v25, -inf }
0x185f   : > { %10078 = vmax.xlane.f32.xlu1 %v10077_v42  ;;  %v10074_v15 = vsel %vm826_vm2, %v16043_v56, -inf }
0x1860   : > { %9639 = vmax.xlane.f32.xlu0 %v9638_v13 }
0x1861   : > { %v16049_v4 = vpop.f32.mrb[116].mxu0 }
0x1862   : > { %v16051_v23 = vpop.f32.mrb[117].mxu0  ;;  %v10501_v12 = vsel %vm826_vm2, %v16049_v4, -inf }
0x1863   : > { %v10498_v2 = vsel %vm826_vm2, %v16051_v23, -inf }
0x1864   : > { %10499 = vmax.xlane.f32.xlu1 %v10498_v2  ;;  %10063 = vmax.xlane.f32.xlu0 %v10062_v52 }
0x1865   : > { %v16057_v59 = vpop.f32.mrb[118].mxu0 }
0x1866   : > { %v16059_v18 = vpop.f32.mrb[119].mxu0  ;;  %v10513_v37 = vsel %vm826_vm2, %v16057_v59, -inf }
0x1867   : > { %v10510_v57 = vsel %vm826_vm2, %v16059_v18, -inf }
0x1868   : > { %10511 = vmax.xlane.f32.xlu1 %v10510_v57  ;;  %10075 = vmax.xlane.f32.xlu0 %v10074_v15 }
0x186c   : > { %10502 = vmax.xlane.f32.xlu0 %v10501_v12 }
0x1870   : > { %10514 = vmax.xlane.f32.xlu0 %v10513_v37 }
0x18a8   : > { %v7445_v60 = vpop.xlane.xlu1 %7444 }
0x18a9   : > { %v7465_v38 = vsub.f32 %v15817_v45, %v7445_v60  ;;  %v7442_v51 = vpop.xlane.xlu0 %7441 }
0x18aa   : > { %v7464_v24 = vsub.f32 %v15819_v61, %v7442_v51 }
0x18ab   : > { %v7474_v43 = vmul.f32 1.442695, %v7465_v38 }
0x18ac   : > { %v7472_v17 = vmul.f32 1.442695, %v7464_v24 }
0x18ad   : > { %13233 = vpow2.f32 %v7474_v43  ;;  %v7451_v33 = vpop.xlane.xlu0 %7450 }
0x18ae   : > { %13235 = vpow2.f32 %v7472_v17  ;;  %v7467_v20 = vsub.f32 %v15827_v63, %v7451_v33 }
0x18b0   : > { %v7478_v19 = vmul.f32 1.442695, %v7467_v20  ;;  %v7457_v55 = vpop.xlane.xlu1 %7456 }
0x18b1   : > { %v7469_v36 = vsub.f32 %v15841_v6, %v7457_v55  ;;  %v7448_v58 = vpop.xlane.xlu0 %7447 }
0x18b2   : > { %13237 = vpow2.f32 %v7478_v19  ;;  %v7466_v53 = vsub.f32 %v15831_v30, %v7448_v58  ;;  %v11619_v42 = vpop.f32.mrb[80].mxu1 }
0x18b3   : > { %v7482_v45 = vmul.f32 1.442695, %v7469_v36  ;;  %v11620_v13 = vpop.f32.mrb[81].mxu1 }
0x18b4   : > { %v7476_v2 = vmul.f32 1.442695, %v7466_v53  ;;  %v16074_v61 = vadd.f32 %v11620_v13, %v11619_v42  ;;  %v7463_v52 = vpop.xlane.xlu1 %7462 }
0x18b5   : > { %13239 = vpow2.f32 %v7482_v45  ;;  %v7471_v57 = vsub.f32 %v15857_v10, %v7463_v52  ;;  %v7454_v15 = vpop.xlane.xlu0 %7453 }
0x18b6   : > { %13241 = vpow2.f32 %v7476_v2  ;;  %v7468_v63 = vsub.f32 %v15847_v1, %v7454_v15  ;;  %v11622_v12 = vpop.f32.mrb[82].mxu1 }
0x18b7   : > { %v16078_v6 = vpop.eup %13233  ;;  %v7486_v37 = vmul.f32 1.442695, %v7471_v57  ;;  %v11623_v60 = vpop.f32.mrb[83].mxu1 }
0x18b8   : > { %17386 = vst [vmem:[#allocation23_spill] sm:$0xff] %v16078_v6  ;;  %v16080_v30 = vpop.eup %13235  ;;  %v7480_v38 = vmul.f32 1.442695, %v7468_v63  ;;  %v16082_v51 = vadd.f32 %v11623_v60, %v11622_v12  ;;  %v7881_v24 = vpop.xlane.xlu1 %7880  ;;  %v7491_v43 = vsel %vm826_vm2, %v16078_v6, 0.0 }
0x18b9   : > { %17387 = vst [vmem:[#allocation43_spill] sm:$0xff] %v16080_v30  ;;  %13243 = vpow2.f32 %v7486_v37  ;;  %v7901_v10 = vsub.f32 %v15875_v5, %v7881_v24  ;;  %7492 = vadd.xlane.f32.xlu1 %v7491_v43  ;;  %v7460_v17 = vpop.xlane.xlu0 %7459  ;;  %v7488_v1 = vsel %vm826_vm2, %v16080_v30, 0.0 }
0x18ba   : > { %13245 = vpow2.f32 %v7480_v38  ;;  %v7470_v33 = vsub.f32 %v15863_v35, %v7460_v17  ;;  %7489 = vadd.xlane.f32.xlu0 %v7488_v1 }
0x18bb   : > { %v7910_v20 = vmul.f32 1.442695, %v7901_v10 }
0x18bc   : > { %v16090_v19 = vpop.eup %13237  ;;  %v7484_v55 = vmul.f32 1.442695, %v7470_v33 }
0x18bd   : > { %13247 = vpow2.f32 %v7910_v20  ;;  %v7878_v36 = vpop.xlane.xlu0 %7877  ;;  %v7497_v58 = vsel %vm826_vm2, %v16090_v19, 0.0 }
0x18be   : > { %13249 = vpow2.f32 %v7484_v55  ;;  %v7900_v5 = vsub.f32 %v15881_v34, %v7878_v36  ;;  %7498 = vadd.xlane.f32.xlu1 %v7497_v58 }
0x18bf   : > { %v16095_v53 = vpop.eup %13239 }
0x18c0   : > { %17388 = vst [vmem:[#allocation44_spill] sm:$0xff] %v16095_v53  ;;  %v16097_v42 = vpop.eup %13241  ;;  %v7908_v45 = vmul.f32 1.442695, %v7900_v5  ;;  %v7893_v35 = vpop.xlane.xlu1 %7892  ;;  %v7503_v13 = vsel %vm826_vm2, %v16095_v53, 0.0 }
0x18c1   : > { %v7905_v2 = vsub.f32 %v15907_v46, %v7893_v35  ;;  %v7887_v52 = vpop.xlane.xlu0 %7886  ;;  %v7494_v57 = vsel %vm826_vm2, %v16097_v42, 0.0 }
0x18c2   : > { %13251 = vpow2.f32 %v7908_v45  ;;  %v7903_v15 = vsub.f32 %v15893_v41, %v7887_v52  ;;  %7504 = vadd.xlane.f32.xlu1 %v7503_v13  ;;  %7495 = vadd.xlane.f32.xlu0 %v7494_v57 }
0x18c3   : > { %v16105_v34 = vpop.eup %13243  ;;  %v7918_v12 = vmul.f32 1.442695, %v7905_v2 }
0x18c4   : > { %v16107_v63 = vpop.eup %13245  ;;  %v7914_v37 = vmul.f32 1.442695, %v7903_v15  ;;  %v7899_v60 = vpop.xlane.xlu1 %7898  ;;  %v7509_v38 = vsel %vm826_vm2, %v16105_v34, 0.0 }
0x18c5   : > { %17389 = vst [vmem:[#allocation45_spill] sm:$0xff] %v16107_v63  ;;  %v7907_v46 = vsub.f32 %v15923_v9, %v7899_v60  ;;  %v7884_v24 = vpop.xlane.xlu0 %7883  ;;  %v7500_v43 = vsel %vm826_vm2, %v16107_v63, 0.0 }
0x18c6   : > { %13253 = vpow2.f32 %v7914_v37  ;;  %v7902_v41 = vsub.f32 %v15899_v54, %v7884_v24  ;;  %7510 = vadd.xlane.f32.xlu1 %v7509_v38  ;;  %7501 = vadd.xlane.f32.xlu0 %v7500_v43 }
0x18c7   : > { %v16115_v10 = vpop.eup %13247  ;;  %13255 = vpow2.f32 %v7918_v12  ;;  %v7922_v1 = vmul.f32 1.442695, %v7907_v46 }
0x18c8   : > { %v16117_v17 = vpop.eup %13249  ;;  %v7912_v33 = vmul.f32 1.442695, %v7902_v41  ;;  %v8323_v20 = vpop.xlane.xlu1 %8322  ;;  %v7927_v9 = vsel %vm826_vm2, %v16115_v10, 0.0 }
0x18c9   : > { %v8339_v55 = vsub.f32 %v15939_v3, %v8323_v20  ;;  %v7890_v36 = vpop.xlane.xlu0 %7889  ;;  %v7506_v58 = vsel %vm826_vm2, %v16117_v17, 0.0 }
0x18ca   : > { %13257 = vpow2.f32 %v7912_v33  ;;  %v7904_v54 = vsub.f32 %v15913_v29, %v7890_v36  ;;  %7928 = vadd.xlane.f32.xlu1 %v7927_v9  ;;  %7507 = vadd.xlane.f32.xlu0 %v7506_v58 }
0x18cb   : > { %13259 = vpow2.f32 %v7922_v1  ;;  %v8350_v45 = vmul.f32 1.442695, %v8339_v55 }
0x18cc   : > { %v16125_v5 = vpop.eup %13251  ;;  %v7916_v35 = vmul.f32 1.442695, %v7904_v54  ;;  %v8335_v13 = vpop.xlane.xlu1 %8334 }
0x18cd   : > { %v8343_v2 = vsub.f32 %v15955_v16, %v8335_v13  ;;  %v7896_v52 = vpop.xlane.xlu0 %7895  ;;  %v7924_v3 = vsel %vm826_vm2, %v16125_v5, 0.0 }
0x18ce   : > { %13261 = vpow2.f32 %v7916_v35  ;;  %v7906_v57 = vsub.f32 %v15929_v27, %v7896_v52  ;;  %7925 = vadd.xlane.f32.xlu0 %v7924_v3 }
0x18cf   : > { %13263 = vpow2.f32 %v8350_v45  ;;  %v8358_v29 = vmul.f32 1.442695, %v8343_v2 }
0x18d0   : > { %v16131_v15 = vpop.eup %13253  ;;  %v7920_v12 = vmul.f32 1.442695, %v7906_v57  ;;  %v8759_v37 = vpop.xlane.xlu1 %8758 }
0x18d1   : > { %v8775_v60 = vsub.f32 %v15971_v49, %v8759_v37  ;;  %v8320_v38 = vpop.xlane.xlu0 %8319  ;;  %v7933_v16 = vsel %vm826_vm2, %v16131_v15, 0.0  ;;  %v16136_v46 = vpop.eup %13255 }
0x18d2   : > { %13265 = vpow2.f32 %v7920_v12  ;;  %v8338_v24 = vsub.f32 %v15945_v0, %v8320_v38  ;;  %7934 = vadd.xlane.f32.xlu1 %v7933_v16  ;;  %v7939_v49 = vsel %vm826_vm2, %v16136_v46, 0.0 }
0x18d3   : > { %13267 = vpow2.f32 %v8358_v29  ;;  %v8786_v43 = vmul.f32 1.442695, %v8775_v60 }
0x18d4   : > { %v16139_v27 = vpop.eup %13257  ;;  %v8348_v41 = vmul.f32 1.442695, %v8338_v24  ;;  %v8771_v1 = vpop.xlane.xlu1 %8770 }
0x18d5   : > { %v8779_v33 = vsub.f32 %v15987_v7, %v8771_v1  ;;  %v8332_v20 = vpop.xlane.xlu0 %8331  ;;  %v7930_v9 = vsel %vm826_vm2, %v16139_v27, 0.0  ;;  %v16146_v55 = vpop.eup %13259 }
0x18d6   : > { %13269 = vpow2.f32 %v8348_v41  ;;  %v8342_v0 = vsub.f32 %v15961_v50, %v8332_v20  ;;  %7940 = vadd.xlane.f32.xlu1 %v7939_v49  ;;  %7931 = vadd.xlane.f32.xlu0 %v7930_v9  ;;  %v7945_v13 = vsel %vm826_vm2, %v16146_v55, 0.0 }
0x18d7   : > { %13271 = vpow2.f32 %v8786_v43  ;;  %v8794_v58 = vmul.f32 1.442695, %v8779_v33 }
0x18d8   : > { %v16149_v36 = vpop.eup %13261  ;;  %v8356_v54 = vmul.f32 1.442695, %v8342_v0  ;;  %v9195_v7 = vpop.xlane.xlu1 %9194 }
0x18d9   : > { %v9211_v45 = vsub.f32 %v15999_v21, %v9195_v7  ;;  %v8756_v35 = vpop.xlane.xlu0 %8755  ;;  %v7936_v2 = vsel %vm826_vm2, %v16149_v36, 0.0  ;;  %v16156_v52 = vpop.eup %13263 }
0x18da   : > { %13273 = vpow2.f32 %v8356_v54  ;;  %v8774_v50 = vsub.f32 %v15977_v28, %v8756_v35  ;;  %7946 = vadd.xlane.f32.xlu1 %v7945_v13  ;;  %7937 = vadd.xlane.f32.xlu0 %v7936_v2  ;;  %v8369_v60 = vsel %vm826_vm2, %v16156_v52, 0.0 }
0x18db   : > { %13275 = vpow2.f32 %v8794_v58  ;;  %v9222_v57 = vmul.f32 1.442695, %v9211_v45 }
0x18dc   : > { %v16159_v3 = vpop.eup %13265  ;;  %v8784_v29 = vmul.f32 1.442695, %v8774_v50  ;;  %v9207_v21 = vpop.xlane.xlu1 %9206 }
0x18dd   : > { %v9215_v12 = vsub.f32 %v16009_v11, %v9207_v21  ;;  %v8768_v37 = vpop.xlane.xlu0 %8767  ;;  %v7942_v38 = vsel %vm826_vm2, %v16159_v3, 0.0  ;;  %v16166_v16 = vpop.eup %13267 }
0x18de   : > { %13277 = vpow2.f32 %v8784_v29  ;;  %v8778_v28 = vsub.f32 %v15991_v8, %v8768_v37  ;;  %8370 = vadd.xlane.f32.xlu1 %v8369_v60  ;;  %7943 = vadd.xlane.f32.xlu0 %v7942_v38  ;;  %v8381_v33 = vsel %vm826_vm2, %v16166_v16, 0.0 }
0x18df   : > { %13279 = vpow2.f32 %v9222_v57  ;;  %v9230_v43 = vmul.f32 1.442695, %v9215_v12  ;;  %v16194_v57 = vld [vmem:[%s17137_s9] sm:$0x3f] }
0x18e0   : > { %v16169_v24 = vpop.eup %13269  ;;  %v8792_v41 = vmul.f32 1.442695, %v8778_v28  ;;  %v9631_v11 = vpop.xlane.xlu1 %9630  ;;  %17390 = vst [vmem:[#allocation46_spill] sm:$0xff] %v16194_v57  ;;  %v16198_v29 = vrot.slane %v16194_v57, %v17378_v39 }
0x18e1   : > { %v9192_v1 = vpop.xlane.xlu0 %9191  ;;  %v8366_v20 = vsel %vm826_vm2, %v16169_v24, 0.0  ;;  %v16175_v49 = vpop.eup %13271  ;;  %v9647_v9 = vsub.f32 %v16017_v40, %v9631_v11 }
0x18e2   : > { %13281 = vpow2.f32 %v8792_v41  ;;  %v9210_v8 = vsub.f32 %v16002_v62, %v9192_v1  ;;  %8382 = vadd.xlane.f32.xlu1 %v8381_v33  ;;  %8367 = vadd.xlane.f32.xlu0 %v8366_v20  ;;  %v8805_v45 = vsel %vm826_vm2, %v16175_v49, 0.0  ;;  %v7006_v39 = vadd.f32 %v16074_v61, %v16198_v29 }
0x18e3   : > { %13283 = vpow2.f32 %v9230_v43  ;;  %v9658_v40 = vmul.f32 1.442695, %v9647_v9  ;;  %v7011_v1 = vadd.f32 %v16082_v51, %v16198_v29 }
0x18e4   : > { %v16179_v0 = vpop.eup %13273  ;;  %v9220_v58 = vmul.f32 1.442695, %v9210_v8  ;;  %v9643_v54 = vpop.xlane.xlu1 %9642 }
0x18e5   : > { %v9204_v7 = vpop.xlane.xlu0 %9203  ;;  %v8378_v35 = vsel %vm826_vm2, %v16179_v0, 0.0  ;;  %v16185_v13 = vpop.eup %13275  ;;  %v9651_v2 = vsub.f32 %v16025_v14, %v9643_v54 }
0x18e6   : > { %13285 = vpow2.f32 %v9220_v58  ;;  %v9214_v62 = vsub.f32 %v16011_v47, %v9204_v7  ;;  %8806 = vadd.xlane.f32.xlu1 %v8805_v45  ;;  %8379 = vadd.xlane.f32.xlu0 %v8378_v35  ;;  %v8817_v47 = vsel %vm826_vm2, %v16185_v13, 0.0  ;;  %v17391_v45 = vld [vmem:[#allocation41_spill] sm:$0xff] }
0x18e7   : > { %13287 = vpow2.f32 %v9658_v40  ;;  %v9666_v38 = vmul.f32 1.442695, %v9651_v2  ;;  %v16223_v35 = vadd.f32 %v7006_v39, %v17391_v45 }
0x18e8   : > { %v16189_v50 = vpop.eup %13277  ;;  %v9228_v21 = vmul.f32 1.442695, %v9214_v62  ;;  %v10067_v33 = vpop.xlane.xlu1 %10066 }
0x18e9   : > { %v9628_v12 = vpop.xlane.xlu0 %9627  ;;  %v8802_v37 = vsel %vm826_vm2, %v16189_v50, 0.0  ;;  %v16204_v14 = vpop.eup %13279  ;;  %v10083_v7 = vsub.f32 %v16033_v32, %v10067_v33 }
0x18ea   : > { %v9646_v60 = vsub.f32 %v16019_v44, %v9628_v12  ;;  %8818 = vadd.xlane.f32.xlu1 %v8817_v47  ;;  %8803 = vadd.xlane.f32.xlu0 %v8802_v37  ;;  %13289 = vpow2.f32 %v9228_v21  ;;  %v9241_v44 = vsel %vm826_vm2, %v16204_v14, 0.0  ;;  %v17392_v12 = vld [vmem:[#allocation42_spill] sm:$0xff] }
0x18eb   : > { %v11625_v28 = vpop.f32.mrb[84].mxu1  ;;  %13291 = vpow2.f32 %v9666_v38  ;;  %v16232_v47 = vadd.f32 %v7011_v1, %v17392_v12  ;;  %v10094_v37 = vmul.f32 1.442695, %v10083_v7 }
0x18ec   : > { %v16207_v43 = vpop.eup %13281  ;;  %v9656_v41 = vmul.f32 1.442695, %v9646_v60  ;;  %v11626_v11 = vpop.f32.mrb[85].mxu1 }
0x18ed   : > { %v11627_v20 = vadd.f32 %v11626_v11, %v11625_v28  ;;  %v9640_v8 = vpop.xlane.xlu0 %9639  ;;  %v8814_v9 = vsel %vm826_vm2, %v16207_v43, 0.0  ;;  %v16217_v58 = vpop.eup %13283  ;;  %v7031_v39 = vsel %vm563_vm0, %v16232_v47, 0.0 }
0x18ee   : > { %9242 = vadd.xlane.f32.xlu1 %v9241_v44  ;;  %8815 = vadd.xlane.f32.xlu0 %v8814_v9  ;;  %13293 = vpow2.f32 %v9656_v41  ;;  %v9253_v2 = vsel %vm826_vm2, %v16217_v58, 0.0  ;;  %v10079_v60 = vpop.xlane.xlu1 %10078  ;;  %v7028_v41 = vsel %vm563_vm0, %v16223_v35, 0.0  ;;  %v9650_v9 = vsub.f32 %v16027_v31, %v9640_v8 }
0x18ef   : > { %v11628_v61 = vpop.f32.mrb[86].mxu1  ;;  %v10087_v1 = vsub.f32 %v16041_v25, %v10079_v60  ;;  %13295 = vpow2.f32 %v10094_v37 }
0x18f0   : > { %v16219_v54 = vpop.eup %13285  ;;  %v11629_v51 = vpop.f32.mrb[87].mxu1  ;;  %v9664_v31 = vmul.f32 1.442695, %v9650_v9 }
0x18f1   : > { %v16225_v62 = vadd.f32 %v11629_v51, %v11628_v61  ;;  %v10064_v40 = vpop.xlane.xlu0 %10063  ;;  %v9238_v21 = vsel %vm826_vm2, %v16219_v54, 0.0  ;;  %v16238_v28 = vpop.eup %13287  ;;  %v7016_v51 = vadd.f32 %v11627_v20, %v16198_v29 }
0x18f2   : > { %9254 = vadd.xlane.f32.xlu1 %v9253_v2  ;;  %9239 = vadd.xlane.f32.xlu0 %v9238_v21  ;;  %v9677_v45 = vsel %vm826_vm2, %v16238_v28, 0.0  ;;  %v10102_v21 = vmul.f32 1.442695, %v10087_v1 }
0x18f3   : > { %v16234_v32 = vpop.f32.mrb[88].mxu1 }
0x18f4   : > { %v16236_v38 = vpop.f32.mrb[89].mxu1  ;;  %v16244_v11 = vpop.eup %13289  ;;  %13297 = vpow2.f32 %v10102_v21 }
0x18f5   : > { %v16247_v33 = vpop.xlane.xlu0 %10075  ;;  %v16254_v7 = vpop.eup %13291  ;;  %v9250_v2 = vsel %vm826_vm2, %v16244_v11, 0.0  ;;  %13299 = vpow2.f32 %v9664_v31 }
0x18f6   : > { %7032 = vadd.xlane.f32.xlu1 %v7031_v39  ;;  %7029 = vadd.xlane.f32.xlu0 %v7028_v41  ;;  %v9689_v20 = vsel %vm826_vm2, %v16254_v7, 0.0  ;;  %v16272_v39 = vadd.f32 %v7016_v51, %v15621_v26  ;;  %v10082_v51 = vsub.f32 %v16035_v22, %v10064_v40  ;;  %v7021_v40 = vadd.f32 %v16225_v62, %v16198_v29 }
0x18f7   : > { %v16249_v44 = vpop.f32.mrb[90].mxu1 }
0x18f8   : > { %17393 = vst [vmem:[#allocation33_spill] sm:$0xff] %v16249_v44  ;;  %v16252_v61 = vpop.f32.mrb[91].mxu1  ;;  %v16261_v25 = vpop.eup %13293  ;;  %v16320_v63 = vadd.f32 %v7021_v40, %v15628_v48 }
0x18f9   : > { %17394 = vst [vmem:[#allocation34_spill] sm:$0xff] %v16252_v61  ;;  %v10503_v37 = vpop.xlane.xlu0 %10502  ;;  %v9674_v60 = vsel %vm826_vm2, %v16261_v25, 0.0  ;;  %v16283_v53 = vpop.eup %13295 }
0x18fa   : > { %9678 = vadd.xlane.f32.xlu1 %v9677_v45  ;;  %9251 = vadd.xlane.f32.xlu0 %v9250_v2  ;;  %v10519_v1 = vsub.f32 %v16049_v4, %v10503_v37  ;;  %v8327_v45 = vsel %vm826_vm2, %v16249_v44, -inf  ;;  %v7034_v2 = vsel %vm563_vm0, %v16272_v39, 0.0  ;;  %v10113_v37 = vsel %vm826_vm2, %v16283_v53, 0.0 }
0x18fb   : > { %v16263_v12 = vpop.f32.mrb[92].mxu1 }
0x18fc   : > { %17395 = vst [vmem:[#allocation47_spill] sm:$0xff] %v16263_v12  ;;  %v16265_v8 = vpop.f32.mrb[93].mxu1  ;;  %v10530_v21 = vmul.f32 1.442695, %v10519_v1  ;;  %v8751_v1 = vsel %vm826_vm2, %v16263_v12, -inf }
0x18fd   : > { %17396 = vst [vmem:[#allocation35_spill] sm:$0xff] %v16265_v8  ;;  %v10515_v4 = vpop.xlane.xlu0 %10514 }
0x18fe   : > { %9690 = vadd.xlane.f32.xlu1 %v9689_v20  ;;  %9675 = vadd.xlane.f32.xlu0 %v9674_v60  ;;  %v8315_v20 = vsel %vm826_vm2, %v16234_v32, -inf  ;;  %13301 = vpow2.f32 %v10530_v21  ;;  %v16299_v22 = vpop.eup %13297 }
0x18ff   : > { %v16274_v41 = vpop.f32.mrb[94].mxu1  ;;  %17402 = vst [vmem:[#allocation49_spill] sm:$0xff] %v16299_v22  ;;  %v10125_v29 = vsel %vm826_vm2, %v16299_v22, 0.0 }
0x1900   : > { %17397 = vst [vmem:[#allocation36_spill] sm:$0xff] %v16274_v41  ;;  %v16277_v9 = vpop.f32.mrb[95].mxu1 }
0x1901   : > { %17398 = vst [vmem:[#allocation29_spill] sm:$0xff] %v16277_v9 }
0x1902   : > { %8328 = vmax.xlane.f32.xlu1 %v8327_v45  ;;  %7035 = vadd.xlane.f32.xlu0 %v7034_v2  ;;  %v10092_v45 = vmul.f32 1.442695, %v10082_v51  ;;  %v10523_v2 = vsub.f32 %v16057_v59, %v10515_v4  ;;  %v10086_v59 = vsub.f32 %v16043_v56, %v16247_v33  ;;  %v10500_v56 = vpop.xlane.xlu1 %10499  ;;  %v8763_v33 = vsel %vm826_vm2, %v16274_v41, -inf }
0x1903   : > { %v16285_v26 = vpop.f32.mrb[96].mxu1  ;;  %v10518_v40 = vsub.f32 %v16051_v23, %v10500_v56 }
0x1904   : > { %17399 = vst [vmem:[#allocation31_spill] sm:$0xff] %v16285_v26  ;;  %v16288_v31 = vpop.f32.mrb[97].mxu1  ;;  %13303 = vpow2.f32 %v10092_v45  ;;  %v10538_v21 = vmul.f32 1.442695, %v10523_v2  ;;  %v10100_v45 = vmul.f32 1.442695, %v10086_v59 }
0x1905   : > { %17400 = vst [vmem:[#allocation19_spill] sm:$0xff] %v16288_v31  ;;  %v7037_v2 = vsel %vm563_vm0, %v16320_v63, 0.0  ;;  %v9187_v23 = vsel %vm826_vm2, %v16285_v26, -inf  ;;  %v8748_v26 = vsel %vm826_vm2, %v16265_v8, -inf }
0x1906   : > { %10114 = vadd.xlane.f32.xlu1 %v10113_v37  ;;  %8316 = vmax.xlane.f32.xlu0 %v8315_v20  ;;  %v8312_v37 = vsel %vm826_vm2, %v16236_v38, -inf  ;;  %v16307_v20 = vpop.eup %13299  ;;  %13305 = vpow2.f32 %v10538_v21  ;;  %v10512_v41 = vpop.xlane.xlu1 %10511 }
0x1907   : > { %v16294_v60 = vpop.f32.mrb[98].mxu1  ;;  %v9686_v62 = vsel %vm826_vm2, %v16307_v20, 0.0  ;;  %13307 = vpow2.f32 %v10100_v45 }
0x1908   : > { %17401 = vst [vmem:[#allocation48_spill] sm:$0xff] %v16294_v60  ;;  %v16297_v6 = vpop.f32.mrb[99].mxu1  ;;  %v16330_v30 = vpop.eup %13301 }
0x1909   : > { %17404 = vst [vmem:[#allocation28_spill] sm:$0xff] %v16330_v30  ;;  %v10549_v21 = vsel %vm826_vm2, %v16330_v30, 0.0 }
0x190a   : > { %8752 = vmax.xlane.f32.xlu1 %v8751_v1  ;;  %8313 = vmax.xlane.f32.xlu0 %v8312_v37 }
0x190b   : > { %v16309_v51 = vpop.f32.mrb[100].mxu1 }
0x190c   : > { %17403 = vst [vmem:[#allocation24_spill] sm:$0xff] %v16309_v51  ;;  %v16313_v4 = vpop.f32.mrb[101].mxu1 }
0x190e   : > { %10126 = vadd.xlane.f32.xlu1 %v10125_v29  ;;  %9687 = vadd.xlane.f32.xlu0 %v9686_v62  ;;  %v8324_v29 = vsel %vm826_vm2, %v16252_v61, -inf  ;;  %v16341_v62 = vpop.eup %13303 }
0x190f   : > { %v16322_v1 = vpop.f32.mrb[102].mxu1  ;;  %17405 = vst [vmem:[#allocation22_spill] sm:$0xff] %v16341_v62  ;;  %v10110_v45 = vsel %vm826_vm2, %v16341_v62, 0.0 }
0x1910   : > { %v16324_v37 = vpop.f32.mrb[103].mxu1  ;;  %v16351_v56 = vpop.eup %13305 }
0x1911   : > { %17406 = vst [vmem:[#allocation25_spill] sm:$0xff] %v16351_v56  ;;  %v16362_v12 = vpop.eup %13307 }
0x1912   : > { %8764 = vmax.xlane.f32.xlu1 %v8763_v33  ;;  %7038 = vadd.xlane.f32.xlu0 %v7037_v2  ;;  %v10528_v33 = vmul.f32 1.442695, %v10518_v40  ;;  %v10561_v40 = vsel %vm826_vm2, %v16351_v56, 0.0  ;;  %17407 = vst [vmem:[#allocation30_spill] sm:$0xff] %v16362_v12 }
0x1913   : > { %v16332_v48 = vpop.f32.mrb[104].mxu1 }
0x1914   : > { %v16335_v59 = vpop.f32.mrb[105].mxu1  ;;  %13309 = vpow2.f32 %v10528_v33  ;;  %v9623_v33 = vsel %vm826_vm2, %v16309_v51, -inf }
0x1916   : > { %10550 = vadd.xlane.f32.xlu1 %v10549_v21  ;;  %8325 = vmax.xlane.f32.xlu0 %v8324_v29  ;;  %v10522_v21 = vsub.f32 %v16059_v18, %v10512_v41  ;;  %v9199_v18 = vsel %vm826_vm2, %v16294_v60, -inf  ;;  %v10122_v41 = vsel %vm826_vm2, %v16362_v12, 0.0 }
0x1917   : > { %v16343_v22 = vpop.f32.mrb[106].mxu1 }
0x1918   : > { %v16345_v2 = vpop.f32.mrb[107].mxu1 }
0x191a   : > { %9188 = vmax.xlane.f32.xlu1 %v9187_v23  ;;  %10111 = vadd.xlane.f32.xlu0 %v10110_v45  ;;  %v10536_v23 = vmul.f32 1.442695, %v10522_v21  ;;  %v9635_v21 = vsel %vm826_vm2, %v16322_v1, -inf }
0x191b   : > { %v16353_v30 = vpop.f32.mrb[108].mxu1 }
0x191c   : > { %v16356_v29 = vpop.f32.mrb[109].mxu1  ;;  %13311 = vpow2.f32 %v10536_v23  ;;  %v10059_v23 = vsel %vm826_vm2, %v16332_v48, -inf }
0x191e   : > { %10562 = vadd.xlane.f32.xlu1 %v10561_v40  ;;  %8749 = vmax.xlane.f32.xlu0 %v8748_v26  ;;  %v8760_v26 = vsel %vm826_vm2, %v16277_v9, -inf  ;;  %v16376_v40 = vpop.eup %13309 }
0x191f   : > { %v16364_v57 = vpop.f32.mrb[110].mxu1  ;;  %17410 = vst [vmem:[#allocation37_spill] sm:$0xff] %v16376_v40  ;;  %v10546_v56 = vsel %vm826_vm2, %v16376_v40, 0.0 }
0x1920   : > { %17408 = vst [vmem:[#allocation32_spill] sm:$0xff] %v16364_v57  ;;  %v16366_v45 = vpop.f32.mrb[111].mxu1 }
0x1921   : > { %17409 = vst [vmem:[#allocation20_spill] sm:$0xff] %v16366_v45 }
0x1922   : > { %9200 = vmax.xlane.f32.xlu1 %v9199_v18  ;;  %10123 = vadd.xlane.f32.xlu0 %v10122_v41  ;;  %v9184_v18 = vsel %vm826_vm2, %v16288_v31, -inf }
0x1926   : > { %9624 = vmax.xlane.f32.xlu1 %v9623_v33  ;;  %8761 = vmax.xlane.f32.xlu0 %v8760_v26  ;;  %v16386_v41 = vpop.eup %13311  ;;  %v10071_v33 = vsel %vm826_vm2, %v16343_v22, -inf }
0x1927   : > { %17411 = vst [vmem:[#allocation26_spill] sm:$0xff] %v16386_v41  ;;  %v10558_v26 = vsel %vm826_vm2, %v16386_v41, 0.0  ;;  %v10495_v41 = vsel %vm826_vm2, %v16353_v30, -inf }
0x192a   : > { %9636 = vmax.xlane.f32.xlu1 %v9635_v21  ;;  %10547 = vadd.xlane.f32.xlu0 %v10546_v56  ;;  %v10492_v56 = vsel %vm826_vm2, %v16356_v29, -inf  ;;  %v9196_v21 = vsel %vm826_vm2, %v16297_v6, -inf }
0x192e   : > { %10060 = vmax.xlane.f32.xlu1 %v10059_v23  ;;  %9185 = vmax.xlane.f32.xlu0 %v9184_v18  ;;  %v10504_v23 = vsel %vm826_vm2, %v16366_v45, -inf  ;;  %v9620_v18 = vsel %vm826_vm2, %v16313_v4, -inf }
0x1932   : > { %10072 = vmax.xlane.f32.xlu1 %v10071_v33  ;;  %10559 = vadd.xlane.f32.xlu0 %v10558_v26  ;;  %v9632_v33 = vsel %vm826_vm2, %v16324_v37, -inf  ;;  %v10056_v26 = vsel %vm826_vm2, %v16335_v59, -inf }
0x1936   : > { %10493 = vmax.xlane.f32.xlu1 %v10492_v56  ;;  %9197 = vmax.xlane.f32.xlu0 %v9196_v21  ;;  %v10068_v56 = vsel %vm826_vm2, %v16345_v2, -inf }
0x193a   : > { %10505 = vmax.xlane.f32.xlu1 %v10504_v23  ;;  %9621 = vmax.xlane.f32.xlu0 %v9620_v18 }
0x193e   : > { %9633 = vmax.xlane.f32.xlu0 %v9632_v33  ;;  %v10507_v33 = vsel %vm826_vm2, %v16364_v57, -inf }
0x1942   : > { %10057 = vmax.xlane.f32.xlu0 %v10056_v26 }
0x1946   : > { %v16406_v21 = vpop.xlane.xlu1 %7492  ;;  %10069 = vmax.xlane.f32.xlu0 %v10068_v56 }
0x1947   : > { %17412 = vst [vmem:[#allocation38_spill] sm:$0xff] %v16406_v21  ;;  %v16410_v23 = vpop.xlane.xlu0 %7489 }
0x1948   : > { %17413 = vst [vmem:[#allocation27_spill] sm:$0xff] %v16410_v23 }
0x194a   : > { %10496 = vmax.xlane.f32.xlu0 %v10495_v41 }
0x194b   : > { %v16412_v18 = vpop.xlane.xlu1 %7498 }
0x194e   : > { %10508 = vmax.xlane.f32.xlu0 %v10507_v33 }
0x194f   : > { %v16416_v40 = vpop.xlane.xlu1 %7504  ;;  %v16418_v26 = vpop.xlane.xlu0 %7495 }
0x1950   : > { %17414 = vst [vmem:[#allocation39_spill] sm:$0xff] %v16416_v40 }
0x1953   : > { %v16420_v12 = vpop.xlane.xlu1 %7510  ;;  %v16422_v21 = vpop.xlane.xlu0 %7501 }
0x1954   : > { %17415 = vst [vmem:[#allocation40_spill] sm:$0xff] %v16422_v21 }
0x1957   : > { %v7929_v56 = vpop.xlane.xlu1 %7928  ;;  %v16424_v60 = vpop.xlane.xlu0 %7507 }
0x1958   : > { %13313 = vrcp.f32 %v7929_v56 }
0x195b   : > { %v7926_v41 = vpop.xlane.xlu0 %7925 }
0x195c   : > { %13315 = vrcp.f32 %v7926_v41 }
0x195f   : > { %v7935_v23 = vpop.xlane.xlu1 %7934 }
0x1960   : > { %13317 = vrcp.f32 %v7935_v23 }
0x1962   : > { %v13314_v31 = vpop.eup %13313 }
0x1963   : > { %v7941_v9 = vpop.xlane.xlu1 %7940  ;;  %v7932_v44 = vpop.xlane.xlu0 %7931  ;;  %v7957_v33 = vmul.f32 %v13314_v31, %v16115_v10 }
0x1964   : > { %13319 = vrcp.f32 %v7932_v44 }
0x1965   : > { %10590 = vrot.lane.b32.xlu1 %v7957_v33, %s17369_s21  ;;  %13321 = vrcp.f32 %v7941_v9 }
0x1966   : > { %v13316_v40 = vpop.eup %13315 }
0x1967   : > { %v7947_v8 = vpop.xlane.xlu1 %7946  ;;  %v7938_v21 = vpop.xlane.xlu0 %7937  ;;  %v7956_v61 = vmul.f32 %v13316_v40, %v16125_v5 }
0x1968   : > { %13323 = vrcp.f32 %v7938_v21 }
0x1969   : > { %10588 = vrot.lane.b32.xlu0 %v7956_v61, %s17369_s21  ;;  %13325 = vrcp.f32 %v7947_v8 }
0x196a   : > { %v13318_v56 = vpop.eup %13317 }
0x196b   : > { %v8371_v23 = vpop.xlane.xlu1 %8370  ;;  %v7944_v41 = vpop.xlane.xlu0 %7943  ;;  %v7959_v62 = vmul.f32 %v13318_v56, %v16131_v15 }
0x196c   : > { %13327 = vrcp.f32 %v7944_v41 }
0x196d   : > { %10594 = vrot.lane.b32.xlu1 %v7959_v62, %s17369_s21  ;;  %13329 = vrcp.f32 %v8371_v23 }
0x196e   : > { %v13320_v10 = vpop.eup %13319 }
0x196f   : > { %v8383_v44 = vpop.xlane.xlu1 %8382  ;;  %v8368_v9 = vpop.xlane.xlu0 %8367  ;;  %v7958_v31 = vmul.f32 %v13320_v10, %v16139_v27 }
0x1970   : > { %v13322_v33 = vpop.eup %13321  ;;  %13331 = vrcp.f32 %v8368_v9 }
0x1971   : > { %10592 = vrot.lane.b32.xlu1 %v7958_v31, %s17369_s21  ;;  %13333 = vrcp.f32 %v8383_v44  ;;  %v7961_v40 = vmul.f32 %v13322_v33, %v16136_v46 }
0x1972   : > { %v13324_v5 = vpop.eup %13323 }
0x1973   : > { %v8807_v61 = vpop.xlane.xlu1 %8806  ;;  %v8380_v8 = vpop.xlane.xlu0 %8379  ;;  %v7960_v15 = vmul.f32 %v13324_v5, %v16149_v36 }
0x1974   : > { %v13326_v21 = vpop.eup %13325  ;;  %13335 = vrcp.f32 %v8380_v8 }
0x1975   : > { %10598 = vrot.lane.b32.xlu1 %v7961_v40, %s17369_s21  ;;  %10596 = vrot.lane.b32.xlu0 %v7960_v15, %s17369_s21  ;;  %13337 = vrcp.f32 %v8807_v61  ;;  %v7963_v23 = vmul.f32 %v13326_v21, %v16146_v55 }
0x1976   : > { %v13328_v62 = vpop.eup %13327 }
0x1977   : > { %v8819_v27 = vpop.xlane.xlu1 %8818  ;;  %v8804_v56 = vpop.xlane.xlu0 %8803  ;;  %v7962_v41 = vmul.f32 %v13328_v62, %v16159_v3 }
0x1978   : > { %v13330_v10 = vpop.eup %13329  ;;  %13339 = vrcp.f32 %v8804_v56 }
0x1979   : > { %10602 = vrot.lane.b32.xlu1 %v7963_v23, %s17369_s21  ;;  %10600 = vrot.lane.b32.xlu0 %v7962_v41, %s17369_s21  ;;  %13341 = vrcp.f32 %v8819_v27  ;;  %v8395_v9 = vmul.f32 %v13330_v10, %v16156_v52 }
0x197a   : > { %v13332_v46 = vpop.eup %13331 }
0x197b   : > { %v9243_v36 = vpop.xlane.xlu1 %9242  ;;  %v8816_v44 = vpop.xlane.xlu0 %8815  ;;  %v8394_v31 = vmul.f32 %v13332_v46, %v16169_v24 }
0x197c   : > { %v13334_v33 = vpop.eup %13333  ;;  %13343 = vrcp.f32 %v9243_v36 }
0x197d   : > { %10626 = vrot.lane.b32.xlu1 %v8395_v9, %s17328_s16  ;;  %10624 = vrot.lane.b32.xlu0 %v8394_v31, %s17328_s16  ;;  %v8399_v61 = vmul.f32 %v13334_v33, %v16166_v16  ;;  %13345 = vrcp.f32 %v8816_v44 }
0x197e   : > { %v13336_v55 = vpop.eup %13335 }
0x197f   : > { %v9255_v3 = vpop.xlane.xlu1 %9254  ;;  %v9240_v5 = vpop.xlane.xlu0 %9239  ;;  %v8398_v8 = vmul.f32 %v13336_v55, %v16179_v0 }
0x1980   : > { %v13338_v40 = vpop.eup %13337  ;;  %13347 = vrcp.f32 %v9240_v5 }
0x1981   : > { %10634 = vrot.lane.b32.xlu1 %v8399_v61, %s17328_s16  ;;  %10632 = vrot.lane.b32.xlu0 %v8398_v8, %s17328_s16  ;;  %v8831_v21 = vmul.f32 %v13338_v40, %v16175_v49  ;;  %13349 = vrcp.f32 %v9255_v3 }
0x1982   : > { %v13340_v52 = vpop.eup %13339 }
0x1983   : > { %v7033_v24 = vpop.xlane.xlu1 %7032  ;;  %v7030_v15 = vpop.xlane.xlu0 %7029  ;;  %v8830_v62 = vmul.f32 %v13340_v52, %v16189_v50 }
0x1984   : > { %v13342_v27 = vpop.eup %13341  ;;  %v7040_v33 = vmul.f32 0.015625, %v7030_v15 }
0x1985   : > { %10658 = vrot.lane.b32.xlu1 %v8831_v21, %s17365_s14  ;;  %10656 = vrot.lane.b32.xlu0 %v8830_v62, %s17365_s14  ;;  %v8835_v0 = vmul.f32 %v13342_v27, %v16185_v13  ;;  %v7041_v27 = vmul.f32 0.015625, %v7033_v24 }
0x1986   : > { %v13344_v23 = vpop.eup %13343 }
0x1987   : > { %v9679_v16 = vpop.xlane.xlu1 %9678  ;;  %v16454_v56 = vpop.xlane.xlu0 %9251  ;;  %v9267_v49 = vmul.f32 %v13344_v23, %v16204_v14  ;;  %v16481_v14 = vsub.f32 %v16223_v35, %v7040_v33  ;;  %v16499_v35 = vsub.f32 %v16232_v47, %v7041_v27 }
0x1988   : > { %v13346_v44 = vpop.eup %13345  ;;  %13351 = vrcp.f32 %v9679_v16 }
0x1989   : > { %10666 = vrot.lane.b32.xlu1 %v8835_v0, %s17365_s14  ;;  %v7048_v52 = vmul.f32 %v16481_v14, %v16481_v14  ;;  %17418 = vst [vmem:[#allocation42_spill] sm:$0xff] %v16499_v35  ;;  %13353 = vrcp.f32 %v16412_v18 }
0x198a   : > { %13355 = vrcp.f32 %v16418_v26 }
0x198b   : > { %v16458_v41 = vpop.xlane.xlu1 %9690  ;;  %v16460_v10 = vpop.xlane.xlu0 %9675  ;;  %v7052_v15 = vsel %vm563_vm0, %v7048_v52, 0.0  ;;  %13357 = vrcp.f32 %v16420_v12 }
0x198c   : > { %13359 = vrcp.f32 %v16424_v60 }
0x198d   : > { %10690 = vrot.lane.b32.xlu1 %v9267_v49, %s17332_s20  ;;  %13361 = vrcp.f32 %v16454_v56 }
0x198e   : > { %13363 = vrcp.f32 %v16460_v10 }
0x198f   : > { %v16464_v50 = vpop.xlane.xlu1 %8328  ;;  %v16466_v46 = vpop.xlane.xlu0 %7035  ;;  %13365 = vrcp.f32 %v16458_v41 }
0x1993   : > { %v16468_v36 = vpop.xlane.xlu1 %10114  ;;  %v16470_v9 = vpop.xlane.xlu0 %8316 }
0x1997   : > { %v16472_v13 = vpop.xlane.xlu1 %8752  ;;  %v16474_v31 = vpop.xlane.xlu0 %8313 }
0x199b   : > { %v16476_v55 = vpop.xlane.xlu1 %10126  ;;  %v16478_v61 = vpop.xlane.xlu0 %9687 }
0x199c   : > { %17416 = vst [vmem:[#allocation21_spill] sm:$0xff] %v16476_v55  ;;  %13367 = vrcp.f32 %v16478_v61 }
0x199f   : > { %v16483_v8 = vpop.xlane.xlu1 %8764  ;;  %v16485_v40 = vpop.xlane.xlu0 %7038 }
0x19a3   : > { %v16489_v21 = vpop.xlane.xlu1 %10550  ;;  %v16491_v62 = vpop.xlane.xlu0 %8325 }
0x19a4   : > { %17417 = vst [vmem:[#allocation41_spill] sm:$0xff] %v16489_v21  ;;  %7053 = vadd.xlane.f32.xlu0 %v7052_v15  ;;  %v7049_v21 = vmul.f32 %v16499_v35, %v16499_v35 }
0x19a6   : > { %v7055_v24 = vsel %vm563_vm0, %v7049_v21, 0.0  ;;  %v8834_v21 = vmul.f32 %v13346_v44, %v16207_v43 }
0x19a7   : > { %v16494_v0 = vpop.xlane.xlu1 %9188  ;;  %v16496_v23 = vpop.xlane.xlu0 %10111 }
0x19ab   : > { %v16501_v49 = vpop.xlane.xlu1 %10562  ;;  %v16503_v33 = vpop.xlane.xlu0 %8749 }
0x19ac   : > { %17419 = vst [vmem:[#allocation50_spill] sm:$0xff] %v16501_v49 }
0x19af   : > { %v16507_v55 = vpop.xlane.xlu1 %9200  ;;  %v16509_v52 = vpop.xlane.xlu0 %10123 }
0x19b0   : > { %17420 = vst [vmem:[#allocation51_spill] sm:$0xff] %v16509_v52 }
0x19b1   : > { %7056 = vadd.xlane.f32.xlu1 %v7055_v24  ;;  %v13348_v24 = vpop.eup %13347 }
0x19b2   : > { %v13350_v51 = vpop.eup %13349 }
0x19b3   : > { %v16512_v15 = vpop.xlane.xlu1 %9624  ;;  %v16514_v47 = vpop.xlane.xlu0 %8761  ;;  %v9271_v44 = vmul.f32 %v13350_v51, %v16217_v58 }
0x19b4   : > { %17421 = vst [vmem:[#allocation52_spill] sm:$0xff] %v16512_v15  ;;  %v9266_v15 = vmul.f32 %v13348_v24, %v16219_v54 }
0x19b7   : > { %v16518_v49 = vpop.xlane.xlu1 %9636  ;;  %v16520_v35 = vpop.xlane.xlu0 %10547 }
0x19b8   : > { %17422 = vst [vmem:[#allocation53_spill] sm:$0xff] %v16520_v35 }
0x19ba   : > { %10664 = vrot.lane.b32.xlu0 %v8834_v21, %s17365_s14  ;;  %v13352_v21 = vpop.eup %13351 }
0x19bb   : > { %v16526_v52 = vpop.xlane.xlu1 %10060  ;;  %v16528_v3 = vpop.xlane.xlu0 %9185  ;;  %v9703_v24 = vmul.f32 %v13352_v21, %v16238_v28  ;;  %v7042_v21 = vmul.f32 0.015625, %v16466_v46 }
0x19be   : > { %10688 = vrot.lane.b32.xlu0 %v9266_v15, %s17332_s20 }
0x19bf   : > { %v16534_v16 = vpop.xlane.xlu1 %10072  ;;  %v16536_v5 = vpop.xlane.xlu0 %10559 }
0x19c0   : > { %17423 = vst [vmem:[#allocation54_spill] sm:$0xff] %v16534_v16  ;;  %17424 = vst [vmem:[#allocation55_spill] sm:$0xff] %v16536_v5 }
0x19c2   : > { %10698 = vrot.lane.b32.xlu1 %v9271_v44, %s17332_s20 }
0x19c3   : > { %v16542_v35 = vpop.xlane.xlu1 %10493  ;;  %v16544_v27 = vpop.xlane.xlu0 %9197 }
0x19c6   : > { %10722 = vrot.lane.b32.xlu1 %v9703_v24, %s17359_s17 }
0x19c7   : > { %v16552_v43 = vpop.xlane.xlu1 %10505  ;;  %v16554_v58 = vpop.xlane.xlu0 %9621 }
0x19c8   : > { %17425 = vst [vmem:[#allocation56_spill] sm:$0xff] %v16552_v43  ;;  %v16574_v43 = vsub.f32 %v16272_v39, %v7042_v21  ;;  %v7043_v39 = vmul.f32 0.015625, %v16485_v40 }
0x19ca   : > { %17426 = vst [vmem:[#allocation57_spill] sm:$0xff] %v16574_v43  ;;  %v7050_v45 = vmul.f32 %v16574_v43, %v16574_v43  ;;  %v16593_v54 = vsub.f32 %v16320_v63, %v7043_v39  ;;  %v13354_v63 = vpop.eup %13353 }
0x19cb   : > { %v16560_v5 = vpop.xlane.xlu0 %9633  ;;  %v13356_v12 = vpop.eup %13355 }
0x19cc   : > { %v7058_v51 = vsel %vm563_vm0, %v7050_v45, 0.0  ;;  %17429 = vst [vmem:[#allocation60_spill] sm:$0xff] %v16593_v54  ;;  %v7051_v45 = vmul.f32 %v16593_v54, %v16593_v54  ;;  %v13358_v39 = vpop.eup %13357 }
0x19cd   : > { %v13360_v56 = vpop.eup %13359 }
0x19ce   : > { %v7061_v26 = vsel %vm563_vm0, %v7051_v45, 0.0  ;;  %v7526_v61 = vmul.f32 %v13360_v56, %v16117_v17  ;;  %v8336_v56 = vsub.f32 %v16236_v38, %v16474_v31  ;;  %v17433_v31 = vld [vmem:[#allocation22_spill] sm:$0xff] }
0x19cf   : > { %v16564_v15 = vpop.xlane.xlu0 %10057 }
0x19d3   : > { %v16569_v24 = vpop.xlane.xlu0 %10069 }
0x19d7   : > { %v16576_v44 = vpop.xlane.xlu0 %10496  ;;  %v16582_v16 = vpop.permute.xlu1 %10590 }
0x19d8   : > { %17427 = vst [vmem:[#allocation58_spill] sm:$0xff] %v16582_v16 }
0x19db   : > { %v16584_v28 = vpop.xlane.xlu0 %10508 }
0x19dc   : > { %17428 = vst [vmem:[#allocation59_spill] sm:$0xff] %v16584_v28  ;;  %v7527_v28 = vmul.f32 %v13358_v39, %v16105_v34 }
0x19dd   : > { %7059 = vadd.xlane.f32.xlu0 %v7058_v51 }
0x19df   : > { %v10595_v21 = vpop.permute.xlu1 %10594  ;;  %v16597_v16 = vpop.permute.xlu0 %10588 }
0x19e0   : > { %17430 = vst [vmem:[#allocation61_spill] sm:$0xff] %v16597_v16  ;;  %v7523_v16 = vmul.f32 %v13354_v63, %v16090_v19 }
0x19e2   : > { %v10807_v10 = vsel %vm826_vm2, %v7523_v16, %v10595_v21 }
0x19e3   : > { %v10593_v46 = vpop.permute.xlu1 %10592 }
0x19e7   : > { %v16602_v40 = vpop.permute.xlu1 %10598  ;;  %v16604_v18 = vpop.permute.xlu0 %10596 }
0x19e8   : > { %17431 = vst [vmem:[#allocation62_spill] sm:$0xff] %v16602_v40  ;;  %17432 = vst [vmem:[#allocation63_spill] sm:$0xff] %v16604_v18  ;;  %v7522_v40 = vmul.f32 %v13356_v12, %v16097_v42  ;;  %v13362_v18 = vpop.eup %13361 }
0x19e9   : > { %v9270_v57 = vmul.f32 %v13362_v18, %v16244_v11  ;;  %v13364_v19 = vpop.eup %13363 }
0x19ea   : > { %7062 = vadd.xlane.f32.xlu1 %v7061_v26  ;;  %v10806_v54 = vsel %vm826_vm2, %v7522_v40, %v10593_v46  ;;  %v9702_v34 = vmul.f32 %v13364_v19, %v16261_v25 }
0x19eb   : > { %v10603_v60 = vpop.permute.xlu1 %10602  ;;  %v10601_v51 = vpop.permute.xlu0 %10600 }
0x19ec   : > { %v10811_v42 = vsel %vm826_vm2, %v7527_v28, %v10603_v60  ;;  %v10810_v63 = vsel %vm826_vm2, %v7526_v61, %v10601_v51 }
0x19ef   : > { %v10627_v45 = vpop.permute.xlu1 %10626  ;;  %v10625_v43 = vpop.permute.xlu0 %10624 }
0x19f0   : > { %v10815_v26 = vsel %vm1143_vm4, %v10807_v10, %v10627_v45  ;;  %v10814_v41 = vsel %vm1143_vm4, %v10806_v54, %v10625_v43  ;;  %v13366_v43 = vpop.eup %13365  ;;  %v8344_v10 = vmul.f32 1.442695, %v8336_v56  ;;  %v8337_v45 = vsub.f32 %v16234_v32, %v16470_v9 }
0x19f1   : > { %v13368_v54 = vpop.eup %13367 }
0x19f2   : > { %v9706_v12 = vmul.f32 %v13368_v54, %v16307_v20  ;;  %13369 = vpow2.f32 %v8344_v10  ;;  %v8346_v20 = vmul.f32 1.442695, %v8337_v45  ;;  %v17439_v45 = vld [vmem:[#allocation29_spill] sm:$0xff] }
0x19f3   : > { %v10635_v16 = vpop.permute.xlu1 %10634  ;;  %10696 = vrot.lane.b32.xlu0 %v9270_v57, %s17332_s20  ;;  %v10633_v46 = vpop.permute.xlu0 %10632  ;;  %v9707_v57 = vmul.f32 %v13366_v43, %v16254_v7 }
0x19f4   : > { %v10819_v21 = vsel %vm1143_vm4, %v10811_v42, %v10635_v16  ;;  %v10818_v40 = vsel %vm1143_vm4, %v10810_v63, %v10633_v46  ;;  %13371 = vpow2.f32 %v8346_v20  ;;  %v8776_v20 = vsub.f32 %v17439_v45, %v16514_v47  ;;  %v17441_v47 = vld [vmem:[#allocation36_spill] sm:$0xff] }
0x19f5   : > { %13373 = vrcp.f32 %v16468_v36  ;;  %v17434_v36 = vld [vmem:[#allocation34_spill] sm:$0xff] }
0x19f6   : > { %13375 = vrcp.f32 %v16496_v23  ;;  %v8340_v23 = vsub.f32 %v17434_v36, %v16491_v62 }
0x19f7   : > { %v10659_v17 = vpop.permute.xlu1 %10658  ;;  %10720 = vrot.lane.b32.xlu0 %v9702_v34, %s17359_s17  ;;  %v10657_v11 = vpop.permute.xlu0 %10656  ;;  %v17435_v34 = vld [vmem:[#allocation18_spill] sm:$0xff] }
0x19f8   : > { %v10823_v28 = vsel %vm6561_vm5, %v10815_v26, %v10659_v17  ;;  %v10822_v18 = vsel %vm6561_vm5, %v10814_v41, %v10657_v11  ;;  %v7082_v54 = vsub.s32 4, %v17435_v34  ;;  %v8352_v17 = vmul.f32 1.442695, %v8340_v23  ;;  %v17436_v11 = vld [vmem:[#allocation35_spill] sm:$0xff] }
0x19fb   : > { %v10667_v60 = vpop.permute.xlu1 %10666  ;;  %10728 = vrot.lane.b32.xlu0 %v9706_v12, %s17359_s17  ;;  %10730 = vrot.lane.b32.xlu1 %v9707_v57, %s17359_s17  ;;  %v7090_v12 = vsub.s32 5, %v17435_v34  ;;  %v17437_v57 = vld [vmem:[#allocation33_spill] sm:$0xff] }
0x19fc   : > { %v10827_v25 = vsel %vm6561_vm5, %v10819_v21, %v10667_v60  ;;  %v16638_v7 = vpop.eup %13369  ;;  %v8341_v60 = vsub.f32 %v17437_v57, %v16464_v50  ;;  %v17440_v50 = vld [vmem:[#allocation47_spill] sm:$0xff]  ;;  %v17446_v57 = vld [vmem:[#allocation42_spill] sm:$0xff] }
0x19fd   : > { %v8360_v26 = vsel %vm826_vm2, %v16638_v7, 0.0 }
0x19fe   : > { %v16642_v41 = vpop.eup %13371 }
0x19ff   : > { %v10691_v51 = vpop.permute.xlu1 %10690  ;;  %v8363_v61 = vsel %vm826_vm2, %v16642_v41, 0.0  ;;  %v13374_v32 = vpop.eup %13373 }
0x1a00   : > { %v10831_v39 = vsel %vm6408_vm6, %v10823_v28, %v10691_v51  ;;  %v13376_v38 = vpop.eup %13375  ;;  %v10139_v9 = vmul.f32 %v13374_v32, %v16283_v53  ;;  %v8772_v28 = vsub.f32 %v17436_v11, %v16503_v33  ;;  %v17438_v51 = vld [vmem:[#allocation46_spill] sm:$0xff]  ;;  %v8354_v32 = vmul.f32 1.442695, %v8341_v60 }
0x1a01   : > { %v10138_v19 = vmul.f32 %v13376_v38, %v17433_v31  ;;  %v16667_v56 = vrot.slane %v17438_v51, %v7082_v54  ;;  %v8773_v38 = vsub.f32 %v17440_v50, %v16472_v13  ;;  %v17450_v50 = vld [vmem:[#allocation52_spill] sm:$0xff] }
0x1a03   : > { %v8782_v36 = vmul.f32 1.442695, %v8773_v38 }
0x1a1a   : > { %8361 = vadd.xlane.f32.xlu0 %v8360_v26  ;;  %v16672_v26 = vrot.slane %v17438_v51, %v7090_v12 }
0x1a1f   : > { %8364 = vadd.xlane.f32.xlu1 %v8363_v61 }
0x1a30   : > { %10754 = vrot.lane.b32.xlu1 %v10139_v9, %s17335_s2  ;;  %10752 = vrot.lane.b32.xlu0 %v10138_v19, %s17335_s2 }
0x1a31   : > { %v7054_v42 = vpop.xlane.xlu0 %7053 }
0x1a32   : > { %v7064_v63 = vmul.f32 0.015625, %v7054_v42  ;;  %v8777_v42 = vsub.f32 %v17441_v47, %v16483_v8 }
0x1a34   : > { %v7068_v16 = vadd.f32 1e-05, %v7064_v63  ;;  %v8788_v63 = vmul.f32 1.442695, %v8776_v20 }
0x1a35   : > { %v10665_v46 = vpop.permute.xlu0 %10664 }
0x1a36   : > { %13377 = vrsqrt.f32 %v7068_v16  ;;  %v16653_v21 = vsel %vm6561_vm5, %v10818_v40, %v10665_v46 }
0x1a37   : > { %13379 = vpow2.f32 %v8352_v17 }
0x1a39   : > { %v10689_v43 = vpop.permute.xlu0 %10688 }
0x1a3a   : > { %v16658_v53 = vsel %vm6408_vm6, %v10822_v18, %v10689_v43  ;;  %v8780_v18 = vmul.f32 1.442695, %v8772_v28  ;;  %v17445_v28 = vld [vmem:[#allocation48_spill] sm:$0xff] }
0x1a3b   : > { %v9213_v12 = vsub.f32 %v17445_v28, %v16507_v55 }
0x1a3d   : > { %v9226_v55 = vmul.f32 1.442695, %v9213_v12 }
0x1a3e   : > { %v7057_v40 = vpop.xlane.xlu1 %7056 }
0x1a3f   : > { %v7065_v62 = vmul.f32 0.015625, %v7057_v40 }
0x1a40   : > { %v13378_v10 = vpop.eup %13377 }
0x1a41   : > { %v7076_v33 = vmul.f32 %v13378_v10, %v16481_v14  ;;  %v7069_v61 = vadd.f32 1e-05, %v7065_v62  ;;  %v17442_v14 = vld [vmem:[#allocation19_spill] sm:$0xff]  ;;  %v16694_v43 = vpop.eup %13379 }
0x1a42   : > { %v10699_v9 = vpop.permute.xlu1 %10698  ;;  %v9208_v16 = vsub.f32 %v17442_v14, %v16528_v3  ;;  %v17443_v3 = vld [vmem:[#allocation31_spill] sm:$0xff]  ;;  %v8372_v40 = vsel %vm826_vm2, %v16694_v43, 0.0 }
0x1a43   : > { %v7084_v31 = vmul.f32 %v16667_v56, %v7076_v33  ;;  %13381 = vrsqrt.f32 %v7069_v61  ;;  %v16679_v19 = vsel %vm6408_vm6, %v10827_v25, %v10699_v9  ;;  %v8790_v25 = vmul.f32 1.442695, %v8777_v42 }
0x1a44   : > { %13383 = vpow2.f32 %v8780_v18  ;;  %v9216_v8 = vmul.f32 1.442695, %v9208_v16  ;;  %v9209_v34 = vsub.f32 %v17443_v3, %v16494_v0 }
0x1a45   : > { %v7092_v46 = vadd.f32 %v16672_v26, %v7084_v31  ;;  %13385 = vpow2.f32 %v8354_v32  ;;  %v17449_v32 = vld [vmem:[#allocation24_spill] sm:$0xff] }
0x1a46   : > { %v10723_v13 = vpop.permute.xlu1 %10722  ;;  %13387 = vpow2.f32 %v8788_v63  ;;  %v9218_v11 = vmul.f32 1.442695, %v9209_v34  ;;  %v17451_v38 = vsub.f32 %v17449_v32, %v17450_v50  ;;  %v17453_v63 = vsub.f32 %v16322_v1, %v16518_v49 }
0x1a47   : > { %v16687_v23 = vsel %vm6570_vm7, %v10831_v39, %v10723_v13  ;;  %7096 = vst.msk [vmem:[%s16690_s5] sm:$0xff] %vm563_vm0, %v7092_v46  ;;  %13389 = vpow2.f32 %v8782_v36  ;;  %v17444_v39 = vsub.f32 %v16297_v6, %v16544_v27  ;;  %v17447_v6 = vsub.f32 %v16313_v4, %v16554_v58 }
0x1a48   : > { %13391 = vpow2.f32 %v8790_v25  ;;  %v17448_v4 = vsub.f32 %v16324_v37, %v16560_v5  ;;  %v9654_v9 = vmul.f32 1.442695, %v17451_v38  ;;  %v17452_v37 = vsub.f32 %v16335_v59, %v16564_v15 }
0x1a49   : > { %13393 = vpow2.f32 %v9216_v8  ;;  %v9224_v17 = vmul.f32 1.442695, %v17444_v39  ;;  %v9652_v27 = vmul.f32 1.442695, %v17447_v6  ;;  %v9662_v14 = vmul.f32 1.442695, %v17453_v63 }
0x1a4a   : > { %v9660_v58 = vmul.f32 1.442695, %v17448_v4  ;;  %v10088_v5 = vmul.f32 1.442695, %v17452_v37  ;;  %v17454_v59 = vsub.f32 %v16345_v2, %v16569_v24  ;;  %v17455_v1 = vsub.f32 %v16332_v48, %v16526_v52  ;;  %v17457_v48 = vld [vmem:[#allocation54_spill] sm:$0xff] }
0x1a4b   : > { %13395 = vpow2.f32 %v9224_v17  ;;  %v17456_v2 = vsub.f32 %v16356_v29, %v16542_v35  ;;  %v17458_v52 = vsub.f32 %v16343_v22, %v17457_v48  ;;  %v17459_v29 = vld [vmem:[#allocation20_spill] sm:$0xff]  ;;  %v17462_v22 = vsub.f32 %v16353_v30, %v16576_v44 }
0x1a4c   : > { %13397 = vpow2.f32 %v9218_v11  ;;  %v10096_v15 = vmul.f32 1.442695, %v17454_v59  ;;  %v10090_v49 = vmul.f32 1.442695, %v17455_v1  ;;  %v17460_v35 = vld [vmem:[#allocation56_spill] sm:$0xff] }
0x1a4d   : > { %v13382_v54 = vpop.eup %13381  ;;  %13399 = vpow2.f32 %v9652_v27  ;;  %v10524_v24 = vmul.f32 1.442695, %v17456_v2  ;;  %v17461_v12 = vsub.f32 %v17459_v29, %v17460_v35 }
0x1a4e   : > { %v7077_v60 = vmul.f32 %v13382_v54, %v17446_v57  ;;  %v16706_v51 = vpop.eup %13383  ;;  %13401 = vpow2.f32 %v9226_v55  ;;  %v10098_v54 = vmul.f32 1.442695, %v17458_v52  ;;  %v17463_v55 = vld [vmem:[#allocation32_spill] sm:$0xff]  ;;  %v17466_v52 = vld [vmem:[#allocation57_spill] sm:$0xff] }
0x1a4f   : > { %8373 = vadd.xlane.f32.xlu0 %v8372_v40  ;;  %v16708_v0 = vpop.eup %13385  ;;  %v8796_v18 = vsel %vm826_vm2, %v16706_v51, 0.0  ;;  %13403 = vpow2.f32 %v9660_v58  ;;  %v10532_v57 = vmul.f32 1.442695, %v17461_v12 }
0x1a50   : > { %v7085_v62 = vmul.f32 %v16667_v56, %v7077_v60  ;;  %v16717_v45 = vpop.eup %13387  ;;  %v8375_v20 = vsel %vm826_vm2, %v16708_v0, 0.0  ;;  %13405 = vpow2.f32 %v9654_v9  ;;  %v10526_v60 = vmul.f32 1.442695, %v17462_v22  ;;  %v17468_v22 = vld [vmem:[#allocation51_spill] sm:$0xff] }
0x1a51   : > { %v16721_v33 = vpop.eup %13389  ;;  %v8808_v31 = vsel %vm826_vm2, %v16717_v45, 0.0  ;;  %13407 = vpow2.f32 %v10088_v5 }
0x1a52   : > { %v7093_v10 = vadd.f32 %v16672_v26, %v7085_v62  ;;  %v16728_v61 = vpop.eup %13391  ;;  %v8799_v42 = vsel %vm826_vm2, %v16721_v33, 0.0  ;;  %13409 = vpow2.f32 %v9662_v14 }
0x1a53   : > { %8797 = vadd.xlane.f32.xlu0 %v8796_v18  ;;  %v16735_v47 = vpop.eup %13393  ;;  %v8811_v36 = vsel %vm826_vm2, %v16728_v61, 0.0  ;;  %13411 = vpow2.f32 %v10096_v15 }
0x1a54   : > { %8376 = vadd.xlane.f32.xlu1 %v8375_v20  ;;  %7097 = vst.msk [vmem:[%s16690_s5 + $0x8] sm:$0xff] %vm563_vm0, %v7093_v10  ;;  %v9232_v16 = vsel %vm826_vm2, %v16735_v47, 0.0  ;;  %13413 = vpow2.f32 %v10090_v49  ;;  %v17464_v10 = vld [vmem:[#allocation59_spill] sm:$0xff] }
0x1a55   : > { %v16747_v46 = vpop.eup %13395  ;;  %13415 = vpow2.f32 %v10524_v24  ;;  %v17465_v18 = vsub.f32 %v17463_v55, %v17464_v10 }
0x1a56   : > { %v16751_v13 = vpop.eup %13397  ;;  %v9244_v25 = vsel %vm826_vm2, %v16747_v46, 0.0  ;;  %13417 = vpow2.f32 %v10098_v54 }
0x1a57   : > { %8809 = vadd.xlane.f32.xlu0 %v8808_v31  ;;  %v16761_v8 = vpop.eup %13399  ;;  %v9235_v3 = vsel %vm826_vm2, %v16751_v13, 0.0  ;;  %13419 = vpow2.f32 %v10532_v57  ;;  %v10534_v20 = vmul.f32 1.442695, %v17465_v18  ;;  %v17467_v57 = vld [vmem:[#allocation21_spill] sm:$0xff]  ;;  %v17471_v18 = vld [vmem:[#allocation60_spill] sm:$0xff] }
0x1a58   : > { %8800 = vadd.xlane.f32.xlu1 %v8799_v42  ;;  %v16765_v34 = vpop.eup %13401  ;;  %v9668_v39 = vsel %vm826_vm2, %v16761_v8, 0.0  ;;  %13421 = vpow2.f32 %v10526_v60 }
0x1a59   : > { %v16775_v17 = vpop.eup %13403  ;;  %v9247_v11 = vsel %vm826_vm2, %v16765_v34, 0.0  ;;  %13423 = vpow2.f32 %v10534_v20 }
0x1a5a   : > { %v16779_v28 = vpop.eup %13405  ;;  %v9680_v40 = vsel %vm826_vm2, %v16775_v17, 0.0 }
0x1a5b   : > { %9233 = vadd.xlane.f32.xlu0 %v9232_v16  ;;  %v16789_v62 = vpop.eup %13407  ;;  %v9671_v6 = vsel %vm826_vm2, %v16779_v28, 0.0 }
0x1a5c   : > { %8812 = vadd.xlane.f32.xlu1 %v8811_v36  ;;  %v16793_v27 = vpop.eup %13409  ;;  %v10104_v44 = vsel %vm826_vm2, %v16789_v62, 0.0 }
0x1a5d   : > { %v16800_v4 = vpop.eup %13411  ;;  %v9683_v32 = vsel %vm826_vm2, %v16793_v27, 0.0 }
0x1a5e   : > { %v16804_v50 = vpop.eup %13413  ;;  %v10116_v31 = vsel %vm826_vm2, %v16800_v4, 0.0 }
0x1a5f   : > { %9245 = vadd.xlane.f32.xlu0 %v9244_v25  ;;  %v16808_v42 = vpop.eup %13415  ;;  %v10107_v5 = vsel %vm826_vm2, %v16804_v50, 0.0 }
0x1a60   : > { %9236 = vadd.xlane.f32.xlu1 %v9235_v3  ;;  %v16814_v63 = vpop.eup %13417  ;;  %v10540_v16 = vsel %vm826_vm2, %v16808_v42, 0.0 }
0x1a61   : > { %v16818_v36 = vpop.eup %13419 }
0x1a62   : > { %v16826_v15 = vpop.eup %13421  ;;  %v10552_v49 = vsel %vm826_vm2, %v16818_v36, 0.0 }
0x1a63   : > { %9669 = vadd.xlane.f32.xlu0 %v9668_v39  ;;  %v16835_v2 = vpop.eup %13423 }
0x1a64   : > { %9248 = vadd.xlane.f32.xlu1 %v9247_v11  ;;  %v10555_v29 = vsel %vm826_vm2, %v16835_v2, 0.0 }
0x1a67   : > { %9681 = vadd.xlane.f32.xlu0 %v9680_v40  ;;  %v17469_v40 = vld [vmem:[#allocation41_spill] sm:$0xff] }
0x1a68   : > { %9672 = vadd.xlane.f32.xlu1 %v9671_v6  ;;  %v17470_v6 = vld [vmem:[#allocation53_spill] sm:$0xff] }
0x1a6a   : > { %v7060_v30 = vpop.xlane.xlu0 %7059 }
0x1a6b   : > { %v7066_v58 = vmul.f32 0.015625, %v7060_v30  ;;  %10105 = vadd.xlane.f32.xlu0 %v10104_v44 }
0x1a6c   : > { %9684 = vadd.xlane.f32.xlu1 %v9683_v32  ;;  %v17472_v32 = vld [vmem:[#allocation30_spill] sm:$0xff] }
0x1a6d   : > { %v7070_v38 = vadd.f32 1e-05, %v7066_v58 }
0x1a6e   : > { %v10697_v9 = vpop.permute.xlu0 %10696 }
0x1a6f   : > { %13425 = vrsqrt.f32 %v7070_v38  ;;  %v10834_v37 = vsel %vm6408_vm6, %v16653_v21, %v10697_v9  ;;  %10117 = vadd.xlane.f32.xlu0 %v10116_v31  ;;  %v10119_v21 = vsel %vm826_vm2, %v16814_v63, 0.0  ;;  %v17473_v9 = vld [vmem:[#allocation49_spill] sm:$0xff] }
0x1a70   : > { %10108 = vadd.xlane.f32.xlu1 %v10107_v5  ;;  %v17474_v5 = vld [vmem:[#allocation37_spill] sm:$0xff] }
0x1a72   : > { %v10721_v14 = vpop.permute.xlu0 %10720 }
0x1a73   : > { %v16822_v59 = vsel %vm6570_vm7, %v16658_v53, %v10721_v14  ;;  %10541 = vadd.xlane.f32.xlu0 %v10540_v16  ;;  %v10543_v53 = vsel %vm826_vm2, %v16826_v15, 0.0  ;;  %v17475_v16 = vld [vmem:[#allocation28_spill] sm:$0xff] }
0x1a74   : > { %10120 = vadd.xlane.f32.xlu1 %v10119_v21 }
0x1a76   : > { %v10729_v1 = vpop.permute.xlu0 %10728 }
0x1a77   : > { %v16831_v25 = vsel %vm6570_vm7, %v10834_v37, %v10729_v1  ;;  %v7063_v3 = vpop.xlane.xlu1 %7062  ;;  %10553 = vadd.xlane.f32.xlu0 %v10552_v49 }
0x1a78   : > { %v7067_v24 = vmul.f32 0.015625, %v7063_v3  ;;  %10544 = vadd.xlane.f32.xlu1 %v10543_v53 }
0x1a79   : > { %v13426_v48 = vpop.eup %13425 }
0x1a7a   : > { %v7078_v54 = vmul.f32 %v13426_v48, %v17466_v52  ;;  %v7071_v39 = vadd.f32 1e-05, %v7067_v24 }
0x1a7b   : > { %v10731_v11 = vpop.permute.xlu1 %10730 }
0x1a7c   : > { %v7086_v35 = vmul.f32 %v16667_v56, %v7078_v54  ;;  %13427 = vrsqrt.f32 %v7071_v39  ;;  %v16843_v12 = vsel %vm6570_vm7, %v16679_v19, %v10731_v11  ;;  %10556 = vadd.xlane.f32.xlu1 %v10555_v29 }
0x1a7d   : > { %13429 = vrcp.f32 %v17467_v57 }
0x1a7e   : > { %13431 = vrcp.f32 %v17468_v22  ;;  %v7094_v60 = vadd.f32 %v16672_v26, %v7086_v35 }
0x1a7f   : > { %13433 = vrcp.f32 %v17469_v40 }
0x1a80   : > { %7098 = vst.msk [vmem:[%s16690_s5 + $0x10] sm:$0xff] %vm563_vm0, %v7094_v60  ;;  %13435 = vrcp.f32 %v17470_v6 }
0x1a86   : > { %v13428_v55 = vpop.eup %13427 }
0x1a87   : > { %v13430_v10 = vpop.eup %13429  ;;  %v7079_v20 = vmul.f32 %v13428_v55, %v17471_v18 }
0x1a88   : > { %v13432_v19 = vpop.eup %13431  ;;  %v10143_v31 = vmul.f32 %v13430_v10, %v17473_v9 }
0x1a89   : > { %v7087_v30 = vmul.f32 %v16667_v56, %v7079_v20  ;;  %v13434_v44 = vpop.eup %13433  ;;  %v10142_v38 = vmul.f32 %v13432_v19, %v17472_v32 }
0x1a8a   : > { %v13436_v37 = vpop.eup %13435  ;;  %v10575_v21 = vmul.f32 %v13434_v44, %v17475_v16 }
0x1a8b   : > { %v7095_v58 = vadd.f32 %v16672_v26, %v7087_v30  ;;  %v10574_v14 = vmul.f32 %v13436_v37, %v17474_v5 }
0x1a8d   : > { %10760 = vrot.lane.b32.xlu0 %v10142_v38, %s17335_s2  ;;  %10762 = vrot.lane.b32.xlu1 %v10143_v31, %s17335_s2  ;;  %7099 = vst.msk [vmem:[%s16690_s5 + $0x18] sm:$0xff] %vm563_vm0, %v7095_v58 }
0x1a91   : > { %10784 = vrot.lane.b32.xlu0 %v10574_v14, %s17326_s18  ;;  %10786 = vrot.lane.b32.xlu1 %v10575_v21, %s17326_s18 }
0x1aa7   : > { %v8362_v56 = vpop.xlane.xlu0 %8361 }
0x1aa8   : > { %13437 = vrcp.f32 %v8362_v56 }
0x1aab   : > { %v16869_v24 = vpop.permute.xlu0 %10752 }
0x1aac   : > { %v8365_v26 = vpop.xlane.xlu1 %8364 }
0x1aad   : > { %13439 = vrcp.f32 %v8365_v26 }
0x1ab0   : > { %v16871_v52 = vpop.permute.xlu1 %10754 }
0x1ab2   : > { %v13438_v1 = vpop.eup %13437 }
0x1ab3   : > { %v8392_v49 = vmul.f32 %v13438_v1, %v16638_v7 }
0x1ab5   : > { %10620 = vrot.lane.b32.xlu0 %v8392_v49, %s17328_s16 }
0x1ab7   : > { %v13440_v3 = vpop.eup %13439 }
0x1ab8   : > { %v8393_v53 = vmul.f32 %v13440_v3, %v16642_v41 }
0x1aba   : > { %10622 = vrot.lane.b32.xlu1 %v8393_v53, %s17328_s16 }
0x1adc   : > { %v8374_v48 = vpop.xlane.xlu0 %8373 }
0x1add   : > { %13441 = vrcp.f32 %v8374_v48 }
0x1ae0   : > { %v8798_v54 = vpop.xlane.xlu0 %8797 }
0x1ae1   : > { %13443 = vrcp.f32 %v8798_v54  ;;  %v8377_v39 = vpop.xlane.xlu1 %8376 }
0x1ae2   : > { %13445 = vrcp.f32 %v8377_v39 }
0x1ae4   : > { %v8810_v11 = vpop.xlane.xlu0 %8809 }
0x1ae5   : > { %13447 = vrcp.f32 %v8810_v11  ;;  %v8801_v7 = vpop.xlane.xlu1 %8800 }
0x1ae6   : > { %13449 = vrcp.f32 %v8801_v7 }
0x1ae7   : > { %v13442_v29 = vpop.eup %13441 }
0x1ae8   : > { %v9234_v35 = vpop.xlane.xlu0 %9233  ;;  %v8396_v41 = vmul.f32 %v13442_v29, %v16694_v43 }
0x1ae9   : > { %13451 = vrcp.f32 %v9234_v35  ;;  %v8813_v57 = vpop.xlane.xlu1 %8812 }
0x1aea   : > { %13453 = vrcp.f32 %v8813_v57  ;;  %10628 = vrot.lane.b32.xlu0 %v8396_v41, %s17328_s16 }
0x1aeb   : > { %v13444_v22 = vpop.eup %13443 }
0x1aec   : > { %v13446_v60 = vpop.eup %13445  ;;  %v9246_v40 = vpop.xlane.xlu0 %9245  ;;  %v8828_v6 = vmul.f32 %v13444_v22, %v16706_v51 }
0x1aed   : > { %13455 = vrcp.f32 %v9246_v40  ;;  %v9237_v55 = vpop.xlane.xlu1 %9236  ;;  %v8397_v10 = vmul.f32 %v13446_v60, %v16708_v0  ;;  %v17477_v60 = vld [vmem:[#allocation50_spill] sm:$0xff] }
0x1aee   : > { %13457 = vrcp.f32 %v9237_v55  ;;  %10652 = vrot.lane.b32.xlu0 %v8828_v6, %s17365_s14 }
0x1aef   : > { %v13448_v18 = vpop.eup %13447  ;;  %10630 = vrot.lane.b32.xlu1 %v8397_v10, %s17328_s16  ;;  %s10908_s16 = sshll.u32 %s15272_s7, 4  ;;  %s10873_s7 = sand.u32 1, %s13838_s29   ;;  %s16921_s16 = int_to_ptr.vmem [resolvable:$true] %s10908_s16 }
0x1af0   : > { %v13450_v43 = vpop.eup %13449  ;;  %v9670_v20 = vpop.xlane.xlu0 %9669  ;;  %v8832_v19 = vmul.f32 %v13448_v18, %v16717_v45  ;;  %s16959_s3 = scalar_lea.sflag [#allocation10], %s10873_s7  ;;  %s13588_s4 = scalar_lea.vmem %s16921_s16, 512 }
0x1af1   : > { %13459 = vrcp.f32 %v9670_v20  ;;  %v9249_v30 = vpop.xlane.xlu1 %9248  ;;  %v8829_v44 = vmul.f32 %v13450_v43, %v16721_v33  ;;  %p13589_p0 = scmp.ne.s32.totalorder %s16921_s16, %s13588_s4 }
0x1af2   : > { %13461 = vrcp.f32 %v9249_v30  ;;  %10660 = vrot.lane.b32.xlu0 %v8832_v19, %s17365_s14 }
0x1af3   : > { %v13452_v51 = vpop.eup %13451  ;;  %10654 = vrot.lane.b32.xlu1 %v8829_v44, %s17365_s14  ;;  %p13590_p3 = pnand %p13589_p0, %p17481_p2 }
0x1af4   : > { %v13454_v0 = vpop.eup %13453  ;;  %v9682_v58 = vpop.xlane.xlu0 %9681  ;;  %v9264_v32 = vmul.f32 %v13452_v51, %v16735_v47 }
0x1af5   : > { %13463 = vrcp.f32 %v9682_v58  ;;  %v9673_v38 = vpop.xlane.xlu1 %9672  ;;  %v8833_v9 = vmul.f32 %v13454_v0, %v16728_v61  ;;  %p13591_p7 = pneg %p13590_p3 }
0x1af6   : > { %13465 = vrcp.f32 %v9673_v38  ;;  %10684 = vrot.lane.b32.xlu0 %v9264_v32, %s17332_s20 }
0x1af7   : > { %v13456_v45 = vpop.eup %13455  ;;  %10662 = vrot.lane.b32.xlu1 %v8833_v9, %s17365_s14  ;;  %s17478_s14 = sld [smem:[#allocation72_spill]] }
0x1af8   : > { %v13458_v33 = vpop.eup %13457  ;;  %v10106_v31 = vpop.xlane.xlu0 %10105  ;;  %v9268_v37 = vmul.f32 %v13456_v45, %v16747_v46 }
0x1af9   : > { %13467 = vrcp.f32 %v10106_v31  ;;  %v9685_v5 = vpop.xlane.xlu1 %9684  ;;  %v9265_v14 = vmul.f32 %v13458_v33, %v16751_v13 }
0x1afa   : > { %13469 = vrcp.f32 %v9685_v5  ;;  %10692 = vrot.lane.b32.xlu0 %v9268_v37, %s17332_s20 }
0x1afb   : > { %v13460_v47 = vpop.eup %13459  ;;  %10686 = vrot.lane.b32.xlu1 %v9265_v14, %s17332_s20 }
0x1afc   : > { %v13462_v61 = vpop.eup %13461  ;;  %v10118_v16 = vpop.xlane.xlu0 %10117  ;;  %v9700_v21 = vmul.f32 %v13460_v47, %v16761_v8 }
0x1afd   : > { %13471 = vrcp.f32 %v10118_v16  ;;  %v10109_v56 = vpop.xlane.xlu1 %10108  ;;  %v9269_v26 = vmul.f32 %v13462_v61, %v16765_v34 }
0x1afe   : > { %13473 = vrcp.f32 %v10109_v56  ;;  %10716 = vrot.lane.b32.xlu0 %v9700_v21, %s17359_s17 }
0x1aff   : > { %v13464_v46 = vpop.eup %13463  ;;  %10694 = vrot.lane.b32.xlu1 %v9269_v26, %s17332_s20  ;;  %s16923_s20 = scalar_lea.vmem [#allocation11], %s11104_s24  ;;  %s13743_s24 = smov [#allocation9]  }
0x1b00   : > { %v13466_v13 = vpop.eup %13465  ;;  %v10542_v1 = vpop.xlane.xlu0 %10541  ;;  %v9704_v49 = vmul.f32 %v13464_v46, %v16775_v17 }
0x1b01   : > { %13475 = vrcp.f32 %v10542_v1  ;;  %v10121_v3 = vpop.xlane.xlu1 %10120  ;;  %v9701_v53 = vmul.f32 %v13466_v13, %v16779_v28  ;;  %v17476_v28 = vld [vmem:[#allocation55_spill] sm:$0xff] }
0x1b02   : > { %13477 = vrcp.f32 %v10121_v3  ;;  %10724 = vrot.lane.b32.xlu0 %v9704_v49, %s17359_s17 }
0x1b03   : > { %v13468_v8 = vpop.eup %13467  ;;  %10718 = vrot.lane.b32.xlu1 %v9701_v53, %s17359_s17 }
0x1b04   : > { %v13470_v34 = vpop.eup %13469  ;;  %v10554_v48 = vpop.xlane.xlu0 %10553  ;;  %v10136_v54 = vmul.f32 %v13468_v8, %v16789_v62 }
0x1b05   : > { %13479 = vrcp.f32 %v10554_v48  ;;  %v10545_v39 = vpop.xlane.xlu1 %10544  ;;  %v9705_v11 = vmul.f32 %v13470_v34, %v16793_v27 }
0x1b06   : > { %13481 = vrcp.f32 %v10545_v39  ;;  %10748 = vrot.lane.b32.xlu0 %v10136_v54, %s17335_s2 }
0x1b07   : > { %v13472_v17 = vpop.eup %13471  ;;  %13483 = vrcp.f32 %v17476_v28  ;;  %10726 = vrot.lane.b32.xlu1 %v9705_v11, %s17359_s17 }
0x1b08   : > { %v13474_v7 = vpop.eup %13473  ;;  %v10761_v29 = vpop.permute.xlu0 %10760  ;;  %v10140_v35 = vmul.f32 %v13472_v17, %v16800_v4  ;;  %v10846_v4 = vsel %vm6413_vm8, %v16822_v59, %v16869_v24 }
0x1b09   : > { %v16908_v62 = vsel %vm6413_vm8, %v16831_v25, %v10761_v29  ;;  %v10557_v41 = vpop.xlane.xlu1 %10556  ;;  %v10137_v27 = vmul.f32 %v13474_v7, %v16804_v50 }
0x1b0a   : > { %13485 = vrcp.f32 %v10557_v41  ;;  %10756 = vrot.lane.b32.xlu0 %v10140_v35, %s17335_s2 }
0x1b0b   : > { %v13476_v57 = vpop.eup %13475  ;;  %10750 = vrot.lane.b32.xlu1 %v10137_v27, %s17335_s2  ;;  %13487 = vrcp.f32 %v17477_v60 }
0x1b0c   : > { %v13478_v22 = vpop.eup %13477  ;;  %v10785_v25 = vpop.permute.xlu0 %10784  ;;  %v10572_v40 = vmul.f32 %v13476_v57, %v16808_v42 }
0x1b0d   : > { %v10854_v50 = vsel %vm6579_vm9, %v10846_v4, %v10785_v25  ;;  %v10763_v6 = vpop.permute.xlu1 %10762  ;;  %v10141_v55 = vmul.f32 %v13478_v22, %v16814_v63 }
0x1b0e   : > { %10862 = vst.msk [vmem:[%s16923_s20 + $0x10] sm:$0xff] %vm563_vm0, %v10854_v50  ;;  %v16929_v10 = vsel %vm6413_vm8, %v16843_v12, %v10763_v6  ;;  %10780 = vrot.lane.b32.xlu0 %v10572_v40, %s17326_s18  ;;  %v10847_v12 = vsel %vm6413_vm8, %v16687_v23, %v16871_v52 }
0x1b0f   : > { %v13480_v42 = vpop.eup %13479  ;;  %10758 = vrot.lane.b32.xlu1 %v10141_v55, %s17335_s2  ;;  %s16943_s2 = scalar_lea.hbm %s17478_s14, %s11367_s30  ;;  %s13592_s30 = sshll.u32 %s13743_s24, 4  ;;  %s13593_s30 = int_to_ptr.vmem [resolvable:$false] %s13592_s30 }
0x1b10   : > { %v13482_v63 = vpop.eup %13481  ;;  %v10576_v59 = vmul.f32 %v13480_v42, %v16818_v36  ;;  %v17480_v36 = vld [vmem:[#allocation26_spill] sm:$0xff]  ;;  %s13594_s5 = scalar_lea.vmem %s13593_s30, 1024  ;;  %p13595_p9 = scmp.lt.s32.totalorder %s16921_s16, %s13593_s30 }
0x1b11   : > { %v13484_v24 = vpop.eup %13483  ;;  %v10787_v18 = vpop.permute.xlu1 %10786  ;;  %v10573_v43 = vmul.f32 %v13482_v63, %v16826_v15  ;;  %p13596_p12 = scmp.lt.s32.totalorder %s13594_s5, %s13588_s4 }
0x1b12   : > { %v10855_v20 = vsel %vm6579_vm9, %v10847_v12, %v10787_v18  ;;  %10788 = vrot.lane.b32.xlu0 %v10576_v59, %s17326_s18  ;;  %v10578_v15 = vmul.f32 %v13484_v24, %v17480_v36 }
0x1b13   : > { %10863 = vst.msk [vmem:[%s16923_s20 + $0x18] sm:$0xff] %vm563_vm0, %v10855_v20  ;;  %10782 = vrot.lane.b32.xlu1 %v10573_v43, %s17326_s18  ;;  %p13597_p1 = por %p13596_p12, %p13595_p9 }
0x1b14   : > { %v13486_v23 = vpop.eup %13485 }
0x1b15   : > { %p13598_p13 = pnand %p13597_p1, %p13591_p7 }
0x1b17   : > { %13601 = shalt.err (!%p13598_p13)
}
0x1b18   : > { %s13602_s7 = scalar_lea.hbm %s16943_s2, 512  ;;  %s13606_s15 = scalar_lea.hbm %s17478_s14, 1024 }
0x1b19   : > { %p13603_p6 = scmp.ne.s32.totalorder %s16943_s2, %s13602_s7  ;;  %p13607_p5 = scmp.lt.u32.totalorder %s16943_s2, %s17478_s14 }
0x1b1a   : > { %p13608_p8 = scmp.lt.u32.totalorder %s13606_s15, %s13602_s7  ;;  %p13610_p0 = scmp.lt.u32.totalorder %s13602_s7, %s16943_s2 }
0x1b1b   : > { %p13604_p10 = pnand %p13603_p6, %p17481_p2 }
0x1b1c   : > { %p13609_p11 = por %p13608_p8, %p13607_p5 }
0x1b1d   : > { %p13605_p4 = pneg %p13604_p10 }
0x1b1e   : > { %p13611_p3 = por %p13610_p0, %p13609_p11 }
0x1b20   : > { %p13612_p7 = pnand %p13611_p3, %p13605_p4 }
0x1b22   : > { %13615 = shalt.err (!%p13612_p7)
}
0x1b23   : > { %s13744_s4 = smov 128   ;;  %v10577_v52 = vmul.f32 %v13486_v23, %v16835_v2  ;;  %s10869_s30 = scalar_lea.sflag [#allocation4], %s14000_s12 }
0x1b24   : > { %12710 = dma.vmem_to_hbm [thread:$0]  (%p17481_p2), %s16921_s16, 512, %s16943_s2, %s16959_s3, %s13744_s4, %s13744_s4, %s17369_s21  }
0x1b25   : > { %s13616_s5 = scalar_lea.vmem %s16956_s1, 512  ;;  %s13745_s7 = smov [#allocation8]  }
0x1b26   : > { %p13617_p9 = scmp.ne.s32.totalorder %s16956_s1, %s13616_s5  ;;  %s13620_s17 = sshll.u32 %s13745_s7, 4  ;;  %s13621_s17 = int_to_ptr.vmem [resolvable:$false] %s13620_s17 }
0x1b27   : > { %s13622_s11 = scalar_lea.vmem %s13621_s17, 1024  ;;  %p13623_p13 = scmp.lt.s32.totalorder %s16956_s1, %s13621_s17 }
0x1b28   : > { %p13618_p12 = pnand %p13617_p9, %p17481_p2  ;;  %p13624_p6 = scmp.lt.s32.totalorder %s13622_s11, %s13616_s5 }
0x1b2a   : > { %p13619_p1 = pneg %p13618_p12  ;;  %p13625_p10 = por %p13624_p6, %p13623_p13 }
0x1b2c   : > { %p13626_p4 = pnand %p13625_p10, %p13619_p1 }
0x1b2e   : > { %13629 = shalt.err (!%p13626_p4)
}
0x1b2f   : > { %s13630_s16 = scalar_lea.hbm %s16950_s25, 512  ;;  %s13634_s0 = scalar_lea.hbm %s17479_s19, 1024 }
0x1b30   : > { %p13631_p5 = scmp.ne.s32.totalorder %s16950_s25, %s13630_s16  ;;  %p13635_p0 = scmp.lt.u32.totalorder %s16950_s25, %s17479_s19 }
0x1b31   : > { %p13636_p3 = scmp.lt.u32.totalorder %s13634_s0, %s13630_s16  ;;  %p13638_p9 = scmp.lt.u32.totalorder %s13630_s16, %s16950_s25 }
0x1b32   : > { %p13632_p8 = pnand %p13631_p5, %p17481_p2 }
0x1b33   : > { %p13637_p7 = por %p13636_p3, %p13635_p0 }
0x1b34   : > { %p13633_p11 = pneg %p13632_p8 }
0x1b35   : > { %p13639_p12 = por %p13638_p9, %p13637_p7 }
0x1b37   : > { %p13640_p1 = pnand %p13639_p12, %p13633_p11 }
0x1b39   : > { %13643 = shalt.err (!%p13640_p1)
}
0x1b3a   : > { %12709 = dma.vmem_to_hbm [thread:$0]  (%p17481_p2), %s16956_s1, 512, %s16950_s25, %s10869_s30, %s13744_s4, %s13744_s4, %s17369_s21   ;;  %v13488_v2 = vpop.eup %13487  ;;  %v17482_v19 = vld [vmem:[#allocation25_spill] sm:$0xff]  ;;  %v10621_v44 = vpop.permute.xlu0 %10620  ;;  %v17483_v31 = vld [vmem:[#allocation27_spill] sm:$0xff]  ;;  %v17484_v14 = vld [vmem:[#allocation40_spill] sm:$0xff] }
0x1b3b   : > { %10792 = vrot.lane.b32.xlu0 %v10578_v15, %s17326_s18  ;;  %10790 = vrot.lane.b32.xlu1 %v10577_v52, %s17326_s18  ;;  %v10579_v30 = vmul.f32 %v13488_v2, %v17482_v19  ;;  %v10623_v0 = vpop.permute.xlu1 %10622  ;;  %13489 = vrcp.f32 %v17483_v31  ;;  %v17485_v61 = vld [vmem:[#allocation38_spill] sm:$0xff]  ;;  %v17486_v56 = vld [vmem:[#allocation39_spill] sm:$0xff]  ;;  %v17488_v34 = vld [vmem:[#allocation61_spill] sm:$0xff]  ;;  %s10925_s12 = sshll.u32 %s16923_s20, 4  ;;  %s17495_s30 = sld [smem:[#allocation73_spill]]  ;;  %s17072_s12 = int_to_ptr.vmem [resolvable:$true] %s10925_s12 }
0x1b3c   : > { %13491 = vrcp.f32 %v17484_v14  ;;  %v17487_v1 = vld [vmem:[#allocation43_spill] sm:$0xff]  ;;  %v17489_v11 = vld [vmem:[#allocation45_spill] sm:$0xff]  ;;  %v17492_v4 = vld [vmem:[#allocation58_spill] sm:$0xff]  ;;  %s13644_s17 = scalar_lea.vmem %s17072_s12, 1024 }
0x1b3d   : > { %13493 = vrcp.f32 %v17485_v61  ;;  %v17490_v29 = vld [vmem:[#allocation23_spill] sm:$0xff]  ;;  %v17493_v24 = vld [vmem:[#allocation44_spill] sm:$0xff]  ;;  %v17494_v36 = vld [vmem:[#allocation62_spill] sm:$0xff]  ;;  %p13645_p13 = scmp.ne.s32.totalorder %s17072_s12, %s13644_s17 }
0x1b3e   : > { %13495 = vrcp.f32 %v17486_v56  ;;  %v17491_v57 = vld [vmem:[#allocation63_spill] sm:$0xff] }
0x1b3f   : > { %10794 = vrot.lane.b32.xlu1 %v10579_v30, %s17326_s18  ;;  %s11370_s18 = sshll.u32 %s13838_s29, 10  ;;  %p13646_p6 = pnand %p13645_p13, %p17481_p2 }
0x1b40   : > { %s13746_s29 = smov [#allocation11]  }
0x1b41   : > { %s17077_s5 = scalar_lea.hbm %s17495_s30, %s11370_s18  ;;  %p13647_p10 = pneg %p13646_p6 }
0x1b42   : > { %s13648_s11 = sshll.u32 %s13746_s29, 4  ;;  %s13649_s11 = int_to_ptr.vmem [resolvable:$false] %s13648_s11 }
0x1b43   : > { %s13650_s16 = scalar_lea.vmem %s13649_s11, 2048  ;;  %p13651_p4 = scmp.lt.s32.totalorder %s17072_s12, %s13649_s11 }
0x1b44   : > { %p13652_p5 = scmp.lt.s32.totalorder %s13650_s16, %s13644_s17 }
0x1b45   : > { %v13490_v46 = vpop.eup %13489 }
0x1b46   : > { %v7520_v49 = vmul.f32 %v13490_v46, %v17487_v1  ;;  %v13492_v53 = vpop.eup %13491  ;;  %p13653_p8 = por %p13652_p5, %p13651_p4 }
0x1b47   : > { %v13494_v8 = vpop.eup %13493  ;;  %v7524_v17 = vmul.f32 %v13492_v53, %v17489_v11 }
0x1b48   : > { %v10804_v48 = vsel %vm826_vm2, %v7520_v49, %v17488_v34  ;;  %v7521_v35 = vmul.f32 %v13494_v8, %v17490_v29  ;;  %v13496_v27 = vpop.eup %13495  ;;  %p13654_p11 = pnand %p13653_p8, %p13647_p10 }
0x1b49   : > { %v10812_v54 = vsel %vm1143_vm4, %v10804_v48, %v10621_v44  ;;  %v10808_v22 = vsel %vm826_vm2, %v7524_v17, %v17491_v57  ;;  %v7525_v12 = vmul.f32 %v13496_v27, %v17493_v24 }
0x1b4a   : > { %v10805_v25 = vsel %vm826_vm2, %v7521_v35, %v17492_v4 }
0x1b4b   : > { %v10813_v55 = vsel %vm1143_vm4, %v10805_v25, %v10623_v0  ;;  %v10809_v15 = vsel %vm826_vm2, %v7525_v12, %v17494_v36 }
0x1b5c   : > { %v10629_v51 = vpop.permute.xlu0 %10628 }
0x1b5d   : > { %v10816_v40 = vsel %vm1143_vm4, %v10808_v22, %v10629_v51 }
0x1b60   : > { %v10653_v58 = vpop.permute.xlu0 %10652 }
0x1b61   : > { %v10631_v32 = vpop.permute.xlu1 %10630  ;;  %v10820_v28 = vsel %vm6561_vm5, %v10812_v54, %v10653_v58 }
0x1b62   : > { %v10817_v30 = vsel %vm1143_vm4, %v10809_v15, %v10631_v32 }
0x1b64   : > { %v10661_v38 = vpop.permute.xlu0 %10660 }
0x1b65   : > { %v10655_v9 = vpop.permute.xlu1 %10654  ;;  %v10824_v42 = vsel %vm6561_vm5, %v10816_v40, %v10661_v38 }
0x1b66   : > { %v10821_v18 = vsel %vm6561_vm5, %v10813_v55, %v10655_v9 }
0x1b68   : > { %v10685_v45 = vpop.permute.xlu0 %10684 }
0x1b69   : > { %v10663_v33 = vpop.permute.xlu1 %10662  ;;  %v10828_v41 = vsel %vm6408_vm6, %v10820_v28, %v10685_v45 }
0x1b6a   : > { %v10825_v58 = vsel %vm6561_vm5, %v10817_v30, %v10663_v33 }
0x1b6c   : > { %v10693_v37 = vpop.permute.xlu0 %10692 }
0x1b6d   : > { %v10687_v5 = vpop.permute.xlu1 %10686  ;;  %v10832_v43 = vsel %vm6408_vm6, %v10824_v42, %v10693_v37 }
0x1b6e   : > { %v10829_v20 = vsel %vm6408_vm6, %v10821_v18, %v10687_v5 }
0x1b70   : > { %v10717_v47 = vpop.permute.xlu0 %10716 }
0x1b71   : > { %v10695_v16 = vpop.permute.xlu1 %10694  ;;  %v10836_v60 = vsel %vm6570_vm7, %v10828_v41, %v10717_v47 }
0x1b72   : > { %v10833_v9 = vsel %vm6408_vm6, %v10825_v58, %v10695_v16 }
0x1b74   : > { %v10725_v21 = vpop.permute.xlu0 %10724 }
0x1b75   : > { %v10719_v26 = vpop.permute.xlu1 %10718  ;;  %v10840_v23 = vsel %vm6570_vm7, %v10832_v43, %v10725_v21 }
0x1b76   : > { %v10837_v52 = vsel %vm6570_vm7, %v10829_v20, %v10719_v26 }
0x1b78   : > { %v10749_v13 = vpop.permute.xlu0 %10748 }
0x1b79   : > { %v10727_v3 = vpop.permute.xlu1 %10726  ;;  %v10844_v50 = vsel %vm6413_vm8, %v10836_v60, %v10749_v13 }
0x1b7a   : > { %v10841_v32 = vsel %vm6570_vm7, %v10833_v9, %v10727_v3 }
0x1b7c   : > { %v10757_v39 = vpop.permute.xlu0 %10756 }
0x1b7d   : > { %v10751_v7 = vpop.permute.xlu1 %10750  ;;  %v10848_v2 = vsel %vm6413_vm8, %v10840_v23, %v10757_v39 }
0x1b7e   : > { %v10845_v44 = vsel %vm6413_vm8, %v10837_v52, %v10751_v7 }
0x1b80   : > { %v10781_v6 = vpop.permute.xlu0 %10780 }
0x1b81   : > { %v10852_v63 = vsel %vm6579_vm9, %v10844_v50, %v10781_v6  ;;  %v10759_v59 = vpop.permute.xlu1 %10758 }
0x1b82   : > { %10860 = vst.msk [vmem:[%s16923_s20] sm:$0xff] %vm563_vm0, %v10852_v63  ;;  %v10849_v31 = vsel %vm6413_vm8, %v10841_v32, %v10759_v59 }
0x1b84   : > { %v10789_v19 = vpop.permute.xlu0 %10788 }
0x1b85   : > { %v10856_v51 = vsel %vm6579_vm9, %v10848_v2, %v10789_v19  ;;  %v10783_v0 = vpop.permute.xlu1 %10782 }
0x1b86   : > { %10864 = vst.msk [vmem:[%s16923_s20 + $0x20] sm:$0xff] %vm563_vm0, %v10856_v51  ;;  %v10853_v38 = vsel %vm6579_vm9, %v10845_v44, %v10783_v0 }
0x1b87   : > { %10861 = vst.msk [vmem:[%s16923_s20 + $0x8] sm:$0xff] %vm563_vm0, %v10853_v38 }
0x1bad   : > { %v10793_v45 = vpop.permute.xlu0 %10792  ;;  %v10791_v5 = vpop.permute.xlu1 %10790 }
0x1bae   : > { %v10858_v37 = vsel %vm6579_vm9, %v16908_v62, %v10793_v45  ;;  %v10857_v33 = vsel %vm6579_vm9, %v10849_v31, %v10791_v5 }
0x1baf   : > { %10866 = vst.msk [vmem:[%s16923_s20 + $0x30] sm:$0xff] %vm563_vm0, %v10858_v37  ;;  %10865 = vst.msk [vmem:[%s16923_s20 + $0x28] sm:$0xff] %vm563_vm0, %v10857_v33 }
0x1bb1   : > { %v10795_v14 = vpop.permute.xlu1 %10794 }
0x1bb2   : > { %v10859_v62 = vsel %vm6579_vm9, %v16929_v10, %v10795_v14 }
0x1bb3   : > { %10867 = vst.msk [vmem:[%s16923_s20 + $0x38] sm:$0xff] %vm563_vm0, %v10859_v62 }
0x1bb4   : > { %13657 = shalt.err (!%p13654_p11)
}
0x1bb5   : > { %s13658_s20 = scalar_lea.hbm %s17077_s5, 1024  ;;  %s13662_s0 = scalar_lea.hbm %s17495_s30, 2048 }
0x1bb6   : > { %p13659_p0 = scmp.ne.s32.totalorder %s17077_s5, %s13658_s20  ;;  %p13663_p9 = scmp.lt.u32.totalorder %s17077_s5, %s17495_s30 }
0x1bb7   : > { %p13664_p12 = scmp.lt.u32.totalorder %s13662_s0, %s13658_s20  ;;  %p13666_p13 = scmp.lt.u32.totalorder %s13658_s20, %s17077_s5 }
0x1bb8   : > { %p13660_p3 = pnand %p13659_p0, %p17481_p2 }
0x1bb9   : > { %p13665_p1 = por %p13664_p12, %p13663_p9 }
0x1bba   : > { %p13661_p7 = pneg %p13660_p3 }
0x1bbb   : > { %p13667_p6 = por %p13666_p13, %p13665_p1 }
0x1bbd   : > { %p13668_p10 = pnand %p13667_p6, %p13661_p7 }
0x1bbf   : > { %13671 = shalt.err (!%p13668_p10)
}
0x1bc0   : > { %12711 = dma.vmem_to_hbm [thread:$0]  (%p17481_p2), %s17072_s12, 1024, %s17077_s5, %s16959_s3, %s13744_s4, %s13744_s4, %s17369_s21  }
0x1bc1 PF: > { %s17496_s18 = sld [smem:[#allocation16_spill]]  ;;  %s17497_s25 = sld [smem:[#allocation17_spill]] }
0x1bc2   : > { %p17499_p5 = scmp.ge.s32.totalorder %s13718_s28, 2 }
0x1bc7   : > { %s10940_s1 = sand.u32 1, %s17496_s18   ;;  %p17498_p4 = scmp.ne.s32.totalorder %s17497_s25, 0 }
0x1bc8   : > { %s10941_s17 = scalar_lea.sflag [#allocation4], %s10940_s1 }
0x1bc9   : > { %p12727_p8 = pnand %p17499_p5, %p17498_p4 }
0x1bcb   : > { %13697 = dma.done.wait (!%p12727_p8), %s10941_s17, 512  }
0x1bcc   : > { %13699 = vsyncadd (!%p12727_p8), %s10941_s17, 4294966784  ;;  %s17500_s22 = sadd.s32 4294967294, %s13718_s28  }
0x1bcd   : > { %s10949_s29 = sand.u32 1, %s17500_s22  }
0x1bce   : > { %s10950_s11 = scalar_lea.sflag [#allocation10], %s10949_s29 }
0x1bcf   : > { %13701 = dma.done.wait (!%p12727_p8), %s10950_s11, 1536  }
0x1bd0   : > { %13703 = vsyncadd (!%p12727_p8), %s10950_s11, 4294965760  ;;  %p31_p2 = scmp.ge.s32.totalorder %s13935_s13, 4   ;;  %s17501_s25 = smov %s13710_s26 }
0x1bd1   : > { %s17502_s26 = smov %s13714_s27  ;;  %s17503_s27 = smov %s13951_s23 }
0x1bd2   : > { %s17504_s28 = smov %s13935_s13  ;;  %33 = sbr.rel (!%p31_p2) target bundleno = 19 (0x13), region = 152 }
0x1bd9   :  { %10964 = vsyncpa [#allocation3], 1 }
0x1bda   :  { %10966 = vsyncpa [#allocation3 + $0x1], 1 }
0x1bdb   :  { %10967 = vsyncpa [#allocation6], 1 }
0x1bdc   :  { %10968 = vsyncpa [#allocation4], 1 }
0x1bdd   :  { %10970 = vsyncpa [#allocation4 + $0x1], 1 }
0x1bde   :  { %10971 = vsyncpa [#allocation10], 1 }
0x1bdf   :  { %10973 = vsyncpa [#allocation10 + $0x1], 1 }

</bundles_post_ra>
